<compile_context>
chip_gen: v7x
topology: tpu7x:2x2x1
jax: 0.10.0
libtpu: 0.0.40
codegen_flags: <defaults>
</compile_context>

<pallas_src>
import functools

import jax
import jax.numpy as jnp
from jax.experimental import pallas as pl
from jax.experimental.pallas import tpu as pltpu


def _round_up(a, m):
    return (a + m - 1) // m * m


_MAX_TM = 1024   # rows per matmul tile (VMEM-safe on v7x's 64 MiB as well)
_BN_EPS = 1e-5


# ----------------------------------------------------------------------------
# Pallas kernels
# ----------------------------------------------------------------------------
def _mm_bias_kernel(x_ref, w_ref, b_ref, y_ref, *, alpha):
    """y = act(x) @ w + b.  act = LeakyReLU(alpha) fused on the patch tile
    (alpha=None -> no activation)."""
    xv = x_ref[...]
    if alpha is not None:
        xv = jnp.where(xv >= 0, xv, alpha * xv)
    acc = jnp.dot(xv, w_ref[...], preferred_element_type=jnp.float32)
    y_ref[...] = acc + b_ref[...]


def _mm_bnstat_kernel(x_ref, w_ref, y_ref, sum_ref, sq_ref, *, alpha):
    """y = act(x) @ w (un-normalized), plus per-tile column sum / sum-of-squares
    so the caller can do the cross-tile BatchNorm reduction."""
    xv = x_ref[...]
    if alpha is not None:
        xv = jnp.where(xv >= 0, xv, alpha * xv)
    acc = jnp.dot(xv, w_ref[...], preferred_element_type=jnp.float32)
    y_ref[...] = acc
    s = jnp.sum(acc, axis=0, keepdims=True)
    q = jnp.sum(acc * acc, axis=0, keepdims=True)
    sum_ref[...] = jnp.broadcast_to(s, sum_ref.shape)
    sq_ref[...] = jnp.broadcast_to(q, sq_ref.shape)


def _affine_kernel(y_ref, s_ref, t_ref, o_ref):
    o_ref[...] = y_ref[...] * s_ref[...] + t_ref[...]


def _dwt_down_kernel(x1_ref, x2_ref, x3_ref, x4_ref,
                     wl_ref, bl_ref, wh1_ref, wh2_ref, wh3_ref, bh_ref,
                     low_ref, high_ref):
    """Haar DWT butterfly + the DWT_transform 1x1 projections, fused."""
    a = x1_ref[...] * 0.5
    b = x2_ref[...] * 0.5
    c = x3_ref[...] * 0.5
    d = x4_ref[...] * 0.5
    ll = a + b + c + d
    hl = -a - b + c + d
    lh = -a + b - c + d
    hh = a - b - c + d
    low_ref[...] = (jnp.dot(ll, wl_ref[...], preferred_element_type=jnp.float32)
                    + bl_ref[...])
    high = (jnp.dot(hl, wh1_ref[...], preferred_element_type=jnp.float32)
            + jnp.dot(lh, wh2_ref[...], preferred_element_type=jnp.float32)
            + jnp.dot(hh, wh3_ref[...], preferred_element_type=jnp.float32))
    high_ref[...] = high + bh_ref[...]


# ----------------------------------------------------------------------------
# Tiled matmul wrappers
# ----------------------------------------------------------------------------
def _tiles(M):
    Mp = _round_up(M, 8)
    tm = min(_MAX_TM, Mp)
    Mp = _round_up(Mp, tm)
    return Mp, tm


def _matmul_bias(cols, w_mat, bias, alpha):
    """(M,K) @ (K,N) + bias, with the pre-conv activation fused.  f32 output."""
    M, K = cols.shape
    N = w_mat.shape[1]
    Mp, tm = _tiles(M)
    Kp, Np = _round_up(K, 128), _round_up(N, 128)
    xp = jnp.pad(cols.astype(jnp.bfloat16), ((0, Mp - M), (0, Kp - K)))
    wp = jnp.pad(w_mat.astype(jnp.bfloat16), ((0, Kp - K), (0, Np - N)))
    bp = jnp.pad(bias.astype(jnp.float32).reshape(1, N), ((0, 0), (0, Np - N)))
    y = pl.pallas_call(
        functools.partial(_mm_bias_kernel, alpha=alpha),
        out_shape=jax.ShapeDtypeStruct((Mp, Np), jnp.float32),
        grid=(Mp // tm,),
        in_specs=[pl.BlockSpec((tm, Kp), lambda i: (i, 0)),
                  pl.BlockSpec((Kp, Np), lambda i: (0, 0)),
                  pl.BlockSpec((1, Np), lambda i: (0, 0))],
        out_specs=pl.BlockSpec((tm, Np), lambda i: (i, 0)),
        compiler_params=pltpu.CompilerParams(dimension_semantics=("parallel",)),
    )(xp, wp, bp)
    return y[:M, :N]


def _matmul_bn(cols, w_mat, gamma, beta, alpha, m_real, groups=1):
    """(M,K) @ (K,N), then BatchNorm with batch statistics pooled over all rows
    (and over `groups` repeats of the channel axis -- used by the phase-
    decomposed transposed conv), then the per-channel affine.  f32 output."""
    M, K = cols.shape
    N = w_mat.shape[1]
    Mp, tm = _tiles(M)
    Kp, Np = _round_up(K, 128), _round_up(N, 128)
    Mg = Mp // tm
    xp = jnp.pad(cols.astype(jnp.bfloat16), ((0, Mp - M), (0, Kp - K)))
    wp = jnp.pad(w_mat.astype(jnp.bfloat16), ((0, Kp - K), (0, Np - N)))
    y, psum, psq = pl.pallas_call(
        functools.partial(_mm_bnstat_kernel, alpha=alpha),
        out_shape=(jax.ShapeDtypeStruct((Mp, Np), jnp.float32),
                   jax.ShapeDtypeStruct((Mg, 8, Np), jnp.float32),
                   jax.ShapeDtypeStruct((Mg, 8, Np), jnp.float32)),
        grid=(Mg,),
        in_specs=[pl.BlockSpec((tm, Kp), lambda i: (i, 0)),
                  pl.BlockSpec((Kp, Np), lambda i: (0, 0))],
        out_specs=(pl.BlockSpec((tm, Np), lambda i: (i, 0)),
                   pl.BlockSpec((1, 8, Np), lambda i: (i, 0, 0)),
                   pl.BlockSpec((1, 8, Np), lambda i: (i, 0, 0))),
        compiler_params=pltpu.CompilerParams(dimension_semantics=("parallel",)),
    )(xp, wp)

    # Cross-tile BN reduction (tiny: Mg x N) + scale/shift math in plain JAX.
    col_sum = jnp.sum(psum[:, 0, :N], axis=0)
    col_sq = jnp.sum(psq[:, 0, :N], axis=0)
    C = N // groups
    s = col_sum.reshape(groups, C).sum(axis=0)
    q = col_sq.reshape(groups, C).sum(axis=0)
    mean = s / m_real
    var = jnp.maximum(q / m_real - mean * mean, 0.0)   # clamp against cancellation
    scale_c = gamma * jax.lax.rsqrt(var + _BN_EPS)
    shift_c = beta - mean * scale_c
    scale = jnp.tile(scale_c, groups)
    shift = jnp.tile(shift_c, groups)

    # Tiled affine epilogue (normalize + gamma/beta), pipelined over M tiles.
    sp = jnp.pad(scale.reshape(1, N), ((0, 0), (0, Np - N)))
    hp = jnp.pad(shift.reshape(1, N), ((0, 0), (0, Np - N)))
    out = pl.pallas_call(
        _affine_kernel,
        out_shape=jax.ShapeDtypeStruct((Mp, Np), jnp.float32),
        grid=(Mg,),
        in_specs=[pl.BlockSpec((tm, Np), lambda i: (i, 0)),
                  pl.BlockSpec((1, Np), lambda i: (0, 0)),
                  pl.BlockSpec((1, Np), lambda i: (0, 0))],
        out_specs=pl.BlockSpec((tm, Np), lambda i: (i, 0)),
        compiler_params=pltpu.CompilerParams(dimension_semantics=("parallel",)),
    )(y, sp, hp)
    return out[:M, :N]


# ----------------------------------------------------------------------------
# Conv / transposed-conv / DWT wrappers (glue in plain JAX, math in Pallas)
# ----------------------------------------------------------------------------
def _im2col_nhwc(x, k, stride, pad):
    """x: (B,H,W,C) -> patches (B*Ho*Wo, k*k*C) with (tap, channel) K-order."""
    B, H, W, C = x.shape
    xp = jnp.pad(x, ((0, 0), (pad, pad), (pad, pad), (0, 0)))
    Ho = (H + 2 * pad - k) // stride + 1
    Wo = (W + 2 * pad - k) // stride + 1
    taps = []
    for di in range(k):
        for dj in range(k):
            taps.append(xp[:, di:di + stride * Ho:stride, dj:dj + stride * Wo:stride, :])
    p = jnp.stack(taps, axis=3)                    # (B, Ho, Wo, k*k, C)
    return p.reshape(B * Ho * Wo, k * k * C), Ho, Wo


def conv2d(x, w, *, stride=1, pad=1, alpha=None, bn_gamma=None, bn_beta=None, bias=None):
    """x: NHWC.  w: (Cout, Cin, k, k) PyTorch Conv2d layout.
    alpha: fused pre-conv LeakyReLU slope (0.0 = ReLU, None = none).
    bn_gamma/bn_beta: fused batch-stat BatchNorm (the conv bias then cancels)."""
    B = x.shape[0]
    Cout, Cin, k, _ = w.shape
    cols, Ho, Wo = _im2col_nhwc(x.astype(jnp.bfloat16), k, stride, pad)
    w_mat = w.transpose(2, 3, 1, 0).reshape(k * k * Cin, Cout)
    if bn_gamma is not None:
        out = _matmul_bn(cols, w_mat, bn_gamma, bn_beta, alpha, float(B * Ho * Wo))
    else:
        b = bias if bias is not None else jnp.zeros((Cout,), jnp.float32)
        out = _matmul_bias(cols, w_mat, b, alpha)
    return out.reshape(B, Ho, Wo, Cout)


def conv_transpose2d(x, w_t, *, alpha, bn_gamma, bn_beta):
    """PyTorch ConvTranspose2d(k=4, stride=2, pad=1, bias=False) + batch-stat BN,
    with the preceding ReLU fused.  Phase decomposition: the four output
    parities are produced by one stride-1 3x3 conv whose (9*Cin, 4*Cout) weight
    embeds each phase's 2x2 sub-kernel (the 75%-zeros dilated input is never
    materialized)."""
    B, H, W, Cin = x.shape
    Cout = w_t.shape[1]
    wc = jnp.zeros((3, 3, Cin, 2, 2, Cout), jnp.float32)
    for py in (0, 1):
        for px in (0, 1):
            for a in (0, 1):
                for b in (0, 1):
                    ky, kx = 3 - 2 * a - py, 3 - 2 * b - px
                    wc = wc.at[a + py, b + px, :, py, px, :].set(w_t[:, :, ky, kx])
    w_mat = wc.reshape(9 * Cin, 4 * Cout)
    cols, _, _ = _im2col_nhwc(x.astype(jnp.bfloat16), 3, 1, 1)        # Ho=H, Wo=W
    y = _matmul_bn(cols, w_mat, bn_gamma, bn_beta, alpha,
                   float(B * 2 * H * 2 * W), groups=4)                # (B*H*W, 4*Cout)
    y = y.reshape(B, H, W, 2, 2, Cout).transpose(0, 1, 3, 2, 4, 5)
    return y.reshape(B, 2 * H, 2 * W, Cout)


def dwt_transform(x, w_low, b_low, w_high, b_high, *, tile=512):
    """Fused Haar DWT + the two 1x1 projections (DWT_transform).  x: NHWC."""
    B, H, W, C = x.shape
    H2, W2 = H // 2, W // 2
    CL, CH = w_low.shape[0], w_high.shape[0]
    P = B * H2 * W2

    def quarter(i, j):
        return x[:, i::2, j::2, :].reshape(P, C)

    x1, x2, x3, x4 = quarter(0, 0), quarter(1, 0), quarter(0, 1), quarter(1, 1)
    Cp = _round_up(C, 128)
    Np = 128
    tp = min(tile, _round_up(P, 8))
    Pp = _round_up(P, tp)

    def prep(a):
        return jnp.pad(a, ((0, Pp - P), (0, Cp - C)))

    wl = jnp.pad(w_low.reshape(CL, C).T, ((0, Cp - C), (0, Np - CL)))
    bl = jnp.pad(b_low.reshape(1, CL), ((0, 0), (0, Np - CL)))
    wh = w_high.reshape(CH, 3 * C)
    wh1 = jnp.pad(wh[:, 0 * C:1 * C].T, ((0, Cp - C), (0, Np - CH)))
    wh2 = jnp.pad(wh[:, 1 * C:2 * C].T, ((0, Cp - C), (0, Np - CH)))
    wh3 = jnp.pad(wh[:, 2 * C:3 * C].T, ((0, Cp - C), (0, Np - CH)))
    bh = jnp.pad(b_high.reshape(1, CH), ((0, 0), (0, Np - CH)))

    x_spec = pl.BlockSpec((tp, Cp), lambda i: (i, 0))
    w_spec = pl.BlockSpec((Cp, Np), lambda i: (0, 0))
    b_spec = pl.BlockSpec((1, Np), lambda i: (0, 0))
    o_spec = pl.BlockSpec((tp, Np), lambda i: (i, 0))
    low, high = pl.pallas_call(
        _dwt_down_kernel,
        out_shape=(jax.ShapeDtypeStruct((Pp, Np), jnp.float32),
                   jax.ShapeDtypeStruct((Pp, Np), jnp.float32)),
        grid=(Pp // tp,),
        in_specs=[x_spec, x_spec, x_spec, x_spec,
                  w_spec, b_spec, w_spec, w_spec, w_spec, b_spec],
        out_specs=(o_spec, o_spec),
        compiler_params=pltpu.CompilerParams(dimension_semantics=("parallel",)),
    )(prep(x1), prep(x2), prep(x3), prep(x4), wl, bl, wh1, wh2, wh3, bh)
    low = low[:P, :CL].reshape(B, H2, W2, CL)
    high = high[:P, :CH].reshape(B, H2, W2, CH)
    return low, high


# ----------------------------------------------------------------------------
# Parameters (deterministic synthetic init, PyTorch weight layouts) + forward
# ----------------------------------------------------------------------------
def init_params(key, nf=16, output_nc=3):
    ks = iter(jax.random.split(key, 64))

    def nrm(shape, s=0.1):
        return jax.random.normal(next(ks), shape, jnp.float32) * s

    p = {}
    p["w_init"] = nrm((16, 3, 3, 3))                      # initial_conv (bias cancels under BN)
    p["bn1_g"], p["bn1_b"] = 1.0 + nrm((16,)), nrm((16,))
    p["w_l1"] = nrm((nf - 1, 16, 4, 4))                   # layer1: conv only
    p["w_d0l"], p["b_d0l"] = nrm((1, 3, 1, 1)), nrm((1,))     # DWT_down_0
    p["w_d0h"], p["b_d0h"] = nrm((1, 9, 1, 1)), nrm((1,))
    p["w_l2"] = nrm((nf * 2 - 2, nf, 4, 4))               # layer2
    p["l2_g"], p["l2_b"] = 1.0 + nrm((nf * 2 - 2,)), nrm((nf * 2 - 2,))
    p["w_d1l"], p["b_d1l"] = nrm((2, 16, 1, 1)), nrm((2,))    # DWT_down_1
    p["w_d1h"], p["b_d1h"] = nrm((2, 48, 1, 1)), nrm((2,))
    p["w_l3"] = nrm((nf * 4 - 4, nf * 2, 4, 4))           # layer3
    p["l3_g"], p["l3_b"] = 1.0 + nrm((nf * 4 - 4,)), nrm((nf * 4 - 4,))
    p["w_d2l"], p["b_d2l"] = nrm((4, 32, 1, 1)), nrm((4,))    # DWT_down_2
    p["w_d2h"], p["b_d2h"] = nrm((4, 96, 1, 1)), nrm((4,))
    p["w_dl6"] = nrm((nf * 4, nf * 2, 4, 4))              # dlayer6 (Cin, Cout, 4, 4)
    p["dl6_g"], p["dl6_b"] = 1.0 + nrm((nf * 2,)), nrm((nf * 2,))
    p["w_dl2"] = nrm((nf * 4 + 2, nf, 4, 4))              # dlayer2
    p["dl2_g"], p["dl2_b"] = 1.0 + nrm((nf,)), nrm((nf,))
    p["w_dl1"] = nrm((nf * 2 + 1, nf * 2, 4, 4))          # dlayer1
    p["dl1_g"], p["dl1_b"] = 1.0 + nrm((nf * 2,)), nrm((nf * 2,))
    p["w_t1"] = nrm((32, 48, 3, 3))                       # tail_conv1 (bias cancels under BN)
    p["bn2_g"], p["bn2_b"] = 1.0 + nrm((32,)), nrm((32,))
    p["w_t2"], p["b_t2"] = nrm((output_nc, nf * 2, 3, 3)), nrm((output_nc,))
    return p


def forward(params, x_nchw):
    p = params
    x = x_nchw.transpose(0, 2, 3, 1)                       # NCHW -> NHWC

    # initial_conv + bn1
    conv_start = conv2d(x, p["w_init"], stride=1, pad=1,
                        bn_gamma=p["bn1_g"], bn_beta=p["bn1_b"])
    # layer1 (conv only)
    conv_out1 = conv2d(conv_start, p["w_l1"], stride=2, pad=1)
    dwt_low_0, dwt_high_0 = dwt_transform(x, p["w_d0l"], p["b_d0l"], p["w_d0h"], p["b_d0h"])
    out1 = jnp.concatenate([conv_out1, dwt_low_0], axis=-1)
    # layer2: LeakyReLU(0.2) (fused) -> conv -> BN
    conv_out2 = conv2d(out1, p["w_l2"], stride=2, pad=1, alpha=0.2,
                       bn_gamma=p["l2_g"], bn_beta=p["l2_b"])
    dwt_low_1, dwt_high_1 = dwt_transform(out1, p["w_d1l"], p["b_d1l"], p["w_d1h"], p["b_d1h"])
    out2 = jnp.concatenate([conv_out2, dwt_low_1], axis=-1)
    # layer3
    conv_out3 = conv2d(out2, p["w_l3"], stride=2, pad=1, alpha=0.2,
                       bn_gamma=p["l3_g"], bn_beta=p["l3_b"])
    dwt_low_2, _dwt_high_2 = dwt_transform(out2, p["w_d2l"], p["b_d2l"], p["w_d2h"], p["b_d2h"])
    out3 = jnp.concatenate([conv_out3, dwt_low_2], axis=-1)
    # TODO(synk): myFFCResblock definition not provided -> identity pass-through.
    out3_ffc = out3
    # dlayer6: ReLU (fused) -> ConvT -> BN
    dout3 = conv_transpose2d(out3_ffc, p["w_dl6"], alpha=0.0,
                             bn_gamma=p["dl6_g"], bn_beta=p["dl6_b"])
    Tout3_out2 = jnp.concatenate([dout3, out2, dwt_high_1], axis=-1)
    # dlayer2
    Tout2 = conv_transpose2d(Tout3_out2, p["w_dl2"], alpha=0.0,
                             bn_gamma=p["dl2_g"], bn_beta=p["dl2_b"])
    Tout2_out1 = jnp.concatenate([Tout2, out1, dwt_high_0], axis=-1)
    # dlayer1
    Tout1 = conv_transpose2d(Tout2_out1, p["w_dl1"], alpha=0.0,
                             bn_gamma=p["dl1_g"], bn_beta=p["dl1_b"])
    Tout1_outinit = jnp.concatenate([Tout1, conv_start], axis=-1)
    # tail
    tail2 = conv2d(Tout1_outinit, p["w_t1"], stride=1, pad=1,
                   bn_gamma=p["bn2_g"], bn_beta=p["bn2_b"])
    dout1 = conv2d(tail2, p["w_t2"], stride=1, pad=1, bias=p["b_t2"])
    return dout1.transpose(0, 3, 1, 2)                     # NHWC -> NCHW


if __name__ == "__main__":
    x = jax.random.normal(jax.random.PRNGKey(0), (2, 3, 16, 16), jnp.float32)  # NCHW
    params = init_params(jax.random.PRNGKey(1))
    out = jax.jit(forward)(params, x)
    out = jax.block_until_ready(out)
    assert out.shape == (2, 3, 16, 16) and out.dtype == jnp.float32
    assert bool(jnp.all(jnp.isfinite(out)))
    print("KERNEL_OK")
</pallas_src>

<mosaic_0001>
module attributes {stable_mosaic.version = 11 : i64} {
  func.func @_mm_bnstat_kernel(%arg0: i32, %arg1: memref<512x128xbf16, #tpu.memory_space<vmem>>, %arg2: memref<128x128xbf16, #tpu.memory_space<vmem>>, %arg3: memref<512x128xf32, #tpu.memory_space<vmem>>, %arg4: memref<1x8x128xf32, #tpu.memory_space<vmem>>, %arg5: memref<1x8x128xf32, #tpu.memory_space<vmem>>) attributes {dimension_semantics = [#tpu.dimension_semantics<parallel>], iteration_bounds = array<i64: 1>, scalar_prefetch = 0 : i64, scratch_operands = 0 : i64, tpu.core_type = #tpu.core_type<tc>, window_params = [{transform_indices = @transform_0, window_bounds = array<i64: 512, 128>}, {pipeline_mode = #tpu.pipeline_mode<synchronous>, transform_indices = @transform_1, window_bounds = array<i64: 128, 128>}, {transform_indices = @transform_2, window_bounds = array<i64: 512, 128>}, {transform_indices = @transform_3, window_bounds = array<i64: 1, 8, 128>}, {transform_indices = @transform_4, window_bounds = array<i64: 1, 8, 128>}]} {
    %c0 = arith.constant 0 : index
    %c0_0 = arith.constant 0 : index
    %0 = vector.load %arg1[%c0, %c0_0] : memref<512x128xbf16, #tpu.memory_space<vmem>>, vector<512x128xbf16>
    %c0_1 = arith.constant 0 : index
    %c0_2 = arith.constant 0 : index
    %1 = vector.load %arg2[%c0_1, %c0_2] : memref<128x128xbf16, #tpu.memory_space<vmem>>, vector<128x128xbf16>
    %cst = arith.constant dense<0.000000e+00> : vector<512x128xf32>
    %2 = tpu.matmul %0, %1, %cst {dimension_numbers = #tpu.dot_dimension_numbers<[1], [0], [0], [1], [0, 0, 1, 1], [], []>} : vector<512x128xbf16>, vector<128x128xbf16>, vector<512x128xf32> -> vector<512x128xf32>
    %c0_3 = arith.constant 0 : index
    %c0_4 = arith.constant 0 : index
    %3 = vector.load %arg3[%c0_3, %c0_4] : memref<512x128xf32, #tpu.memory_space<vmem>>, vector<512x128xf32>
    tpu.vector_store %arg3[%c0_3, %c0_4], %2 {strides = array<i32>} : memref<512x128xf32, #tpu.memory_space<vmem>>, vector<512x128xf32>,
    %cst_5 = arith.constant dense<0.000000e+00> : vector<128xf32>
    %4 = vector.multi_reduction <add>, %2, %cst_5 [0] : vector<512x128xf32> to vector<128xf32>
    %5 = vector.shape_cast %4 : vector<128xf32> to vector<1x128xf32>
    %6 = arith.mulf %2, %2 : vector<512x128xf32>
    %cst_6 = arith.constant dense<0.000000e+00> : vector<128xf32>
    %7 = vector.multi_reduction <add>, %6, %cst_6 [0] : vector<512x128xf32> to vector<128xf32>
    %8 = vector.shape_cast %7 : vector<128xf32> to vector<1x128xf32>
    %9 = vector.shape_cast %5 : vector<1x128xf32> to vector<1x1x128xf32>
    %10 = vector.broadcast %9 : vector<1x1x128xf32> to vector<1x8x128xf32>
    %c0_7 = arith.constant 0 : index
    %c0_8 = arith.constant 0 : index
    %c0_9 = arith.constant 0 : index
    %11 = vector.load %arg4[%c0_7, %c0_8, %c0_9] : memref<1x8x128xf32, #tpu.memory_space<vmem>>, vector<1x8x128xf32>
    tpu.vector_store %arg4[%c0_7, %c0_8, %c0_9], %10 {strides = array<i32>} : memref<1x8x128xf32, #tpu.memory_space<vmem>>, vector<1x8x128xf32>,
    %12 = vector.shape_cast %8 : vector<1x128xf32> to vector<1x1x128xf32>
    %13 = vector.broadcast %12 : vector<1x1x128xf32> to vector<1x8x128xf32>
    %c0_10 = arith.constant 0 : index
    %c0_11 = arith.constant 0 : index
    %c0_12 = arith.constant 0 : index
    %14 = vector.load %arg5[%c0_10, %c0_11, %c0_12] : memref<1x8x128xf32, #tpu.memory_space<vmem>>, vector<1x8x128xf32>
    tpu.vector_store %arg5[%c0_10, %c0_11, %c0_12], %13 {strides = array<i32>} : memref<1x8x128xf32, #tpu.memory_space<vmem>>, vector<1x8x128xf32>,
    return
  }
  func.func @transform_0(%arg0: i32) -> (i32, i32) {
    %c0_i32 = arith.constant 0 : i32
    %c0_i32_0 = arith.constant 0 : i32
    return %arg0, %c0_i32 : i32, i32
  }
  func.func @transform_1(%arg0: i32) -> (i32, i32) {
    %c0_i32 = arith.constant 0 : i32
    %c0_i32_0 = arith.constant 0 : i32
    %c0_i32_1 = arith.constant 0 : i32
    return %c0_i32, %c0_i32_0 : i32, i32
  }
  func.func @transform_2(%arg0: i32) -> (i32, i32) {
    %c0_i32 = arith.constant 0 : i32
    %c0_i32_0 = arith.constant 0 : i32
    return %arg0, %c0_i32 : i32, i32
  }
  func.func @transform_3(%arg0: i32) -> (i32, i32, i32) {
    %c0_i32 = arith.constant 0 : i32
    %c0_i32_0 = arith.constant 0 : i32
    %c0_i32_1 = arith.constant 0 : i32
    return %arg0, %c0_i32, %c0_i32_0 : i32, i32, i32
  }
  func.func @transform_4(%arg0: i32) -> (i32, i32, i32) {
    %c0_i32 = arith.constant 0 : i32
    %c0_i32_0 = arith.constant 0 : i32
    %c0_i32_1 = arith.constant 0 : i32
    return %arg0, %c0_i32, %c0_i32_0 : i32, i32, i32
  }
}

module attributes {stable_mosaic.version = 11 : i64} {
  func.func @_affine_kernel(%arg0: i32, %arg1: memref<512x128xf32, #tpu.memory_space<vmem>>, %arg2: memref<1x128xf32, #tpu.memory_space<vmem>>, %arg3: memref<1x128xf32, #tpu.memory_space<vmem>>, %arg4: memref<512x128xf32, #tpu.memory_space<vmem>>) attributes {dimension_semantics = [#tpu.dimension_semantics<parallel>], iteration_bounds = array<i64: 1>, scalar_prefetch = 0 : i64, scratch_operands = 0 : i64, tpu.core_type = #tpu.core_type<tc>, window_params = [{transform_indices = @transform_0, window_bounds = array<i64: 512, 128>}, {pipeline_mode = #tpu.pipeline_mode<synchronous>, transform_indices = @transform_1, window_bounds = array<i64: 1, 128>}, {pipeline_mode = #tpu.pipeline_mode<synchronous>, transform_indices = @transform_2, window_bounds = array<i64: 1, 128>}, {transform_indices = @transform_3, window_bounds = array<i64: 512, 128>}]} {
    %c0 = arith.constant 0 : index
    %c0_0 = arith.constant 0 : index
    %0 = vector.load %arg1[%c0, %c0_0] : memref<512x128xf32, #tpu.memory_space<vmem>>, vector<512x128xf32>
    %c0_1 = arith.constant 0 : index
    %c0_2 = arith.constant 0 : index
    %1 = vector.load %arg2[%c0_1, %c0_2] : memref<1x128xf32, #tpu.memory_space<vmem>>, vector<1x128xf32>
    %2 = vector.broadcast %1 : vector<1x128xf32> to vector<512x128xf32>
    %3 = arith.mulf %0, %2 : vector<512x128xf32>
    %c0_3 = arith.constant 0 : index
    %c0_4 = arith.constant 0 : index
    %4 = vector.load %arg3[%c0_3, %c0_4] : memref<1x128xf32, #tpu.memory_space<vmem>>, vector<1x128xf32>
    %5 = vector.broadcast %4 : vector<1x128xf32> to vector<512x128xf32>
    %6 = arith.addf %3, %5 : vector<512x128xf32>
    %c0_5 = arith.constant 0 : index
    %c0_6 = arith.constant 0 : index
    %7 = vector.load %arg4[%c0_5, %c0_6] : memref<512x128xf32, #tpu.memory_space<vmem>>, vector<512x128xf32>
    tpu.vector_store %arg4[%c0_5, %c0_6], %6 {strides = array<i32>} : memref<512x128xf32, #tpu.memory_space<vmem>>, vector<512x128xf32>,
    return
  }
  func.func @transform_0(%arg0: i32) -> (i32, i32) {
    %c0_i32 = arith.constant 0 : i32
    %c0_i32_0 = arith.constant 0 : i32
    return %arg0, %c0_i32 : i32, i32
  }
  func.func @transform_1(%arg0: i32) -> (i32, i32) {
    %c0_i32 = arith.constant 0 : i32
    %c0_i32_0 = arith.constant 0 : i32
    %c0_i32_1 = arith.constant 0 : i32
    return %c0_i32, %c0_i32_0 : i32, i32
  }
  func.func @transform_2(%arg0: i32) -> (i32, i32) {
    %c0_i32 = arith.constant 0 : i32
    %c0_i32_0 = arith.constant 0 : i32
    %c0_i32_1 = arith.constant 0 : i32
    return %c0_i32, %c0_i32_0 : i32, i32
  }
  func.func @transform_3(%arg0: i32) -> (i32, i32) {
    %c0_i32 = arith.constant 0 : i32
    %c0_i32_0 = arith.constant 0 : i32
    return %arg0, %c0_i32 : i32, i32
  }
}

module attributes {stable_mosaic.version = 11 : i64} {
  func.func @_mm_bias_kernel(%arg0: i32, %arg1: memref<128x256xbf16, #tpu.memory_space<vmem>>, %arg2: memref<256x128xbf16, #tpu.memory_space<vmem>>, %arg3: memref<1x128xf32, #tpu.memory_space<vmem>>, %arg4: memref<128x128xf32, #tpu.memory_space<vmem>>) attributes {dimension_semantics = [#tpu.dimension_semantics<parallel>], iteration_bounds = array<i64: 1>, scalar_prefetch = 0 : i64, scratch_operands = 0 : i64, tpu.core_type = #tpu.core_type<tc>, window_params = [{transform_indices = @transform_0, window_bounds = array<i64: 128, 256>}, {pipeline_mode = #tpu.pipeline_mode<synchronous>, transform_indices = @transform_1, window_bounds = array<i64: 256, 128>}, {pipeline_mode = #tpu.pipeline_mode<synchronous>, transform_indices = @transform_2, window_bounds = array<i64: 1, 128>}, {transform_indices = @transform_3, window_bounds = array<i64: 128, 128>}]} {
    %c0 = arith.constant 0 : index
    %c0_0 = arith.constant 0 : index
    %0 = vector.load %arg1[%c0, %c0_0] : memref<128x256xbf16, #tpu.memory_space<vmem>>, vector<128x256xbf16>
    %c0_1 = arith.constant 0 : index
    %c0_2 = arith.constant 0 : index
    %1 = vector.load %arg2[%c0_1, %c0_2] : memref<256x128xbf16, #tpu.memory_space<vmem>>, vector<256x128xbf16>
    %cst = arith.constant dense<0.000000e+00> : vector<128x128xf32>
    %2 = tpu.matmul %0, %1, %cst {dimension_numbers = #tpu.dot_dimension_numbers<[1], [0], [0], [1], [0, 0, 1, 1], [], []>} : vector<128x256xbf16>, vector<256x128xbf16>, vector<128x128xf32> -> vector<128x128xf32>
    %c0_3 = arith.constant 0 : index
    %c0_4 = arith.constant 0 : index
    %3 = vector.load %arg3[%c0_3, %c0_4] : memref<1x128xf32, #tpu.memory_space<vmem>>, vector<1x128xf32>
    %4 = vector.broadcast %3 : vector<1x128xf32> to vector<128x128xf32>
    %5 = arith.addf %2, %4 : vector<128x128xf32>
    %c0_5 = arith.constant 0 : index
    %c0_6 = arith.constant 0 : index
    %6 = vector.load %arg4[%c0_5, %c0_6] : memref<128x128xf32, #tpu.memory_space<vmem>>, vector<128x128xf32>
    tpu.vector_store %arg4[%c0_5, %c0_6], %5 {strides = array<i32>} : memref<128x128xf32, #tpu.memory_space<vmem>>, vector<128x128xf32>,
    return
  }
  func.func @transform_0(%arg0: i32) -> (i32, i32) {
    %c0_i32 = arith.constant 0 : i32
    %c0_i32_0 = arith.constant 0 : i32
    return %arg0, %c0_i32 : i32, i32
  }
  func.func @transform_1(%arg0: i32) -> (i32, i32) {
    %c0_i32 = arith.constant 0 : i32
    %c0_i32_0 = arith.constant 0 : i32
    %c0_i32_1 = arith.constant 0 : i32
    return %c0_i32, %c0_i32_0 : i32, i32
  }
  func.func @transform_2(%arg0: i32) -> (i32, i32) {
    %c0_i32 = arith.constant 0 : i32
    %c0_i32_0 = arith.constant 0 : i32
    %c0_i32_1 = arith.constant 0 : i32
    return %c0_i32, %c0_i32_0 : i32, i32
  }
  func.func @transform_3(%arg0: i32) -> (i32, i32) {
    %c0_i32 = arith.constant 0 : i32
    %c0_i32_0 = arith.constant 0 : i32
    return %arg0, %c0_i32 : i32, i32
  }
}

module attributes {stable_mosaic.version = 11 : i64} {
  func.func @_dwt_down_kernel(%arg0: i32, %arg1: memref<128x128xf32, #tpu.memory_space<vmem>>, %arg2: memref<128x128xf32, #tpu.memory_space<vmem>>, %arg3: memref<128x128xf32, #tpu.memory_space<vmem>>, %arg4: memref<128x128xf32, #tpu.memory_space<vmem>>, %arg5: memref<128x128xf32, #tpu.memory_space<vmem>>, %arg6: memref<1x128xf32, #tpu.memory_space<vmem>>, %arg7: memref<128x128xf32, #tpu.memory_space<vmem>>, %arg8: memref<128x128xf32, #tpu.memory_space<vmem>>, %arg9: memref<128x128xf32, #tpu.memory_space<vmem>>, %arg10: memref<1x128xf32, #tpu.memory_space<vmem>>, %arg11: memref<128x128xf32, #tpu.memory_space<vmem>>, %arg12: memref<128x128xf32, #tpu.memory_space<vmem>>) attributes {dimension_semantics = [#tpu.dimension_semantics<parallel>], iteration_bounds = array<i64: 1>, scalar_prefetch = 0 : i64, scratch_operands = 0 : i64, tpu.core_type = #tpu.core_type<tc>, window_params = [{transform_indices = @transform_0, window_bounds = array<i64: 128, 128>}, {transform_indices = @transform_1, window_bounds = array<i64: 128, 128>}, {transform_indices = @transform_2, window_bounds = array<i64: 128, 128>}, {transform_indices = @transform_3, window_bounds = array<i64: 128, 128>}, {pipeline_mode = #tpu.pipeline_mode<synchronous>, transform_indices = @transform_4, window_bounds = array<i64: 128, 128>}, {pipeline_mode = #tpu.pipeline_mode<synchronous>, transform_indices = @transform_5, window_bounds = array<i64: 1, 128>}, {pipeline_mode = #tpu.pipeline_mode<synchronous>, transform_indices = @transform_6, window_bounds = array<i64: 128, 128>}, {pipeline_mode = #tpu.pipeline_mode<synchronous>, transform_indices = @transform_7, window_bounds = array<i64: 128, 128>}, {pipeline_mode = #tpu.pipeline_mode<synchronous>, transform_indices = @transform_8, window_bounds = array<i64: 128, 128>}, {pipeline_mode = #tpu.pipeline_mode<synchronous>, transform_indices = @transform_9, window_bounds = array<i64: 1, 128>}, {transform_indices = @transform_10, window_bounds = array<i64: 128, 128>}, {transform_indices = @transform_11, window_bounds = array<i64: 128, 128>}]} {
    %c0 = arith.constant 0 : index
    %c0_0 = arith.constant 0 : index
    %0 = vector.load %arg1[%c0, %c0_0] : memref<128x128xf32, #tpu.memory_space<vmem>>, vector<128x128xf32>
    %cst = arith.constant 5.000000e-01 : f32
    %1 = vector.broadcast %cst : f32 to vector<128x128xf32>
    %2 = arith.mulf %0, %1 : vector<128x128xf32>
    %c0_1 = arith.constant 0 : index
    %c0_2 = arith.constant 0 : index
    %3 = vector.load %arg2[%c0_1, %c0_2] : memref<128x128xf32, #tpu.memory_space<vmem>>, vector<128x128xf32>
    %cst_3 = arith.constant 5.000000e-01 : f32
    %4 = vector.broadcast %cst_3 : f32 to vector<128x128xf32>
    %5 = arith.mulf %3, %4 : vector<128x128xf32>
    %c0_4 = arith.constant 0 : index
    %c0_5 = arith.constant 0 : index
    %6 = vector.load %arg3[%c0_4, %c0_5] : memref<128x128xf32, #tpu.memory_space<vmem>>, vector<128x128xf32>
    %cst_6 = arith.constant 5.000000e-01 : f32
    %7 = vector.broadcast %cst_6 : f32 to vector<128x128xf32>
    %8 = arith.mulf %6, %7 : vector<128x128xf32>
    %c0_7 = arith.constant 0 : index
    %c0_8 = arith.constant 0 : index
    %9 = vector.load %arg4[%c0_7, %c0_8] : memref<128x128xf32, #tpu.memory_space<vmem>>, vector<128x128xf32>
    %cst_9 = arith.constant 5.000000e-01 : f32
    %10 = vector.broadcast %cst_9 : f32 to vector<128x128xf32>
    %11 = arith.mulf %9, %10 : vector<128x128xf32>
    %12 = arith.addf %2, %5 : vector<128x128xf32>
    %13 = arith.addf %12, %8 : vector<128x128xf32>
    %14 = arith.addf %13, %11 : vector<128x128xf32>
    %cst_10 = arith.constant 0.000000e+00 : f32
    %15 = vector.broadcast %cst_10 : f32 to vector<128x128xf32>
    %16 = arith.subf %15, %2 : vector<128x128xf32>
    %17 = arith.subf %16, %5 : vector<128x128xf32>
    %18 = arith.addf %17, %8 : vector<128x128xf32>
    %19 = arith.addf %18, %11 : vector<128x128xf32>
    %cst_11 = arith.constant 0.000000e+00 : f32
    %20 = vector.broadcast %cst_11 : f32 to vector<128x128xf32>
    %21 = arith.subf %20, %2 : vector<128x128xf32>
    %22 = arith.addf %21, %5 : vector<128x128xf32>
    %23 = arith.subf %22, %8 : vector<128x128xf32>
    %24 = arith.addf %23, %11 : vector<128x128xf32>
    %25 = arith.subf %2, %5 : vector<128x128xf32>
    %26 = arith.subf %25, %8 : vector<128x128xf32>
    %27 = arith.addf %26, %11 : vector<128x128xf32>
    %c0_12 = arith.constant 0 : index
    %c0_13 = arith.constant 0 : index
    %28 = vector.load %arg5[%c0_12, %c0_13] : memref<128x128xf32, #tpu.memory_space<vmem>>, vector<128x128xf32>
    %cst_14 = arith.constant dense<0.000000e+00> : vector<128x128xf32>
    %29 = tpu.matmul %14, %28, %cst_14 {dimension_numbers = #tpu.dot_dimension_numbers<[1], [0], [0], [1], [0, 0, 1, 1], [], []>} : vector<128x128xf32>, vector<128x128xf32>, vector<128x128xf32> -> vector<128x128xf32>
    %c0_15 = arith.constant 0 : index
    %c0_16 = arith.constant 0 : index
    %30 = vector.load %arg6[%c0_15, %c0_16] : memref<1x128xf32, #tpu.memory_space<vmem>>, vector<1x128xf32>
    %31 = vector.broadcast %30 : vector<1x128xf32> to vector<128x128xf32>
    %32 = arith.addf %29, %31 : vector<128x128xf32>
    %c0_17 = arith.constant 0 : index
    %c0_18 = arith.constant 0 : index
    %33 = vector.load %arg11[%c0_17, %c0_18] : memref<128x128xf32, #tpu.memory_space<vmem>>, vector<128x128xf32>
    tpu.vector_store %arg11[%c0_17, %c0_18], %32 {strides = array<i32>} : memref<128x128xf32, #tpu.memory_space<vmem>>, vector<128x128xf32>,
    %c0_19 = arith.constant 0 : index
    %c0_20 = arith.constant 0 : index
    %34 = vector.load %arg7[%c0_19, %c0_20] : memref<128x128xf32, #tpu.memory_space<vmem>>, vector<128x128xf32>
    %cst_21 = arith.constant dense<0.000000e+00> : vector<128x128xf32>
    %35 = tpu.matmul %19, %34, %cst_21 {dimension_numbers = #tpu.dot_dimension_numbers<[1], [0], [0], [1], [0, 0, 1, 1], [], []>} : vector<128x128xf32>, vector<128x128xf32>, vector<128x128xf32> -> vector<128x128xf32>
    %c0_22 = arith.constant 0 : index
    %c0_23 = arith.constant 0 : index
    %36 = vector.load %arg8[%c0_22, %c0_23] : memref<128x128xf32, #tpu.memory_space<vmem>>, vector<128x128xf32>
    %cst_24 = arith.constant dense<0.000000e+00> : vector<128x128xf32>
    %37 = tpu.matmul %24, %36, %cst_24 {dimension_numbers = #tpu.dot_dimension_numbers<[1], [0], [0], [1], [0, 0, 1, 1], [], []>} : vector<128x128xf32>, vector<128x128xf32>, vector<128x128xf32> -> vector<128x128xf32>
    %38 = arith.addf %35, %37 : vector<128x128xf32>
    %c0_25 = arith.constant 0 : index
    %c0_26 = arith.constant 0 : index
    %39 = vector.load %arg9[%c0_25, %c0_26] : memref<128x128xf32, #tpu.memory_space<vmem>>, vector<128x128xf32>
    %cst_27 = arith.constant dense<0.000000e+00> : vector<128x128xf32>
    %40 = tpu.matmul %27, %39, %cst_27 {dimension_numbers = #tpu.dot_dimension_numbers<[1], [0], [0], [1], [0, 0, 1, 1], [], []>} : vector<128x128xf32>, vector<128x128xf32>, vector<128x128xf32> -> vector<128x128xf32>
    %41 = arith.addf %38, %40 : vector<128x128xf32>
    %c0_28 = arith.constant 0 : index
    %c0_29 = arith.constant 0 : index
    %42 = vector.load %arg10[%c0_28, %c0_29] : memref<1x128xf32, #tpu.memory_space<vmem>>, vector<1x128xf32>
    %43 = vector.broadcast %42 : vector<1x128xf32> to vector<128x128xf32>
    %44 = arith.addf %41, %43 : vector<128x128xf32>
    %c0_30 = arith.constant 0 : index
    %c0_31 = arith.constant 0 : index
    %45 = vector.load %arg12[%c0_30, %c0_31] : memref<128x128xf32, #tpu.memory_space<vmem>>, vector<128x128xf32>
    tpu.vector_store %arg12[%c0_30, %c0_31], %44 {strides = array<i32>} : memref<128x128xf32, #tpu.memory_space<vmem>>, vector<128x128xf32>,
    return
  }
  func.func @transform_0(%arg0: i32) -> (i32, i32) {
    %c0_i32 = arith.constant 0 : i32
    %c0_i32_0 = arith.constant 0 : i32
    return %arg0, %c0_i32 : i32, i32
  }
  func.func @transform_1(%arg0: i32) -> (i32, i32) {
    %c0_i32 = arith.constant 0 : i32
    %c0_i32_0 = arith.constant 0 : i32
    return %arg0, %c0_i32 : i32, i32
  }
  func.func @transform_2(%arg0: i32) -> (i32, i32) {
    %c0_i32 = arith.constant 0 : i32
    %c0_i32_0 = arith.constant 0 : i32
    return %arg0, %c0_i32 : i32, i32
  }
  func.func @transform_3(%arg0: i32) -> (i32, i32) {
    %c0_i32 = arith.constant 0 : i32
    %c0_i32_0 = arith.constant 0 : i32
    return %arg0, %c0_i32 : i32, i32
  }
  func.func @transform_4(%arg0: i32) -> (i32, i32) {
    %c0_i32 = arith.constant 0 : i32
    %c0_i32_0 = arith.constant 0 : i32
    %c0_i32_1 = arith.constant 0 : i32
    return %c0_i32, %c0_i32_0 : i32, i32
  }
  func.func @transform_5(%arg0: i32) -> (i32, i32) {
    %c0_i32 = arith.constant 0 : i32
    %c0_i32_0 = arith.constant 0 : i32
    %c0_i32_1 = arith.constant 0 : i32
    return %c0_i32, %c0_i32_0 : i32, i32
  }
  func.func @transform_6(%arg0: i32) -> (i32, i32) {
    %c0_i32 = arith.constant 0 : i32
    %c0_i32_0 = arith.constant 0 : i32
    %c0_i32_1 = arith.constant 0 : i32
    return %c0_i32, %c0_i32_0 : i32, i32
  }
  func.func @transform_7(%arg0: i32) -> (i32, i32) {
    %c0_i32 = arith.constant 0 : i32
    %c0_i32_0 = arith.constant 0 : i32
    %c0_i32_1 = arith.constant 0 : i32
    return %c0_i32, %c0_i32_0 : i32, i32
  }
  func.func @transform_8(%arg0: i32) -> (i32, i32) {
    %c0_i32 = arith.constant 0 : i32
    %c0_i32_0 = arith.constant 0 : i32
    %c0_i32_1 = arith.constant 0 : i32
    return %c0_i32, %c0_i32_0 : i32, i32
  }
  func.func @transform_9(%arg0: i32) -> (i32, i32) {
    %c0_i32 = arith.constant 0 : i32
    %c0_i32_0 = arith.constant 0 : i32
    %c0_i32_1 = arith.constant 0 : i32
    return %c0_i32, %c0_i32_0 : i32, i32
  }
  func.func @transform_10(%arg0: i32) -> (i32, i32) {
    %c0_i32 = arith.constant 0 : i32
    %c0_i32_0 = arith.constant 0 : i32
    return %arg0, %c0_i32 : i32, i32
  }
  func.func @transform_11(%arg0: i32) -> (i32, i32) {
    %c0_i32 = arith.constant 0 : i32
    %c0_i32_0 = arith.constant 0 : i32
    return %arg0, %c0_i32 : i32, i32
  }
}

module attributes {stable_mosaic.version = 11 : i64} {
  func.func @_affine_kernel(%arg0: i32, %arg1: memref<32x128xf32, #tpu.memory_space<vmem>>, %arg2: memref<1x128xf32, #tpu.memory_space<vmem>>, %arg3: memref<1x128xf32, #tpu.memory_space<vmem>>, %arg4: memref<32x128xf32, #tpu.memory_space<vmem>>) attributes {dimension_semantics = [#tpu.dimension_semantics<parallel>], iteration_bounds = array<i64: 1>, scalar_prefetch = 0 : i64, scratch_operands = 0 : i64, tpu.core_type = #tpu.core_type<tc>, window_params = [{transform_indices = @transform_0, window_bounds = array<i64: 32, 128>}, {pipeline_mode = #tpu.pipeline_mode<synchronous>, transform_indices = @transform_1, window_bounds = array<i64: 1, 128>}, {pipeline_mode = #tpu.pipeline_mode<synchronous>, transform_indices = @transform_2, window_bounds = array<i64: 1, 128>}, {transform_indices = @transform_3, window_bounds = array<i64: 32, 128>}]} {
    %c0 = arith.constant 0 : index
    %c0_0 = arith.constant 0 : index
    %0 = vector.load %arg1[%c0, %c0_0] : memref<32x128xf32, #tpu.memory_space<vmem>>, vector<32x128xf32>
    %c0_1 = arith.constant 0 : index
    %c0_2 = arith.constant 0 : index
    %1 = vector.load %arg2[%c0_1, %c0_2] : memref<1x128xf32, #tpu.memory_space<vmem>>, vector<1x128xf32>
    %2 = vector.broadcast %1 : vector<1x128xf32> to vector<32x128xf32>
    %3 = arith.mulf %0, %2 : vector<32x128xf32>
    %c0_3 = arith.constant 0 : index
    %c0_4 = arith.constant 0 : index
    %4 = vector.load %arg3[%c0_3, %c0_4] : memref<1x128xf32, #tpu.memory_space<vmem>>, vector<1x128xf32>
    %5 = vector.broadcast %4 : vector<1x128xf32> to vector<32x128xf32>
    %6 = arith.addf %3, %5 : vector<32x128xf32>
    %c0_5 = arith.constant 0 : index
    %c0_6 = arith.constant 0 : index
    %7 = vector.load %arg4[%c0_5, %c0_6] : memref<32x128xf32, #tpu.memory_space<vmem>>, vector<32x128xf32>
    tpu.vector_store %arg4[%c0_5, %c0_6], %6 {strides = array<i32>} : memref<32x128xf32, #tpu.memory_space<vmem>>, vector<32x128xf32>,
    return
  }
  func.func @transform_0(%arg0: i32) -> (i32, i32) {
    %c0_i32 = arith.constant 0 : i32
    %c0_i32_0 = arith.constant 0 : i32
    return %arg0, %c0_i32 : i32, i32
  }
  func.func @transform_1(%arg0: i32) -> (i32, i32) {
    %c0_i32 = arith.constant 0 : i32
    %c0_i32_0 = arith.constant 0 : i32
    %c0_i32_1 = arith.constant 0 : i32
    return %c0_i32, %c0_i32_0 : i32, i32
  }
  func.func @transform_2(%arg0: i32) -> (i32, i32) {
    %c0_i32 = arith.constant 0 : i32
    %c0_i32_0 = arith.constant 0 : i32
    %c0_i32_1 = arith.constant 0 : i32
    return %c0_i32, %c0_i32_0 : i32, i32
  }
  func.func @transform_3(%arg0: i32) -> (i32, i32) {
    %c0_i32 = arith.constant 0 : i32
    %c0_i32_0 = arith.constant 0 : i32
    return %arg0, %c0_i32 : i32, i32
  }
}

module attributes {stable_mosaic.version = 11 : i64} {
  func.func @_mm_bnstat_kernel(%arg0: i32, %arg1: memref<32x256xbf16, #tpu.memory_space<vmem>>, %arg2: memref<256x128xbf16, #tpu.memory_space<vmem>>, %arg3: memref<32x128xf32, #tpu.memory_space<vmem>>, %arg4: memref<1x8x128xf32, #tpu.memory_space<vmem>>, %arg5: memref<1x8x128xf32, #tpu.memory_space<vmem>>) attributes {dimension_semantics = [#tpu.dimension_semantics<parallel>], iteration_bounds = array<i64: 1>, scalar_prefetch = 0 : i64, scratch_operands = 0 : i64, tpu.core_type = #tpu.core_type<tc>, window_params = [{transform_indices = @transform_0, window_bounds = array<i64: 32, 256>}, {pipeline_mode = #tpu.pipeline_mode<synchronous>, transform_indices = @transform_1, window_bounds = array<i64: 256, 128>}, {transform_indices = @transform_2, window_bounds = array<i64: 32, 128>}, {transform_indices = @transform_3, window_bounds = array<i64: 1, 8, 128>}, {transform_indices = @transform_4, window_bounds = array<i64: 1, 8, 128>}]} {
    %c0 = arith.constant 0 : index
    %c0_0 = arith.constant 0 : index
    %0 = vector.load %arg1[%c0, %c0_0] : memref<32x256xbf16, #tpu.memory_space<vmem>>, vector<32x256xbf16>
    %cst = arith.constant 0.000000e+00 : bf16
    %1 = vector.broadcast %cst : bf16 to vector<32x256xbf16>
    %2 = arith.cmpf oge, %0, %1 : vector<32x256xbf16>
    %cst_1 = arith.constant 2.001950e-01 : bf16
    %3 = vector.broadcast %cst_1 : bf16 to vector<32x256xbf16>
    %4 = arith.mulf %3, %0 : vector<32x256xbf16>
    %5 = arith.select %2, %0, %4 : vector<32x256xi1>, vector<32x256xbf16>
    %c0_2 = arith.constant 0 : index
    %c0_3 = arith.constant 0 : index
    %6 = vector.load %arg2[%c0_2, %c0_3] : memref<256x128xbf16, #tpu.memory_space<vmem>>, vector<256x128xbf16>
    %cst_4 = arith.constant dense<0.000000e+00> : vector<32x128xf32>
    %7 = tpu.matmul %5, %6, %cst_4 {dimension_numbers = #tpu.dot_dimension_numbers<[1], [0], [0], [1], [0, 0, 1, 1], [], []>} : vector<32x256xbf16>, vector<256x128xbf16>, vector<32x128xf32> -> vector<32x128xf32>
    %c0_5 = arith.constant 0 : index
    %c0_6 = arith.constant 0 : index
    %8 = vector.load %arg3[%c0_5, %c0_6] : memref<32x128xf32, #tpu.memory_space<vmem>>, vector<32x128xf32>
    tpu.vector_store %arg3[%c0_5, %c0_6], %7 {strides = array<i32>} : memref<32x128xf32, #tpu.memory_space<vmem>>, vector<32x128xf32>,
    %cst_7 = arith.constant dense<0.000000e+00> : vector<128xf32>
    %9 = vector.multi_reduction <add>, %7, %cst_7 [0] : vector<32x128xf32> to vector<128xf32>
    %10 = vector.shape_cast %9 : vector<128xf32> to vector<1x128xf32>
    %11 = arith.mulf %7, %7 : vector<32x128xf32>
    %cst_8 = arith.constant dense<0.000000e+00> : vector<128xf32>
    %12 = vector.multi_reduction <add>, %11, %cst_8 [0] : vector<32x128xf32> to vector<128xf32>
    %13 = vector.shape_cast %12 : vector<128xf32> to vector<1x128xf32>
    %14 = vector.shape_cast %10 : vector<1x128xf32> to vector<1x1x128xf32>
    %15 = vector.broadcast %14 : vector<1x1x128xf32> to vector<1x8x128xf32>
    %c0_9 = arith.constant 0 : index
    %c0_10 = arith.constant 0 : index
    %c0_11 = arith.constant 0 : index
    %16 = vector.load %arg4[%c0_9, %c0_10, %c0_11] : memref<1x8x128xf32, #tpu.memory_space<vmem>>, vector<1x8x128xf32>
    tpu.vector_store %arg4[%c0_9, %c0_10, %c0_11], %15 {strides = array<i32>} : memref<1x8x128xf32, #tpu.memory_space<vmem>>, vector<1x8x128xf32>,
    %17 = vector.shape_cast %13 : vector<1x128xf32> to vector<1x1x128xf32>
    %18 = vector.broadcast %17 : vector<1x1x128xf32> to vector<1x8x128xf32>
    %c0_12 = arith.constant 0 : index
    %c0_13 = arith.constant 0 : index
    %c0_14 = arith.constant 0 : index
    %19 = vector.load %arg5[%c0_12, %c0_13, %c0_14] : memref<1x8x128xf32, #tpu.memory_space<vmem>>, vector<1x8x128xf32>
    tpu.vector_store %arg5[%c0_12, %c0_13, %c0_14], %18 {strides = array<i32>} : memref<1x8x128xf32, #tpu.memory_space<vmem>>, vector<1x8x128xf32>,
    return
  }
  func.func @transform_0(%arg0: i32) -> (i32, i32) {
    %c0_i32 = arith.constant 0 : i32
    %c0_i32_0 = arith.constant 0 : i32
    return %arg0, %c0_i32 : i32, i32
  }
  func.func @transform_1(%arg0: i32) -> (i32, i32) {
    %c0_i32 = arith.constant 0 : i32
    %c0_i32_0 = arith.constant 0 : i32
    %c0_i32_1 = arith.constant 0 : i32
    return %c0_i32, %c0_i32_0 : i32, i32
  }
  func.func @transform_2(%arg0: i32) -> (i32, i32) {
    %c0_i32 = arith.constant 0 : i32
    %c0_i32_0 = arith.constant 0 : i32
    return %arg0, %c0_i32 : i32, i32
  }
  func.func @transform_3(%arg0: i32) -> (i32, i32, i32) {
    %c0_i32 = arith.constant 0 : i32
    %c0_i32_0 = arith.constant 0 : i32
    %c0_i32_1 = arith.constant 0 : i32
    return %arg0, %c0_i32, %c0_i32_0 : i32, i32, i32
  }
  func.func @transform_4(%arg0: i32) -> (i32, i32, i32) {
    %c0_i32 = arith.constant 0 : i32
    %c0_i32_0 = arith.constant 0 : i32
    %c0_i32_1 = arith.constant 0 : i32
    return %arg0, %c0_i32, %c0_i32_0 : i32, i32, i32
  }
}

module attributes {stable_mosaic.version = 11 : i64} {
  func.func @_dwt_down_kernel(%arg0: i32, %arg1: memref<32x128xf32, #tpu.memory_space<vmem>>, %arg2: memref<32x128xf32, #tpu.memory_space<vmem>>, %arg3: memref<32x128xf32, #tpu.memory_space<vmem>>, %arg4: memref<32x128xf32, #tpu.memory_space<vmem>>, %arg5: memref<128x128xf32, #tpu.memory_space<vmem>>, %arg6: memref<1x128xf32, #tpu.memory_space<vmem>>, %arg7: memref<128x128xf32, #tpu.memory_space<vmem>>, %arg8: memref<128x128xf32, #tpu.memory_space<vmem>>, %arg9: memref<128x128xf32, #tpu.memory_space<vmem>>, %arg10: memref<1x128xf32, #tpu.memory_space<vmem>>, %arg11: memref<32x128xf32, #tpu.memory_space<vmem>>, %arg12: memref<32x128xf32, #tpu.memory_space<vmem>>) attributes {dimension_semantics = [#tpu.dimension_semantics<parallel>], iteration_bounds = array<i64: 1>, scalar_prefetch = 0 : i64, scratch_operands = 0 : i64, tpu.core_type = #tpu.core_type<tc>, window_params = [{transform_indices = @transform_0, window_bounds = array<i64: 32, 128>}, {transform_indices = @transform_1, window_bounds = array<i64: 32, 128>}, {transform_indices = @transform_2, window_bounds = array<i64: 32, 128>}, {transform_indices = @transform_3, window_bounds = array<i64: 32, 128>}, {pipeline_mode = #tpu.pipeline_mode<synchronous>, transform_indices = @transform_4, window_bounds = array<i64: 128, 128>}, {pipeline_mode = #tpu.pipeline_mode<synchronous>, transform_indices = @transform_5, window_bounds = array<i64: 1, 128>}, {pipeline_mode = #tpu.pipeline_mode<synchronous>, transform_indices = @transform_6, window_bounds = array<i64: 128, 128>}, {pipeline_mode = #tpu.pipeline_mode<synchronous>, transform_indices = @transform_7, window_bounds = array<i64: 128, 128>}, {pipeline_mode = #tpu.pipeline_mode<synchronous>, transform_indices = @transform_8, window_bounds = array<i64: 128, 128>}, {pipeline_mode = #tpu.pipeline_mode<synchronous>, transform_indices = @transform_9, window_bounds = array<i64: 1, 128>}, {transform_indices = @transform_10, window_bounds = array<i64: 32, 128>}, {transform_indices = @transform_11, window_bounds = array<i64: 32, 128>}]} {
    %c0 = arith.constant 0 : index
    %c0_0 = arith.constant 0 : index
    %0 = vector.load %arg1[%c0, %c0_0] : memref<32x128xf32, #tpu.memory_space<vmem>>, vector<32x128xf32>
    %cst = arith.constant 5.000000e-01 : f32
    %1 = vector.broadcast %cst : f32 to vector<32x128xf32>
    %2 = arith.mulf %0, %1 : vector<32x128xf32>
    %c0_1 = arith.constant 0 : index
    %c0_2 = arith.constant 0 : index
    %3 = vector.load %arg2[%c0_1, %c0_2] : memref<32x128xf32, #tpu.memory_space<vmem>>, vector<32x128xf32>
    %cst_3 = arith.constant 5.000000e-01 : f32
    %4 = vector.broadcast %cst_3 : f32 to vector<32x128xf32>
    %5 = arith.mulf %3, %4 : vector<32x128xf32>
    %c0_4 = arith.constant 0 : index
    %c0_5 = arith.constant 0 : index
    %6 = vector.load %arg3[%c0_4, %c0_5] : memref<32x128xf32, #tpu.memory_space<vmem>>, vector<32x128xf32>
    %cst_6 = arith.constant 5.000000e-01 : f32
    %7 = vector.broadcast %cst_6 : f32 to vector<32x128xf32>
    %8 = arith.mulf %6, %7 : vector<32x128xf32>
    %c0_7 = arith.constant 0 : index
    %c0_8 = arith.constant 0 : index
    %9 = vector.load %arg4[%c0_7, %c0_8] : memref<32x128xf32, #tpu.memory_space<vmem>>, vector<32x128xf32>
    %cst_9 = arith.constant 5.000000e-01 : f32
    %10 = vector.broadcast %cst_9 : f32 to vector<32x128xf32>
    %11 = arith.mulf %9, %10 : vector<32x128xf32>
    %12 = arith.addf %2, %5 : vector<32x128xf32>
    %13 = arith.addf %12, %8 : vector<32x128xf32>
    %14 = arith.addf %13, %11 : vector<32x128xf32>
    %cst_10 = arith.constant 0.000000e+00 : f32
    %15 = vector.broadcast %cst_10 : f32 to vector<32x128xf32>
    %16 = arith.subf %15, %2 : vector<32x128xf32>
    %17 = arith.subf %16, %5 : vector<32x128xf32>
    %18 = arith.addf %17, %8 : vector<32x128xf32>
    %19 = arith.addf %18, %11 : vector<32x128xf32>
    %cst_11 = arith.constant 0.000000e+00 : f32
    %20 = vector.broadcast %cst_11 : f32 to vector<32x128xf32>
    %21 = arith.subf %20, %2 : vector<32x128xf32>
    %22 = arith.addf %21, %5 : vector<32x128xf32>
    %23 = arith.subf %22, %8 : vector<32x128xf32>
    %24 = arith.addf %23, %11 : vector<32x128xf32>
    %25 = arith.subf %2, %5 : vector<32x128xf32>
    %26 = arith.subf %25, %8 : vector<32x128xf32>
    %27 = arith.addf %26, %11 : vector<32x128xf32>
    %c0_12 = arith.constant 0 : index
    %c0_13 = arith.constant 0 : index
    %28 = vector.load %arg5[%c0_12, %c0_13] : memref<128x128xf32, #tpu.memory_space<vmem>>, vector<128x128xf32>
    %cst_14 = arith.constant dense<0.000000e+00> : vector<32x128xf32>
    %29 = tpu.matmul %14, %28, %cst_14 {dimension_numbers = #tpu.dot_dimension_numbers<[1], [0], [0], [1], [0, 0, 1, 1], [], []>} : vector<32x128xf32>, vector<128x128xf32>, vector<32x128xf32> -> vector<32x128xf32>
    %c0_15 = arith.constant 0 : index
    %c0_16 = arith.constant 0 : index
    %30 = vector.load %arg6[%c0_15, %c0_16] : memref<1x128xf32, #tpu.memory_space<vmem>>, vector<1x128xf32>
    %31 = vector.broadcast %30 : vector<1x128xf32> to vector<32x128xf32>
    %32 = arith.addf %29, %31 : vector<32x128xf32>
    %c0_17 = arith.constant 0 : index
    %c0_18 = arith.constant 0 : index
    %33 = vector.load %arg11[%c0_17, %c0_18] : memref<32x128xf32, #tpu.memory_space<vmem>>, vector<32x128xf32>
    tpu.vector_store %arg11[%c0_17, %c0_18], %32 {strides = array<i32>} : memref<32x128xf32, #tpu.memory_space<vmem>>, vector<32x128xf32>,
    %c0_19 = arith.constant 0 : index
    %c0_20 = arith.constant 0 : index
    %34 = vector.load %arg7[%c0_19, %c0_20] : memref<128x128xf32, #tpu.memory_space<vmem>>, vector<128x128xf32>
    %cst_21 = arith.constant dense<0.000000e+00> : vector<32x128xf32>
    %35 = tpu.matmul %19, %34, %cst_21 {dimension_numbers = #tpu.dot_dimension_numbers<[1], [0], [0], [1], [0, 0, 1, 1], [], []>} : vector<32x128xf32>, vector<128x128xf32>, vector<32x128xf32> -> vector<32x128xf32>
    %c0_22 = arith.constant 0 : index
    %c0_23 = arith.constant 0 : index
    %36 = vector.load %arg8[%c0_22, %c0_23] : memref<128x128xf32, #tpu.memory_space<vmem>>, vector<128x128xf32>
    %cst_24 = arith.constant dense<0.000000e+00> : vector<32x128xf32>
    %37 = tpu.matmul %24, %36, %cst_24 {dimension_numbers = #tpu.dot_dimension_numbers<[1], [0], [0], [1], [0, 0, 1, 1], [], []>} : vector<32x128xf32>, vector<128x128xf32>, vector<32x128xf32> -> vector<32x128xf32>
    %38 = arith.addf %35, %37 : vector<32x128xf32>
    %c0_25 = arith.constant 0 : index
    %c0_26 = arith.constant 0 : index
    %39 = vector.load %arg9[%c0_25, %c0_26] : memref<128x128xf32, #tpu.memory_space<vmem>>, vector<128x128xf32>
    %cst_27 = arith.constant dense<0.000000e+00> : vector<32x128xf32>
    %40 = tpu.matmul %27, %39, %cst_27 {dimension_numbers = #tpu.dot_dimension_numbers<[1], [0], [0], [1], [0, 0, 1, 1], [], []>} : vector<32x128xf32>, vector<128x128xf32>, vector<32x128xf32> -> vector<32x128xf32>
    %41 = arith.addf %38, %40 : vector<32x128xf32>
    %c0_28 = arith.constant 0 : index
    %c0_29 = arith.constant 0 : index
    %42 = vector.load %arg10[%c0_28, %c0_29] : memref<1x128xf32, #tpu.memory_space<vmem>>, vector<1x128xf32>
    %43 = vector.broadcast %42 : vector<1x128xf32> to vector<32x128xf32>
    %44 = arith.addf %41, %43 : vector<32x128xf32>
    %c0_30 = arith.constant 0 : index
    %c0_31 = arith.constant 0 : index
    %45 = vector.load %arg12[%c0_30, %c0_31] : memref<32x128xf32, #tpu.memory_space<vmem>>, vector<32x128xf32>
    tpu.vector_store %arg12[%c0_30, %c0_31], %44 {strides = array<i32>} : memref<32x128xf32, #tpu.memory_space<vmem>>, vector<32x128xf32>,
    return
  }
  func.func @transform_0(%arg0: i32) -> (i32, i32) {
    %c0_i32 = arith.constant 0 : i32
    %c0_i32_0 = arith.constant 0 : i32
    return %arg0, %c0_i32 : i32, i32
  }
  func.func @transform_1(%arg0: i32) -> (i32, i32) {
    %c0_i32 = arith.constant 0 : i32
    %c0_i32_0 = arith.constant 0 : i32
    return %arg0, %c0_i32 : i32, i32
  }
  func.func @transform_2(%arg0: i32) -> (i32, i32) {
    %c0_i32 = arith.constant 0 : i32
    %c0_i32_0 = arith.constant 0 : i32
    return %arg0, %c0_i32 : i32, i32
  }
  func.func @transform_3(%arg0: i32) -> (i32, i32) {
    %c0_i32 = arith.constant 0 : i32
    %c0_i32_0 = arith.constant 0 : i32
    return %arg0, %c0_i32 : i32, i32
  }
  func.func @transform_4(%arg0: i32) -> (i32, i32) {
    %c0_i32 = arith.constant 0 : i32
    %c0_i32_0 = arith.constant 0 : i32
    %c0_i32_1 = arith.constant 0 : i32
    return %c0_i32, %c0_i32_0 : i32, i32
  }
  func.func @transform_5(%arg0: i32) -> (i32, i32) {
    %c0_i32 = arith.constant 0 : i32
    %c0_i32_0 = arith.constant 0 : i32
    %c0_i32_1 = arith.constant 0 : i32
    return %c0_i32, %c0_i32_0 : i32, i32
  }
  func.func @transform_6(%arg0: i32) -> (i32, i32) {
    %c0_i32 = arith.constant 0 : i32
    %c0_i32_0 = arith.constant 0 : i32
    %c0_i32_1 = arith.constant 0 : i32
    return %c0_i32, %c0_i32_0 : i32, i32
  }
  func.func @transform_7(%arg0: i32) -> (i32, i32) {
    %c0_i32 = arith.constant 0 : i32
    %c0_i32_0 = arith.constant 0 : i32
    %c0_i32_1 = arith.constant 0 : i32
    return %c0_i32, %c0_i32_0 : i32, i32
  }
  func.func @transform_8(%arg0: i32) -> (i32, i32) {
    %c0_i32 = arith.constant 0 : i32
    %c0_i32_0 = arith.constant 0 : i32
    %c0_i32_1 = arith.constant 0 : i32
    return %c0_i32, %c0_i32_0 : i32, i32
  }
  func.func @transform_9(%arg0: i32) -> (i32, i32) {
    %c0_i32 = arith.constant 0 : i32
    %c0_i32_0 = arith.constant 0 : i32
    %c0_i32_1 = arith.constant 0 : i32
    return %c0_i32, %c0_i32_0 : i32, i32
  }
  func.func @transform_10(%arg0: i32) -> (i32, i32) {
    %c0_i32 = arith.constant 0 : i32
    %c0_i32_0 = arith.constant 0 : i32
    return %arg0, %c0_i32 : i32, i32
  }
  func.func @transform_11(%arg0: i32) -> (i32, i32) {
    %c0_i32 = arith.constant 0 : i32
    %c0_i32_0 = arith.constant 0 : i32
    return %arg0, %c0_i32 : i32, i32
  }
}

module attributes {stable_mosaic.version = 11 : i64} {
  func.func @_mm_bnstat_kernel(%arg0: i32, %arg1: memref<8x512xbf16, #tpu.memory_space<vmem>>, %arg2: memref<512x128xbf16, #tpu.memory_space<vmem>>, %arg3: memref<8x128xf32, #tpu.memory_space<vmem>>, %arg4: memref<1x8x128xf32, #tpu.memory_space<vmem>>, %arg5: memref<1x8x128xf32, #tpu.memory_space<vmem>>) attributes {dimension_semantics = [#tpu.dimension_semantics<parallel>], iteration_bounds = array<i64: 1>, scalar_prefetch = 0 : i64, scratch_operands = 0 : i64, tpu.core_type = #tpu.core_type<tc>, window_params = [{transform_indices = @transform_0, window_bounds = array<i64: 8, 512>}, {pipeline_mode = #tpu.pipeline_mode<synchronous>, transform_indices = @transform_1, window_bounds = array<i64: 512, 128>}, {transform_indices = @transform_2, window_bounds = array<i64: 8, 128>}, {transform_indices = @transform_3, window_bounds = array<i64: 1, 8, 128>}, {transform_indices = @transform_4, window_bounds = array<i64: 1, 8, 128>}]} {
    %c0 = arith.constant 0 : index
    %c0_0 = arith.constant 0 : index
    %0 = vector.load %arg1[%c0, %c0_0] : memref<8x512xbf16, #tpu.memory_space<vmem>>, vector<8x512xbf16>
    %cst = arith.constant 0.000000e+00 : bf16
    %1 = vector.broadcast %cst : bf16 to vector<8x512xbf16>
    %2 = arith.cmpf oge, %0, %1 : vector<8x512xbf16>
    %cst_1 = arith.constant 2.001950e-01 : bf16
    %3 = vector.broadcast %cst_1 : bf16 to vector<8x512xbf16>
    %4 = arith.mulf %3, %0 : vector<8x512xbf16>
    %5 = arith.select %2, %0, %4 : vector<8x512xi1>, vector<8x512xbf16>
    %c0_2 = arith.constant 0 : index
    %c0_3 = arith.constant 0 : index
    %6 = vector.load %arg2[%c0_2, %c0_3] : memref<512x128xbf16, #tpu.memory_space<vmem>>, vector<512x128xbf16>
    %cst_4 = arith.constant dense<0.000000e+00> : vector<8x128xf32>
    %7 = tpu.matmul %5, %6, %cst_4 {dimension_numbers = #tpu.dot_dimension_numbers<[1], [0], [0], [1], [0, 0, 1, 1], [], []>} : vector<8x512xbf16>, vector<512x128xbf16>, vector<8x128xf32> -> vector<8x128xf32>
    %c0_5 = arith.constant 0 : index
    %c0_6 = arith.constant 0 : index
    %8 = vector.load %arg3[%c0_5, %c0_6] : memref<8x128xf32, #tpu.memory_space<vmem>>, vector<8x128xf32>
    tpu.vector_store %arg3[%c0_5, %c0_6], %7 {strides = array<i32>} : memref<8x128xf32, #tpu.memory_space<vmem>>, vector<8x128xf32>,
    %cst_7 = arith.constant dense<0.000000e+00> : vector<128xf32>
    %9 = vector.multi_reduction <add>, %7, %cst_7 [0] : vector<8x128xf32> to vector<128xf32>
    %10 = vector.shape_cast %9 : vector<128xf32> to vector<1x128xf32>
    %11 = arith.mulf %7, %7 : vector<8x128xf32>
    %cst_8 = arith.constant dense<0.000000e+00> : vector<128xf32>
    %12 = vector.multi_reduction <add>, %11, %cst_8 [0] : vector<8x128xf32> to vector<128xf32>
    %13 = vector.shape_cast %12 : vector<128xf32> to vector<1x128xf32>
    %14 = vector.shape_cast %10 : vector<1x128xf32> to vector<1x1x128xf32>
    %15 = vector.broadcast %14 : vector<1x1x128xf32> to vector<1x8x128xf32>
    %c0_9 = arith.constant 0 : index
    %c0_10 = arith.constant 0 : index
    %c0_11 = arith.constant 0 : index
    %16 = vector.load %arg4[%c0_9, %c0_10, %c0_11] : memref<1x8x128xf32, #tpu.memory_space<vmem>>, vector<1x8x128xf32>
    tpu.vector_store %arg4[%c0_9, %c0_10, %c0_11], %15 {strides = array<i32>} : memref<1x8x128xf32, #tpu.memory_space<vmem>>, vector<1x8x128xf32>,
    %17 = vector.shape_cast %13 : vector<1x128xf32> to vector<1x1x128xf32>
    %18 = vector.broadcast %17 : vector<1x1x128xf32> to vector<1x8x128xf32>
    %c0_12 = arith.constant 0 : index
    %c0_13 = arith.constant 0 : index
    %c0_14 = arith.constant 0 : index
    %19 = vector.load %arg5[%c0_12, %c0_13, %c0_14] : memref<1x8x128xf32, #tpu.memory_space<vmem>>, vector<1x8x128xf32>
    tpu.vector_store %arg5[%c0_12, %c0_13, %c0_14], %18 {strides = array<i32>} : memref<1x8x128xf32, #tpu.memory_space<vmem>>, vector<1x8x128xf32>,
    return
  }
  func.func @transform_0(%arg0: i32) -> (i32, i32) {
    %c0_i32 = arith.constant 0 : i32
    %c0_i32_0 = arith.constant 0 : i32
    return %arg0, %c0_i32 : i32, i32
  }
  func.func @transform_1(%arg0: i32) -> (i32, i32) {
    %c0_i32 = arith.constant 0 : i32
    %c0_i32_0 = arith.constant 0 : i32
    %c0_i32_1 = arith.constant 0 : i32
    return %c0_i32, %c0_i32_0 : i32, i32
  }
  func.func @transform_2(%arg0: i32) -> (i32, i32) {
    %c0_i32 = arith.constant 0 : i32
    %c0_i32_0 = arith.constant 0 : i32
    return %arg0, %c0_i32 : i32, i32
  }
  func.func @transform_3(%arg0: i32) -> (i32, i32, i32) {
    %c0_i32 = arith.constant 0 : i32
    %c0_i32_0 = arith.constant 0 : i32
    %c0_i32_1 = arith.constant 0 : i32
    return %arg0, %c0_i32, %c0_i32_0 : i32, i32, i32
  }
  func.func @transform_4(%arg0: i32) -> (i32, i32, i32) {
    %c0_i32 = arith.constant 0 : i32
    %c0_i32_0 = arith.constant 0 : i32
    %c0_i32_1 = arith.constant 0 : i32
    return %arg0, %c0_i32, %c0_i32_0 : i32, i32, i32
  }
}

module attributes {stable_mosaic.version = 11 : i64} {
  func.func @_affine_kernel(%arg0: i32, %arg1: memref<8x128xf32, #tpu.memory_space<vmem>>, %arg2: memref<1x128xf32, #tpu.memory_space<vmem>>, %arg3: memref<1x128xf32, #tpu.memory_space<vmem>>, %arg4: memref<8x128xf32, #tpu.memory_space<vmem>>) attributes {dimension_semantics = [#tpu.dimension_semantics<parallel>], iteration_bounds = array<i64: 1>, scalar_prefetch = 0 : i64, scratch_operands = 0 : i64, tpu.core_type = #tpu.core_type<tc>, window_params = [{transform_indices = @transform_0, window_bounds = array<i64: 8, 128>}, {pipeline_mode = #tpu.pipeline_mode<synchronous>, transform_indices = @transform_1, window_bounds = array<i64: 1, 128>}, {pipeline_mode = #tpu.pipeline_mode<synchronous>, transform_indices = @transform_2, window_bounds = array<i64: 1, 128>}, {transform_indices = @transform_3, window_bounds = array<i64: 8, 128>}]} {
    %c0 = arith.constant 0 : index
    %c0_0 = arith.constant 0 : index
    %0 = vector.load %arg1[%c0, %c0_0] : memref<8x128xf32, #tpu.memory_space<vmem>>, vector<8x128xf32>
    %c0_1 = arith.constant 0 : index
    %c0_2 = arith.constant 0 : index
    %1 = vector.load %arg2[%c0_1, %c0_2] : memref<1x128xf32, #tpu.memory_space<vmem>>, vector<1x128xf32>
    %2 = vector.broadcast %1 : vector<1x128xf32> to vector<8x128xf32>
    %3 = arith.mulf %0, %2 : vector<8x128xf32>
    %c0_3 = arith.constant 0 : index
    %c0_4 = arith.constant 0 : index
    %4 = vector.load %arg3[%c0_3, %c0_4] : memref<1x128xf32, #tpu.memory_space<vmem>>, vector<1x128xf32>
    %5 = vector.broadcast %4 : vector<1x128xf32> to vector<8x128xf32>
    %6 = arith.addf %3, %5 : vector<8x128xf32>
    %c0_5 = arith.constant 0 : index
    %c0_6 = arith.constant 0 : index
    %7 = vector.load %arg4[%c0_5, %c0_6] : memref<8x128xf32, #tpu.memory_space<vmem>>, vector<8x128xf32>
    tpu.vector_store %arg4[%c0_5, %c0_6], %6 {strides = array<i32>} : memref<8x128xf32, #tpu.memory_space<vmem>>, vector<8x128xf32>,
    return
  }
  func.func @transform_0(%arg0: i32) -> (i32, i32) {
    %c0_i32 = arith.constant 0 : i32
    %c0_i32_0 = arith.constant 0 : i32
    return %arg0, %c0_i32 : i32, i32
  }
  func.func @transform_1(%arg0: i32) -> (i32, i32) {
    %c0_i32 = arith.constant 0 : i32
    %c0_i32_0 = arith.constant 0 : i32
    %c0_i32_1 = arith.constant 0 : i32
    return %c0_i32, %c0_i32_0 : i32, i32
  }
  func.func @transform_2(%arg0: i32) -> (i32, i32) {
    %c0_i32 = arith.constant 0 : i32
    %c0_i32_0 = arith.constant 0 : i32
    %c0_i32_1 = arith.constant 0 : i32
    return %c0_i32, %c0_i32_0 : i32, i32
  }
  func.func @transform_3(%arg0: i32) -> (i32, i32) {
    %c0_i32 = arith.constant 0 : i32
    %c0_i32_0 = arith.constant 0 : i32
    return %arg0, %c0_i32 : i32, i32
  }
}

module attributes {stable_mosaic.version = 11 : i64} {
  func.func @_dwt_down_kernel(%arg0: i32, %arg1: memref<8x128xf32, #tpu.memory_space<vmem>>, %arg2: memref<8x128xf32, #tpu.memory_space<vmem>>, %arg3: memref<8x128xf32, #tpu.memory_space<vmem>>, %arg4: memref<8x128xf32, #tpu.memory_space<vmem>>, %arg5: memref<128x128xf32, #tpu.memory_space<vmem>>, %arg6: memref<1x128xf32, #tpu.memory_space<vmem>>, %arg7: memref<128x128xf32, #tpu.memory_space<vmem>>, %arg8: memref<128x128xf32, #tpu.memory_space<vmem>>, %arg9: memref<128x128xf32, #tpu.memory_space<vmem>>, %arg10: memref<1x128xf32, #tpu.memory_space<vmem>>, %arg11: memref<8x128xf32, #tpu.memory_space<vmem>>, %arg12: memref<8x128xf32, #tpu.memory_space<vmem>>) attributes {dimension_semantics = [#tpu.dimension_semantics<parallel>], iteration_bounds = array<i64: 1>, scalar_prefetch = 0 : i64, scratch_operands = 0 : i64, tpu.core_type = #tpu.core_type<tc>, window_params = [{transform_indices = @transform_0, window_bounds = array<i64: 8, 128>}, {transform_indices = @transform_1, window_bounds = array<i64: 8, 128>}, {transform_indices = @transform_2, window_bounds = array<i64: 8, 128>}, {transform_indices = @transform_3, window_bounds = array<i64: 8, 128>}, {pipeline_mode = #tpu.pipeline_mode<synchronous>, transform_indices = @transform_4, window_bounds = array<i64: 128, 128>}, {pipeline_mode = #tpu.pipeline_mode<synchronous>, transform_indices = @transform_5, window_bounds = array<i64: 1, 128>}, {pipeline_mode = #tpu.pipeline_mode<synchronous>, transform_indices = @transform_6, window_bounds = array<i64: 128, 128>}, {pipeline_mode = #tpu.pipeline_mode<synchronous>, transform_indices = @transform_7, window_bounds = array<i64: 128, 128>}, {pipeline_mode = #tpu.pipeline_mode<synchronous>, transform_indices = @transform_8, window_bounds = array<i64: 128, 128>}, {pipeline_mode = #tpu.pipeline_mode<synchronous>, transform_indices = @transform_9, window_bounds = array<i64: 1, 128>}, {transform_indices = @transform_10, window_bounds = array<i64: 8, 128>}, {transform_indices = @transform_11, window_bounds = array<i64: 8, 128>}]} {
    %c0 = arith.constant 0 : index
    %c0_0 = arith.constant 0 : index
    %0 = vector.load %arg1[%c0, %c0_0] : memref<8x128xf32, #tpu.memory_space<vmem>>, vector<8x128xf32>
    %cst = arith.constant 5.000000e-01 : f32
    %1 = vector.broadcast %cst : f32 to vector<8x128xf32>
    %2 = arith.mulf %0, %1 : vector<8x128xf32>
    %c0_1 = arith.constant 0 : index
    %c0_2 = arith.constant 0 : index
    %3 = vector.load %arg2[%c0_1, %c0_2] : memref<8x128xf32, #tpu.memory_space<vmem>>, vector<8x128xf32>
    %cst_3 = arith.constant 5.000000e-01 : f32
    %4 = vector.broadcast %cst_3 : f32 to vector<8x128xf32>
    %5 = arith.mulf %3, %4 : vector<8x128xf32>
    %c0_4 = arith.constant 0 : index
    %c0_5 = arith.constant 0 : index
    %6 = vector.load %arg3[%c0_4, %c0_5] : memref<8x128xf32, #tpu.memory_space<vmem>>, vector<8x128xf32>
    %cst_6 = arith.constant 5.000000e-01 : f32
    %7 = vector.broadcast %cst_6 : f32 to vector<8x128xf32>
    %8 = arith.mulf %6, %7 : vector<8x128xf32>
    %c0_7 = arith.constant 0 : index
    %c0_8 = arith.constant 0 : index
    %9 = vector.load %arg4[%c0_7, %c0_8] : memref<8x128xf32, #tpu.memory_space<vmem>>, vector<8x128xf32>
    %cst_9 = arith.constant 5.000000e-01 : f32
    %10 = vector.broadcast %cst_9 : f32 to vector<8x128xf32>
    %11 = arith.mulf %9, %10 : vector<8x128xf32>
    %12 = arith.addf %2, %5 : vector<8x128xf32>
    %13 = arith.addf %12, %8 : vector<8x128xf32>
    %14 = arith.addf %13, %11 : vector<8x128xf32>
    %cst_10 = arith.constant 0.000000e+00 : f32
    %15 = vector.broadcast %cst_10 : f32 to vector<8x128xf32>
    %16 = arith.subf %15, %2 : vector<8x128xf32>
    %17 = arith.subf %16, %5 : vector<8x128xf32>
    %18 = arith.addf %17, %8 : vector<8x128xf32>
    %19 = arith.addf %18, %11 : vector<8x128xf32>
    %cst_11 = arith.constant 0.000000e+00 : f32
    %20 = vector.broadcast %cst_11 : f32 to vector<8x128xf32>
    %21 = arith.subf %20, %2 : vector<8x128xf32>
    %22 = arith.addf %21, %5 : vector<8x128xf32>
    %23 = arith.subf %22, %8 : vector<8x128xf32>
    %24 = arith.addf %23, %11 : vector<8x128xf32>
    %25 = arith.subf %2, %5 : vector<8x128xf32>
    %26 = arith.subf %25, %8 : vector<8x128xf32>
    %27 = arith.addf %26, %11 : vector<8x128xf32>
    %c0_12 = arith.constant 0 : index
    %c0_13 = arith.constant 0 : index
    %28 = vector.load %arg5[%c0_12, %c0_13] : memref<128x128xf32, #tpu.memory_space<vmem>>, vector<128x128xf32>
    %cst_14 = arith.constant dense<0.000000e+00> : vector<8x128xf32>
    %29 = tpu.matmul %14, %28, %cst_14 {dimension_numbers = #tpu.dot_dimension_numbers<[1], [0], [0], [1], [0, 0, 1, 1], [], []>} : vector<8x128xf32>, vector<128x128xf32>, vector<8x128xf32> -> vector<8x128xf32>
    %c0_15 = arith.constant 0 : index
    %c0_16 = arith.constant 0 : index
    %30 = vector.load %arg6[%c0_15, %c0_16] : memref<1x128xf32, #tpu.memory_space<vmem>>, vector<1x128xf32>
    %31 = vector.broadcast %30 : vector<1x128xf32> to vector<8x128xf32>
    %32 = arith.addf %29, %31 : vector<8x128xf32>
    %c0_17 = arith.constant 0 : index
    %c0_18 = arith.constant 0 : index
    %33 = vector.load %arg11[%c0_17, %c0_18] : memref<8x128xf32, #tpu.memory_space<vmem>>, vector<8x128xf32>
    tpu.vector_store %arg11[%c0_17, %c0_18], %32 {strides = array<i32>} : memref<8x128xf32, #tpu.memory_space<vmem>>, vector<8x128xf32>,
    %c0_19 = arith.constant 0 : index
    %c0_20 = arith.constant 0 : index
    %34 = vector.load %arg7[%c0_19, %c0_20] : memref<128x128xf32, #tpu.memory_space<vmem>>, vector<128x128xf32>
    %cst_21 = arith.constant dense<0.000000e+00> : vector<8x128xf32>
    %35 = tpu.matmul %19, %34, %cst_21 {dimension_numbers = #tpu.dot_dimension_numbers<[1], [0], [0], [1], [0, 0, 1, 1], [], []>} : vector<8x128xf32>, vector<128x128xf32>, vector<8x128xf32> -> vector<8x128xf32>
    %c0_22 = arith.constant 0 : index
    %c0_23 = arith.constant 0 : index
    %36 = vector.load %arg8[%c0_22, %c0_23] : memref<128x128xf32, #tpu.memory_space<vmem>>, vector<128x128xf32>
    %cst_24 = arith.constant dense<0.000000e+00> : vector<8x128xf32>
    %37 = tpu.matmul %24, %36, %cst_24 {dimension_numbers = #tpu.dot_dimension_numbers<[1], [0], [0], [1], [0, 0, 1, 1], [], []>} : vector<8x128xf32>, vector<128x128xf32>, vector<8x128xf32> -> vector<8x128xf32>
    %38 = arith.addf %35, %37 : vector<8x128xf32>
    %c0_25 = arith.constant 0 : index
    %c0_26 = arith.constant 0 : index
    %39 = vector.load %arg9[%c0_25, %c0_26] : memref<128x128xf32, #tpu.memory_space<vmem>>, vector<128x128xf32>
    %cst_27 = arith.constant dense<0.000000e+00> : vector<8x128xf32>
    %40 = tpu.matmul %27, %39, %cst_27 {dimension_numbers = #tpu.dot_dimension_numbers<[1], [0], [0], [1], [0, 0, 1, 1], [], []>} : vector<8x128xf32>, vector<128x128xf32>, vector<8x128xf32> -> vector<8x128xf32>
    %41 = arith.addf %38, %40 : vector<8x128xf32>
    %c0_28 = arith.constant 0 : index
    %c0_29 = arith.constant 0 : index
    %42 = vector.load %arg10[%c0_28, %c0_29] : memref<1x128xf32, #tpu.memory_space<vmem>>, vector<1x128xf32>
    %43 = vector.broadcast %42 : vector<1x128xf32> to vector<8x128xf32>
    %44 = arith.addf %41, %43 : vector<8x128xf32>
    %c0_30 = arith.constant 0 : index
    %c0_31 = arith.constant 0 : index
    %45 = vector.load %arg12[%c0_30, %c0_31] : memref<8x128xf32, #tpu.memory_space<vmem>>, vector<8x128xf32>
    tpu.vector_store %arg12[%c0_30, %c0_31], %44 {strides = array<i32>} : memref<8x128xf32, #tpu.memory_space<vmem>>, vector<8x128xf32>,
    return
  }
  func.func @transform_0(%arg0: i32) -> (i32, i32) {
    %c0_i32 = arith.constant 0 : i32
    %c0_i32_0 = arith.constant 0 : i32
    return %arg0, %c0_i32 : i32, i32
  }
  func.func @transform_1(%arg0: i32) -> (i32, i32) {
    %c0_i32 = arith.constant 0 : i32
    %c0_i32_0 = arith.constant 0 : i32
    return %arg0, %c0_i32 : i32, i32
  }
  func.func @transform_2(%arg0: i32) -> (i32, i32) {
    %c0_i32 = arith.constant 0 : i32
    %c0_i32_0 = arith.constant 0 : i32
    return %arg0, %c0_i32 : i32, i32
  }
  func.func @transform_3(%arg0: i32) -> (i32, i32) {
    %c0_i32 = arith.constant 0 : i32
    %c0_i32_0 = arith.constant 0 : i32
    return %arg0, %c0_i32 : i32, i32
  }
  func.func @transform_4(%arg0: i32) -> (i32, i32) {
    %c0_i32 = arith.constant 0 : i32
    %c0_i32_0 = arith.constant 0 : i32
    %c0_i32_1 = arith.constant 0 : i32
    return %c0_i32, %c0_i32_0 : i32, i32
  }
  func.func @transform_5(%arg0: i32) -> (i32, i32) {
    %c0_i32 = arith.constant 0 : i32
    %c0_i32_0 = arith.constant 0 : i32
    %c0_i32_1 = arith.constant 0 : i32
    return %c0_i32, %c0_i32_0 : i32, i32
  }
  func.func @transform_6(%arg0: i32) -> (i32, i32) {
    %c0_i32 = arith.constant 0 : i32
    %c0_i32_0 = arith.constant 0 : i32
    %c0_i32_1 = arith.constant 0 : i32
    return %c0_i32, %c0_i32_0 : i32, i32
  }
  func.func @transform_7(%arg0: i32) -> (i32, i32) {
    %c0_i32 = arith.constant 0 : i32
    %c0_i32_0 = arith.constant 0 : i32
    %c0_i32_1 = arith.constant 0 : i32
    return %c0_i32, %c0_i32_0 : i32, i32
  }
  func.func @transform_8(%arg0: i32) -> (i32, i32) {
    %c0_i32 = arith.constant 0 : i32
    %c0_i32_0 = arith.constant 0 : i32
    %c0_i32_1 = arith.constant 0 : i32
    return %c0_i32, %c0_i32_0 : i32, i32
  }
  func.func @transform_9(%arg0: i32) -> (i32, i32) {
    %c0_i32 = arith.constant 0 : i32
    %c0_i32_0 = arith.constant 0 : i32
    %c0_i32_1 = arith.constant 0 : i32
    return %c0_i32, %c0_i32_0 : i32, i32
  }
  func.func @transform_10(%arg0: i32) -> (i32, i32) {
    %c0_i32 = arith.constant 0 : i32
    %c0_i32_0 = arith.constant 0 : i32
    return %arg0, %c0_i32 : i32, i32
  }
  func.func @transform_11(%arg0: i32) -> (i32, i32) {
    %c0_i32 = arith.constant 0 : i32
    %c0_i32_0 = arith.constant 0 : i32
    return %arg0, %c0_i32 : i32, i32
  }
}

module attributes {stable_mosaic.version = 11 : i64} {
  func.func @_mm_bnstat_kernel(%arg0: i32, %arg1: memref<8x640xbf16, #tpu.memory_space<vmem>>, %arg2: memref<640x128xbf16, #tpu.memory_space<vmem>>, %arg3: memref<8x128xf32, #tpu.memory_space<vmem>>, %arg4: memref<1x8x128xf32, #tpu.memory_space<vmem>>, %arg5: memref<1x8x128xf32, #tpu.memory_space<vmem>>) attributes {dimension_semantics = [#tpu.dimension_semantics<parallel>], iteration_bounds = array<i64: 1>, scalar_prefetch = 0 : i64, scratch_operands = 0 : i64, tpu.core_type = #tpu.core_type<tc>, window_params = [{transform_indices = @transform_0, window_bounds = array<i64: 8, 640>}, {pipeline_mode = #tpu.pipeline_mode<synchronous>, transform_indices = @transform_1, window_bounds = array<i64: 640, 128>}, {transform_indices = @transform_2, window_bounds = array<i64: 8, 128>}, {transform_indices = @transform_3, window_bounds = array<i64: 1, 8, 128>}, {transform_indices = @transform_4, window_bounds = array<i64: 1, 8, 128>}]} {
    %c0 = arith.constant 0 : index
    %c0_0 = arith.constant 0 : index
    %0 = vector.load %arg1[%c0, %c0_0] : memref<8x640xbf16, #tpu.memory_space<vmem>>, vector<8x640xbf16>
    %cst = arith.constant 0.000000e+00 : bf16
    %1 = vector.broadcast %cst : bf16 to vector<8x640xbf16>
    %2 = arith.cmpf oge, %0, %1 : vector<8x640xbf16>
    %cst_1 = arith.constant 0.000000e+00 : bf16
    %3 = vector.broadcast %cst_1 : bf16 to vector<8x640xbf16>
    %4 = arith.mulf %3, %0 : vector<8x640xbf16>
    %5 = arith.select %2, %0, %4 : vector<8x640xi1>, vector<8x640xbf16>
    %c0_2 = arith.constant 0 : index
    %c0_3 = arith.constant 0 : index
    %6 = vector.load %arg2[%c0_2, %c0_3] : memref<640x128xbf16, #tpu.memory_space<vmem>>, vector<640x128xbf16>
    %cst_4 = arith.constant dense<0.000000e+00> : vector<8x128xf32>
    %7 = tpu.matmul %5, %6, %cst_4 {dimension_numbers = #tpu.dot_dimension_numbers<[1], [0], [0], [1], [0, 0, 1, 1], [], []>} : vector<8x640xbf16>, vector<640x128xbf16>, vector<8x128xf32> -> vector<8x128xf32>
    %c0_5 = arith.constant 0 : index
    %c0_6 = arith.constant 0 : index
    %8 = vector.load %arg3[%c0_5, %c0_6] : memref<8x128xf32, #tpu.memory_space<vmem>>, vector<8x128xf32>
    tpu.vector_store %arg3[%c0_5, %c0_6], %7 {strides = array<i32>} : memref<8x128xf32, #tpu.memory_space<vmem>>, vector<8x128xf32>,
    %cst_7 = arith.constant dense<0.000000e+00> : vector<128xf32>
    %9 = vector.multi_reduction <add>, %7, %cst_7 [0] : vector<8x128xf32> to vector<128xf32>
    %10 = vector.shape_cast %9 : vector<128xf32> to vector<1x128xf32>
    %11 = arith.mulf %7, %7 : vector<8x128xf32>
    %cst_8 = arith.constant dense<0.000000e+00> : vector<128xf32>
    %12 = vector.multi_reduction <add>, %11, %cst_8 [0] : vector<8x128xf32> to vector<128xf32>
    %13 = vector.shape_cast %12 : vector<128xf32> to vector<1x128xf32>
    %14 = vector.shape_cast %10 : vector<1x128xf32> to vector<1x1x128xf32>
    %15 = vector.broadcast %14 : vector<1x1x128xf32> to vector<1x8x128xf32>
    %c0_9 = arith.constant 0 : index
    %c0_10 = arith.constant 0 : index
    %c0_11 = arith.constant 0 : index
    %16 = vector.load %arg4[%c0_9, %c0_10, %c0_11] : memref<1x8x128xf32, #tpu.memory_space<vmem>>, vector<1x8x128xf32>
    tpu.vector_store %arg4[%c0_9, %c0_10, %c0_11], %15 {strides = array<i32>} : memref<1x8x128xf32, #tpu.memory_space<vmem>>, vector<1x8x128xf32>,
    %17 = vector.shape_cast %13 : vector<1x128xf32> to vector<1x1x128xf32>
    %18 = vector.broadcast %17 : vector<1x1x128xf32> to vector<1x8x128xf32>
    %c0_12 = arith.constant 0 : index
    %c0_13 = arith.constant 0 : index
    %c0_14 = arith.constant 0 : index
    %19 = vector.load %arg5[%c0_12, %c0_13, %c0_14] : memref<1x8x128xf32, #tpu.memory_space<vmem>>, vector<1x8x128xf32>
    tpu.vector_store %arg5[%c0_12, %c0_13, %c0_14], %18 {strides = array<i32>} : memref<1x8x128xf32, #tpu.memory_space<vmem>>, vector<1x8x128xf32>,
    return
  }
  func.func @transform_0(%arg0: i32) -> (i32, i32) {
    %c0_i32 = arith.constant 0 : i32
    %c0_i32_0 = arith.constant 0 : i32
    return %arg0, %c0_i32 : i32, i32
  }
  func.func @transform_1(%arg0: i32) -> (i32, i32) {
    %c0_i32 = arith.constant 0 : i32
    %c0_i32_0 = arith.constant 0 : i32
    %c0_i32_1 = arith.constant 0 : i32
    return %c0_i32, %c0_i32_0 : i32, i32
  }
  func.func @transform_2(%arg0: i32) -> (i32, i32) {
    %c0_i32 = arith.constant 0 : i32
    %c0_i32_0 = arith.constant 0 : i32
    return %arg0, %c0_i32 : i32, i32
  }
  func.func @transform_3(%arg0: i32) -> (i32, i32, i32) {
    %c0_i32 = arith.constant 0 : i32
    %c0_i32_0 = arith.constant 0 : i32
    %c0_i32_1 = arith.constant 0 : i32
    return %arg0, %c0_i32, %c0_i32_0 : i32, i32, i32
  }
  func.func @transform_4(%arg0: i32) -> (i32, i32, i32) {
    %c0_i32 = arith.constant 0 : i32
    %c0_i32_0 = arith.constant 0 : i32
    %c0_i32_1 = arith.constant 0 : i32
    return %arg0, %c0_i32, %c0_i32_0 : i32, i32, i32
  }
}

module attributes {stable_mosaic.version = 11 : i64} {
  func.func @_mm_bnstat_kernel(%arg0: i32, %arg1: memref<32x640xbf16, #tpu.memory_space<vmem>>, %arg2: memref<640x128xbf16, #tpu.memory_space<vmem>>, %arg3: memref<32x128xf32, #tpu.memory_space<vmem>>, %arg4: memref<1x8x128xf32, #tpu.memory_space<vmem>>, %arg5: memref<1x8x128xf32, #tpu.memory_space<vmem>>) attributes {dimension_semantics = [#tpu.dimension_semantics<parallel>], iteration_bounds = array<i64: 1>, scalar_prefetch = 0 : i64, scratch_operands = 0 : i64, tpu.core_type = #tpu.core_type<tc>, window_params = [{transform_indices = @transform_0, window_bounds = array<i64: 32, 640>}, {pipeline_mode = #tpu.pipeline_mode<synchronous>, transform_indices = @transform_1, window_bounds = array<i64: 640, 128>}, {transform_indices = @transform_2, window_bounds = array<i64: 32, 128>}, {transform_indices = @transform_3, window_bounds = array<i64: 1, 8, 128>}, {transform_indices = @transform_4, window_bounds = array<i64: 1, 8, 128>}]} {
    %c0 = arith.constant 0 : index
    %c0_0 = arith.constant 0 : index
    %0 = vector.load %arg1[%c0, %c0_0] : memref<32x640xbf16, #tpu.memory_space<vmem>>, vector<32x640xbf16>
    %cst = arith.constant 0.000000e+00 : bf16
    %1 = vector.broadcast %cst : bf16 to vector<32x640xbf16>
    %2 = arith.cmpf oge, %0, %1 : vector<32x640xbf16>
    %cst_1 = arith.constant 0.000000e+00 : bf16
    %3 = vector.broadcast %cst_1 : bf16 to vector<32x640xbf16>
    %4 = arith.mulf %3, %0 : vector<32x640xbf16>
    %5 = arith.select %2, %0, %4 : vector<32x640xi1>, vector<32x640xbf16>
    %c0_2 = arith.constant 0 : index
    %c0_3 = arith.constant 0 : index
    %6 = vector.load %arg2[%c0_2, %c0_3] : memref<640x128xbf16, #tpu.memory_space<vmem>>, vector<640x128xbf16>
    %cst_4 = arith.constant dense<0.000000e+00> : vector<32x128xf32>
    %7 = tpu.matmul %5, %6, %cst_4 {dimension_numbers = #tpu.dot_dimension_numbers<[1], [0], [0], [1], [0, 0, 1, 1], [], []>} : vector<32x640xbf16>, vector<640x128xbf16>, vector<32x128xf32> -> vector<32x128xf32>
    %c0_5 = arith.constant 0 : index
    %c0_6 = arith.constant 0 : index
    %8 = vector.load %arg3[%c0_5, %c0_6] : memref<32x128xf32, #tpu.memory_space<vmem>>, vector<32x128xf32>
    tpu.vector_store %arg3[%c0_5, %c0_6], %7 {strides = array<i32>} : memref<32x128xf32, #tpu.memory_space<vmem>>, vector<32x128xf32>,
    %cst_7 = arith.constant dense<0.000000e+00> : vector<128xf32>
    %9 = vector.multi_reduction <add>, %7, %cst_7 [0] : vector<32x128xf32> to vector<128xf32>
    %10 = vector.shape_cast %9 : vector<128xf32> to vector<1x128xf32>
    %11 = arith.mulf %7, %7 : vector<32x128xf32>
    %cst_8 = arith.constant dense<0.000000e+00> : vector<128xf32>
    %12 = vector.multi_reduction <add>, %11, %cst_8 [0] : vector<32x128xf32> to vector<128xf32>
    %13 = vector.shape_cast %12 : vector<128xf32> to vector<1x128xf32>
    %14 = vector.shape_cast %10 : vector<1x128xf32> to vector<1x1x128xf32>
    %15 = vector.broadcast %14 : vector<1x1x128xf32> to vector<1x8x128xf32>
    %c0_9 = arith.constant 0 : index
    %c0_10 = arith.constant 0 : index
    %c0_11 = arith.constant 0 : index
    %16 = vector.load %arg4[%c0_9, %c0_10, %c0_11] : memref<1x8x128xf32, #tpu.memory_space<vmem>>, vector<1x8x128xf32>
    tpu.vector_store %arg4[%c0_9, %c0_10, %c0_11], %15 {strides = array<i32>} : memref<1x8x128xf32, #tpu.memory_space<vmem>>, vector<1x8x128xf32>,
    %17 = vector.shape_cast %13 : vector<1x128xf32> to vector<1x1x128xf32>
    %18 = vector.broadcast %17 : vector<1x1x128xf32> to vector<1x8x128xf32>
    %c0_12 = arith.constant 0 : index
    %c0_13 = arith.constant 0 : index
    %c0_14 = arith.constant 0 : index
    %19 = vector.load %arg5[%c0_12, %c0_13, %c0_14] : memref<1x8x128xf32, #tpu.memory_space<vmem>>, vector<1x8x128xf32>
    tpu.vector_store %arg5[%c0_12, %c0_13, %c0_14], %18 {strides = array<i32>} : memref<1x8x128xf32, #tpu.memory_space<vmem>>, vector<1x8x128xf32>,
    return
  }
  func.func @transform_0(%arg0: i32) -> (i32, i32) {
    %c0_i32 = arith.constant 0 : i32
    %c0_i32_0 = arith.constant 0 : i32
    return %arg0, %c0_i32 : i32, i32
  }
  func.func @transform_1(%arg0: i32) -> (i32, i32) {
    %c0_i32 = arith.constant 0 : i32
    %c0_i32_0 = arith.constant 0 : i32
    %c0_i32_1 = arith.constant 0 : i32
    return %c0_i32, %c0_i32_0 : i32, i32
  }
  func.func @transform_2(%arg0: i32) -> (i32, i32) {
    %c0_i32 = arith.constant 0 : i32
    %c0_i32_0 = arith.constant 0 : i32
    return %arg0, %c0_i32 : i32, i32
  }
  func.func @transform_3(%arg0: i32) -> (i32, i32, i32) {
    %c0_i32 = arith.constant 0 : i32
    %c0_i32_0 = arith.constant 0 : i32
    %c0_i32_1 = arith.constant 0 : i32
    return %arg0, %c0_i32, %c0_i32_0 : i32, i32, i32
  }
  func.func @transform_4(%arg0: i32) -> (i32, i32, i32) {
    %c0_i32 = arith.constant 0 : i32
    %c0_i32_0 = arith.constant 0 : i32
    %c0_i32_1 = arith.constant 0 : i32
    return %arg0, %c0_i32, %c0_i32_0 : i32, i32, i32
  }
}

module attributes {stable_mosaic.version = 11 : i64} {
  func.func @_mm_bnstat_kernel(%arg0: i32, %arg1: memref<128x384xbf16, #tpu.memory_space<vmem>>, %arg2: memref<384x128xbf16, #tpu.memory_space<vmem>>, %arg3: memref<128x128xf32, #tpu.memory_space<vmem>>, %arg4: memref<1x8x128xf32, #tpu.memory_space<vmem>>, %arg5: memref<1x8x128xf32, #tpu.memory_space<vmem>>) attributes {dimension_semantics = [#tpu.dimension_semantics<parallel>], iteration_bounds = array<i64: 1>, scalar_prefetch = 0 : i64, scratch_operands = 0 : i64, tpu.core_type = #tpu.core_type<tc>, window_params = [{transform_indices = @transform_0, window_bounds = array<i64: 128, 384>}, {pipeline_mode = #tpu.pipeline_mode<synchronous>, transform_indices = @transform_1, window_bounds = array<i64: 384, 128>}, {transform_indices = @transform_2, window_bounds = array<i64: 128, 128>}, {transform_indices = @transform_3, window_bounds = array<i64: 1, 8, 128>}, {transform_indices = @transform_4, window_bounds = array<i64: 1, 8, 128>}]} {
    %c0 = arith.constant 0 : index
    %c0_0 = arith.constant 0 : index
    %0 = vector.load %arg1[%c0, %c0_0] : memref<128x384xbf16, #tpu.memory_space<vmem>>, vector<128x384xbf16>
    %cst = arith.constant 0.000000e+00 : bf16
    %1 = vector.broadcast %cst : bf16 to vector<128x384xbf16>
    %2 = arith.cmpf oge, %0, %1 : vector<128x384xbf16>
    %cst_1 = arith.constant 0.000000e+00 : bf16
    %3 = vector.broadcast %cst_1 : bf16 to vector<128x384xbf16>
    %4 = arith.mulf %3, %0 : vector<128x384xbf16>
    %5 = arith.select %2, %0, %4 : vector<128x384xi1>, vector<128x384xbf16>
    %c0_2 = arith.constant 0 : index
    %c0_3 = arith.constant 0 : index
    %6 = vector.load %arg2[%c0_2, %c0_3] : memref<384x128xbf16, #tpu.memory_space<vmem>>, vector<384x128xbf16>
    %cst_4 = arith.constant dense<0.000000e+00> : vector<128x128xf32>
    %7 = tpu.matmul %5, %6, %cst_4 {dimension_numbers = #tpu.dot_dimension_numbers<[1], [0], [0], [1], [0, 0, 1, 1], [], []>} : vector<128x384xbf16>, vector<384x128xbf16>, vector<128x128xf32> -> vector<128x128xf32>
    %c0_5 = arith.constant 0 : index
    %c0_6 = arith.constant 0 : index
    %8 = vector.load %arg3[%c0_5, %c0_6] : memref<128x128xf32, #tpu.memory_space<vmem>>, vector<128x128xf32>
    tpu.vector_store %arg3[%c0_5, %c0_6], %7 {strides = array<i32>} : memref<128x128xf32, #tpu.memory_space<vmem>>, vector<128x128xf32>,
    %cst_7 = arith.constant dense<0.000000e+00> : vector<128xf32>
    %9 = vector.multi_reduction <add>, %7, %cst_7 [0] : vector<128x128xf32> to vector<128xf32>
    %10 = vector.shape_cast %9 : vector<128xf32> to vector<1x128xf32>
    %11 = arith.mulf %7, %7 : vector<128x128xf32>
    %cst_8 = arith.constant dense<0.000000e+00> : vector<128xf32>
    %12 = vector.multi_reduction <add>, %11, %cst_8 [0] : vector<128x128xf32> to vector<128xf32>
    %13 = vector.shape_cast %12 : vector<128xf32> to vector<1x128xf32>
    %14 = vector.shape_cast %10 : vector<1x128xf32> to vector<1x1x128xf32>
    %15 = vector.broadcast %14 : vector<1x1x128xf32> to vector<1x8x128xf32>
    %c0_9 = arith.constant 0 : index
    %c0_10 = arith.constant 0 : index
    %c0_11 = arith.constant 0 : index
    %16 = vector.load %arg4[%c0_9, %c0_10, %c0_11] : memref<1x8x128xf32, #tpu.memory_space<vmem>>, vector<1x8x128xf32>
    tpu.vector_store %arg4[%c0_9, %c0_10, %c0_11], %15 {strides = array<i32>} : memref<1x8x128xf32, #tpu.memory_space<vmem>>, vector<1x8x128xf32>,
    %17 = vector.shape_cast %13 : vector<1x128xf32> to vector<1x1x128xf32>
    %18 = vector.broadcast %17 : vector<1x1x128xf32> to vector<1x8x128xf32>
    %c0_12 = arith.constant 0 : index
    %c0_13 = arith.constant 0 : index
    %c0_14 = arith.constant 0 : index
    %19 = vector.load %arg5[%c0_12, %c0_13, %c0_14] : memref<1x8x128xf32, #tpu.memory_space<vmem>>, vector<1x8x128xf32>
    tpu.vector_store %arg5[%c0_12, %c0_13, %c0_14], %18 {strides = array<i32>} : memref<1x8x128xf32, #tpu.memory_space<vmem>>, vector<1x8x128xf32>,
    return
  }
  func.func @transform_0(%arg0: i32) -> (i32, i32) {
    %c0_i32 = arith.constant 0 : i32
    %c0_i32_0 = arith.constant 0 : i32
    return %arg0, %c0_i32 : i32, i32
  }
  func.func @transform_1(%arg0: i32) -> (i32, i32) {
    %c0_i32 = arith.constant 0 : i32
    %c0_i32_0 = arith.constant 0 : i32
    %c0_i32_1 = arith.constant 0 : i32
    return %c0_i32, %c0_i32_0 : i32, i32
  }
  func.func @transform_2(%arg0: i32) -> (i32, i32) {
    %c0_i32 = arith.constant 0 : i32
    %c0_i32_0 = arith.constant 0 : i32
    return %arg0, %c0_i32 : i32, i32
  }
  func.func @transform_3(%arg0: i32) -> (i32, i32, i32) {
    %c0_i32 = arith.constant 0 : i32
    %c0_i32_0 = arith.constant 0 : i32
    %c0_i32_1 = arith.constant 0 : i32
    return %arg0, %c0_i32, %c0_i32_0 : i32, i32, i32
  }
  func.func @transform_4(%arg0: i32) -> (i32, i32, i32) {
    %c0_i32 = arith.constant 0 : i32
    %c0_i32_0 = arith.constant 0 : i32
    %c0_i32_1 = arith.constant 0 : i32
    return %arg0, %c0_i32, %c0_i32_0 : i32, i32, i32
  }
}

module attributes {stable_mosaic.version = 11 : i64} {
  func.func @_affine_kernel(%arg0: i32, %arg1: memref<128x128xf32, #tpu.memory_space<vmem>>, %arg2: memref<1x128xf32, #tpu.memory_space<vmem>>, %arg3: memref<1x128xf32, #tpu.memory_space<vmem>>, %arg4: memref<128x128xf32, #tpu.memory_space<vmem>>) attributes {dimension_semantics = [#tpu.dimension_semantics<parallel>], iteration_bounds = array<i64: 1>, scalar_prefetch = 0 : i64, scratch_operands = 0 : i64, tpu.core_type = #tpu.core_type<tc>, window_params = [{transform_indices = @transform_0, window_bounds = array<i64: 128, 128>}, {pipeline_mode = #tpu.pipeline_mode<synchronous>, transform_indices = @transform_1, window_bounds = array<i64: 1, 128>}, {pipeline_mode = #tpu.pipeline_mode<synchronous>, transform_indices = @transform_2, window_bounds = array<i64: 1, 128>}, {transform_indices = @transform_3, window_bounds = array<i64: 128, 128>}]} {
    %c0 = arith.constant 0 : index
    %c0_0 = arith.constant 0 : index
    %0 = vector.load %arg1[%c0, %c0_0] : memref<128x128xf32, #tpu.memory_space<vmem>>, vector<128x128xf32>
    %c0_1 = arith.constant 0 : index
    %c0_2 = arith.constant 0 : index
    %1 = vector.load %arg2[%c0_1, %c0_2] : memref<1x128xf32, #tpu.memory_space<vmem>>, vector<1x128xf32>
    %2 = vector.broadcast %1 : vector<1x128xf32> to vector<128x128xf32>
    %3 = arith.mulf %0, %2 : vector<128x128xf32>
    %c0_3 = arith.constant 0 : index
    %c0_4 = arith.constant 0 : index
    %4 = vector.load %arg3[%c0_3, %c0_4] : memref<1x128xf32, #tpu.memory_space<vmem>>, vector<1x128xf32>
    %5 = vector.broadcast %4 : vector<1x128xf32> to vector<128x128xf32>
    %6 = arith.addf %3, %5 : vector<128x128xf32>
    %c0_5 = arith.constant 0 : index
    %c0_6 = arith.constant 0 : index
    %7 = vector.load %arg4[%c0_5, %c0_6] : memref<128x128xf32, #tpu.memory_space<vmem>>, vector<128x128xf32>
    tpu.vector_store %arg4[%c0_5, %c0_6], %6 {strides = array<i32>} : memref<128x128xf32, #tpu.memory_space<vmem>>, vector<128x128xf32>,
    return
  }
  func.func @transform_0(%arg0: i32) -> (i32, i32) {
    %c0_i32 = arith.constant 0 : i32
    %c0_i32_0 = arith.constant 0 : i32
    return %arg0, %c0_i32 : i32, i32
  }
  func.func @transform_1(%arg0: i32) -> (i32, i32) {
    %c0_i32 = arith.constant 0 : i32
    %c0_i32_0 = arith.constant 0 : i32
    %c0_i32_1 = arith.constant 0 : i32
    return %c0_i32, %c0_i32_0 : i32, i32
  }
  func.func @transform_2(%arg0: i32) -> (i32, i32) {
    %c0_i32 = arith.constant 0 : i32
    %c0_i32_0 = arith.constant 0 : i32
    %c0_i32_1 = arith.constant 0 : i32
    return %c0_i32, %c0_i32_0 : i32, i32
  }
  func.func @transform_3(%arg0: i32) -> (i32, i32) {
    %c0_i32 = arith.constant 0 : i32
    %c0_i32_0 = arith.constant 0 : i32
    return %arg0, %c0_i32 : i32, i32
  }
}

module attributes {stable_mosaic.version = 11 : i64} {
  func.func @_mm_bnstat_kernel(%arg0: i32, %arg1: memref<512x512xbf16, #tpu.memory_space<vmem>>, %arg2: memref<512x128xbf16, #tpu.memory_space<vmem>>, %arg3: memref<512x128xf32, #tpu.memory_space<vmem>>, %arg4: memref<1x8x128xf32, #tpu.memory_space<vmem>>, %arg5: memref<1x8x128xf32, #tpu.memory_space<vmem>>) attributes {dimension_semantics = [#tpu.dimension_semantics<parallel>], iteration_bounds = array<i64: 1>, scalar_prefetch = 0 : i64, scratch_operands = 0 : i64, tpu.core_type = #tpu.core_type<tc>, window_params = [{transform_indices = @transform_0, window_bounds = array<i64: 512, 512>}, {pipeline_mode = #tpu.pipeline_mode<synchronous>, transform_indices = @transform_1, window_bounds = array<i64: 512, 128>}, {transform_indices = @transform_2, window_bounds = array<i64: 512, 128>}, {transform_indices = @transform_3, window_bounds = array<i64: 1, 8, 128>}, {transform_indices = @transform_4, window_bounds = array<i64: 1, 8, 128>}]} {
    %c0 = arith.constant 0 : index
    %c0_0 = arith.constant 0 : index
    %0 = vector.load %arg1[%c0, %c0_0] : memref<512x512xbf16, #tpu.memory_space<vmem>>, vector<512x512xbf16>
    %c0_1 = arith.constant 0 : index
    %c0_2 = arith.constant 0 : index
    %1 = vector.load %arg2[%c0_1, %c0_2] : memref<512x128xbf16, #tpu.memory_space<vmem>>, vector<512x128xbf16>
    %cst = arith.constant dense<0.000000e+00> : vector<512x128xf32>
    %2 = tpu.matmul %0, %1, %cst {dimension_numbers = #tpu.dot_dimension_numbers<[1], [0], [0], [1], [0, 0, 1, 1], [], []>} : vector<512x512xbf16>, vector<512x128xbf16>, vector<512x128xf32> -> vector<512x128xf32>
    %c0_3 = arith.constant 0 : index
    %c0_4 = arith.constant 0 : index
    %3 = vector.load %arg3[%c0_3, %c0_4] : memref<512x128xf32, #tpu.memory_space<vmem>>, vector<512x128xf32>
    tpu.vector_store %arg3[%c0_3, %c0_4], %2 {strides = array<i32>} : memref<512x128xf32, #tpu.memory_space<vmem>>, vector<512x128xf32>,
    %cst_5 = arith.constant dense<0.000000e+00> : vector<128xf32>
    %4 = vector.multi_reduction <add>, %2, %cst_5 [0] : vector<512x128xf32> to vector<128xf32>
    %5 = vector.shape_cast %4 : vector<128xf32> to vector<1x128xf32>
    %6 = arith.mulf %2, %2 : vector<512x128xf32>
    %cst_6 = arith.constant dense<0.000000e+00> : vector<128xf32>
    %7 = vector.multi_reduction <add>, %6, %cst_6 [0] : vector<512x128xf32> to vector<128xf32>
    %8 = vector.shape_cast %7 : vector<128xf32> to vector<1x128xf32>
    %9 = vector.shape_cast %5 : vector<1x128xf32> to vector<1x1x128xf32>
    %10 = vector.broadcast %9 : vector<1x1x128xf32> to vector<1x8x128xf32>
    %c0_7 = arith.constant 0 : index
    %c0_8 = arith.constant 0 : index
    %c0_9 = arith.constant 0 : index
    %11 = vector.load %arg4[%c0_7, %c0_8, %c0_9] : memref<1x8x128xf32, #tpu.memory_space<vmem>>, vector<1x8x128xf32>
    tpu.vector_store %arg4[%c0_7, %c0_8, %c0_9], %10 {strides = array<i32>} : memref<1x8x128xf32, #tpu.memory_space<vmem>>, vector<1x8x128xf32>,
    %12 = vector.shape_cast %8 : vector<1x128xf32> to vector<1x1x128xf32>
    %13 = vector.broadcast %12 : vector<1x1x128xf32> to vector<1x8x128xf32>
    %c0_10 = arith.constant 0 : index
    %c0_11 = arith.constant 0 : index
    %c0_12 = arith.constant 0 : index
    %14 = vector.load %arg5[%c0_10, %c0_11, %c0_12] : memref<1x8x128xf32, #tpu.memory_space<vmem>>, vector<1x8x128xf32>
    tpu.vector_store %arg5[%c0_10, %c0_11, %c0_12], %13 {strides = array<i32>} : memref<1x8x128xf32, #tpu.memory_space<vmem>>, vector<1x8x128xf32>,
    return
  }
  func.func @transform_0(%arg0: i32) -> (i32, i32) {
    %c0_i32 = arith.constant 0 : i32
    %c0_i32_0 = arith.constant 0 : i32
    return %arg0, %c0_i32 : i32, i32
  }
  func.func @transform_1(%arg0: i32) -> (i32, i32) {
    %c0_i32 = arith.constant 0 : i32
    %c0_i32_0 = arith.constant 0 : i32
    %c0_i32_1 = arith.constant 0 : i32
    return %c0_i32, %c0_i32_0 : i32, i32
  }
  func.func @transform_2(%arg0: i32) -> (i32, i32) {
    %c0_i32 = arith.constant 0 : i32
    %c0_i32_0 = arith.constant 0 : i32
    return %arg0, %c0_i32 : i32, i32
  }
  func.func @transform_3(%arg0: i32) -> (i32, i32, i32) {
    %c0_i32 = arith.constant 0 : i32
    %c0_i32_0 = arith.constant 0 : i32
    %c0_i32_1 = arith.constant 0 : i32
    return %arg0, %c0_i32, %c0_i32_0 : i32, i32, i32
  }
  func.func @transform_4(%arg0: i32) -> (i32, i32, i32) {
    %c0_i32 = arith.constant 0 : i32
    %c0_i32_0 = arith.constant 0 : i32
    %c0_i32_1 = arith.constant 0 : i32
    return %arg0, %c0_i32, %c0_i32_0 : i32, i32, i32
  }
}

module attributes {stable_mosaic.version = 11 : i64} {
  func.func @_mm_bias_kernel(%arg0: i32, %arg1: memref<512x384xbf16, #tpu.memory_space<vmem>>, %arg2: memref<384x128xbf16, #tpu.memory_space<vmem>>, %arg3: memref<1x128xf32, #tpu.memory_space<vmem>>, %arg4: memref<512x128xf32, #tpu.memory_space<vmem>>) attributes {dimension_semantics = [#tpu.dimension_semantics<parallel>], iteration_bounds = array<i64: 1>, scalar_prefetch = 0 : i64, scratch_operands = 0 : i64, tpu.core_type = #tpu.core_type<tc>, window_params = [{transform_indices = @transform_0, window_bounds = array<i64: 512, 384>}, {pipeline_mode = #tpu.pipeline_mode<synchronous>, transform_indices = @transform_1, window_bounds = array<i64: 384, 128>}, {pipeline_mode = #tpu.pipeline_mode<synchronous>, transform_indices = @transform_2, window_bounds = array<i64: 1, 128>}, {transform_indices = @transform_3, window_bounds = array<i64: 512, 128>}]} {
    %c0 = arith.constant 0 : index
    %c0_0 = arith.constant 0 : index
    %0 = vector.load %arg1[%c0, %c0_0] : memref<512x384xbf16, #tpu.memory_space<vmem>>, vector<512x384xbf16>
    %c0_1 = arith.constant 0 : index
    %c0_2 = arith.constant 0 : index
    %1 = vector.load %arg2[%c0_1, %c0_2] : memref<384x128xbf16, #tpu.memory_space<vmem>>, vector<384x128xbf16>
    %cst = arith.constant dense<0.000000e+00> : vector<512x128xf32>
    %2 = tpu.matmul %0, %1, %cst {dimension_numbers = #tpu.dot_dimension_numbers<[1], [0], [0], [1], [0, 0, 1, 1], [], []>} : vector<512x384xbf16>, vector<384x128xbf16>, vector<512x128xf32> -> vector<512x128xf32>
    %c0_3 = arith.constant 0 : index
    %c0_4 = arith.constant 0 : index
    %3 = vector.load %arg3[%c0_3, %c0_4] : memref<1x128xf32, #tpu.memory_space<vmem>>, vector<1x128xf32>
    %4 = vector.broadcast %3 : vector<1x128xf32> to vector<512x128xf32>
    %5 = arith.addf %2, %4 : vector<512x128xf32>
    %c0_5 = arith.constant 0 : index
    %c0_6 = arith.constant 0 : index
    %6 = vector.load %arg4[%c0_5, %c0_6] : memref<512x128xf32, #tpu.memory_space<vmem>>, vector<512x128xf32>
    tpu.vector_store %arg4[%c0_5, %c0_6], %5 {strides = array<i32>} : memref<512x128xf32, #tpu.memory_space<vmem>>, vector<512x128xf32>,
    return
  }
  func.func @transform_0(%arg0: i32) -> (i32, i32) {
    %c0_i32 = arith.constant 0 : i32
    %c0_i32_0 = arith.constant 0 : i32
    return %arg0, %c0_i32 : i32, i32
  }
  func.func @transform_1(%arg0: i32) -> (i32, i32) {
    %c0_i32 = arith.constant 0 : i32
    %c0_i32_0 = arith.constant 0 : i32
    %c0_i32_1 = arith.constant 0 : i32
    return %c0_i32, %c0_i32_0 : i32, i32
  }
  func.func @transform_2(%arg0: i32) -> (i32, i32) {
    %c0_i32 = arith.constant 0 : i32
    %c0_i32_0 = arith.constant 0 : i32
    %c0_i32_1 = arith.constant 0 : i32
    return %c0_i32, %c0_i32_0 : i32, i32
  }
  func.func @transform_3(%arg0: i32) -> (i32, i32) {
    %c0_i32 = arith.constant 0 : i32
    %c0_i32_0 = arith.constant 0 : i32
    return %arg0, %c0_i32 : i32, i32
  }
}

</mosaic_0001>

<bundles_post_ra>
// kernel: forward.20
= control target key start
LH: loop header
LB: loop body
LE: loop exit
PB: predicated region body
PF: predicated region fallthrough
CT: control target
= control target key end

     0   :  { %s832_s0 = inlined_call_operand.vmem [shape: f32[512,128], index: 0, kind: input, shape index: {}]   ;;  %s833_s1 = inlined_call_operand.vmem [shape: f32[1,128], index: 1, kind: input, shape index: {}]   ;;  %s834_s2 = inlined_call_operand.vmem [shape: f32[1,128], index: 2, kind: input, shape index: {}]   ;;  %s835_s3 = inlined_call_operand.vmem [shape: f32[512,128], index: 3, kind: output, shape index: {}]  }
   0x1   :  { %v14_v0 = vld [vmem:[%s832_s0] sm:$0xff]  ;;  %v15_v4 = vld [vmem:[%s832_s0 + $0x8] sm:$0xff]  ;;  %v16_v5 = vld [vmem:[%s832_s0 + $0x10] sm:$0xff] }
   0x2   :  { %v316_v1 = vld [vmem:[%s833_s1] ss:$0 sm:$0xff]  ;;  %v17_v6 = vld [vmem:[%s832_s0 + $0x18] sm:$0xff]  ;;  %v19_v11 = vld [vmem:[%s832_s0 + $0x28] sm:$0xff] }
   0x3   :  { %v321_v2 = vld [vmem:[%s834_s2] ss:$0 sm:$0xff]  ;;  %v85_v3 = vmul.f32 %v316_v1, %v14_v0  ;;  %v86_v7 = vmul.f32 %v316_v1, %v15_v4  ;;  %v87_v8 = vmul.f32 %v316_v1, %v16_v5  ;;  %v88_v9 = vmul.f32 %v316_v1, %v17_v6  ;;  %v20_v12 = vld [vmem:[%s832_s0 + $0x30] sm:$0xff]  ;;  %v21_v17 = vld [vmem:[%s832_s0 + $0x38] sm:$0xff] }
   0x4   :  { %v18_v10 = vld [vmem:[%s832_s0 + $0x20] sm:$0xff]  ;;  %v90_v15 = vmul.f32 %v316_v1, %v19_v11  ;;  %v91_v16 = vmul.f32 %v316_v1, %v20_v12  ;;  %v23_v19 = vld [vmem:[%s832_s0 + $0x48] sm:$0xff]  ;;  %v92_v23 = vmul.f32 %v316_v1, %v21_v17  ;;  %v24_v24 = vld [vmem:[%s832_s0 + $0x50] sm:$0xff] }
   0x5   :  { %v156_v13 = vadd.f32 %v321_v2, %v85_v3  ;;  %v89_v14 = vmul.f32 %v316_v1, %v18_v10  ;;  %v22_v18 = vld [vmem:[%s832_s0 + $0x40] sm:$0xff]  ;;  %v157_v20 = vadd.f32 %v321_v2, %v86_v7  ;;  %v158_v21 = vadd.f32 %v321_v2, %v87_v8  ;;  %v25_v25 = vld [vmem:[%s832_s0 + $0x58] sm:$0xff]  ;;  %v27_v31 = vld [vmem:[%s832_s0 + $0x68] sm:$0xff] }
   0x6   :  { %v159_v22 = vadd.f32 %v321_v2, %v88_v9  ;;  %v26_v26 = vld [vmem:[%s832_s0 + $0x60] sm:$0xff]  ;;  %v161_v28 = vadd.f32 %v321_v2, %v90_v15  ;;  %v162_v29 = vadd.f32 %v321_v2, %v91_v16  ;;  %v93_v30 = vmul.f32 %v316_v1, %v22_v18  ;;  %v28_v32 = vld [vmem:[%s832_s0 + $0x70] sm:$0xff]  ;;  %v29_v33 = vld [vmem:[%s832_s0 + $0x78] sm:$0xff] }
   0x7   :  { %220 = vst [vmem:[%s835_s3] sm:$0xff] %v156_v13  ;;  %v160_v27 = vadd.f32 %v321_v2, %v89_v14  ;;  %221 = vst [vmem:[%s835_s3 + $0x8] sm:$0xff] %v157_v20  ;;  %v163_v34 = vadd.f32 %v321_v2, %v92_v23  ;;  %v94_v35 = vmul.f32 %v316_v1, %v23_v19  ;;  %v30_v38 = vld [vmem:[%s832_s0 + $0x80] sm:$0xff]  ;;  %v31_v43 = vld [vmem:[%s832_s0 + $0x88] sm:$0xff] }
   0x8   :  { %222 = vst [vmem:[%s835_s3 + $0x10] sm:$0xff] %v158_v21  ;;  %223 = vst [vmem:[%s835_s3 + $0x18] sm:$0xff] %v159_v22  ;;  %v95_v36 = vmul.f32 %v316_v1, %v24_v24  ;;  %v96_v37 = vmul.f32 %v316_v1, %v25_v25  ;;  %v164_v39 = vadd.f32 %v321_v2, %v93_v30  ;;  %v32_v44 = vld [vmem:[%s832_s0 + $0x90] sm:$0xff]  ;;  %v33_v45 = vld [vmem:[%s832_s0 + $0x98] sm:$0xff] }
   0x9   :  { %224 = vst [vmem:[%s835_s3 + $0x20] sm:$0xff] %v160_v27  ;;  %225 = vst [vmem:[%s835_s3 + $0x28] sm:$0xff] %v161_v28  ;;  %v97_v40 = vmul.f32 %v316_v1, %v26_v26  ;;  %v98_v41 = vmul.f32 %v316_v1, %v27_v31  ;;  %v99_v42 = vmul.f32 %v316_v1, %v28_v32  ;;  %v34_v50 = vld [vmem:[%s832_s0 + $0xa0] sm:$0xff]  ;;  %v35_v51 = vld [vmem:[%s832_s0 + $0xa8] sm:$0xff] }
   0xa   :  { %226 = vst [vmem:[%s835_s3 + $0x30] sm:$0xff] %v162_v29  ;;  %227 = vst [vmem:[%s835_s3 + $0x38] sm:$0xff] %v163_v34  ;;  %v165_v46 = vadd.f32 %v321_v2, %v94_v35  ;;  %v166_v47 = vadd.f32 %v321_v2, %v95_v36  ;;  %v167_v48 = vadd.f32 %v321_v2, %v96_v37  ;;  %v36_v52 = vld [vmem:[%s832_s0 + $0xb0] sm:$0xff]  ;;  %v37_v57 = vld [vmem:[%s832_s0 + $0xb8] sm:$0xff] }
   0xb   :  { %v100_v49 = vmul.f32 %v316_v1, %v29_v33  ;;  %228 = vst [vmem:[%s835_s3 + $0x40] sm:$0xff] %v164_v39  ;;  %v168_v53 = vadd.f32 %v321_v2, %v97_v40  ;;  %v169_v54 = vadd.f32 %v321_v2, %v98_v41  ;;  %v170_v55 = vadd.f32 %v321_v2, %v99_v42  ;;  %v38_v62 = vld [vmem:[%s832_s0 + $0xc0] sm:$0xff]  ;;  %v39_v5 = vld [vmem:[%s832_s0 + $0xc8] sm:$0xff]  ;;  %v40_v6 = vld [vmem:[%s832_s0 + $0xd0] sm:$0xff] }
   0xc   :  { %v101_v56 = vmul.f32 %v316_v1, %v30_v38  ;;  %229 = vst [vmem:[%s835_s3 + $0x48] sm:$0xff] %v165_v46  ;;  %230 = vst [vmem:[%s835_s3 + $0x50] sm:$0xff] %v166_v47  ;;  %v102_v59 = vmul.f32 %v316_v1, %v31_v43  ;;  %v103_v60 = vmul.f32 %v316_v1, %v32_v44  ;;  %v41_v7 = vld [vmem:[%s832_s0 + $0xd8] sm:$0xff]  ;;  %v42_v12 = vld [vmem:[%s832_s0 + $0xe0] sm:$0xff] }
   0xd   :  { %231 = vst [vmem:[%s835_s3 + $0x58] sm:$0xff] %v167_v48  ;;  %v171_v58 = vadd.f32 %v321_v2, %v100_v49  ;;  %v104_v61 = vmul.f32 %v316_v1, %v33_v45  ;;  %232 = vst [vmem:[%s835_s3 + $0x60] sm:$0xff] %v168_v53  ;;  %v105_v0 = vmul.f32 %v316_v1, %v34_v50  ;;  %v43_v13 = vld [vmem:[%s832_s0 + $0xe8] sm:$0xff]  ;;  %v44_v14 = vld [vmem:[%s832_s0 + $0xf0] sm:$0xff] }
   0xe   :  { %233 = vst [vmem:[%s835_s3 + $0x68] sm:$0xff] %v169_v54  ;;  %234 = vst [vmem:[%s835_s3 + $0x70] sm:$0xff] %v170_v55  ;;  %v172_v63 = vadd.f32 %v321_v2, %v101_v56  ;;  %v106_v3 = vmul.f32 %v316_v1, %v35_v51  ;;  %v107_v4 = vmul.f32 %v316_v1, %v36_v52  ;;  %v45_v19 = vld [vmem:[%s832_s0 + $0xf8] sm:$0xff]  ;;  %v46_v24 = vld [vmem:[%s832_s0 + $0x100] sm:$0xff] }
   0xf   :  { %235 = vst [vmem:[%s835_s3 + $0x78] sm:$0xff] %v171_v58  ;;  %v173_v8 = vadd.f32 %v321_v2, %v102_v59  ;;  %v174_v9 = vadd.f32 %v321_v2, %v103_v60  ;;  %v175_v10 = vadd.f32 %v321_v2, %v104_v61  ;;  %v108_v11 = vmul.f32 %v316_v1, %v37_v57  ;;  %v47_v29 = vld [vmem:[%s832_s0 + $0x108] sm:$0xff]  ;;  %v48_v30 = vld [vmem:[%s832_s0 + $0x110] sm:$0xff]  ;;  %v49_v31 = vld [vmem:[%s832_s0 + $0x118] sm:$0xff] }
  0x10   :  { %236 = vst [vmem:[%s835_s3 + $0x80] sm:$0xff] %v172_v63  ;;  %v176_v15 = vadd.f32 %v321_v2, %v105_v0  ;;  %v177_v16 = vadd.f32 %v321_v2, %v106_v3  ;;  %v178_v17 = vadd.f32 %v321_v2, %v107_v4  ;;  %v109_v18 = vmul.f32 %v316_v1, %v38_v62  ;;  %v50_v36 = vld [vmem:[%s832_s0 + $0x120] sm:$0xff]  ;;  %v51_v37 = vld [vmem:[%s832_s0 + $0x128] sm:$0xff]  ;;  %v52_v38 = vld [vmem:[%s832_s0 + $0x130] sm:$0xff] }
  0x11   :  { %237 = vst [vmem:[%s835_s3 + $0x88] sm:$0xff] %v173_v8  ;;  %238 = vst [vmem:[%s835_s3 + $0x90] sm:$0xff] %v174_v9  ;;  %v179_v20 = vadd.f32 %v321_v2, %v108_v11  ;;  %v110_v21 = vmul.f32 %v316_v1, %v39_v5  ;;  %v111_v22 = vmul.f32 %v316_v1, %v40_v6  ;;  %v53_v43 = vld [vmem:[%s832_s0 + $0x138] sm:$0xff]  ;;  %v54_v48 = vld [vmem:[%s832_s0 + $0x140] sm:$0xff] }
  0x12   :  { %239 = vst [vmem:[%s835_s3 + $0x98] sm:$0xff] %v175_v10  ;;  %v112_v23 = vmul.f32 %v316_v1, %v41_v7  ;;  %240 = vst [vmem:[%s835_s3 + $0xa0] sm:$0xff] %v176_v15  ;;  %v180_v25 = vadd.f32 %v321_v2, %v109_v18  ;;  %v113_v26 = vmul.f32 %v316_v1, %v42_v12  ;;  %v55_v53 = vld [vmem:[%s832_s0 + $0x148] sm:$0xff]  ;;  %v56_v54 = vld [vmem:[%s832_s0 + $0x150] sm:$0xff] }
  0x13   :  { %241 = vst [vmem:[%s835_s3 + $0xa8] sm:$0xff] %v177_v16  ;;  %242 = vst [vmem:[%s835_s3 + $0xb0] sm:$0xff] %v178_v17  ;;  %v114_v27 = vmul.f32 %v316_v1, %v43_v13  ;;  %v115_v28 = vmul.f32 %v316_v1, %v44_v14  ;;  %v181_v32 = vadd.f32 %v321_v2, %v110_v21  ;;  %v57_v55 = vld [vmem:[%s832_s0 + $0x158] sm:$0xff]  ;;  %v58_v60 = vld [vmem:[%s832_s0 + $0x160] sm:$0xff] }
  0x14   :  { %243 = vst [vmem:[%s835_s3 + $0xb8] sm:$0xff] %v179_v20  ;;  %v182_v33 = vadd.f32 %v321_v2, %v111_v22  ;;  %v183_v34 = vadd.f32 %v321_v2, %v112_v23  ;;  %v116_v35 = vmul.f32 %v316_v1, %v45_v19  ;;  %244 = vst [vmem:[%s835_s3 + $0xc0] sm:$0xff] %v180_v25  ;;  %v59_v61 = vld [vmem:[%s832_s0 + $0x168] sm:$0xff]  ;;  %v60_v62 = vld [vmem:[%s832_s0 + $0x170] sm:$0xff] }
  0x15   :  { %v184_v39 = vadd.f32 %v321_v2, %v113_v26  ;;  %v185_v40 = vadd.f32 %v321_v2, %v114_v27  ;;  %v186_v41 = vadd.f32 %v321_v2, %v115_v28  ;;  %v117_v42 = vmul.f32 %v316_v1, %v46_v24  ;;  %245 = vst [vmem:[%s835_s3 + $0xc8] sm:$0xff] %v181_v32  ;;  %v61_v5 = vld [vmem:[%s832_s0 + $0x178] sm:$0xff]  ;;  %v62_v10 = vld [vmem:[%s832_s0 + $0x180] sm:$0xff]  ;;  %v63_v15 = vld [vmem:[%s832_s0 + $0x188] sm:$0xff] }
  0x16   :  { %246 = vst [vmem:[%s835_s3 + $0xd0] sm:$0xff] %v182_v33  ;;  %247 = vst [vmem:[%s835_s3 + $0xd8] sm:$0xff] %v183_v34  ;;  %v187_v44 = vadd.f32 %v321_v2, %v116_v35  ;;  %v118_v45 = vmul.f32 %v316_v1, %v47_v29  ;;  %v119_v46 = vmul.f32 %v316_v1, %v48_v30  ;;  %v64_v16 = vld [vmem:[%s832_s0 + $0x190] sm:$0xff]  ;;  %v65_v17 = vld [vmem:[%s832_s0 + $0x198] sm:$0xff] }
  0x17   :  { %v120_v47 = vmul.f32 %v316_v1, %v49_v31  ;;  %248 = vst [vmem:[%s835_s3 + $0xe0] sm:$0xff] %v184_v39  ;;  %249 = vst [vmem:[%s835_s3 + $0xe8] sm:$0xff] %v185_v40  ;;  %v188_v49 = vadd.f32 %v321_v2, %v117_v42  ;;  %v121_v50 = vmul.f32 %v316_v1, %v50_v36  ;;  %v66_v22 = vld [vmem:[%s832_s0 + $0x1a0] sm:$0xff]  ;;  %v67_v23 = vld [vmem:[%s832_s0 + $0x1a8] sm:$0xff] }
  0x18   :  { %250 = vst [vmem:[%s835_s3 + $0xf0] sm:$0xff] %v186_v41  ;;  %v122_v51 = vmul.f32 %v316_v1, %v51_v37  ;;  %v123_v52 = vmul.f32 %v316_v1, %v52_v38  ;;  %251 = vst [vmem:[%s835_s3 + $0xf8] sm:$0xff] %v187_v44  ;;  %v189_v56 = vadd.f32 %v321_v2, %v118_v45  ;;  %v68_v24 = vld [vmem:[%s832_s0 + $0x1b0] sm:$0xff]  ;;  %v69_v29 = vld [vmem:[%s832_s0 + $0x1b8] sm:$0xff] }
  0x19   :  { %v190_v57 = vadd.f32 %v321_v2, %v119_v46  ;;  %v191_v58 = vadd.f32 %v321_v2, %v120_v47  ;;  %v124_v59 = vmul.f32 %v316_v1, %v53_v43  ;;  %252 = vst [vmem:[%s835_s3 + $0x100] sm:$0xff] %v188_v49  ;;  %v192_v63 = vadd.f32 %v321_v2, %v121_v50  ;;  %v70_v34 = vld [vmem:[%s832_s0 + $0x1c0] sm:$0xff]  ;;  %v71_v39 = vld [vmem:[%s832_s0 + $0x1c8] sm:$0xff]  ;;  %v72_v40 = vld [vmem:[%s832_s0 + $0x1d0] sm:$0xff] }
  0x1a   :  { %v193_v0 = vadd.f32 %v321_v2, %v122_v51  ;;  %v194_v3 = vadd.f32 %v321_v2, %v123_v52  ;;  %v125_v4 = vmul.f32 %v316_v1, %v54_v48  ;;  %253 = vst [vmem:[%s835_s3 + $0x108] sm:$0xff] %v189_v56  ;;  %v126_v7 = vmul.f32 %v316_v1, %v55_v53  ;;  %v73_v41 = vld [vmem:[%s832_s0 + $0x1d8] sm:$0xff]  ;;  %v74_v46 = vld [vmem:[%s832_s0 + $0x1e0] sm:$0xff]  ;;  %v75_v47 = vld [vmem:[%s832_s0 + $0x1e8] sm:$0xff] }
  0x1b   :  { %254 = vst [vmem:[%s835_s3 + $0x110] sm:$0xff] %v190_v57  ;;  %255 = vst [vmem:[%s835_s3 + $0x118] sm:$0xff] %v191_v58  ;;  %v195_v6 = vadd.f32 %v321_v2, %v124_v59  ;;  %v127_v8 = vmul.f32 %v316_v1, %v56_v54  ;;  %v128_v9 = vmul.f32 %v316_v1, %v57_v55  ;;  %v76_v48 = vld [vmem:[%s832_s0 + $0x1f0] sm:$0xff]  ;;  %v77_v53 = vld [vmem:[%s832_s0 + $0x1f8] sm:$0xff] }
  0x1c   :  { %256 = vst [vmem:[%s835_s3 + $0x120] sm:$0xff] %v192_v63  ;;  %257 = vst [vmem:[%s835_s3 + $0x128] sm:$0xff] %v193_v0  ;;  %v196_v11 = vadd.f32 %v321_v2, %v125_v4  ;;  %v129_v12 = vmul.f32 %v316_v1, %v58_v60  ;;  %v130_v13 = vmul.f32 %v316_v1, %v59_v61 }
  0x1d   :  { %258 = vst [vmem:[%s835_s3 + $0x130] sm:$0xff] %v194_v3  ;;  %v131_v14 = vmul.f32 %v316_v1, %v60_v62  ;;  %259 = vst [vmem:[%s835_s3 + $0x138] sm:$0xff] %v195_v6  ;;  %v197_v18 = vadd.f32 %v321_v2, %v126_v7  ;;  %v198_v19 = vadd.f32 %v321_v2, %v127_v8 }
  0x1e   :  { %v199_v20 = vadd.f32 %v321_v2, %v128_v9  ;;  %v132_v21 = vmul.f32 %v316_v1, %v61_v5  ;;  %260 = vst [vmem:[%s835_s3 + $0x140] sm:$0xff] %v196_v11  ;;  %v200_v25 = vadd.f32 %v321_v2, %v129_v12  ;;  %v201_v26 = vadd.f32 %v321_v2, %v130_v13 }
  0x1f   :  { %v202_v27 = vadd.f32 %v321_v2, %v131_v14  ;;  %v133_v28 = vmul.f32 %v316_v1, %v62_v10  ;;  %261 = vst [vmem:[%s835_s3 + $0x148] sm:$0xff] %v197_v18  ;;  %262 = vst [vmem:[%s835_s3 + $0x150] sm:$0xff] %v198_v19  ;;  %v134_v31 = vmul.f32 %v316_v1, %v63_v15 }
  0x20   :  { %263 = vst [vmem:[%s835_s3 + $0x158] sm:$0xff] %v199_v20  ;;  %v203_v30 = vadd.f32 %v321_v2, %v132_v21  ;;  %v135_v32 = vmul.f32 %v316_v1, %v64_v16  ;;  %v136_v33 = vmul.f32 %v316_v1, %v65_v17  ;;  %264 = vst [vmem:[%s835_s3 + $0x160] sm:$0xff] %v200_v25 }
  0x21   :  { %265 = vst [vmem:[%s835_s3 + $0x168] sm:$0xff] %v201_v26  ;;  %266 = vst [vmem:[%s835_s3 + $0x170] sm:$0xff] %v202_v27  ;;  %v204_v35 = vadd.f32 %v321_v2, %v133_v28  ;;  %v137_v36 = vmul.f32 %v316_v1, %v66_v22  ;;  %v138_v37 = vmul.f32 %v316_v1, %v67_v23 }
  0x22   :  { %v139_v38 = vmul.f32 %v316_v1, %v68_v24  ;;  %267 = vst [vmem:[%s835_s3 + $0x178] sm:$0xff] %v203_v30  ;;  %v205_v42 = vadd.f32 %v321_v2, %v134_v31  ;;  %v206_v43 = vadd.f32 %v321_v2, %v135_v32  ;;  %v207_v44 = vadd.f32 %v321_v2, %v136_v33 }
  0x23   :  { %v140_v45 = vmul.f32 %v316_v1, %v69_v29  ;;  %268 = vst [vmem:[%s835_s3 + $0x180] sm:$0xff] %v204_v35  ;;  %v208_v49 = vadd.f32 %v321_v2, %v137_v36  ;;  %v209_v50 = vadd.f32 %v321_v2, %v138_v37  ;;  %v141_v52 = vmul.f32 %v316_v1, %v70_v34 }
  0x24   :  { %v210_v51 = vadd.f32 %v321_v2, %v139_v38  ;;  %269 = vst [vmem:[%s835_s3 + $0x188] sm:$0xff] %v205_v42  ;;  %270 = vst [vmem:[%s835_s3 + $0x190] sm:$0xff] %v206_v43  ;;  %v142_v55 = vmul.f32 %v316_v1, %v71_v39  ;;  %v143_v56 = vmul.f32 %v316_v1, %v72_v40 }
  0x25   :  { %271 = vst [vmem:[%s835_s3 + $0x198] sm:$0xff] %v207_v44  ;;  %v211_v54 = vadd.f32 %v321_v2, %v140_v45  ;;  %v144_v57 = vmul.f32 %v316_v1, %v73_v41  ;;  %272 = vst [vmem:[%s835_s3 + $0x1a0] sm:$0xff] %v208_v49  ;;  %v212_v58 = vadd.f32 %v321_v2, %v141_v52 }
  0x26   :  { %273 = vst [vmem:[%s835_s3 + $0x1a8] sm:$0xff] %v209_v50  ;;  %274 = vst [vmem:[%s835_s3 + $0x1b0] sm:$0xff] %v210_v51  ;;  %v145_v59 = vmul.f32 %v316_v1, %v74_v46  ;;  %v146_v60 = vmul.f32 %v316_v1, %v75_v47  ;;  %v147_v61 = vmul.f32 %v316_v1, %v76_v48 }
  0x27   :  { %275 = vst [vmem:[%s835_s3 + $0x1b8] sm:$0xff] %v211_v54  ;;  %v213_v62 = vadd.f32 %v321_v2, %v142_v55  ;;  %v214_v63 = vadd.f32 %v321_v2, %v143_v56  ;;  %v215_v0 = vadd.f32 %v321_v2, %v144_v57  ;;  %v148_v3 = vmul.f32 %v316_v1, %v77_v53 }
  0x28   :  { %276 = vst [vmem:[%s835_s3 + $0x1c0] sm:$0xff] %v212_v58  ;;  %v216_v4 = vadd.f32 %v321_v2, %v145_v59  ;;  %v217_v5 = vadd.f32 %v321_v2, %v146_v60  ;;  %v218_v6 = vadd.f32 %v321_v2, %v147_v61 }
  0x29   :  { %277 = vst [vmem:[%s835_s3 + $0x1c8] sm:$0xff] %v213_v62  ;;  %278 = vst [vmem:[%s835_s3 + $0x1d0] sm:$0xff] %v214_v63  ;;  %v219_v1 = vadd.f32 %v321_v2, %v148_v3 }
  0x2a   :  { %279 = vst [vmem:[%s835_s3 + $0x1d8] sm:$0xff] %v215_v0  ;;  %280 = vst [vmem:[%s835_s3 + $0x1e0] sm:$0xff] %v216_v4 }
  0x2b   :  { %281 = vst [vmem:[%s835_s3 + $0x1e8] sm:$0xff] %v217_v5  ;;  %282 = vst [vmem:[%s835_s3 + $0x1f0] sm:$0xff] %v218_v6 }
  0x2c   :  { %283 = vst [vmem:[%s835_s3 + $0x1f8] sm:$0xff] %v219_v1 }

// kernel: forward.19
= control target key start
LH: loop header
LB: loop body
LE: loop exit
PB: predicated region body
PF: predicated region fallthrough
CT: control target
= control target key end

     0   :  { %s1655_s1 = inlined_call_operand.vmem [shape: bf16[128,128], index: 1, kind: input, shape index: {}]   ;;  %s1656_s0 = inlined_call_operand.vmem [shape: bf16[512,128], index: 0, kind: input, shape index: {}]   ;;  %s1657_s2 = inlined_call_operand.vmem [shape: f32[512,128], index: 2, kind: output, shape index: {0}]   ;;  %s1658_s3 = inlined_call_operand.vmem [shape: f32[1,8,128], index: 3, kind: output, shape index: {1}]   ;;  %s1659_s4 = inlined_call_operand.vmem [shape: f32[1,8,128], index: 4, kind: output, shape index: {2}]  }
   0x1   :  { %v1080_v0 = vld [vmem:[%s1655_s1] sm:$0xff]   ;;  %v1081_v1 = vld [vmem:[%s1655_s1 + $0x8] sm:$0xff]   ;;  %v1082_v2 = vld [vmem:[%s1655_s1 + $0x10] sm:$0xff]  }
   0x2   :  { %984 = vmatprep.subr.bf16.mxu0 %v1080_v0  ;;  %1064 = vmatprep.subr.bf16.mxu1 %v1080_v0  ;;  %v1083_v3 = vld [vmem:[%s1655_s1 + $0x18] sm:$0xff]   ;;  %v1088_v4 = vld [vmem:[%s1656_s0] sm:$0xff]   ;;  %v1085_v6 = vld [vmem:[%s1655_s1 + $0x28] sm:$0xff]  }
   0x3   :  { %985 = vmatpush3.bf16.msra.mxu0 %v1080_v0  ;;  %1072 = vmatpush3.bf16.msra.mxu1 %v1080_v0  ;;  %v1084_v5 = vld [vmem:[%s1655_s1 + $0x20] sm:$0xff]   ;;  %v1086_v7 = vld [vmem:[%s1655_s1 + $0x30] sm:$0xff]   ;;  %v1087_v8 = vld [vmem:[%s1655_s1 + $0x38] sm:$0xff]  }
   0x4   :  { %986 = vmatprep.subr.bf16.mxu0 %v1081_v1  ;;  %1065 = vmatprep.subr.bf16.mxu1 %v1081_v1  ;;  %v1104_v9 = vld [vmem:[%s1656_s0 + $0x80] sm:$0xff]   ;;  %v1089_v10 = vld [vmem:[%s1656_s0 + $0x8] sm:$0xff]   ;;  %v1090_v11 = vld [vmem:[%s1656_s0 + $0x10] sm:$0xff]  }
   0x5   :  { %1000 = vmatprep.mubr.bf16.mxu0 %v1088_v4  ;;  %1032 = vmatprep.mubr.bf16.mxu1 %v1104_v9  ;;  %v1105_v12 = vld [vmem:[%s1656_s0 + $0x88] sm:$0xff]   ;;  %v1106_v13 = vld [vmem:[%s1656_s0 + $0x90] sm:$0xff]   ;;  %v1091_v14 = vld [vmem:[%s1656_s0 + $0x18] sm:$0xff]  }
   0x6   :  { %v1092_v15 = vld [vmem:[%s1656_s0 + $0x20] sm:$0xff]   ;;  %v1107_v16 = vld [vmem:[%s1656_s0 + $0x98] sm:$0xff]   ;;  %v1093_v18 = vld [vmem:[%s1656_s0 + $0x28] sm:$0xff]  }
   0x7   :  { %987 = vmatpush3.bf16.msra.mxu0 %v1081_v1  ;;  %1073 = vmatpush3.bf16.msra.mxu1 %v1081_v1  ;;  %v1108_v17 = vld [vmem:[%s1656_s0 + $0xa0] sm:$0xff]   ;;  %v1109_v19 = vld [vmem:[%s1656_s0 + $0xa8] sm:$0xff]   ;;  %v1094_v20 = vld [vmem:[%s1656_s0 + $0x30] sm:$0xff]  }
   0x8   :  { %988 = vmatprep.subr.bf16.mxu0 %v1082_v2  ;;  %1066 = vmatprep.subr.bf16.mxu1 %v1082_v2  ;;  %v1110_v21 = vld [vmem:[%s1656_s0 + $0xb0] sm:$0xff]   ;;  %v1095_v22 = vld [vmem:[%s1656_s0 + $0x38] sm:$0xff]   ;;  %v1096_v24 = vld [vmem:[%s1656_s0 + $0x40] sm:$0xff]  }
   0x9   :  { %v1111_v23 = vld [vmem:[%s1656_s0 + $0xb8] sm:$0xff]   ;;  %v1112_v25 = vld [vmem:[%s1656_s0 + $0xc0] sm:$0xff]   ;;  %v1097_v26 = vld [vmem:[%s1656_s0 + $0x48] sm:$0xff]  }
   0xa   :  { %v1113_v27 = vld [vmem:[%s1656_s0 + $0xc8] sm:$0xff]   ;;  %v1098_v28 = vld [vmem:[%s1656_s0 + $0x50] sm:$0xff]   ;;  %v1099_v30 = vld [vmem:[%s1656_s0 + $0x58] sm:$0xff]  }
   0xb   :  { %989 = vmatpush3.bf16.msra.mxu0 %v1082_v2  ;;  %1074 = vmatpush3.bf16.msra.mxu1 %v1082_v2  ;;  %v1114_v29 = vld [vmem:[%s1656_s0 + $0xd0] sm:$0xff]   ;;  %v1115_v31 = vld [vmem:[%s1656_s0 + $0xd8] sm:$0xff]   ;;  %v1100_v32 = vld [vmem:[%s1656_s0 + $0x60] sm:$0xff]  }
   0xc   :  { %990 = vmatprep.subr.bf16.mxu0 %v1083_v3  ;;  %1067 = vmatprep.subr.bf16.mxu1 %v1083_v3  ;;  %v1116_v33 = vld [vmem:[%s1656_s0 + $0xe0] sm:$0xff]   ;;  %v1101_v34 = vld [vmem:[%s1656_s0 + $0x68] sm:$0xff]   ;;  %v1102_v36 = vld [vmem:[%s1656_s0 + $0x70] sm:$0xff]  }
   0xd   :  { %v1117_v35 = vld [vmem:[%s1656_s0 + $0xe8] sm:$0xff]   ;;  %v1118_v37 = vld [vmem:[%s1656_s0 + $0xf0] sm:$0xff]   ;;  %v1103_v38 = vld [vmem:[%s1656_s0 + $0x78] sm:$0xff]  }
   0xe   :  { %v1119_v39 = vld [vmem:[%s1656_s0 + $0xf8] sm:$0xff]  }
   0xf   :  { %991 = vmatpush3.bf16.msra.mxu0 %v1083_v3  ;;  %1075 = vmatpush3.bf16.msra.mxu1 %v1083_v3 }
  0x10   :  { %992 = vmatprep.subr.bf16.mxu0 %v1084_v5  ;;  %1068 = vmatprep.subr.bf16.mxu1 %v1084_v5 }
  0x13   :  { %993 = vmatpush3.bf16.msra.mxu0 %v1084_v5  ;;  %1076 = vmatpush3.bf16.msra.mxu1 %v1084_v5 }
  0x14   :  { %994 = vmatprep.subr.bf16.mxu0 %v1085_v6  ;;  %1069 = vmatprep.subr.bf16.mxu1 %v1085_v6 }
  0x17   :  { %995 = vmatpush3.bf16.msra.mxu0 %v1085_v6  ;;  %1077 = vmatpush3.bf16.msra.mxu1 %v1085_v6 }
  0x18   :  { %996 = vmatprep.subr.bf16.mxu0 %v1086_v7  ;;  %1070 = vmatprep.subr.bf16.mxu1 %v1086_v7 }
  0x1b   :  { %997 = vmatpush3.bf16.msra.mxu0 %v1086_v7  ;;  %1078 = vmatpush3.bf16.msra.mxu1 %v1086_v7 }
  0x1c   :  { %998 = vmatprep.subr.bf16.mxu0 %v1087_v8  ;;  %1071 = vmatprep.subr.bf16.mxu1 %v1087_v8 }
  0x1f   :  { %999 = vmatpush3.bf16.msra.mxu0 %v1087_v8  ;;  %1079 = vmatpush3.bf16.msra.mxu1 %v1087_v8 }
  0x22   :  { %1001 = vmatmul.mubr.bf16.vlgmr.msra.gmra.mrb[0].mxu0 %v1089_v10  ;;  %1033 = vmatmul.mubr.bf16.vlgmr.msra.gmra.mrb[0].mxu1 %v1105_v12 }
  0x23   :  { %1004 = vmatprep.mubr.bf16.mxu0 %v1090_v11  ;;  %1036 = vmatprep.mubr.bf16.mxu1 %v1106_v13 }
  0x2a   :  { %1005 = vmatmul.mubr.bf16.gmra.mrb[4].mxu0 %v1091_v14  ;;  %1037 = vmatmul.mubr.bf16.gmra.mrb[4].mxu1 %v1107_v16 }
  0x2b   :  { %1008 = vmatprep.mubr.bf16.mxu0 %v1092_v15  ;;  %1040 = vmatprep.mubr.bf16.mxu1 %v1108_v17 }
  0x32   :  { %1009 = vmatmul.mubr.bf16.gmra.mrb[8].mxu0 %v1093_v18  ;;  %1041 = vmatmul.mubr.bf16.gmra.mrb[8].mxu1 %v1109_v19 }
  0x33   :  { %1012 = vmatprep.mubr.bf16.mxu0 %v1094_v20  ;;  %1044 = vmatprep.mubr.bf16.mxu1 %v1110_v21 }
  0x3a   :  { %1013 = vmatmul.mubr.bf16.gmra.mrb[12].mxu0 %v1095_v22  ;;  %1045 = vmatmul.mubr.bf16.gmra.mrb[12].mxu1 %v1111_v23 }
  0x3b   :  { %1016 = vmatprep.mubr.bf16.mxu0 %v1096_v24  ;;  %1048 = vmatprep.mubr.bf16.mxu1 %v1112_v25 }
  0x42   :  { %1017 = vmatmul.mubr.bf16.gmra.mrb[16].mxu0 %v1097_v26  ;;  %1049 = vmatmul.mubr.bf16.gmra.mrb[16].mxu1 %v1113_v27 }
  0x43   :  { %1020 = vmatprep.mubr.bf16.mxu0 %v1098_v28  ;;  %1052 = vmatprep.mubr.bf16.mxu1 %v1114_v29 }
  0x4a   :  { %1021 = vmatmul.mubr.bf16.gmra.mrb[20].mxu0 %v1099_v30  ;;  %1053 = vmatmul.mubr.bf16.gmra.mrb[20].mxu1 %v1115_v31 }
  0x4b   :  { %1024 = vmatprep.mubr.bf16.mxu0 %v1100_v32  ;;  %1056 = vmatprep.mubr.bf16.mxu1 %v1116_v33 }
  0x52   :  { %1025 = vmatmul.mubr.bf16.gmra.mrb[24].mxu0 %v1101_v34  ;;  %1057 = vmatmul.mubr.bf16.gmra.mrb[24].mxu1 %v1117_v35 }
  0x53   :  { %1028 = vmatprep.mubr.bf16.mxu0 %v1102_v36  ;;  %1060 = vmatprep.mubr.bf16.mxu1 %v1118_v37 }
  0x5a   :  { %1029 = vmatmul.mubr.bf16.gmra.mrb[28].mxu0 %v1103_v38  ;;  %1061 = vmatmul.mubr.bf16.gmra.mrb[28].mxu1 %v1119_v39 }
  0xf5   :  { %v1002_v40 = vpop.f32.mrb[0].mxu0  ;;  %v1265_v41 = vpop.f32.mrb[0].mxu1 }
  0xf6   :  { %626 = vst [vmem:[%s1657_s2 + $0x10] sm:$0xff] %v1002_v40  ;;  %v369_v42 = vpop.f32.mrb[1].mxu0  ;;  %658 = vst [vmem:[%s1657_s2 + $0x110] sm:$0xff] %v1265_v41  ;;  %v1274_v43 = vpop.f32.mrb[1].mxu1  ;;  %v759_v51 = vmul.f32 %v1002_v40, %v1002_v40 }
  0xf7   :  { %624 = vst [vmem:[%s1657_s2] sm:$0xff] %v369_v42  ;;  %v1003_v44 = vpop.f32.mrb[2].mxu0  ;;  %656 = vst [vmem:[%s1657_s2 + $0x100] sm:$0xff] %v1274_v43  ;;  %v1283_v45 = vpop.f32.mrb[2].mxu1  ;;  %v757_v48 = vmul.f32 %v369_v42, %v369_v42 }
  0xf8   :  { %627 = vst [vmem:[%s1657_s2 + $0x18] sm:$0xff] %v1003_v44  ;;  %v372_v46 = vpop.f32.mrb[3].mxu0  ;;  %659 = vst [vmem:[%s1657_s2 + $0x118] sm:$0xff] %v1283_v45  ;;  %v1292_v47 = vpop.f32.mrb[3].mxu1  ;;  %v760_v54 = vmul.f32 %v1003_v44, %v1003_v44 }
  0xf9   :  { %625 = vst [vmem:[%s1657_s2 + $0x8] sm:$0xff] %v372_v46  ;;  %v688_v49 = vadd.f32 %v372_v46, %v369_v42  ;;  %v758_v50 = vmul.f32 %v372_v46, %v372_v46  ;;  %657 = vst [vmem:[%s1657_s2 + $0x108] sm:$0xff] %v1292_v47 }
  0xfb   :  { %v689_v52 = vadd.f32 %v1002_v40, %v688_v49  ;;  %v821_v53 = vadd.f32 %v758_v50, %v757_v48 }
  0xfd   :  { %v822_v55 = vadd.f32 %v821_v53, %v759_v51  ;;  %v1006_v56 = vpop.f32.mrb[4].mxu0  ;;  %v690_v57 = vadd.f32 %v1003_v44, %v689_v52  ;;  %v1301_v58 = vpop.f32.mrb[4].mxu1 }
  0xfe   :  { %630 = vst [vmem:[%s1657_s2 + $0x30] sm:$0xff] %v1006_v56  ;;  %v385_v59 = vpop.f32.mrb[5].mxu0  ;;  %662 = vst [vmem:[%s1657_s2 + $0x130] sm:$0xff] %v1301_v58  ;;  %v1310_v60 = vpop.f32.mrb[5].mxu1  ;;  %v763_v7 = vmul.f32 %v1006_v56, %v1006_v56 }
  0xff   :  { %628 = vst [vmem:[%s1657_s2 + $0x20] sm:$0xff] %v385_v59  ;;  %v691_v61 = vadd.f32 %v690_v57, %v385_v59  ;;  %v761_v62 = vmul.f32 %v385_v59, %v385_v59  ;;  %v823_v63 = vadd.f32 %v822_v55, %v760_v54  ;;  %v1007_v0 = vpop.f32.mrb[6].mxu0  ;;  %660 = vst [vmem:[%s1657_s2 + $0x120] sm:$0xff] %v1310_v60  ;;  %v1319_v1 = vpop.f32.mrb[6].mxu1 }
 0x100   :  { %631 = vst [vmem:[%s1657_s2 + $0x38] sm:$0xff] %v1007_v0  ;;  %v388_v2 = vpop.f32.mrb[7].mxu0  ;;  %663 = vst [vmem:[%s1657_s2 + $0x138] sm:$0xff] %v1319_v1  ;;  %v1328_v3 = vpop.f32.mrb[7].mxu1  ;;  %v764_v10 = vmul.f32 %v1007_v0, %v1007_v0 }
 0x101   :  { %v824_v4 = vadd.f32 %v823_v63, %v761_v62  ;;  %629 = vst [vmem:[%s1657_s2 + $0x28] sm:$0xff] %v388_v2  ;;  %v692_v5 = vadd.f32 %v691_v61, %v388_v2  ;;  %v762_v6 = vmul.f32 %v388_v2, %v388_v2  ;;  %661 = vst [vmem:[%s1657_s2 + $0x128] sm:$0xff] %v1328_v3 }
 0x103   :  { %v693_v8 = vadd.f32 %v1006_v56, %v692_v5  ;;  %v825_v9 = vadd.f32 %v824_v4, %v762_v6 }
 0x105   :  { %v826_v11 = vadd.f32 %v825_v9, %v763_v7  ;;  %v1010_v12 = vpop.f32.mrb[8].mxu0  ;;  %v694_v13 = vadd.f32 %v1007_v0, %v693_v8  ;;  %v1337_v14 = vpop.f32.mrb[8].mxu1 }
 0x106   :  { %634 = vst [vmem:[%s1657_s2 + $0x50] sm:$0xff] %v1010_v12  ;;  %v401_v15 = vpop.f32.mrb[9].mxu0  ;;  %666 = vst [vmem:[%s1657_s2 + $0x150] sm:$0xff] %v1337_v14  ;;  %v1346_v16 = vpop.f32.mrb[9].mxu1  ;;  %v767_v27 = vmul.f32 %v1010_v12, %v1010_v12 }
 0x107   :  { %632 = vst [vmem:[%s1657_s2 + $0x40] sm:$0xff] %v401_v15  ;;  %v695_v17 = vadd.f32 %v694_v13, %v401_v15  ;;  %v765_v18 = vmul.f32 %v401_v15, %v401_v15  ;;  %v827_v19 = vadd.f32 %v826_v11, %v764_v10  ;;  %v1011_v20 = vpop.f32.mrb[10].mxu0  ;;  %664 = vst [vmem:[%s1657_s2 + $0x140] sm:$0xff] %v1346_v16  ;;  %v1355_v21 = vpop.f32.mrb[10].mxu1 }
 0x108   :  { %635 = vst [vmem:[%s1657_s2 + $0x58] sm:$0xff] %v1011_v20  ;;  %v404_v22 = vpop.f32.mrb[11].mxu0  ;;  %667 = vst [vmem:[%s1657_s2 + $0x158] sm:$0xff] %v1355_v21  ;;  %v1364_v23 = vpop.f32.mrb[11].mxu1  ;;  %v768_v30 = vmul.f32 %v1011_v20, %v1011_v20 }
 0x109   :  { %v828_v24 = vadd.f32 %v827_v19, %v765_v18  ;;  %633 = vst [vmem:[%s1657_s2 + $0x48] sm:$0xff] %v404_v22  ;;  %v696_v25 = vadd.f32 %v695_v17, %v404_v22  ;;  %v766_v26 = vmul.f32 %v404_v22, %v404_v22  ;;  %665 = vst [vmem:[%s1657_s2 + $0x148] sm:$0xff] %v1364_v23 }
 0x10b   :  { %v697_v28 = vadd.f32 %v1010_v12, %v696_v25  ;;  %v829_v29 = vadd.f32 %v828_v24, %v766_v26 }
 0x10d   :  { %v830_v31 = vadd.f32 %v829_v29, %v767_v27  ;;  %v1014_v32 = vpop.f32.mrb[12].mxu0  ;;  %v698_v33 = vadd.f32 %v1011_v20, %v697_v28  ;;  %v1373_v34 = vpop.f32.mrb[12].mxu1 }
 0x10e   :  { %638 = vst [vmem:[%s1657_s2 + $0x70] sm:$0xff] %v1014_v32  ;;  %v417_v35 = vpop.f32.mrb[13].mxu0  ;;  %670 = vst [vmem:[%s1657_s2 + $0x170] sm:$0xff] %v1373_v34  ;;  %v1382_v36 = vpop.f32.mrb[13].mxu1  ;;  %v771_v51 = vmul.f32 %v1014_v32, %v1014_v32 }
 0x10f   :  { %636 = vst [vmem:[%s1657_s2 + $0x60] sm:$0xff] %v417_v35  ;;  %v699_v37 = vadd.f32 %v698_v33, %v417_v35  ;;  %v769_v38 = vmul.f32 %v417_v35, %v417_v35  ;;  %v831_v39 = vadd.f32 %v830_v31, %v768_v30  ;;  %v1015_v40 = vpop.f32.mrb[14].mxu0  ;;  %668 = vst [vmem:[%s1657_s2 + $0x160] sm:$0xff] %v1382_v36  ;;  %v1391_v42 = vpop.f32.mrb[14].mxu1 }
 0x110   :  { %639 = vst [vmem:[%s1657_s2 + $0x78] sm:$0xff] %v1015_v40  ;;  %v420_v44 = vpop.f32.mrb[15].mxu0  ;;  %671 = vst [vmem:[%s1657_s2 + $0x178] sm:$0xff] %v1391_v42  ;;  %v1400_v46 = vpop.f32.mrb[15].mxu1  ;;  %v772_v54 = vmul.f32 %v1015_v40, %v1015_v40 }
 0x111   :  { %v832_v48 = vadd.f32 %v831_v39, %v769_v38  ;;  %637 = vst [vmem:[%s1657_s2 + $0x68] sm:$0xff] %v420_v44  ;;  %v700_v49 = vadd.f32 %v699_v37, %v420_v44  ;;  %v770_v50 = vmul.f32 %v420_v44, %v420_v44  ;;  %669 = vst [vmem:[%s1657_s2 + $0x168] sm:$0xff] %v1400_v46 }
 0x113   :  { %v701_v52 = vadd.f32 %v1014_v32, %v700_v49  ;;  %v833_v53 = vadd.f32 %v832_v48, %v770_v50 }
 0x115   :  { %v834_v55 = vadd.f32 %v833_v53, %v771_v51  ;;  %v1018_v56 = vpop.f32.mrb[16].mxu0  ;;  %v702_v57 = vadd.f32 %v1015_v40, %v701_v52  ;;  %v1409_v59 = vpop.f32.mrb[16].mxu1 }
 0x116   :  { %642 = vst [vmem:[%s1657_s2 + $0x90] sm:$0xff] %v1018_v56  ;;  %v433_v61 = vpop.f32.mrb[17].mxu0  ;;  %674 = vst [vmem:[%s1657_s2 + $0x190] sm:$0xff] %v1409_v59  ;;  %v1418_v62 = vpop.f32.mrb[17].mxu1  ;;  %v775_v11 = vmul.f32 %v1018_v56, %v1018_v56 }
 0x117   :  { %640 = vst [vmem:[%s1657_s2 + $0x80] sm:$0xff] %v433_v61  ;;  %v703_v63 = vadd.f32 %v702_v57, %v433_v61  ;;  %v773_v0 = vmul.f32 %v433_v61, %v433_v61  ;;  %v835_v2 = vadd.f32 %v834_v55, %v772_v54  ;;  %v1019_v4 = vpop.f32.mrb[18].mxu0  ;;  %672 = vst [vmem:[%s1657_s2 + $0x180] sm:$0xff] %v1418_v62  ;;  %v1427_v5 = vpop.f32.mrb[18].mxu1 }
 0x118   :  { %643 = vst [vmem:[%s1657_s2 + $0x98] sm:$0xff] %v1019_v4  ;;  %v436_v6 = vpop.f32.mrb[19].mxu0  ;;  %675 = vst [vmem:[%s1657_s2 + $0x198] sm:$0xff] %v1427_v5  ;;  %v1436_v7 = vpop.f32.mrb[19].mxu1  ;;  %v776_v15 = vmul.f32 %v1019_v4, %v1019_v4 }
 0x119   :  { %v836_v8 = vadd.f32 %v835_v2, %v773_v0  ;;  %641 = vst [vmem:[%s1657_s2 + $0x88] sm:$0xff] %v436_v6  ;;  %v704_v9 = vadd.f32 %v703_v63, %v436_v6  ;;  %v774_v10 = vmul.f32 %v436_v6, %v436_v6  ;;  %673 = vst [vmem:[%s1657_s2 + $0x188] sm:$0xff] %v1436_v7 }
 0x11b   :  { %v705_v12 = vadd.f32 %v1018_v56, %v704_v9  ;;  %v837_v13 = vadd.f32 %v836_v8, %v774_v10 }
 0x11d   :  { %v838_v17 = vadd.f32 %v837_v13, %v775_v11  ;;  %v1022_v18 = vpop.f32.mrb[20].mxu0  ;;  %v706_v19 = vadd.f32 %v1019_v4, %v705_v12  ;;  %v1445_v20 = vpop.f32.mrb[20].mxu1 }
 0x11e   :  { %646 = vst [vmem:[%s1657_s2 + $0xb0] sm:$0xff] %v1022_v18  ;;  %v449_v22 = vpop.f32.mrb[21].mxu0  ;;  %678 = vst [vmem:[%s1657_s2 + $0x1b0] sm:$0xff] %v1445_v20  ;;  %v1454_v24 = vpop.f32.mrb[21].mxu1  ;;  %v779_v37 = vmul.f32 %v1022_v18, %v1022_v18 }
 0x11f   :  { %644 = vst [vmem:[%s1657_s2 + $0xa0] sm:$0xff] %v449_v22  ;;  %v707_v25 = vadd.f32 %v706_v19, %v449_v22  ;;  %v777_v26 = vmul.f32 %v449_v22, %v449_v22  ;;  %v839_v27 = vadd.f32 %v838_v17, %v776_v15  ;;  %v1023_v28 = vpop.f32.mrb[22].mxu0  ;;  %676 = vst [vmem:[%s1657_s2 + $0x1a0] sm:$0xff] %v1454_v24  ;;  %v1463_v29 = vpop.f32.mrb[22].mxu1 }
 0x120   :  { %647 = vst [vmem:[%s1657_s2 + $0xb8] sm:$0xff] %v1023_v28  ;;  %v452_v30 = vpop.f32.mrb[23].mxu0  ;;  %679 = vst [vmem:[%s1657_s2 + $0x1b8] sm:$0xff] %v1463_v29  ;;  %v1472_v31 = vpop.f32.mrb[23].mxu1  ;;  %v780_v40 = vmul.f32 %v1023_v28, %v1023_v28 }
 0x121   :  { %v840_v32 = vadd.f32 %v839_v27, %v777_v26  ;;  %645 = vst [vmem:[%s1657_s2 + $0xa8] sm:$0xff] %v452_v30  ;;  %v708_v33 = vadd.f32 %v707_v25, %v452_v30  ;;  %v778_v35 = vmul.f32 %v452_v30, %v452_v30  ;;  %677 = vst [vmem:[%s1657_s2 + $0x1a8] sm:$0xff] %v1472_v31 }
 0x123   :  { %v709_v38 = vadd.f32 %v1022_v18, %v708_v33  ;;  %v841_v39 = vadd.f32 %v840_v32, %v778_v35 }
 0x125   :  { %v842_v44 = vadd.f32 %v841_v39, %v779_v37  ;;  %v1026_v48 = vpop.f32.mrb[24].mxu0  ;;  %v710_v49 = vadd.f32 %v1023_v28, %v709_v38  ;;  %v1481_v50 = vpop.f32.mrb[24].mxu1 }
 0x126   :  { %650 = vst [vmem:[%s1657_s2 + $0xd0] sm:$0xff] %v1026_v48  ;;  %v465_v51 = vpop.f32.mrb[25].mxu0  ;;  %682 = vst [vmem:[%s1657_s2 + $0x1d0] sm:$0xff] %v1481_v50  ;;  %v1490_v52 = vpop.f32.mrb[25].mxu1  ;;  %v783_v6 = vmul.f32 %v1026_v48, %v1026_v48 }
 0x127   :  { %648 = vst [vmem:[%s1657_s2 + $0xc0] sm:$0xff] %v465_v51  ;;  %v711_v53 = vadd.f32 %v710_v49, %v465_v51  ;;  %v781_v54 = vmul.f32 %v465_v51, %v465_v51  ;;  %v843_v55 = vadd.f32 %v842_v44, %v780_v40  ;;  %v1027_v56 = vpop.f32.mrb[26].mxu0  ;;  %680 = vst [vmem:[%s1657_s2 + $0x1c0] sm:$0xff] %v1490_v52  ;;  %v1499_v57 = vpop.f32.mrb[26].mxu1 }
 0x128   :  { %651 = vst [vmem:[%s1657_s2 + $0xd8] sm:$0xff] %v1027_v56  ;;  %v468_v61 = vpop.f32.mrb[27].mxu0  ;;  %683 = vst [vmem:[%s1657_s2 + $0x1d8] sm:$0xff] %v1499_v57  ;;  %v1508_v63 = vpop.f32.mrb[27].mxu1  ;;  %v784_v10 = vmul.f32 %v1027_v56, %v1027_v56  ;;  %v789_v49 = vmul.f32 %v1274_v43, %v1274_v43 }
 0x129   :  { %v844_v0 = vadd.f32 %v843_v55, %v781_v54  ;;  %649 = vst [vmem:[%s1657_s2 + $0xc8] sm:$0xff] %v468_v61  ;;  %v712_v2 = vadd.f32 %v711_v53, %v468_v61  ;;  %v782_v4 = vmul.f32 %v468_v61, %v468_v61  ;;  %681 = vst [vmem:[%s1657_s2 + $0x1c8] sm:$0xff] %v1508_v63 }
 0x12a   :  { %v791_v61 = vmul.f32 %v1265_v41, %v1265_v41 }
 0x12b   :  { %v713_v8 = vadd.f32 %v1026_v48, %v712_v2  ;;  %v845_v9 = vadd.f32 %v844_v0, %v782_v4  ;;  %v792_v4 = vmul.f32 %v1283_v45, %v1283_v45 }
 0x12d   :  { %v846_v11 = vadd.f32 %v845_v9, %v783_v6  ;;  %v1030_v12 = vpop.f32.mrb[28].mxu0  ;;  %v714_v13 = vadd.f32 %v1027_v56, %v713_v8  ;;  %v1517_v15 = vpop.f32.mrb[28].mxu1  ;;  %v790_v56 = vmul.f32 %v1292_v47, %v1292_v47 }
 0x12e   :  { %654 = vst [vmem:[%s1657_s2 + $0xf0] sm:$0xff] %v1030_v12  ;;  %v481_v17 = vpop.f32.mrb[29].mxu0  ;;  %686 = vst [vmem:[%s1657_s2 + $0x1f0] sm:$0xff] %v1517_v15  ;;  %v1526_v18 = vpop.f32.mrb[29].mxu1  ;;  %v787_v37 = vmul.f32 %v1030_v12, %v1030_v12 }
 0x12f   :  { %652 = vst [vmem:[%s1657_s2 + $0xe0] sm:$0xff] %v481_v17  ;;  %v715_v19 = vadd.f32 %v714_v13, %v481_v17  ;;  %v785_v22 = vmul.f32 %v481_v17, %v481_v17  ;;  %v847_v25 = vadd.f32 %v846_v11, %v784_v10  ;;  %v1031_v26 = vpop.f32.mrb[30].mxu0  ;;  %684 = vst [vmem:[%s1657_s2 + $0x1e0] sm:$0xff] %v1526_v18  ;;  %v1535_v27 = vpop.f32.mrb[30].mxu1 }
 0x130   :  { %655 = vst [vmem:[%s1657_s2 + $0xf8] sm:$0xff] %v1031_v26  ;;  %v484_v28 = vpop.f32.mrb[31].mxu0  ;;  %687 = vst [vmem:[%s1657_s2 + $0x1f8] sm:$0xff] %v1535_v27  ;;  %v1544_v30 = vpop.f32.mrb[31].mxu1  ;;  %v788_v40 = vmul.f32 %v1031_v26, %v1031_v26 }
 0x131   :  { %v848_v32 = vadd.f32 %v847_v25, %v785_v22  ;;  %653 = vst [vmem:[%s1657_s2 + $0xe8] sm:$0xff] %v484_v28  ;;  %v716_v33 = vadd.f32 %v715_v19, %v484_v28  ;;  %v786_v35 = vmul.f32 %v484_v28, %v484_v28  ;;  %685 = vst [vmem:[%s1657_s2 + $0x1e8] sm:$0xff] %v1544_v30 }
 0x133   :  { %v717_v38 = vadd.f32 %v1030_v12, %v716_v33  ;;  %v849_v39 = vadd.f32 %v848_v32, %v786_v35  ;;  %v794_v12 = vmul.f32 %v1328_v3, %v1328_v3  ;;  %v798_v32 = vmul.f32 %v1364_v23, %v1364_v23 }
 0x135   :  { %v850_v44 = vadd.f32 %v849_v39, %v787_v37  ;;  %v718_v48 = vadd.f32 %v1031_v26, %v717_v38 }
 0x137   :  { %v719_v51 = vadd.f32 %v718_v48, %v1274_v43  ;;  %v851_v53 = vadd.f32 %v850_v44, %v788_v40  ;;  %v793_v43 = vmul.f32 %v1310_v60, %v1310_v60  ;;  %v802_v48 = vmul.f32 %v1400_v46, %v1400_v46 }
 0x139   :  { %v852_v54 = vadd.f32 %v851_v53, %v789_v49  ;;  %v720_v55 = vadd.f32 %v719_v51, %v1292_v47 }
 0x13b   :  { %v721_v0 = vadd.f32 %v1265_v41, %v720_v55  ;;  %v853_v2 = vadd.f32 %v852_v54, %v790_v56  ;;  %v795_v41 = vmul.f32 %v1301_v58, %v1301_v58 }
 0x13d   :  { %v854_v6 = vadd.f32 %v853_v2, %v791_v61  ;;  %v722_v8 = vadd.f32 %v1283_v45, %v721_v0  ;;  %v796_v45 = vmul.f32 %v1319_v1, %v1319_v1  ;;  %v806_v0 = vmul.f32 %v1436_v7, %v1436_v7 }
 0x13f   :  { %v723_v9 = vadd.f32 %v722_v8, %v1310_v60  ;;  %v855_v10 = vadd.f32 %v854_v6, %v792_v4  ;;  %v797_v60 = vmul.f32 %v1346_v16, %v1346_v16 }
 0x141   :  { %v856_v11 = vadd.f32 %v855_v10, %v793_v43  ;;  %v724_v47 = vadd.f32 %v723_v9, %v1328_v3 }
 0x143   :  { %v725_v13 = vadd.f32 %v1301_v58, %v724_v47  ;;  %v857_v17 = vadd.f32 %v856_v11, %v794_v12  ;;  %v799_v58 = vmul.f32 %v1337_v14, %v1337_v14  ;;  %v810_v11 = vmul.f32 %v1472_v31, %v1472_v31 }
 0x145   :  { %v858_v19 = vadd.f32 %v857_v17, %v795_v41  ;;  %v726_v22 = vadd.f32 %v1319_v1, %v725_v13  ;;  %v800_v1 = vmul.f32 %v1355_v21, %v1355_v21 }
 0x147   :  { %v727_v25 = vadd.f32 %v726_v22, %v1346_v16  ;;  %v859_v26 = vadd.f32 %v858_v19, %v796_v45  ;;  %v801_v16 = vmul.f32 %v1382_v36, %v1382_v36  ;;  %v814_v22 = vmul.f32 %v1508_v63, %v1508_v63 }
 0x149   :  { %v860_v28 = vadd.f32 %v859_v26, %v797_v60  ;;  %v728_v3 = vadd.f32 %v727_v25, %v1364_v23 }
 0x14b   :  { %v729_v33 = vadd.f32 %v1337_v14, %v728_v3  ;;  %v861_v35 = vadd.f32 %v860_v28, %v798_v32  ;;  %v803_v14 = vmul.f32 %v1373_v34, %v1373_v34 }
 0x14d   :  { %v862_v37 = vadd.f32 %v861_v35, %v799_v58  ;;  %v730_v38 = vadd.f32 %v1355_v21, %v729_v33  ;;  %v804_v21 = vmul.f32 %v1391_v42, %v1391_v42  ;;  %v818_v33 = vmul.f32 %v1544_v30, %v1544_v30 }
 0x14f   :  { %v731_v39 = vadd.f32 %v730_v38, %v1382_v36  ;;  %v863_v40 = vadd.f32 %v862_v37, %v800_v1  ;;  %v805_v36 = vmul.f32 %v1418_v62, %v1418_v62 }
 0x151   :  { %v864_v44 = vadd.f32 %v863_v40, %v801_v16  ;;  %v732_v23 = vadd.f32 %v731_v39, %v1400_v46 }
 0x153   :  { %v733_v49 = vadd.f32 %v1373_v34, %v732_v23  ;;  %v865_v51 = vadd.f32 %v864_v44, %v802_v48  ;;  %v807_v34 = vmul.f32 %v1409_v59, %v1409_v59 }
 0x155   :  { %v866_v53 = vadd.f32 %v865_v51, %v803_v14  ;;  %v734_v54 = vadd.f32 %v1391_v42, %v733_v49  ;;  %v808_v42 = vmul.f32 %v1427_v5, %v1427_v5 }
 0x157   :  { %v735_v55 = vadd.f32 %v734_v54, %v1418_v62  ;;  %v867_v56 = vadd.f32 %v866_v53, %v804_v21  ;;  %v809_v62 = vmul.f32 %v1454_v24, %v1454_v24 }
 0x159   :  { %v868_v61 = vadd.f32 %v867_v56, %v805_v36  ;;  %v736_v46 = vadd.f32 %v735_v55, %v1436_v7 }
 0x15b   :  { %v737_v2 = vadd.f32 %v1409_v59, %v736_v46  ;;  %v869_v4 = vadd.f32 %v868_v61, %v806_v0  ;;  %v811_v59 = vmul.f32 %v1445_v20, %v1445_v20 }
 0x15d   :  { %v870_v6 = vadd.f32 %v869_v4, %v807_v34  ;;  %v738_v8 = vadd.f32 %v1427_v5, %v737_v2  ;;  %v812_v5 = vmul.f32 %v1463_v29, %v1463_v29 }
 0x15f   :  { %v739_v43 = vadd.f32 %v738_v8, %v1454_v24  ;;  %v871_v9 = vadd.f32 %v870_v6, %v808_v42  ;;  %v813_v24 = vmul.f32 %v1490_v52, %v1490_v52 }
 0x161   :  { %v872_v10 = vadd.f32 %v871_v9, %v809_v62  ;;  %v740_v7 = vadd.f32 %v739_v43, %v1472_v31 }
 0x163   :  { %v741_v47 = vadd.f32 %v1445_v20, %v740_v7  ;;  %v873_v12 = vadd.f32 %v872_v10, %v810_v11  ;;  %v815_v20 = vmul.f32 %v1481_v50, %v1481_v50 }
 0x165   :  { %v874_v41 = vadd.f32 %v873_v12, %v811_v59  ;;  %v742_v13 = vadd.f32 %v1463_v29, %v741_v47  ;;  %v816_v29 = vmul.f32 %v1499_v57, %v1499_v57 }
 0x167   :  { %v743_v17 = vadd.f32 %v742_v13, %v1490_v52  ;;  %v875_v45 = vadd.f32 %v874_v41, %v812_v5  ;;  %v817_v52 = vmul.f32 %v1526_v18, %v1526_v18 }
 0x169   :  { %v876_v19 = vadd.f32 %v875_v45, %v813_v24  ;;  %v744_v31 = vadd.f32 %v743_v17, %v1508_v63 }
 0x16b   :  { %v745_v60 = vadd.f32 %v1481_v50, %v744_v31  ;;  %v877_v25 = vadd.f32 %v876_v19, %v814_v22  ;;  %v819_v50 = vmul.f32 %v1517_v15, %v1517_v15 }
 0x16d   :  { %v878_v26 = vadd.f32 %v877_v25, %v815_v20  ;;  %v746_v28 = vadd.f32 %v1499_v57, %v745_v60  ;;  %v820_v57 = vmul.f32 %v1535_v27, %v1535_v27 }
 0x16f   :  { %v747_v3 = vadd.f32 %v746_v28, %v1526_v18  ;;  %v879_v32 = vadd.f32 %v878_v26, %v816_v29 }
 0x171   :  { %v880_v58 = vadd.f32 %v879_v32, %v817_v52  ;;  %v748_v63 = vadd.f32 %v747_v3, %v1544_v30 }
 0x173   :  { %v749_v35 = vadd.f32 %v1517_v15, %v748_v63  ;;  %v881_v1 = vadd.f32 %v880_v58, %v818_v33 }
 0x175   :  { %v750_v37 = vadd.f32 %v1535_v27, %v749_v35  ;;  %v882_v38 = vadd.f32 %v881_v1, %v819_v50 }
 0x177   :  { %v751_v18 = vrot.slane %v750_v37, 4  ;;  %v883_v16 = vadd.f32 %v882_v38, %v820_v57 }
 0x179   :  { %v752_v39 = vadd.f32 %v751_v18, %v750_v37  ;;  %v884_v40 = vrot.slane %v883_v16, 4 }
 0x17b   :  { %v753_v44 = vrot.slane %v752_v39, 2  ;;  %v885_v23 = vadd.f32 %v884_v40, %v883_v16 }
 0x17d   :  { %v754_v48 = vadd.f32 %v753_v44, %v752_v39  ;;  %v886_v30 = vrot.slane %v885_v23, 2 }
 0x17f   :  { %v755_v14 = vrot.slane %v754_v48, 1  ;;  %v887_v49 = vadd.f32 %v886_v30, %v885_v23 }
 0x181   :  { %v756_v51 = vadd.f32 %v755_v14, %v754_v48  ;;  %v888_v21 = vrot.slane %v887_v49, 1 }
 0x183   :  { %v889_v15 = vadd.f32 %v888_v21, %v887_v49  ;;  %890 = vst [vmem:[%s1658_s3] sm:$0xff] %v756_v51 }
 0x185   :  { %891 = vst [vmem:[%s1659_s4] sm:$0xff] %v889_v15 }

// kernel: forward.21
= control target key start
LH: loop header
LB: loop body
LE: loop exit
PB: predicated region body
PF: predicated region fallthrough
CT: control target
= control target key end

     0   :  { %s701_s1 = inlined_call_operand.vmem [shape: bf16[256,128], index: 1, kind: input, shape index: {}]   ;;  %s702_s0 = inlined_call_operand.vmem [shape: bf16[128,256], index: 0, kind: input, shape index: {}]   ;;  %s703_s2 = inlined_call_operand.vmem [shape: f32[1,128], index: 2, kind: input, shape index: {}]   ;;  %s704_s3 = inlined_call_operand.vmem [shape: f32[128,128], index: 3, kind: output, shape index: {}]  }
   0x1   :  { %v476_v0 = vld [vmem:[%s701_s1 + $0x40] sm:$0xff]   ;;  %v478_v2 = vld [vmem:[%s701_s1 + $0x48] sm:$0xff]   ;;  %v480_v4 = vld [vmem:[%s701_s1 + $0x50] sm:$0xff]  }
   0x2   :  { %v477_v1 = vld [vmem:[%s701_s1] sm:$0xff]   ;;  %396 = vmatprep.subr.bf16.mxu0 %v476_v0  ;;  %460 = vmatprep.subr.bf16.mxu1 %v476_v0  ;;  %v479_v3 = vld [vmem:[%s701_s1 + $0x8] sm:$0xff]   ;;  %v481_v5 = vld [vmem:[%s701_s1 + $0x10] sm:$0xff]  }
   0x3   :  { %397 = vmatpush3.bf16.msra.mxu0 %v477_v1  ;;  %468 = vmatpush3.bf16.msra.mxu1 %v477_v1  ;;  %v482_v6 = vld [vmem:[%s701_s1 + $0x58] sm:$0xff]   ;;  %v484_v8 = vld [vmem:[%s701_s1 + $0x60] sm:$0xff]   ;;  %v486_v10 = vld [vmem:[%s701_s1 + $0x68] sm:$0xff]  }
   0x4   :  { %398 = vmatprep.subr.bf16.mxu0 %v478_v2  ;;  %461 = vmatprep.subr.bf16.mxu1 %v478_v2  ;;  %v483_v7 = vld [vmem:[%s701_s1 + $0x18] sm:$0xff]   ;;  %v485_v9 = vld [vmem:[%s701_s1 + $0x20] sm:$0xff]   ;;  %v487_v13 = vld [vmem:[%s701_s1 + $0x28] sm:$0xff]  }
   0x5   :  { %v494_v11 = vld [vmem:[%s702_s0 + $0x4] ss:$8 sps:$4 sm:$0xff]   ;;  %v488_v14 = vld [vmem:[%s701_s1 + $0x70] sm:$0xff]   ;;  %v490_v16 = vld [vmem:[%s701_s1 + $0x78] sm:$0xff]  }
   0x6   :  { %v497_v12 = vld [vmem:[%s702_s0 + $0x44] ss:$8 sps:$4 sm:$0xff]   ;;  %278 = vmatprep.mubr.bf16.mxu0 %v494_v11  ;;  %v489_v15 = vld [vmem:[%s701_s1 + $0x30] sm:$0xff]   ;;  %v491_v17 = vld [vmem:[%s701_s1 + $0x38] sm:$0xff]  }
   0x7   :  { %399 = vmatpush3.bf16.msra.mxu0 %v479_v3  ;;  %469 = vmatpush3.bf16.msra.mxu1 %v479_v3  ;;  %v492_v18 = vld [vmem:[%s702_s0] ss:$8 sps:$4 sm:$0xff]   ;;  %v498_v20 = vld [vmem:[%s702_s0 + $0x14] ss:$8 sps:$4 sm:$0xff]   ;;  %v502_v22 = vld [vmem:[%s702_s0 + $0x10] ss:$8 sps:$4 sm:$0xff]  }
   0x8   :  { %400 = vmatprep.subr.bf16.mxu0 %v480_v4  ;;  %462 = vmatprep.subr.bf16.mxu1 %v480_v4  ;;  %v495_v19 = vld [vmem:[%s702_s0 + $0x40] ss:$8 sps:$4 sm:$0xff]   ;;  %v500_v21 = vld [vmem:[%s702_s0 + $0x54] ss:$8 sps:$4 sm:$0xff]   ;;  %v503_v23 = vld [vmem:[%s702_s0 + $0x50] ss:$8 sps:$4 sm:$0xff]  }
   0x9   :  { %310 = vmatprep.mubr.bf16.mxu1 %v497_v12  ;;  %v504_v24 = vld [vmem:[%s702_s0 + $0x24] ss:$8 sps:$4 sm:$0xff]   ;;  %v508_v26 = vld [vmem:[%s702_s0 + $0x20] ss:$8 sps:$4 sm:$0xff]   ;;  %v510_v28 = vld [vmem:[%s702_s0 + $0x34] ss:$8 sps:$4 sm:$0xff]  }
   0xa   :  { %v506_v25 = vld [vmem:[%s702_s0 + $0x64] ss:$8 sps:$4 sm:$0xff]   ;;  %v509_v27 = vld [vmem:[%s702_s0 + $0x60] ss:$8 sps:$4 sm:$0xff]   ;;  %v512_v29 = vld [vmem:[%s702_s0 + $0x74] ss:$8 sps:$4 sm:$0xff]  }
   0xb   :  { %401 = vmatpush3.bf16.msra.mxu0 %v481_v5  ;;  %470 = vmatpush3.bf16.msra.mxu1 %v481_v5  ;;  %v514_v30 = vld [vmem:[%s702_s0 + $0x30] ss:$8 sps:$4 sm:$0xff]   ;;  %v635_v34 = vld [vmem:[%s703_s2] ss:$0 sm:$0xff] }
   0xc   :  { %402 = vmatprep.subr.bf16.mxu0 %v482_v6  ;;  %463 = vmatprep.subr.bf16.mxu1 %v482_v6  ;;  %v515_v31 = vld [vmem:[%s702_s0 + $0x70] ss:$8 sps:$4 sm:$0xff]  }
   0xf   :  { %403 = vmatpush3.bf16.msra.mxu0 %v483_v7  ;;  %471 = vmatpush3.bf16.msra.mxu1 %v483_v7 }
  0x10   :  { %404 = vmatprep.subr.bf16.mxu0 %v484_v8  ;;  %464 = vmatprep.subr.bf16.mxu1 %v484_v8 }
  0x13   :  { %405 = vmatpush3.bf16.msra.mxu0 %v485_v9  ;;  %472 = vmatpush3.bf16.msra.mxu1 %v485_v9 }
  0x14   :  { %406 = vmatprep.subr.bf16.mxu0 %v486_v10  ;;  %465 = vmatprep.subr.bf16.mxu1 %v486_v10 }
  0x17   :  { %407 = vmatpush3.bf16.msra.mxu0 %v487_v13  ;;  %473 = vmatpush3.bf16.msra.mxu1 %v487_v13 }
  0x18   :  { %408 = vmatprep.subr.bf16.mxu0 %v488_v14  ;;  %466 = vmatprep.subr.bf16.mxu1 %v488_v14 }
  0x1b   :  { %409 = vmatpush3.bf16.msra.mxu0 %v489_v15  ;;  %474 = vmatpush3.bf16.msra.mxu1 %v489_v15 }
  0x1c   :  { %410 = vmatprep.subr.bf16.mxu0 %v490_v16  ;;  %467 = vmatprep.subr.bf16.mxu1 %v490_v16 }
  0x1f   :  { %411 = vmatpush3.bf16.msra.mxu0 %v491_v17  ;;  %475 = vmatpush3.bf16.msra.mxu1 %v491_v17 }
  0x22   :  { %279 = vmatmul.mubr.bf16.vlgmr.msra.gmra.mrb[0].mxu0 %v492_v18  ;;  %311 = vmatmul.mubr.bf16.vlgmr.msra.gmra.mrb[0].mxu1 %v495_v19 }
  0x23   :  { %286 = vmatprep.mubr.bf16.mxu0 %v498_v20  ;;  %318 = vmatprep.mubr.bf16.mxu1 %v500_v21 }
  0x2a   :  { %287 = vmatmul.mubr.bf16.gmra.mrb[4].mxu0 %v502_v22  ;;  %319 = vmatmul.mubr.bf16.gmra.mrb[4].mxu1 %v503_v23 }
  0x2b   :  { %294 = vmatprep.mubr.bf16.mxu0 %v504_v24  ;;  %326 = vmatprep.mubr.bf16.mxu1 %v506_v25 }
  0x32   :  { %295 = vmatmul.mubr.bf16.gmra.mrb[8].mxu0 %v508_v26  ;;  %327 = vmatmul.mubr.bf16.gmra.mrb[8].mxu1 %v509_v27 }
  0x33   :  { %302 = vmatprep.mubr.bf16.mxu0 %v510_v28  ;;  %334 = vmatprep.mubr.bf16.mxu1 %v512_v29 }
  0x3a   :  { %303 = vmatmul.mubr.bf16.gmra.mrb[12].mxu0 %v514_v30  ;;  %335 = vmatmul.mubr.bf16.gmra.mrb[12].mxu1 %v515_v31 }
  0xf5   :  { %v412_v32 = vpop.f32.mrb[0].mxu0  ;;  %v436_v33 = vpop.f32.mrb[0].mxu1 }
  0xf6   :  { %v413_v35 = vpop.f32.mrb[1].mxu0  ;;  %v437_v36 = vpop.f32.mrb[1].mxu1 }
  0xf7   :  { %v414_v37 = vadd.f32 %v413_v35, %v412_v32  ;;  %v438_v38 = vadd.f32 %v437_v36, %v436_v33  ;;  %v415_v39 = vpop.f32.mrb[2].mxu0  ;;  %v439_v40 = vpop.f32.mrb[2].mxu1 }
  0xf8   :  { %v416_v41 = vpop.f32.mrb[3].mxu0  ;;  %v440_v42 = vpop.f32.mrb[3].mxu1 }
  0xf9   :  { %v281_v43 = vadd.f32 %v414_v37, %v635_v34  ;;  %v313_v44 = vadd.f32 %v438_v38, %v635_v34  ;;  %v417_v45 = vadd.f32 %v416_v41, %v415_v39  ;;  %v441_v46 = vadd.f32 %v440_v42, %v439_v40 }
  0xfb   :  { %343 = vst [vmem:[%s704_s3] sm:$0xff] %v281_v43  ;;  %351 = vst [vmem:[%s704_s3 + $0x40] sm:$0xff] %v313_v44  ;;  %v284_v47 = vadd.f32 %v417_v45, %v635_v34  ;;  %v316_v48 = vadd.f32 %v441_v46, %v635_v34 }
  0xfd   :  { %344 = vst [vmem:[%s704_s3 + $0x8] sm:$0xff] %v284_v47  ;;  %352 = vst [vmem:[%s704_s3 + $0x48] sm:$0xff] %v316_v48  ;;  %v418_v49 = vpop.f32.mrb[4].mxu0  ;;  %v442_v50 = vpop.f32.mrb[4].mxu1 }
  0xfe   :  { %v419_v51 = vpop.f32.mrb[5].mxu0  ;;  %v443_v52 = vpop.f32.mrb[5].mxu1 }
  0xff   :  { %v420_v53 = vadd.f32 %v419_v51, %v418_v49  ;;  %v444_v54 = vadd.f32 %v443_v52, %v442_v50  ;;  %v421_v55 = vpop.f32.mrb[6].mxu0  ;;  %v445_v56 = vpop.f32.mrb[6].mxu1 }
 0x100   :  { %v422_v57 = vpop.f32.mrb[7].mxu0  ;;  %v446_v58 = vpop.f32.mrb[7].mxu1 }
 0x101   :  { %v289_v59 = vadd.f32 %v420_v53, %v635_v34  ;;  %v321_v60 = vadd.f32 %v444_v54, %v635_v34  ;;  %v423_v61 = vadd.f32 %v422_v57, %v421_v55  ;;  %v447_v62 = vadd.f32 %v446_v58, %v445_v56 }
 0x103   :  { %345 = vst [vmem:[%s704_s3 + $0x10] sm:$0xff] %v289_v59  ;;  %353 = vst [vmem:[%s704_s3 + $0x50] sm:$0xff] %v321_v60  ;;  %v292_v63 = vadd.f32 %v423_v61, %v635_v34  ;;  %v324_v0 = vadd.f32 %v447_v62, %v635_v34 }
 0x105   :  { %346 = vst [vmem:[%s704_s3 + $0x18] sm:$0xff] %v292_v63  ;;  %354 = vst [vmem:[%s704_s3 + $0x58] sm:$0xff] %v324_v0  ;;  %v424_v1 = vpop.f32.mrb[8].mxu0  ;;  %v448_v2 = vpop.f32.mrb[8].mxu1 }
 0x106   :  { %v425_v3 = vpop.f32.mrb[9].mxu0  ;;  %v449_v4 = vpop.f32.mrb[9].mxu1 }
 0x107   :  { %v426_v5 = vadd.f32 %v425_v3, %v424_v1  ;;  %v450_v6 = vadd.f32 %v449_v4, %v448_v2  ;;  %v427_v7 = vpop.f32.mrb[10].mxu0  ;;  %v451_v8 = vpop.f32.mrb[10].mxu1 }
 0x108   :  { %v428_v9 = vpop.f32.mrb[11].mxu0  ;;  %v452_v10 = vpop.f32.mrb[11].mxu1 }
 0x109   :  { %v297_v11 = vadd.f32 %v426_v5, %v635_v34  ;;  %v329_v12 = vadd.f32 %v450_v6, %v635_v34  ;;  %v429_v13 = vadd.f32 %v428_v9, %v427_v7  ;;  %v453_v14 = vadd.f32 %v452_v10, %v451_v8 }
 0x10b   :  { %347 = vst [vmem:[%s704_s3 + $0x20] sm:$0xff] %v297_v11  ;;  %355 = vst [vmem:[%s704_s3 + $0x60] sm:$0xff] %v329_v12  ;;  %v300_v15 = vadd.f32 %v429_v13, %v635_v34  ;;  %v332_v16 = vadd.f32 %v453_v14, %v635_v34 }
 0x10d   :  { %348 = vst [vmem:[%s704_s3 + $0x28] sm:$0xff] %v300_v15  ;;  %356 = vst [vmem:[%s704_s3 + $0x68] sm:$0xff] %v332_v16  ;;  %v430_v17 = vpop.f32.mrb[12].mxu0  ;;  %v454_v18 = vpop.f32.mrb[12].mxu1 }
 0x10e   :  { %v431_v19 = vpop.f32.mrb[13].mxu0  ;;  %v455_v20 = vpop.f32.mrb[13].mxu1 }
 0x10f   :  { %v432_v21 = vadd.f32 %v431_v19, %v430_v17  ;;  %v456_v22 = vadd.f32 %v455_v20, %v454_v18  ;;  %v433_v23 = vpop.f32.mrb[14].mxu0  ;;  %v457_v24 = vpop.f32.mrb[14].mxu1 }
 0x110   :  { %v434_v25 = vpop.f32.mrb[15].mxu0  ;;  %v458_v26 = vpop.f32.mrb[15].mxu1 }
 0x111   :  { %v305_v27 = vadd.f32 %v432_v21, %v635_v34  ;;  %v337_v28 = vadd.f32 %v456_v22, %v635_v34  ;;  %v435_v29 = vadd.f32 %v434_v25, %v433_v23  ;;  %v459_v30 = vadd.f32 %v458_v26, %v457_v24 }
 0x113   :  { %349 = vst [vmem:[%s704_s3 + $0x30] sm:$0xff] %v305_v27  ;;  %357 = vst [vmem:[%s704_s3 + $0x70] sm:$0xff] %v337_v28  ;;  %v308_v31 = vadd.f32 %v435_v29, %v635_v34  ;;  %v340_v32 = vadd.f32 %v459_v30, %v635_v34 }
 0x115   :  { %350 = vst [vmem:[%s704_s3 + $0x38] sm:$0xff] %v308_v31  ;;  %358 = vst [vmem:[%s704_s3 + $0x78] sm:$0xff] %v340_v32 }

// kernel: forward.22
= control target key start
LH: loop header
LB: loop body
LE: loop exit
PB: predicated region body
PF: predicated region fallthrough
CT: control target
= control target key end

     0   :  { %s2741_s4 = inlined_call_operand.vmem [shape: f32[128,128], index: 4, kind: input, shape index: {}]   ;;  %s2742_s6 = inlined_call_operand.vmem [shape: f32[128,128], index: 6, kind: input, shape index: {}]   ;;  %s2743_s0 = inlined_call_operand.vmem [shape: f32[128,128], index: 0, kind: input, shape index: {}]   ;;  %s2744_s1 = inlined_call_operand.vmem [shape: f32[128,128], index: 1, kind: input, shape index: {}]   ;;  %s2745_s2 = inlined_call_operand.vmem [shape: f32[128,128], index: 2, kind: input, shape index: {}]   ;;  %s2746_s3 = inlined_call_operand.vmem [shape: f32[128,128], index: 3, kind: input, shape index: {}]   ;;  %s2747_s7 = inlined_call_operand.vmem [shape: f32[128,128], index: 7, kind: input, shape index: {}]   ;;  %s2748_s8 = inlined_call_operand.vmem [shape: f32[128,128], index: 8, kind: input, shape index: {}]   ;;  %s2749_s5 = inlined_call_operand.vmem [shape: f32[1,128], index: 5, kind: input, shape index: {}]   ;;  %s2750_s10 = inlined_call_operand.vmem [shape: f32[128,128], index: 10, kind: output, shape index: {0}]   ;;  %s2751_s9 = inlined_call_operand.vmem [shape: f32[1,128], index: 9, kind: input, shape index: {}]   ;;  %s2752_s11 = inlined_call_operand.vmem [shape: f32[128,128], index: 11, kind: output, shape index: {1}]  }
   0x1   :  { %v373_v0 = vld [vmem:[%s2741_s4] sm:$0xff]  ;;  %v374_v1 = vld [vmem:[%s2741_s4 + $0x8] sm:$0xff]  ;;  %v375_v5 = vld [vmem:[%s2741_s4 + $0x10] sm:$0xff] }
   0x2   :  { %v557_v2 = vld [vmem:[%s2742_s6] sm:$0xff]  ;;  %v1457_v3 = vpack.c.bf16 %v374_v1, %v373_v0  ;;  %v558_v4 = vld [vmem:[%s2742_s6 + $0x8] sm:$0xff]  ;;  %v376_v6 = vld [vmem:[%s2741_s4 + $0x18] sm:$0xff] }
   0x3   :  { %v1521_v7 = vpack.c.bf16 %v558_v4, %v557_v2  ;;  %v1461_v8 = vpack.c.bf16 %v376_v6, %v375_v5  ;;  %v559_v9 = vld [vmem:[%s2742_s6 + $0x10] sm:$0xff]  ;;  %v560_v10 = vld [vmem:[%s2742_s6 + $0x18] sm:$0xff]  ;;  %v377_v11 = vld [vmem:[%s2741_s4 + $0x20] sm:$0xff] }
   0x4   :  { %1458 = vmatprep.subr.bf16.mxu0 %v1457_v3  ;;  %v1525_v12 = vpack.c.bf16 %v560_v10, %v559_v9  ;;  %v378_v13 = vld [vmem:[%s2741_s4 + $0x28] sm:$0xff]  ;;  %v561_v14 = vld [vmem:[%s2742_s6 + $0x20] sm:$0xff]  ;;  %v379_v16 = vld [vmem:[%s2741_s4 + $0x30] sm:$0xff] }
   0x5   :  { %v562_v15 = vld [vmem:[%s2742_s6 + $0x28] sm:$0xff]  ;;  %1522 = vmatprep.subr.bf16.mxu1 %v1521_v7  ;;  %1460 = vmatpush3.bf16.msra.mxu0 %v1457_v3  ;;  %v380_v17 = vld [vmem:[%s2741_s4 + $0x38] sm:$0xff]  ;;  %v1465_v18 = vpack.c.bf16 %v378_v13, %v377_v11  ;;  %v563_v19 = vld [vmem:[%s2742_s6 + $0x30] sm:$0xff] }
   0x6   :  { %1524 = vmatpush3.bf16.msra.mxu1 %v1521_v7  ;;  %1462 = vmatprep.subr.bf16.mxu0 %v1461_v8  ;;  %v564_v20 = vld [vmem:[%s2742_s6 + $0x38] sm:$0xff]  ;;  %v381_v21 = vld [vmem:[%s2741_s4 + $0x40] sm:$0xff]  ;;  %v382_v22 = vld [vmem:[%s2741_s4 + $0x48] sm:$0xff]  ;;  %v1529_v23 = vpack.c.bf16 %v562_v15, %v561_v14  ;;  %v1469_v33 = vpack.c.bf16 %v380_v17, %v379_v16 }
   0x7   :  { %1526 = vmatprep.subr.bf16.mxu1 %v1525_v12  ;;  %v565_v24 = vld [vmem:[%s2742_s6 + $0x40] sm:$0xff]  ;;  %v566_v25 = vld [vmem:[%s2742_s6 + $0x48] sm:$0xff]  ;;  %v383_v26 = vld [vmem:[%s2741_s4 + $0x50] sm:$0xff]  ;;  %v1533_v37 = vpack.c.bf16 %v564_v20, %v563_v19  ;;  %v1767_v38 = vpack.c.bf16 %v382_v22, %v381_v21 }
   0x8   :  { %v384_v27 = vld [vmem:[%s2741_s4 + $0x58] sm:$0xff]  ;;  %v567_v28 = vld [vmem:[%s2742_s6 + $0x50] sm:$0xff]  ;;  %v385_v30 = vld [vmem:[%s2741_s4 + $0x60] sm:$0xff]  ;;  %v1769_v39 = vpack.c.bf16 %v566_v25, %v565_v24 }
   0x9   :  { %v568_v29 = vld [vmem:[%s2742_s6 + $0x58] sm:$0xff]  ;;  %1464 = vmatpush3.bf16.msra.mxu0 %v1461_v8  ;;  %v386_v31 = vld [vmem:[%s2741_s4 + $0x68] sm:$0xff]  ;;  %v569_v32 = vld [vmem:[%s2742_s6 + $0x60] sm:$0xff]  ;;  %v1780_v43 = vpack.c.bf16 %v384_v27, %v383_v26 }
   0xa   :  { %1528 = vmatpush3.bf16.msra.mxu1 %v1525_v12  ;;  %1466 = vmatprep.subr.bf16.mxu0 %v1465_v18  ;;  %v570_v34 = vld [vmem:[%s2742_s6 + $0x68] sm:$0xff]  ;;  %v387_v35 = vld [vmem:[%s2741_s4 + $0x70] sm:$0xff]  ;;  %v388_v36 = vld [vmem:[%s2741_s4 + $0x78] sm:$0xff]  ;;  %v1782_v44 = vpack.c.bf16 %v568_v29, %v567_v28  ;;  %v1784_v45 = vpack.c.bf16 %v386_v31, %v385_v30 }
   0xb   :  { %1530 = vmatprep.subr.bf16.mxu1 %v1529_v23  ;;  %v571_v40 = vld [vmem:[%s2742_s6 + $0x70] sm:$0xff]  ;;  %v572_v41 = vld [vmem:[%s2742_s6 + $0x78] sm:$0xff]  ;;  %v37_v42 = vld [vmem:[%s2743_s0] sm:$0xff]  ;;  %v1797_v50 = vpack.c.bf16 %v570_v34, %v569_v32  ;;  %v1799_v51 = vpack.c.bf16 %v388_v36, %v387_v35 }
   0xc   :  { %v1786_v46 = vmul.f32 0.5, %v37_v42  ;;  %v69_v47 = vld [vmem:[%s2744_s1] sm:$0xff]  ;;  %v38_v54 = vld [vmem:[%s2743_s0 + $0x8] sm:$0xff]  ;;  %v1827_v63 = vpack.c.bf16 %v572_v41, %v571_v40  ;;  %v39_v9 = vld [vmem:[%s2743_s0 + $0x10] sm:$0xff] }
   0xd   :  { %v101_v48 = vld [vmem:[%s2745_s2] sm:$0xff]  ;;  %1468 = vmatpush3.bf16.msra.mxu0 %v1465_v18  ;;  %v1801_v52 = vmul.f32 0.5, %v69_v47  ;;  %v70_v55 = vld [vmem:[%s2744_s1 + $0x8] sm:$0xff]  ;;  %v1815_v58 = vmul.f32 0.5, %v38_v54  ;;  %v71_v10 = vld [vmem:[%s2744_s1 + $0x10] sm:$0xff]  ;;  %v1864_v15 = vmul.f32 0.5, %v39_v9 }
   0xe   :  { %v133_v49 = vld [vmem:[%s2746_s3] sm:$0xff]  ;;  %v1803_v53 = vmul.f32 0.5, %v101_v48  ;;  %v102_v56 = vld [vmem:[%s2745_s2 + $0x8] sm:$0xff]  ;;  %1532 = vmatpush3.bf16.msra.mxu1 %v1529_v23  ;;  %1470 = vmatprep.subr.bf16.mxu0 %v1469_v33  ;;  %v2758_v57 = vsub.f32 0.0, %v1786_v46  ;;  %v1817_v59 = vmul.f32 0.5, %v70_v55  ;;  %v103_v11 = vld [vmem:[%s2745_s2 + $0x10] sm:$0xff] }
   0xf   :  { %v1819_v60 = vmul.f32 0.5, %v102_v56  ;;  %v134_v61 = vld [vmem:[%s2746_s3 + $0x8] sm:$0xff]  ;;  %v573_v62 = vld [vmem:[%s2747_s7] sm:$0xff]  ;;  %1534 = vmatprep.subr.bf16.mxu1 %v1533_v37  ;;  %v1829_v0 = vmul.f32 0.5, %v133_v49  ;;  %v165_v1 = vadd.f32 %v1801_v52, %v1786_v46  ;;  %v2759_v8 = vsub.f32 0.0, %v1815_v58  ;;  %v135_v17 = vld [vmem:[%s2746_s3 + $0x10] sm:$0xff] }
  0x10   :  { %v1833_v2 = vmul.f32 0.5, %v134_v61  ;;  %v574_v3 = vld [vmem:[%s2747_s7 + $0x8] sm:$0xff]  ;;  %v879_v4 = vld [vmem:[%s2748_s8] sm:$0xff]  ;;  %v229_v6 = vsub.f32 %v2758_v57, %v1801_v52  ;;  %v166_v7 = vadd.f32 %v1817_v59, %v1815_v58  ;;  %v1866_v16 = vmul.f32 0.5, %v71_v10  ;;  %v40_v22 = vld [vmem:[%s2743_s0 + $0x18] sm:$0xff] }
  0x11   :  { %v880_v5 = vld [vmem:[%s2748_s8 + $0x8] sm:$0xff]  ;;  %1472 = vmatpush3.bf16.msra.mxu0 %v1469_v33  ;;  %v181_v13 = vadd.f32 %v165_v1, %v1803_v53  ;;  %v1862_v14 = vpack.c.bf16 %v574_v3, %v573_v62  ;;  %v230_v20 = vsub.f32 %v2759_v8, %v1817_v59  ;;  %v1877_v21 = vmul.f32 0.5, %v103_v11  ;;  %v72_v23 = vld [vmem:[%s2744_s1 + $0x18] sm:$0xff]  ;;  %v575_v30 = vld [vmem:[%s2747_s7 + $0x10] sm:$0xff] }
  0x12   :  { %1536 = vmatpush3.bf16.msra.mxu1 %v1533_v37  ;;  %1474 = vmatprep.subr.bf16.mxu0 %v1767_v38  ;;  %v245_v18 = vadd.f32 %v229_v6, %v1803_v53  ;;  %v182_v19 = vadd.f32 %v166_v7, %v1819_v60  ;;  %v104_v24 = vld [vmem:[%s2745_s2 + $0x18] sm:$0xff]  ;;  %v1890_v26 = vpack.c.bf16 %v880_v5, %v879_v4  ;;  %v1892_v27 = vmul.f32 0.5, %v135_v17  ;;  %v881_v36 = vld [vmem:[%s2748_s8 + $0x10] sm:$0xff]  ;;  %v41_v48 = vld [vmem:[%s2743_s0 + $0x20] sm:$0xff] }
  0x13   :  { %1538 = vmatprep.subr.bf16.mxu1 %v1769_v39  ;;  %v197_v25 = vadd.f32 %v181_v13, %v1829_v0  ;;  %v167_v28 = vadd.f32 %v1866_v16, %v1864_v15  ;;  %v136_v29 = vld [vmem:[%s2746_s3 + $0x18] sm:$0xff]  ;;  %v246_v34 = vadd.f32 %v230_v20, %v1819_v60  ;;  %v2756_v35 = vsub.f32 0.0, %v1864_v15  ;;  %v73_v49 = vld [vmem:[%s2744_s1 + $0x20] sm:$0xff]  ;;  %v74_v6 = vld [vmem:[%s2744_s1 + $0x28] sm:$0xff] }
  0x14   :  { %v576_v31 = vld [vmem:[%s2747_s7 + $0x18] sm:$0xff]  ;;  %v261_v32 = vadd.f32 %v245_v18, %v1829_v0  ;;  %v1907_v33 = vadd.f32 %v182_v19, %v1833_v2  ;;  %v1919_v41 = vmul.f32 0.5, %v40_v22  ;;  %v1921_v42 = vmul.f32 0.5, %v72_v23  ;;  %v137_v62 = vld [vmem:[%s2746_s3 + $0x20] sm:$0xff]  ;;  %v106_v13 = vld [vmem:[%s2745_s2 + $0x28] sm:$0xff] }
  0x15   :  { %v882_v37 = vld [vmem:[%s2748_s8 + $0x18] sm:$0xff]  ;;  %1476 = vmatpush3.bf16.msra.mxu0 %v1767_v38  ;;  %1265 = vmatprep.mubr.f32.mxu0 %v197_v25  ;;  %v183_v40 = vadd.f32 %v167_v28, %v1877_v21  ;;  %v1923_v47 = vmul.f32 0.5, %v104_v24  ;;  %v105_v38 = vld [vmem:[%s2745_s2 + $0x20] sm:$0xff]  ;;  %v1937_v54 = vadd.f32 %v246_v34, %v1833_v2  ;;  %v231_v55 = vsub.f32 %v2756_v35, %v1866_v16  ;;  %v138_v17 = vld [vmem:[%s2746_s3 + $0x28] sm:$0xff] }
  0x16   :  { %1540 = vmatpush3.bf16.msra.mxu1 %v1769_v39  ;;  %1478 = vmatprep.subr.bf16.mxu0 %v1780_v43  ;;  %v1942_v56 = vmul.f32 0.5, %v136_v29  ;;  %v1944_v61 = vpack.c.bf16 %v576_v31, %v575_v30  ;;  %v42_v39 = vld [vmem:[%s2743_s0 + $0x28] sm:$0xff]  ;;  %v168_v3 = vadd.f32 %v1921_v42, %v1919_v41  ;;  %v2755_v4 = vsub.f32 0.0, %v1919_v41  ;;  %v577_v23 = vld [vmem:[%s2747_s7 + $0x20] sm:$0xff]  ;;  %v43_v31 = vld [vmem:[%s2743_s0 + $0x30] sm:$0xff] }
  0x17   :  { %1542 = vmatprep.subr.bf16.mxu1 %v1782_v44  ;;  %1377 = vmatprep.mubr.f32.mxu1 %v261_v32  ;;  %v1954_v1 = vadd.f32 %v183_v40, %v1892_v27  ;;  %v1959_v5 = vpack.c.bf16 %v882_v37, %v881_v36  ;;  %v247_v7 = vadd.f32 %v231_v55, %v1877_v21  ;;  %v1965_v9 = vmul.f32 0.5, %v41_v48  ;;  %v578_v24 = vld [vmem:[%s2747_s7 + $0x28] sm:$0xff]  ;;  %v883_v30 = vld [vmem:[%s2748_s8 + $0x20] sm:$0xff]  ;;  %v75_v40 = vld [vmem:[%s2744_s1 + $0x30] sm:$0xff] }
  0x18   :  { %v1967_v10 = vmul.f32 0.5, %v73_v49  ;;  %v1969_v11 = vmul.f32 0.5, %v105_v38  ;;  %v184_v18 = vadd.f32 %v168_v3, %v1923_v47  ;;  %v232_v19 = vsub.f32 %v2755_v4, %v1921_v42  ;;  %v45_v35 = vld [vmem:[%s2743_s0 + $0x40] sm:$0xff] }
  0x19   :  { %1480 = vmatpush3.bf16.msra.mxu0 %v1780_v43  ;;  %v1982_v20 = vmul.f32 0.5, %v137_v62  ;;  %v1984_v22 = vmul.f32 0.5, %v42_v39  ;;  %v1995_v43 = vadd.f32 %v247_v7, %v1892_v27  ;;  %v2754_v28 = vsub.f32 0.0, %v1965_v9  ;;  %v107_v62 = vld [vmem:[%s2745_s2 + $0x30] sm:$0xff]  ;;  %v77_v12 = vld [vmem:[%s2744_s1 + $0x40] sm:$0xff] }
  0x1a   :  { %1544 = vmatpush3.bf16.msra.mxu1 %v1782_v44  ;;  %1482 = vmatprep.subr.bf16.mxu0 %v1784_v45  ;;  %v169_v25 = vadd.f32 %v1967_v10, %v1965_v9  ;;  %v2000_v29 = vmul.f32 0.5, %v74_v6  ;;  %v884_v44 = vld [vmem:[%s2748_s8 + $0x28] sm:$0xff]  ;;  %v2013_v32 = vadd.f32 %v184_v18, %v1942_v56  ;;  %v248_v34 = vadd.f32 %v232_v19, %v1923_v47  ;;  %v139_v39 = vld [vmem:[%s2746_s3 + $0x30] sm:$0xff]  ;;  %v141_v57 = vld [vmem:[%s2746_s3 + $0x40] sm:$0xff] }
  0x1b   :  { %1546 = vmatprep.subr.bf16.mxu1 %v1797_v50  ;;  %v2016_v36 = vmul.f32 0.5, %v106_v13  ;;  %v2018_v37 = vmul.f32 0.5, %v138_v17  ;;  %v233_v49 = vsub.f32 %v2754_v28, %v1967_v10  ;;  %v2029_v55 = vpack.c.bf16 %v578_v24, %v577_v23  ;;  %v44_v17 = vld [vmem:[%s2743_s0 + $0x38] sm:$0xff] }
  0x1c   :  { %v185_v48 = vadd.f32 %v169_v25, %v1969_v11  ;;  %v170_v38 = vadd.f32 %v2000_v29, %v1984_v22  ;;  %v2039_v3 = vadd.f32 %v248_v34, %v1942_v56  ;;  %v2753_v6 = vsub.f32 0.0, %v1984_v22  ;;  %v76_v24 = vld [vmem:[%s2744_s1 + $0x38] sm:$0xff] }
  0x1d   :  { %2806 = vst [vmem:[#allocation2_spill] sm:$0xff] %v2018_v37  ;;  %1484 = vmatpush3.bf16.msra.mxu0 %v1784_v45  ;;  %v2042_v7 = vpack.c.bf16 %v884_v44, %v883_v30  ;;  %v2044_v13 = vmul.f32 0.5, %v43_v31  ;;  %v249_v45 = vadd.f32 %v233_v49, %v1969_v11  ;;  %v2056_v23 = vmul.f32 0.5, %v75_v40  ;;  %v108_v25 = vld [vmem:[%s2745_s2 + $0x38] sm:$0xff]  ;;  %v579_v40 = vld [vmem:[%s2747_s7 + $0x30] sm:$0xff] }
  0x1e   :  { %1548 = vmatpush3.bf16.msra.mxu1 %v1797_v50  ;;  %1486 = vmatprep.subr.bf16.mxu0 %v1799_v51  ;;  %v2052_v18 = vadd.f32 %v185_v48, %v1982_v20  ;;  %v186_v19 = vadd.f32 %v170_v38, %v2016_v36  ;;  %v234_v50 = vsub.f32 %v2753_v6, %v2000_v29  ;;  %v2068_v30 = vmul.f32 0.5, %v107_v62  ;;  %v140_v34 = vld [vmem:[%s2746_s3 + $0x38] sm:$0xff]  ;;  %v885_v6 = vld [vmem:[%s2748_s8 + $0x30] sm:$0xff] }
  0x1f   :  { %1550 = vmatprep.subr.bf16.mxu1 %v1827_v63  ;;  %v2070_v44 = vmul.f32 0.5, %v139_v39  ;;  %v2757_v31 = vsub.f32 0.0, %v2044_v13  ;;  %v580_v48 = vld [vmem:[%s2747_s7 + $0x38] sm:$0xff]  ;;  %v2083_v49 = vadd.f32 %v249_v45, %v1982_v20  ;;  %v171_v62 = vadd.f32 %v2056_v23, %v2044_v13 }
  0x20   :  { %2807 = vst [vmem:[#allocation3_spill] sm:$0xff] %v2068_v30  ;;  %v2086_v38 = vadd.f32 %v186_v19, %v2018_v37  ;;  %v2090_v39 = vmul.f32 0.5, %v44_v17  ;;  %v886_v28 = vld [vmem:[%s2748_s8 + $0x38] sm:$0xff]  ;;  %v250_v45 = vadd.f32 %v234_v50, %v2016_v36  ;;  %v2103_v4 = vmul.f32 0.5, %v76_v24 }
  0x21   :  { %2808 = vst [vmem:[#allocation4_spill] sm:$0xff] %v2070_v44  ;;  %1488 = vmatpush3.bf16.msra.mxu0 %v1799_v51  ;;  %v235_v19 = vsub.f32 %v2757_v31, %v2056_v23  ;;  %v2105_v17 = vmul.f32 0.5, %v108_v25  ;;  %v187_v51 = vadd.f32 %v171_v62, %v2068_v30  ;;  %v2116_v50 = vmul.f32 0.5, %v140_v34  ;;  %v109_v31 = vld [vmem:[%s2745_s2 + $0x40] sm:$0xff]  ;;  %v46_v62 = vld [vmem:[%s2743_s0 + $0x48] sm:$0xff] }
  0x22   :  { %2809 = vst [vmem:[#allocation5_spill] sm:$0xff] %v2090_v39  ;;  %1552 = vmatpush3.bf16.msra.mxu1 %v1827_v63  ;;  %1490 = vmatprep.subr.bf16.mxu0 %v1862_v14  ;;  %v2118_v24 = vpack.c.bf16 %v580_v48, %v579_v40  ;;  %v2762_v25 = vsub.f32 0.0, %v2090_v39  ;;  %v2129_v63 = vadd.f32 %v250_v45, %v2018_v37  ;;  %v2146_v37 = vmul.f32 0.5, %v45_v35 }
  0x23   :  { %2810 = vst [vmem:[#allocation6_spill] sm:$0xff] %v2105_v17  ;;  %2811 = vst [vmem:[#allocation7_spill] sm:$0xff] %v2116_v50  ;;  %1554 = vmatprep.subr.bf16.mxu1 %v1890_v26  ;;  %v251_v34 = vadd.f32 %v235_v19, %v2068_v30  ;;  %v172_v40 = vadd.f32 %v2103_v4, %v2090_v39  ;;  %v2134_v48 = vpack.c.bf16 %v886_v28, %v885_v6  ;;  %v78_v28 = vld [vmem:[%s2744_s1 + $0x48] sm:$0xff]  ;;  %v581_v30 = vld [vmem:[%s2747_s7 + $0x40] sm:$0xff] }
  0x24   :  { %1266 = vmatmul.mubr.f32.vlgmr.msra.gmra.mrb[0].mxu0 %v1907_v33  ;;  %v2141_v8 = vadd.f32 %v187_v51, %v2070_v44  ;;  %v236_v45 = vsub.f32 %v2762_v25, %v2103_v4  ;;  %v2148_v19 = vmul.f32 0.5, %v77_v12  ;;  %v110_v6 = vld [vmem:[%s2745_s2 + $0x48] sm:$0xff]  ;;  %v2165_v51 = vmul.f32 0.5, %v109_v31 }
  0x25   :  { %v142_v33 = vld [vmem:[%s2746_s3 + $0x48] sm:$0xff]  ;;  %1378 = vmatmul.mubr.f32.vlgmr.msra.gmra.mrb[0].mxu1 %v1937_v54  ;;  %1492 = vmatpush3.bf16.msra.mxu0 %v1862_v14  ;;  %v2162_v35 = vadd.f32 %v251_v34, %v2070_v44  ;;  %v188_v12 = vadd.f32 %v172_v40, %v2105_v17  ;;  %v2167_v25 = vmul.f32 0.5, %v141_v57  ;;  %v2181_v31 = vmul.f32 0.5, %v46_v62  ;;  %v887_v34 = vld [vmem:[%s2748_s8 + $0x40] sm:$0xff]  ;;  %v79_v44 = vld [vmem:[%s2744_s1 + $0x50] sm:$0xff] }
  0x26   :  { %v582_v39 = vld [vmem:[%s2747_s7 + $0x48] sm:$0xff]  ;;  %1556 = vmatpush3.bf16.msra.mxu1 %v1890_v26  ;;  %1268 = vmatprep.mubr.f32.mxu0 %v1954_v1  ;;  %v252_v14 = vadd.f32 %v236_v45, %v2105_v17  ;;  %v173_v54 = vadd.f32 %v2148_v19, %v2146_v37  ;;  %v47_v26 = vld [vmem:[%s2743_s0 + $0x50] sm:$0xff]  ;;  %v2197_v62 = vmul.f32 0.5, %v78_v28  ;;  %v2199_v45 = vmul.f32 0.5, %v110_v6 }
  0x27   :  { %2812 = vst [vmem:[#allocation8_spill] sm:$0xff] %v2167_v25  ;;  %2813 = vst [vmem:[#allocation9_spill] sm:$0xff] %v2181_v31  ;;  %v888_v40 = vld [vmem:[%s2748_s8 + $0x48] sm:$0xff]  ;;  %1380 = vmatprep.mubr.f32.mxu1 %v1995_v43  ;;  %1494 = vmatprep.subr.bf16.mxu0 %v1944_v61  ;;  %v2195_v1 = vadd.f32 %v188_v12, %v2116_v50  ;;  %v2201_v57 = vmul.f32 0.5, %v142_v33  ;;  %v2817_v28 = vsub.f32 0.0, %v2146_v37  ;;  %v111_v17 = vld [vmem:[%s2745_s2 + $0x50] sm:$0xff] }
  0x28   :  { %2814 = vst [vmem:[#allocation10_spill] sm:$0xff] %v2197_v62  ;;  %2815 = vst [vmem:[#allocation11_spill] sm:$0xff] %v2199_v45  ;;  %1269 = vmatmul.mubr.f32.gmra.mrb[2].mxu0 %v2013_v32  ;;  %1558 = vmatprep.subr.bf16.mxu1 %v1959_v5  ;;  %v2209_v43 = vadd.f32 %v252_v14, %v2116_v50  ;;  %v189_v12 = vadd.f32 %v173_v54, %v2165_v51  ;;  %v143_v32 = vld [vmem:[%s2746_s3 + $0x50] sm:$0xff]  ;;  %v2230_v33 = vmul.f32 0.5, %v47_v26  ;;  %v48_v50 = vld [vmem:[%s2743_s0 + $0x58] sm:$0xff] }
  0x29   :  { %2816 = vst [vmem:[#allocation12_spill] sm:$0xff] %v2201_v57  ;;  %v237_v6 = vsub.f32 %v2817_v28, %v2148_v19  ;;  %1381 = vmatmul.mubr.f32.gmra.mrb[2].mxu1 %v2039_v3  ;;  %1496 = vmatpush3.bf16.msra.mxu0 %v1944_v61  ;;  %v174_v14 = vadd.f32 %v2197_v62, %v2181_v31  ;;  %v2255_v26 = vmul.f32 0.5, %v111_v17 }
  0x2a   :  { %v2226_v54 = vpack.c.bf16 %v582_v39, %v581_v30  ;;  %v2228_v28 = vpack.c.bf16 %v888_v40, %v887_v34  ;;  %2818 = vst [vmem:[#allocation13_spill] sm:$0xff] %v2230_v33  ;;  %1560 = vmatpush3.bf16.msra.mxu1 %v1959_v5  ;;  %1271 = vmatprep.mubr.f32.mxu0 %v2052_v18  ;;  %v2819_v30 = vsub.f32 0.0, %v2181_v31  ;;  %v2244_v34 = vmul.f32 0.5, %v79_v44  ;;  %v80_v40 = vld [vmem:[%s2744_s1 + $0x58] sm:$0xff]  ;;  %v889_v31 = vld [vmem:[%s2748_s8 + $0x50] sm:$0xff] }
  0x2b   :  { %v2238_v3 = vadd.f32 %v189_v12, %v2167_v25  ;;  %v253_v61 = vadd.f32 %v237_v6, %v2165_v51  ;;  %v112_v5 = vld [vmem:[%s2745_s2 + $0x58] sm:$0xff]  ;;  %1383 = vmatprep.mubr.f32.mxu1 %v2083_v49  ;;  %1498 = vmatprep.subr.bf16.mxu0 %v2029_v55  ;;  %v190_v18 = vadd.f32 %v174_v14, %v2199_v45  ;;  %v2257_v12 = vmul.f32 0.5, %v143_v32 }
  0x2c   :  { %v238_v39 = vsub.f32 %v2819_v30, %v2197_v62  ;;  %2820 = vst [vmem:[#allocation14_spill] sm:$0xff] %v2255_v26  ;;  %v144_v6 = vld [vmem:[%s2746_s3 + $0x58] sm:$0xff]  ;;  %v583_v30 = vld [vmem:[%s2747_s7 + $0x50] sm:$0xff]  ;;  %1272 = vmatmul.mubr.f32.gmra.mrb[4].mxu0 %v2086_v38  ;;  %1562 = vmatprep.subr.bf16.mxu1 %v2042_v7  ;;  %v175_v14 = vadd.f32 %v2244_v34, %v2230_v33  ;;  %v2275_v44 = vmul.f32 0.5, %v48_v50  ;;  %v2289_v50 = vmul.f32 0.5, %v80_v40 }
  0x2d   :  { %2821 = vst [vmem:[#allocation15_spill] sm:$0xff] %v2257_v12  ;;  %v584_v49 = vld [vmem:[%s2747_s7 + $0x58] sm:$0xff]  ;;  %v269_v17 = vadd.f32 %v253_v61, %v2167_v25  ;;  %1384 = vmatmul.mubr.f32.gmra.mrb[4].mxu1 %v2129_v63  ;;  %1500 = vmatpush3.bf16.msra.mxu0 %v2029_v55  ;;  %v206_v38 = vadd.f32 %v190_v18, %v2201_v57  ;;  %v2823_v61 = vsub.f32 0.0, %v2230_v33  ;;  %v49_v25 = vld [vmem:[%s2743_s0 + $0x60] sm:$0xff]  ;;  %v2306_v18 = vmul.f32 0.5, %v144_v6  ;;  %v50_v6 = vld [vmem:[%s2743_s0 + $0x68] sm:$0xff] }
  0x2e   :  { %v254_v32 = vadd.f32 %v238_v39, %v2199_v45  ;;  %2822 = vst [vmem:[#allocation16_spill] sm:$0xff] %v2275_v44  ;;  %v890_v62 = vld [vmem:[%s2748_s8 + $0x58] sm:$0xff]  ;;  %2824 = vst [vmem:[#allocation17_spill] sm:$0xff] %v2289_v50  ;;  %v2291_v45 = vmul.f32 0.5, %v112_v5  ;;  %v81_v63 = vld [vmem:[%s2744_s1 + $0x60] sm:$0xff]  ;;  %1564 = vmatpush3.bf16.msra.mxu1 %v2042_v7  ;;  %1274 = vmatprep.mubr.f32.mxu0 %v2141_v8  ;;  %v191_v5 = vadd.f32 %v175_v14, %v2255_v26 }
  0x2f   :  { %v239_v39 = vsub.f32 %v2823_v61, %v2244_v34  ;;  %v113_v55 = vld [vmem:[%s2745_s2 + $0x60] sm:$0xff]  ;;  %2826 = vst [vmem:[#allocation19_spill] sm:$0xff] %v2306_v18  ;;  %v2308_v61 = vpack.c.bf16 %v584_v49, %v583_v30  ;;  %1386 = vmatprep.mubr.f32.mxu1 %v2162_v35  ;;  %1502 = vmatprep.subr.bf16.mxu0 %v2118_v24  ;;  %v82_v30 = vld [vmem:[%s2744_s1 + $0x68] sm:$0xff]  ;;  %v2330_v49 = vmul.f32 0.5, %v49_v25 }
  0x30   :  { %2825 = vst [vmem:[#allocation18_spill] sm:$0xff] %v2291_v45  ;;  %v270_v40 = vadd.f32 %v254_v32, %v2201_v57  ;;  %v145_v33 = vld [vmem:[%s2746_s3 + $0x60] sm:$0xff]  ;;  %v176_v8 = vadd.f32 %v2289_v50, %v2275_v44  ;;  %v2319_v14 = vpack.c.bf16 %v890_v62, %v889_v31  ;;  %1275 = vmatmul.mubr.f32.gmra.mrb[6].mxu0 %v2195_v1  ;;  %v2334_v31 = vmul.f32 0.5, %v113_v55  ;;  %v114_v62 = vld [vmem:[%s2745_s2 + $0x68] sm:$0xff] }
  0x31   :  { %v255_v7 = vadd.f32 %v239_v39, %v2255_v26  ;;  %1566 = vmatprep.subr.bf16.mxu1 %v2134_v48  ;;  %v207_v35 = vadd.f32 %v191_v5, %v2257_v12  ;;  %2827 = vst [vmem:[#allocation20_spill] sm:$0xff] %v2330_v49  ;;  %v2332_v39 = vmul.f32 0.5, %v81_v63  ;;  %v146_v32 = vld [vmem:[%s2746_s3 + $0x68] sm:$0xff]  ;;  %1387 = vmatmul.mubr.f32.gmra.mrb[6].mxu1 %v2209_v43  ;;  %v2829_v63 = vsub.f32 0.0, %v2275_v44  ;;  %v585_v57 = vld [vmem:[%s2747_s7 + $0x60] sm:$0xff]  ;;  %v83_v26 = vld [vmem:[%s2744_s1 + $0x70] sm:$0xff] }
  0x32   :  { %1504 = vmatpush3.bf16.msra.mxu0 %v2118_v24  ;;  %v192_v25 = vadd.f32 %v176_v8, %v2291_v45  ;;  %v2349_v5 = vmul.f32 0.5, %v145_v33  ;;  %v586_v43 = vld [vmem:[%s2747_s7 + $0x68] sm:$0xff]  ;;  %1568 = vmatpush3.bf16.msra.mxu1 %v2134_v48  ;;  %v2362_v8 = vmul.f32 0.5, %v50_v6  ;;  %v2364_v33 = vmul.f32 0.5, %v82_v30  ;;  %v51_v48 = vld [vmem:[%s2743_s0 + $0x70] sm:$0xff] }
  0x33   :  { %2828 = vst [vmem:[#allocation21_spill] sm:$0xff] %v2332_v39  ;;  %v271_v1 = vadd.f32 %v255_v7, %v2257_v12  ;;  %v240_v55 = vsub.f32 %v2829_v63, %v2289_v50  ;;  %1277 = vmatprep.mubr.f32.mxu0 %v2238_v3  ;;  %v177_v24 = vadd.f32 %v2332_v39, %v2330_v49  ;;  %v891_v63 = vld [vmem:[%s2748_s8 + $0x60] sm:$0xff]  ;;  %v892_v12 = vld [vmem:[%s2748_s8 + $0x68] sm:$0xff]  ;;  %v2378_v30 = vmul.f32 0.5, %v114_v62  ;;  %v52_v62 = vld [vmem:[%s2743_s0 + $0x78] sm:$0xff] }
  0x34   :  { %2830 = vst [vmem:[#allocation22_spill] sm:$0xff] %v2349_v5  ;;  %1389 = vmatprep.mubr.f32.mxu1 %v269_v17  ;;  %1506 = vmatprep.subr.bf16.mxu0 %v2226_v54  ;;  %v208_v3 = vadd.f32 %v192_v25, %v2306_v18  ;;  %v2380_v7 = vmul.f32 0.5, %v146_v32  ;;  %v2832_v17 = vsub.f32 0.0, %v2330_v49  ;;  %v178_v25 = vadd.f32 %v2364_v33, %v2362_v8  ;;  %v115_v32 = vld [vmem:[%s2745_s2 + $0x70] sm:$0xff] }
  0x35   :  { %v256_v6 = vadd.f32 %v240_v55, %v2291_v45  ;;  %2831 = vst [vmem:[#allocation23_spill] sm:$0xff] %v2378_v30  ;;  %1278 = vmatmul.mubr.f32.gmra.mrb[8].mxu0 %v206_v38  ;;  %1570 = vmatprep.subr.bf16.mxu1 %v2228_v28  ;;  %v193_v44 = vadd.f32 %v177_v24, %v2334_v31  ;;  %v147_v38 = vld [vmem:[%s2746_s3 + $0x70] sm:$0xff]  ;;  %v2401_v49 = vmul.f32 0.5, %v51_v48 }
  0x36   :  { %v241_v50 = vsub.f32 %v2832_v17, %v2332_v39  ;;  %1390 = vmatmul.mubr.f32.gmra.mrb[8].mxu1 %v270_v40  ;;  %1508 = vmatpush3.bf16.msra.mxu0 %v2226_v54  ;;  %v1513_v24 = vpack.c.bf16 %v586_v43, %v585_v57  ;;  %v1577_v17 = vpack.c.bf16 %v892_v12, %v891_v63  ;;  %v2410_v54 = vmul.f32 0.5, %v83_v26  ;;  %v84_v57 = vld [vmem:[%s2744_s1 + $0x78] sm:$0xff]  ;;  %v587_v43 = vld [vmem:[%s2747_s7 + $0x70] sm:$0xff] }
  0x37   :  { %v272_v55 = vadd.f32 %v256_v6, %v2306_v18  ;;  %1572 = vmatpush3.bf16.msra.mxu1 %v2228_v28  ;;  %1280 = vmatprep.mubr.f32.mxu0 %v207_v35  ;;  %v209_v39 = vadd.f32 %v193_v44, %v2349_v5  ;;  %v194_v40 = vadd.f32 %v178_v25, %v2378_v30  ;;  %v116_v12 = vld [vmem:[%s2745_s2 + $0x78] sm:$0xff]  ;;  %v2833_v28 = vsub.f32 0.0, %v2362_v8 }
  0x38   :  { %v257_v45 = vadd.f32 %v241_v50, %v2334_v31  ;;  %1392 = vmatprep.mubr.f32.mxu1 %v271_v1  ;;  %1510 = vmatprep.subr.bf16.mxu0 %v2308_v61  ;;  %v2422_v50 = vmul.f32 0.5, %v115_v32  ;;  %v2424_v35 = vmul.f32 0.5, %v147_v38  ;;  %v2799_v26 = vsub.f32 0.0, %v2401_v49  ;;  %v588_v1 = vld [vmem:[%s2747_s7 + $0x78] sm:$0xff] }
  0x39   :  { %v242_v44 = vsub.f32 %v2833_v28, %v2364_v33  ;;  %1281 = vmatmul.mubr.f32.gmra.mrb[10].mxu0 %v208_v3  ;;  %1574 = vmatprep.subr.bf16.mxu1 %v2319_v14  ;;  %v210_v48 = vadd.f32 %v194_v40, %v2380_v7  ;;  %v179_v6 = vadd.f32 %v2410_v54, %v2401_v49  ;;  %v2438_v25 = vmul.f32 0.5, %v52_v62  ;;  %v148_v32 = vld [vmem:[%s2746_s3 + $0x78] sm:$0xff]  ;;  %v893_v62 = vld [vmem:[%s2748_s8 + $0x70] sm:$0xff] }
  0x3a   :  { %v273_v63 = vadd.f32 %v257_v45, %v2349_v5  ;;  %1393 = vmatmul.mubr.f32.gmra.mrb[10].mxu1 %v272_v55  ;;  %1512 = vmatpush3.bf16.msra.mxu0 %v2308_v61  ;;  %v243_v45 = vsub.f32 %v2799_v26, %v2410_v54  ;;  %v2448_v38 = vmul.f32 0.5, %v84_v57  ;;  %v2450_v40 = vmul.f32 0.5, %v116_v12  ;;  %v894_v55 = vld [vmem:[%s2748_s8 + $0x78] sm:$0xff] }
  0x3b   :  { %v258_v3 = vadd.f32 %v242_v44, %v2378_v30  ;;  %v2834_v61 = vsub.f32 0.0, %v1815_v58  ;;  %1576 = vmatpush3.bf16.msra.mxu1 %v2319_v14  ;;  %1283 = vmatprep.mubr.f32.mxu0 %v209_v39  ;;  %v195_v57 = vadd.f32 %v179_v6, %v2422_v50  ;;  %v1517_v44 = vpack.c.bf16 %v588_v1, %v587_v43 }
  0x3c   :  { %v228_v12 = vsub.f32 0.0, %v2438_v25  ;;  %1395 = vmatprep.mubr.f32.mxu1 %v273_v63  ;;  %1514 = vmatprep.subr.bf16.mxu0 %v1513_v24  ;;  %v259_v30 = vadd.f32 %v243_v45, %v2422_v50  ;;  %v2466_v5 = vmul.f32 0.5, %v148_v32  ;;  %v180_v18 = vadd.f32 %v2448_v38, %v2438_v25 }
  0x3d   :  { %v278_v28 = vadd.f32 %v2834_v61, %v1817_v59  ;;  %v274_v26 = vadd.f32 %v258_v3, %v2380_v7  ;;  %1284 = vmatmul.mubr.f32.gmra.mrb[12].mxu0 %v210_v48  ;;  %1578 = vmatprep.subr.bf16.mxu1 %v1577_v17  ;;  %v211_v14 = vadd.f32 %v195_v57, %v2424_v35  ;;  %v2835_v6 = vsub.f32 0.0, %v1786_v46 }
  0x3e   :  { %v244_v39 = vsub.f32 %v228_v12, %v2448_v38  ;;  %v1581_v43 = vpack.c.bf16 %v894_v55, %v893_v62  ;;  %1516 = vmatpush3.bf16.msra.mxu0 %v1513_v24  ;;  %v275_v1 = vadd.f32 %v259_v30, %v2424_v35  ;;  %v196_v63 = vadd.f32 %v180_v18, %v2450_v40 }
  0x3f   :  { %1396 = vmatmul.mubr.f32.gmra.mrb[12].mxu1 %v274_v26  ;;  %v277_v32 = vadd.f32 %v2835_v6, %v1801_v52  ;;  %1286 = vmatprep.mubr.f32.mxu0 %v211_v14  ;;  %v2836_v3 = vsub.f32 %v1786_v46, %v1801_v52  ;;  %v294_v26 = vsub.f32 %v278_v28, %v1819_v60  ;;  %v2837_v46 = vsub.f32 0.0, %v1864_v15 }
  0x40   :  { %1580 = vmatpush3.bf16.msra.mxu1 %v1577_v17  ;;  %v260_v48 = vadd.f32 %v244_v39, %v2450_v40  ;;  %1398 = vmatprep.mubr.f32.mxu1 %v275_v1  ;;  %v212_v30 = vadd.f32 %v196_v63, %v2466_v5  ;;  %v326_v24 = vsub.f32 %v1815_v58, %v1817_v59  ;;  %v2838_v58 = vsub.f32 0.0, %v1919_v41 }
  0x41   :  { %v341_v45 = vsub.f32 %v2836_v3, %v1803_v53  ;;  %1518 = vmatprep.subr.bf16.mxu0 %v1517_v44  ;;  %v293_v18 = vsub.f32 %v277_v32, %v1803_v53  ;;  %1582 = vmatprep.subr.bf16.mxu1 %v1581_v43  ;;  %v310_v55 = vadd.f32 %v294_v26, %v1833_v2  ;;  %v2839_v39 = vsub.f32 0.0, %v1965_v9 }
  0x42   :  { %v276_v17 = vadd.f32 %v260_v48, %v2466_v5  ;;  %v279_v52 = vadd.f32 %v2837_v46, %v1866_v16  ;;  %1287 = vmatmul.mubr.f32.gmra.mrb[14].mxu0 %v212_v30  ;;  %v342_v28 = vsub.f32 %v326_v24, %v1819_v60  ;;  %v327_v53 = vsub.f32 %v1864_v15, %v1866_v16 }
  0x43   :  { %v357_v62 = vadd.f32 %v341_v45, %v1829_v0  ;;  %v309_v61 = vadd.f32 %v293_v18, %v1829_v0  ;;  %v280_v59 = vadd.f32 %v2838_v58, %v1921_v42  ;;  %1520 = vmatpush3.bf16.msra.mxu0 %v1517_v44  ;;  %v328_v14 = vsub.f32 %v1919_v41, %v1921_v42  ;;  %v2845_v18 = vld [vmem:[#allocation2_spill] sm:$0xff] }
  0x44   :  { %1399 = vmatmul.mubr.f32.gmra.mrb[14].mxu1 %v276_v17  ;;  %v295_v57 = vsub.f32 %v279_v52, %v1877_v21  ;;  %v281_v0 = vadd.f32 %v2839_v39, %v1967_v10  ;;  %v358_v60 = vadd.f32 %v342_v28, %v1833_v2  ;;  %v343_v15 = vsub.f32 %v327_v53, %v1877_v21  ;;  %v2848_v52 = vld [vmem:[#allocation4_spill] sm:$0xff]  ;;  %v2849_v58 = vld [vmem:[#allocation10_spill] sm:$0xff]  ;;  %v2852_v39 = vld [vmem:[#allocation7_spill] sm:$0xff] }
  0x45   :  { %1584 = vmatpush3.bf16.msra.mxu1 %v1581_v43  ;;  %1321 = vmatprep.mubr.f32.mxu0 %v309_v61  ;;  %v296_v16 = vsub.f32 %v280_v59, %v1923_v47  ;;  %v344_v1 = vsub.f32 %v328_v14, %v1923_v47  ;;  %v329_v41 = vsub.f32 %v1965_v9, %v1967_v10  ;;  %v2840_v2 = vsub.f32 0.0, %v1984_v22  ;;  %v2850_v59 = vld [vmem:[#allocation9_spill] sm:$0xff] }
  0x46   :  { %1433 = vmatprep.mubr.f32.mxu1 %v357_v62  ;;  %v311_v44 = vadd.f32 %v295_v57, %v1892_v27  ;;  %v297_v63 = vsub.f32 %v281_v0, %v1969_v11  ;;  %1322 = vmatmul.mubr.f32.vlgmr.msra.gmra.mrb[16].mxu0 %v310_v55  ;;  %v359_v42 = vadd.f32 %v343_v15, %v1892_v27  ;;  %v2841_v48 = vsub.f32 0.0, %v2044_v13  ;;  %v2846_v62 = vld [vmem:[#allocation3_spill] sm:$0xff]  ;;  %v2853_v15 = vld [vmem:[#allocation8_spill] sm:$0xff] }
  0x47   :  { %v312_v43 = vadd.f32 %v296_v16, %v1942_v56  ;;  %v282_v21 = vadd.f32 %v2840_v2, %v2000_v29  ;;  %v330_v6 = vsub.f32 %v1984_v22, %v2000_v29  ;;  %v360_v47 = vadd.f32 %v344_v1, %v1942_v56  ;;  %v2842_v56 = vld [vmem:[#allocation5_spill] sm:$0xff] }
  0x48   :  { %1434 = vmatmul.mubr.f32.vlgmr.msra.gmra.mrb[0].mxu1 %v358_v60  ;;  %1324 = vmatprep.mubr.f32.mxu0 %v311_v44  ;;  %v313_v32 = vadd.f32 %v297_v63, %v1982_v20  ;;  %v345_v9 = vsub.f32 %v329_v41, %v1969_v11  ;;  %v283_v3 = vadd.f32 %v2841_v48, %v2056_v23  ;;  %v2843_v45 = vsub.f32 0.0, %v2842_v56  ;;  %v2854_v63 = vld [vmem:[#allocation11_spill] sm:$0xff] }
  0x49   :  { %1436 = vmatprep.mubr.f32.mxu1 %v359_v42  ;;  %v298_v27 = vsub.f32 %v282_v21, %v2016_v36  ;;  %v346_v10 = vsub.f32 %v330_v6, %v2016_v36  ;;  %v331_v22 = vsub.f32 %v2044_v13, %v2056_v23  ;;  %v332_v11 = vsub.f32 %v2842_v56, %v2103_v4  ;;  %v2847_v23 = vld [vmem:[#allocation6_spill] sm:$0xff]  ;;  %v2857_v21 = vld [vmem:[#allocation17_spill] sm:$0xff]  ;;  %v2858_v6 = vld [vmem:[#allocation16_spill] sm:$0xff] }
  0x4a   :  { %v361_v29 = vadd.f32 %v345_v9, %v1982_v20  ;;  %v284_v26 = vadd.f32 %v2843_v45, %v2103_v4  ;;  %v2844_v30 = vsub.f32 0.0, %v2146_v37  ;;  %1325 = vmatmul.mubr.f32.gmra.mrb[18].mxu0 %v312_v43  ;;  %v299_v13 = vsub.f32 %v283_v3, %v2846_v62  ;;  %v2861_v3 = vld [vmem:[#allocation18_spill] sm:$0xff] }
  0x4b   :  { %v314_v24 = vadd.f32 %v298_v27, %v2845_v18  ;;  %v362_v17 = vadd.f32 %v346_v10, %v2845_v18  ;;  %v347_v20 = vsub.f32 %v331_v22, %v2846_v62  ;;  %1327 = vmatprep.mubr.f32.mxu0 %v313_v32  ;;  %v348_v46 = vsub.f32 %v332_v11, %v2847_v23  ;;  %v2860_v27 = vld [vmem:[#allocation14_spill] sm:$0xff]  ;;  %v2862_v22 = vld [vmem:[#allocation21_spill] sm:$0xff]  ;;  %v2867_v62 = vld [vmem:[#allocation15_spill] sm:$0xff] }
  0x4c   :  { %v285_v36 = vadd.f32 %v2844_v30, %v2148_v19  ;;  %1437 = vmatmul.mubr.f32.gmra.mrb[2].mxu1 %v360_v47  ;;  %v300_v55 = vsub.f32 %v284_v26, %v2847_v23  ;;  %v315_v61 = vadd.f32 %v299_v13, %v2848_v52  ;;  %v333_v53 = vsub.f32 %v2146_v37, %v2148_v19  ;;  %v2855_v37 = vld [vmem:[#allocation13_spill] sm:$0xff]  ;;  %v2865_v26 = vld [vmem:[#allocation12_spill] sm:$0xff] }
  0x4d   :  { %1439 = vmatprep.mubr.f32.mxu1 %v361_v29  ;;  %v363_v28 = vadd.f32 %v347_v20, %v2848_v52  ;;  %v2851_v57 = vsub.f32 0.0, %v2850_v59  ;;  %v364_v60 = vadd.f32 %v348_v46, %v2852_v39  ;;  %v334_v44 = vsub.f32 %v2850_v59, %v2849_v58  ;;  %v2863_v29 = vld [vmem:[#allocation20_spill] sm:$0xff]  ;;  %v2870_v59 = vld [vmem:[#allocation22_spill] sm:$0xff] }
  0x4e   :  { %v301_v4 = vsub.f32 %v285_v36, %v2165_v51  ;;  %v316_v0 = vadd.f32 %v300_v55, %v2852_v39  ;;  %1328 = vmatmul.mubr.f32.gmra.mrb[20].mxu0 %v314_v24  ;;  %v349_v1 = vsub.f32 %v333_v53, %v2165_v51  ;;  %v2856_v19 = vsub.f32 0.0, %v2855_v37 }
  0x4f   :  { %v286_v14 = vadd.f32 %v2851_v57, %v2849_v58  ;;  %v335_v43 = vsub.f32 %v2855_v37, %v2244_v34  ;;  %1330 = vmatprep.mubr.f32.mxu0 %v315_v61  ;;  %v350_v2 = vsub.f32 %v334_v44, %v2854_v63  ;;  %v2859_v47 = vsub.f32 0.0, %v2858_v6  ;;  %v2869_v61 = vld [vmem:[#allocation19_spill] sm:$0xff] }
  0x50   :  { %v317_v16 = vadd.f32 %v301_v4, %v2853_v15  ;;  %v287_v42 = vadd.f32 %v2856_v19, %v2244_v34  ;;  %1440 = vmatmul.mubr.f32.gmra.mrb[4].mxu1 %v362_v17  ;;  %v336_v51 = vsub.f32 %v2858_v6, %v2857_v21  ;;  %v365_v9 = vadd.f32 %v349_v1, %v2853_v15 }
  0x51   :  { %v302_v41 = vsub.f32 %v286_v14, %v2854_v63  ;;  %v288_v32 = vadd.f32 %v2859_v47, %v2857_v21  ;;  %1442 = vmatprep.mubr.f32.mxu1 %v363_v28  ;;  %v351_v48 = vsub.f32 %v335_v43, %v2860_v27  ;;  %v2864_v56 = vsub.f32 0.0, %v2863_v29  ;;  %v2871_v14 = vld [vmem:[#allocation23_spill] sm:$0xff] }
  0x52   :  { %v303_v10 = vsub.f32 %v287_v42, %v2860_v27  ;;  %1331 = vmatmul.mubr.f32.gmra.mrb[22].mxu0 %v316_v0  ;;  %v352_v30 = vsub.f32 %v336_v51, %v2861_v3  ;;  %v337_v36 = vsub.f32 %v2863_v29, %v2862_v22  ;;  %v2866_v18 = vsub.f32 0.0, %v2362_v8 }
  0x53   :  { %v304_v34 = vsub.f32 %v288_v32, %v2861_v3  ;;  %v289_v45 = vadd.f32 %v2864_v56, %v2862_v22  ;;  %v318_v11 = vadd.f32 %v302_v41, %v2865_v26  ;;  %1333 = vmatprep.mubr.f32.mxu0 %v317_v16  ;;  %v366_v17 = vadd.f32 %v350_v2, %v2865_v26 }
  0x54   :  { %v290_v24 = vadd.f32 %v2866_v18, %v2364_v33  ;;  %1443 = vmatmul.mubr.f32.gmra.mrb[6].mxu1 %v364_v60  ;;  %v319_v13 = vadd.f32 %v303_v10, %v2867_v62  ;;  %v367_v23 = vadd.f32 %v351_v48, %v2867_v62  ;;  %v353_v55 = vsub.f32 %v337_v36, %v2334_v31 }
  0x55   :  { %v305_v20 = vsub.f32 %v289_v45, %v2334_v31  ;;  %1445 = vmatprep.mubr.f32.mxu1 %v365_v9  ;;  %v338_v46 = vsub.f32 %v2362_v8, %v2364_v33  ;;  %v2868_v4 = vsub.f32 0.0, %v2401_v49  ;;  %v320_v28 = vadd.f32 %v304_v34, %v2869_v61 }
  0x56   :  { %v339_v53 = vsub.f32 %v2401_v49, %v2410_v54  ;;  %1334 = vmatmul.mubr.f32.gmra.mrb[24].mxu0 %v318_v11  ;;  %v368_v58 = vadd.f32 %v352_v30, %v2869_v61  ;;  %v306_v39 = vsub.f32 %v290_v24, %v2871_v14  ;;  %v292_v31 = vadd.f32 %v228_v12, %v2448_v38 }
  0x57   :  { %v291_v52 = vadd.f32 %v2868_v4, %v2410_v54  ;;  %v321_v57 = vadd.f32 %v305_v20, %v2870_v59  ;;  %1336 = vmatprep.mubr.f32.mxu0 %v319_v13  ;;  %v354_v8 = vsub.f32 %v338_v46, %v2871_v14  ;;  %v340_v49 = vsub.f32 %v2438_v25, %v2448_v38  ;;  %v2675_v13 = vld [vmem:[%s2751_s9] ss:$0 sm:$0xff] }
  0x58   :  { %1446 = vmatmul.mubr.f32.gmra.mrb[8].mxu1 %v366_v17  ;;  %v369_v54 = vadd.f32 %v353_v55, %v2870_v59  ;;  %v355_v0 = vsub.f32 %v339_v53, %v2422_v50  ;;  %v322_v60 = vadd.f32 %v306_v39, %v2380_v7  ;;  %v308_v15 = vsub.f32 %v292_v31, %v2450_v40 }
  0x59   :  { %v307_v33 = vsub.f32 %v291_v52, %v2422_v50  ;;  %1448 = vmatprep.mubr.f32.mxu1 %v367_v23  ;;  %v370_v12 = vadd.f32 %v354_v8, %v2380_v7  ;;  %v356_v44 = vsub.f32 %v340_v49, %v2450_v40  ;;  %v1103_v7 = vld [vmem:[%s2749_s5] ss:$0 sm:$0xff] }
  0x5a   :  { %1337 = vmatmul.mubr.f32.gmra.mrb[26].mxu0 %v320_v28  ;;  %v371_v25 = vadd.f32 %v355_v0, %v2424_v35  ;;  %v324_v38 = vadd.f32 %v308_v15, %v2466_v5 }
  0x5b   :  { %1339 = vmatprep.mubr.f32.mxu0 %v321_v57  ;;  %v323_v16 = vadd.f32 %v307_v33, %v2424_v35  ;;  %v372_v50 = vadd.f32 %v356_v44, %v2466_v5 }
  0x5c   :  { %1449 = vmatmul.mubr.f32.gmra.mrb[10].mxu1 %v368_v58 }
  0x5d   :  { %1451 = vmatprep.mubr.f32.mxu1 %v369_v54 }
  0x5e   :  { %1340 = vmatmul.mubr.f32.gmra.mrb[28].mxu0 %v322_v60 }
  0x5f   :  { %1342 = vmatprep.mubr.f32.mxu0 %v323_v16 }
  0x60   :  { %1452 = vmatmul.mubr.f32.gmra.mrb[12].mxu1 %v370_v12 }
  0x61   :  { %1454 = vmatprep.mubr.f32.mxu1 %v371_v25 }
  0x62   :  { %1343 = vmatmul.mubr.f32.gmra.mrb[30].mxu0 %v324_v38 }
  0x64   :  { %1455 = vmatmul.mubr.f32.gmra.mrb[14].mxu1 %v372_v50 }
  0xf7   :  { %v1267_v1 = vpop.f32.mrb[0].mxu0 }
  0xf8   :  { %v468_v63 = vadd.f32 %v1267_v1, %v1103_v7  ;;  %v462_v40 = vpop.f32.mrb[1].mxu0 }
  0xf9   :  { %v463_v41 = vadd.f32 %v1103_v7, %v462_v40 }
  0xfa   :  { %542 = vst [vmem:[%s2750_s10 + $0x8] sm:$0xff] %v468_v63 }
  0xfb   :  { %541 = vst [vmem:[%s2750_s10] sm:$0xff] %v463_v41  ;;  %v1270_v5 = vpop.f32.mrb[2].mxu0 }
  0xfc   :  { %v478_v35 = vadd.f32 %v1270_v5, %v1103_v7  ;;  %v472_v37 = vpop.f32.mrb[3].mxu0 }
  0xfd   :  { %v473_v19 = vadd.f32 %v1103_v7, %v472_v37 }
  0xfe   :  { %544 = vst [vmem:[%s2750_s10 + $0x18] sm:$0xff] %v478_v35 }
  0xff   :  { %543 = vst [vmem:[%s2750_s10 + $0x10] sm:$0xff] %v473_v19  ;;  %v1273_v42 = vpop.f32.mrb[4].mxu0 }
 0x100   :  { %v488_v43 = vadd.f32 %v1273_v42, %v1103_v7  ;;  %v482_v2 = vpop.f32.mrb[5].mxu0 }
 0x101   :  { %v483_v21 = vadd.f32 %v1103_v7, %v482_v2 }
 0x102   :  { %546 = vst [vmem:[%s2750_s10 + $0x28] sm:$0xff] %v488_v43 }
 0x103   :  { %545 = vst [vmem:[%s2750_s10 + $0x20] sm:$0xff] %v483_v21  ;;  %v1276_v6 = vpop.f32.mrb[6].mxu0 }
 0x104   :  { %v498_v47 = vadd.f32 %v1276_v6, %v1103_v7  ;;  %v492_v32 = vpop.f32.mrb[7].mxu0 }
 0x105   :  { %v493_v51 = vadd.f32 %v1103_v7, %v492_v32 }
 0x106   :  { %548 = vst [vmem:[%s2750_s10 + $0x38] sm:$0xff] %v498_v47 }
 0x107   :  { %547 = vst [vmem:[%s2750_s10 + $0x30] sm:$0xff] %v493_v51 }
 0x108   :  { %v1279_v9 = vpop.f32.mrb[8].mxu0 }
 0x109   :  { %v508_v27 = vadd.f32 %v1279_v9, %v1103_v7  ;;  %v502_v10 = vpop.f32.mrb[9].mxu0 }
 0x10a   :  { %v503_v48 = vadd.f32 %v1103_v7, %v502_v10 }
 0x10b   :  { %550 = vst [vmem:[%s2750_s10 + $0x48] sm:$0xff] %v508_v27 }
 0x10c   :  { %549 = vst [vmem:[%s2750_s10 + $0x40] sm:$0xff] %v503_v48  ;;  %v1282_v3 = vpop.f32.mrb[10].mxu0 }
 0x10d   :  { %v518_v34 = vadd.f32 %v1282_v3, %v1103_v7  ;;  %v512_v22 = vpop.f32.mrb[11].mxu0 }
 0x10e   :  { %v513_v29 = vadd.f32 %v1103_v7, %v512_v22 }
 0x10f   :  { %552 = vst [vmem:[%s2750_s10 + $0x58] sm:$0xff] %v518_v34 }
 0x110   :  { %551 = vst [vmem:[%s2750_s10 + $0x50] sm:$0xff] %v513_v29  ;;  %v1285_v56 = vpop.f32.mrb[12].mxu0 }
 0x111   :  { %v528_v45 = vadd.f32 %v1285_v56, %v1103_v7  ;;  %v522_v26 = vpop.f32.mrb[13].mxu0 }
 0x112   :  { %v523_v11 = vadd.f32 %v1103_v7, %v522_v26 }
 0x113   :  { %554 = vst [vmem:[%s2750_s10 + $0x68] sm:$0xff] %v528_v45 }
 0x114   :  { %553 = vst [vmem:[%s2750_s10 + $0x60] sm:$0xff] %v523_v11 }
 0x115   :  { %v1288_v30 = vpop.f32.mrb[14].mxu0 }
 0x116   :  { %v538_v36 = vadd.f32 %v1288_v30, %v1103_v7  ;;  %v532_v18 = vpop.f32.mrb[15].mxu0 }
 0x117   :  { %v533_v24 = vadd.f32 %v1103_v7, %v532_v18 }
 0x118   :  { %556 = vst [vmem:[%s2750_s10 + $0x78] sm:$0xff] %v538_v36 }
 0x119   :  { %555 = vst [vmem:[%s2750_s10 + $0x70] sm:$0xff] %v533_v24  ;;  %v1323_v17 = vpop.f32.mrb[16].mxu0 }
 0x11a   :  { %v655_v20 = vpop.f32.mrb[17].mxu0 }
 0x11b   :  { %v1435_v62 = vpop.f32.mrb[0].mxu1 }
 0x11c   :  { %v1585_v23 = vadd.f32 %v1435_v62, %v1323_v17  ;;  %v961_v55 = vpop.f32.mrb[1].mxu1 }
 0x11d   :  { %v1586_v46 = vadd.f32 %v961_v55, %v655_v20  ;;  %v1326_v52 = vpop.f32.mrb[18].mxu0 }
 0x11e   :  { %v1064_v4 = vadd.f32 %v1585_v23, %v2675_v13  ;;  %v665_v53 = vpop.f32.mrb[19].mxu0 }
 0x11f   :  { %v1063_v61 = vadd.f32 %v1586_v46, %v2675_v13  ;;  %v1438_v28 = vpop.f32.mrb[2].mxu1 }
 0x120   :  { %1080 = vst [vmem:[%s2752_s11 + $0x8] sm:$0xff] %v1064_v4  ;;  %v1587_v58 = vadd.f32 %v1438_v28, %v1326_v52  ;;  %v971_v59 = vpop.f32.mrb[3].mxu1 }
 0x121   :  { %1079 = vst [vmem:[%s2752_s11] sm:$0xff] %v1063_v61  ;;  %v1588_v57 = vadd.f32 %v971_v59, %v665_v53  ;;  %v1329_v39 = vpop.f32.mrb[20].mxu0 }
 0x122   :  { %v1066_v14 = vadd.f32 %v1587_v58, %v2675_v13  ;;  %v675_v33 = vpop.f32.mrb[21].mxu0 }
 0x123   :  { %v1065_v31 = vadd.f32 %v1588_v57, %v2675_v13  ;;  %v1441_v8 = vpop.f32.mrb[4].mxu1 }
 0x124   :  { %1082 = vst [vmem:[%s2752_s11 + $0x18] sm:$0xff] %v1066_v14  ;;  %v1589_v49 = vadd.f32 %v1441_v8, %v1329_v39  ;;  %v981_v54 = vpop.f32.mrb[5].mxu1 }
 0x125   :  { %1081 = vst [vmem:[%s2752_s11 + $0x10] sm:$0xff] %v1065_v31  ;;  %v1590_v0 = vadd.f32 %v981_v54, %v675_v33  ;;  %v1332_v15 = vpop.f32.mrb[22].mxu0 }
 0x126   :  { %v1068_v60 = vadd.f32 %v1589_v49, %v2675_v13  ;;  %v685_v44 = vpop.f32.mrb[23].mxu0 }
 0x127   :  { %v1067_v12 = vadd.f32 %v1590_v0, %v2675_v13  ;;  %v1444_v16 = vpop.f32.mrb[6].mxu1 }
 0x128   :  { %1084 = vst [vmem:[%s2752_s11 + $0x28] sm:$0xff] %v1068_v60  ;;  %v1591_v25 = vadd.f32 %v1444_v16, %v1332_v15  ;;  %v991_v38 = vpop.f32.mrb[7].mxu1 }
 0x129   :  { %1083 = vst [vmem:[%s2752_s11 + $0x20] sm:$0xff] %v1067_v12  ;;  %v1592_v50 = vadd.f32 %v991_v38, %v685_v44  ;;  %v1335_v1 = vpop.f32.mrb[24].mxu0 }
 0x12a   :  { %v1070_v7 = vadd.f32 %v1591_v25, %v2675_v13  ;;  %v695_v41 = vpop.f32.mrb[25].mxu0 }
 0x12b   :  { %v1069_v63 = vadd.f32 %v1592_v50, %v2675_v13  ;;  %v1447_v40 = vpop.f32.mrb[8].mxu1 }
 0x12c   :  { %1086 = vst [vmem:[%s2752_s11 + $0x38] sm:$0xff] %v1070_v7  ;;  %v1593_v5 = vadd.f32 %v1447_v40, %v1335_v1  ;;  %v1001_v35 = vpop.f32.mrb[9].mxu1 }
 0x12d   :  { %1085 = vst [vmem:[%s2752_s11 + $0x30] sm:$0xff] %v1069_v63  ;;  %v1594_v37 = vadd.f32 %v1001_v35, %v695_v41  ;;  %v1338_v42 = vpop.f32.mrb[26].mxu0 }
 0x12e   :  { %v1072_v19 = vadd.f32 %v1593_v5, %v2675_v13  ;;  %v705_v21 = vpop.f32.mrb[27].mxu0 }
 0x12f   :  { %v1071_v43 = vadd.f32 %v1594_v37, %v2675_v13  ;;  %v1450_v2 = vpop.f32.mrb[10].mxu1 }
 0x130   :  { %1088 = vst [vmem:[%s2752_s11 + $0x48] sm:$0xff] %v1072_v19  ;;  %v1595_v6 = vadd.f32 %v1450_v2, %v1338_v42  ;;  %v1011_v47 = vpop.f32.mrb[11].mxu1 }
 0x131   :  { %1087 = vst [vmem:[%s2752_s11 + $0x40] sm:$0xff] %v1071_v43  ;;  %v1596_v32 = vadd.f32 %v1011_v47, %v705_v21  ;;  %v1341_v9 = vpop.f32.mrb[28].mxu0 }
 0x132   :  { %v1074_v51 = vadd.f32 %v1595_v6, %v2675_v13  ;;  %v715_v48 = vpop.f32.mrb[29].mxu0 }
 0x133   :  { %v1073_v27 = vadd.f32 %v1596_v32, %v2675_v13  ;;  %v1453_v10 = vpop.f32.mrb[12].mxu1 }
 0x134   :  { %1090 = vst [vmem:[%s2752_s11 + $0x58] sm:$0xff] %v1074_v51  ;;  %v1597_v3 = vadd.f32 %v1453_v10, %v1341_v9  ;;  %v1021_v34 = vpop.f32.mrb[13].mxu1 }
 0x135   :  { %1089 = vst [vmem:[%s2752_s11 + $0x50] sm:$0xff] %v1073_v27  ;;  %v1598_v22 = vadd.f32 %v1021_v34, %v715_v48  ;;  %v1344_v56 = vpop.f32.mrb[30].mxu0 }
 0x136   :  { %v1076_v29 = vadd.f32 %v1597_v3, %v2675_v13  ;;  %v725_v11 = vpop.f32.mrb[31].mxu0 }
 0x137   :  { %v1075_v45 = vadd.f32 %v1598_v22, %v2675_v13  ;;  %v1456_v26 = vpop.f32.mrb[14].mxu1 }
 0x138   :  { %1092 = vst [vmem:[%s2752_s11 + $0x68] sm:$0xff] %v1076_v29  ;;  %v1599_v30 = vadd.f32 %v1456_v26, %v1344_v56  ;;  %v1031_v36 = vpop.f32.mrb[15].mxu1 }
 0x139   :  { %1091 = vst [vmem:[%s2752_s11 + $0x60] sm:$0xff] %v1075_v45  ;;  %v1600_v18 = vadd.f32 %v1031_v36, %v725_v11 }
 0x13a   :  { %v1078_v24 = vadd.f32 %v1599_v30, %v2675_v13 }
 0x13b   :  { %v1077_v17 = vadd.f32 %v1600_v18, %v2675_v13 }
 0x13c   :  { %1094 = vst [vmem:[%s2752_s11 + $0x78] sm:$0xff] %v1078_v24 }
 0x13d   :  { %1093 = vst [vmem:[%s2752_s11 + $0x70] sm:$0xff] %v1077_v17 }

// kernel: forward.24
= control target key start
LH: loop header
LB: loop body
LE: loop exit
PB: predicated region body
PF: predicated region fallthrough
CT: control target
= control target key end

     0   :  { %s100_s0 = inlined_call_operand.vmem [shape: f32[32,128], index: 0, kind: input, shape index: {}]   ;;  %s101_s1 = inlined_call_operand.vmem [shape: f32[1,128], index: 1, kind: input, shape index: {}]   ;;  %s102_s2 = inlined_call_operand.vmem [shape: f32[1,128], index: 2, kind: input, shape index: {}]   ;;  %s103_s3 = inlined_call_operand.vmem [shape: f32[32,128], index: 3, kind: output, shape index: {}]  }
   0x1   :  { %v14_v0 = vld [vmem:[%s100_s0] sm:$0xff]  ;;  %v15_v4 = vld [vmem:[%s100_s0 + $0x8] sm:$0xff]  ;;  %v16_v5 = vld [vmem:[%s100_s0 + $0x10] sm:$0xff] }
   0x2   :  { %v48_v1 = vld [vmem:[%s101_s1] ss:$0 sm:$0xff]  ;;  %v17_v6 = vld [vmem:[%s100_s0 + $0x18] sm:$0xff] }
   0x3   :  { %v49_v2 = vld [vmem:[%s102_s2] ss:$0 sm:$0xff]  ;;  %v25_v3 = vmul.f32 %v48_v1, %v14_v0  ;;  %v26_v7 = vmul.f32 %v48_v1, %v15_v4  ;;  %v27_v8 = vmul.f32 %v48_v1, %v16_v5  ;;  %v28_v9 = vmul.f32 %v48_v1, %v17_v6 }
   0x5   :  { %v36_v10 = vadd.f32 %v49_v2, %v25_v3  ;;  %v37_v11 = vadd.f32 %v49_v2, %v26_v7  ;;  %v38_v12 = vadd.f32 %v49_v2, %v27_v8  ;;  %v39_v13 = vadd.f32 %v49_v2, %v28_v9 }
   0x7   :  { %40 = vst [vmem:[%s103_s3] sm:$0xff] %v36_v10  ;;  %41 = vst [vmem:[%s103_s3 + $0x8] sm:$0xff] %v37_v11 }
   0x8   :  { %42 = vst [vmem:[%s103_s3 + $0x10] sm:$0xff] %v38_v12  ;;  %43 = vst [vmem:[%s103_s3 + $0x18] sm:$0xff] %v39_v13 }

// kernel: forward.23
= control target key start
LH: loop header
LB: loop body
LE: loop exit
PB: predicated region body
PF: predicated region fallthrough
CT: control target
= control target key end

     0   :  { %s452_s1 = inlined_call_operand.vmem [shape: bf16[256,128], index: 1, kind: input, shape index: {}]   ;;  %s453_s0 = inlined_call_operand.vmem [shape: bf16[32,256], index: 0, kind: input, shape index: {}]   ;;  %s454_s2 = inlined_call_operand.vmem [shape: f32[32,128], index: 2, kind: output, shape index: {0}]   ;;  %s455_s3 = inlined_call_operand.vmem [shape: f32[1,8,128], index: 3, kind: output, shape index: {1}]   ;;  %s456_s4 = inlined_call_operand.vmem [shape: f32[1,8,128], index: 4, kind: output, shape index: {2}]  }
   0x1   :  { %v333_v0 = vld [vmem:[%s452_s1 + $0x40] sm:$0xff]   ;;  %v335_v2 = vld [vmem:[%s452_s1 + $0x48] sm:$0xff]   ;;  %v337_v4 = vld [vmem:[%s452_s1 + $0x50] sm:$0xff]  }
   0x2   :  { %v334_v1 = vld [vmem:[%s452_s1] sm:$0xff]   ;;  %289 = vmatprep.subr.bf16.mxu0 %v333_v0  ;;  %317 = vmatprep.subr.bf16.mxu1 %v333_v0  ;;  %v336_v3 = vld [vmem:[%s452_s1 + $0x8] sm:$0xff]   ;;  %v338_v5 = vld [vmem:[%s452_s1 + $0x10] sm:$0xff]  }
   0x3   :  { %290 = vmatpush3.bf16.msra.mxu0 %v334_v1  ;;  %325 = vmatpush3.bf16.msra.mxu1 %v334_v1  ;;  %v339_v6 = vld [vmem:[%s452_s1 + $0x58] sm:$0xff]   ;;  %v341_v8 = vld [vmem:[%s452_s1 + $0x60] sm:$0xff]   ;;  %v343_v10 = vld [vmem:[%s452_s1 + $0x68] sm:$0xff]  }
   0x4   :  { %291 = vmatprep.subr.bf16.mxu0 %v335_v2  ;;  %318 = vmatprep.subr.bf16.mxu1 %v335_v2  ;;  %v340_v7 = vld [vmem:[%s452_s1 + $0x18] sm:$0xff]   ;;  %v342_v9 = vld [vmem:[%s452_s1 + $0x20] sm:$0xff]   ;;  %v17_v12 = vld [vmem:[%s453_s0 + $0x8] sm:$0xff] }
   0x5   :  { %v16_v11 = vld [vmem:[%s453_s0] sm:$0xff]  ;;  %v18_v13 = vld [vmem:[%s453_s0 + $0x10] sm:$0xff]  ;;  %vm21_vm1 = vcmp.ge.bf16.partialorder %v17_v12, 0  ;;  %v25_v15 = vmul.bf16 1045249613, %v17_v12  ;;  %v19_v16 = vld [vmem:[%s453_s0 + $0x18] sm:$0xff] }
   0x6   :  { %vm20_vm0 = vcmp.ge.bf16.partialorder %v16_v11, 0  ;;  %v24_v14 = vmul.bf16 1045249613, %v16_v11  ;;  %vm22_vm2 = vcmp.ge.bf16.partialorder %v18_v13, 0  ;;  %v26_v17 = vmul.bf16 1045249613, %v18_v13 }
   0x7   :  { %292 = vmatpush3.bf16.msra.mxu0 %v336_v3  ;;  %326 = vmatpush3.bf16.msra.mxu1 %v336_v3  ;;  %v344_v18 = vld [vmem:[%s452_s1 + $0x28] sm:$0xff]   ;;  %v29_v20 = vsel %vm21_vm1, %v17_v12, %v25_v15  ;;  %vm23_vm3 = vcmp.ge.bf16.partialorder %v19_v16, 0  ;;  %v27_v21 = vmul.bf16 1045249613, %v19_v16  ;;  %v345_v22 = vld [vmem:[%s452_s1 + $0x70] sm:$0xff]   ;;  %v347_v28 = vld [vmem:[%s452_s1 + $0x78] sm:$0xff]  }
   0x8   :  { %293 = vmatprep.subr.bf16.mxu0 %v337_v4  ;;  %319 = vmatprep.subr.bf16.mxu1 %v337_v4  ;;  %v28_v19 = vsel %vm20_vm0, %v16_v11, %v24_v14  ;;  %v30_v24 = vsel %vm22_vm2, %v18_v13, %v26_v17  ;;  %v346_v27 = vld [vmem:[%s452_s1 + $0x30] sm:$0xff]   ;;  %v348_v29 = vld [vmem:[%s452_s1 + $0x38] sm:$0xff]  }
   0x9   :  { %v270_v23 = vcombine.high %v28_v19, %v29_v20  ;;  %v31_v25 = vsel %vm23_vm3, %v19_v16, %v27_v21  ;;  %v269_v30 = vcombine.low %v28_v19, %v29_v20 }
   0xa   :  { %v272_v26 = vcombine.high %v30_v24, %v31_v25  ;;  %v271_v31 = vcombine.low %v30_v24, %v31_v25 }
   0xb   :  { %294 = vmatpush3.bf16.msra.mxu0 %v338_v5  ;;  %327 = vmatpush3.bf16.msra.mxu1 %v338_v5 }
   0xc   :  { %295 = vmatprep.subr.bf16.mxu0 %v339_v6  ;;  %320 = vmatprep.subr.bf16.mxu1 %v339_v6 }
   0xd   :  { %212 = vmatprep.mubr.bf16.mxu0 %v270_v23  ;;  %220 = vmatprep.mubr.bf16.mxu1 %v272_v26 }
   0xf   :  { %296 = vmatpush3.bf16.msra.mxu0 %v340_v7  ;;  %328 = vmatpush3.bf16.msra.mxu1 %v340_v7 }
  0x10   :  { %297 = vmatprep.subr.bf16.mxu0 %v341_v8  ;;  %321 = vmatprep.subr.bf16.mxu1 %v341_v8 }
  0x13   :  { %298 = vmatpush3.bf16.msra.mxu0 %v342_v9  ;;  %329 = vmatpush3.bf16.msra.mxu1 %v342_v9 }
  0x14   :  { %299 = vmatprep.subr.bf16.mxu0 %v343_v10  ;;  %322 = vmatprep.subr.bf16.mxu1 %v343_v10 }
  0x17   :  { %300 = vmatpush3.bf16.msra.mxu0 %v344_v18  ;;  %330 = vmatpush3.bf16.msra.mxu1 %v344_v18 }
  0x18   :  { %301 = vmatprep.subr.bf16.mxu0 %v345_v22  ;;  %323 = vmatprep.subr.bf16.mxu1 %v345_v22 }
  0x1b   :  { %302 = vmatpush3.bf16.msra.mxu0 %v346_v27  ;;  %331 = vmatpush3.bf16.msra.mxu1 %v346_v27 }
  0x1c   :  { %303 = vmatprep.subr.bf16.mxu0 %v347_v28  ;;  %324 = vmatprep.subr.bf16.mxu1 %v347_v28 }
  0x1f   :  { %304 = vmatpush3.bf16.msra.mxu0 %v348_v29  ;;  %332 = vmatpush3.bf16.msra.mxu1 %v348_v29 }
  0x22   :  { %213 = vmatmul.mubr.bf16.vlgmr.msra.gmra.mrb[0].mxu0 %v269_v30  ;;  %221 = vmatmul.mubr.bf16.vlgmr.msra.gmra.mrb[0].mxu1 %v271_v31 }
  0xf5   :  { %v305_v32 = vpop.f32.mrb[0].mxu0  ;;  %v311_v33 = vpop.f32.mrb[0].mxu1 }
  0xf6   :  { %v306_v34 = vpop.f32.mrb[1].mxu0  ;;  %v312_v35 = vpop.f32.mrb[1].mxu1 }
  0xf7   :  { %v307_v36 = vadd.f32 %v306_v34, %v305_v32  ;;  %v308_v37 = vpop.f32.mrb[2].mxu0  ;;  %v313_v38 = vadd.f32 %v312_v35, %v311_v33  ;;  %v314_v39 = vpop.f32.mrb[2].mxu1 }
  0xf8   :  { %v309_v40 = vpop.f32.mrb[3].mxu0  ;;  %v315_v41 = vpop.f32.mrb[3].mxu1 }
  0xf9   :  { %229 = vst [vmem:[%s454_s2] sm:$0xff] %v307_v36  ;;  %231 = vst [vmem:[%s454_s2 + $0x10] sm:$0xff] %v313_v38  ;;  %v310_v42 = vadd.f32 %v309_v40, %v308_v37  ;;  %v316_v43 = vadd.f32 %v315_v41, %v314_v39  ;;  %v242_v44 = vmul.f32 %v307_v36, %v307_v36 }
  0xfa   :  { %v244_v45 = vmul.f32 %v313_v38, %v313_v38 }
  0xfb   :  { %230 = vst [vmem:[%s454_s2 + $0x8] sm:$0xff] %v310_v42  ;;  %v233_v46 = vadd.f32 %v310_v42, %v307_v36  ;;  %v243_v47 = vmul.f32 %v310_v42, %v310_v42  ;;  %232 = vst [vmem:[%s454_s2 + $0x18] sm:$0xff] %v316_v43  ;;  %v245_v51 = vmul.f32 %v316_v43, %v316_v43 }
  0xfd   :  { %v246_v48 = vadd.f32 %v243_v47, %v242_v44  ;;  %v234_v49 = vadd.f32 %v313_v38, %v233_v46 }
  0xff   :  { %v235_v50 = vadd.f32 %v316_v43, %v234_v49  ;;  %v247_v52 = vadd.f32 %v246_v48, %v244_v45 }
 0x101   :  { %v236_v53 = vrot.slane %v235_v50, 4  ;;  %v248_v54 = vadd.f32 %v247_v52, %v245_v51 }
 0x103   :  { %v237_v55 = vadd.f32 %v236_v53, %v235_v50  ;;  %v249_v56 = vrot.slane %v248_v54, 4 }
 0x105   :  { %v238_v57 = vrot.slane %v237_v55, 2  ;;  %v250_v58 = vadd.f32 %v249_v56, %v248_v54 }
 0x107   :  { %v239_v59 = vadd.f32 %v238_v57, %v237_v55  ;;  %v251_v60 = vrot.slane %v250_v58, 2 }
 0x109   :  { %v240_v61 = vrot.slane %v239_v59, 1  ;;  %v252_v62 = vadd.f32 %v251_v60, %v250_v58 }
 0x10b   :  { %v241_v63 = vadd.f32 %v240_v61, %v239_v59  ;;  %v253_v0 = vrot.slane %v252_v62, 1 }
 0x10d   :  { %v254_v1 = vadd.f32 %v253_v0, %v252_v62  ;;  %255 = vst [vmem:[%s455_s3] sm:$0xff] %v241_v63 }
 0x10f   :  { %256 = vst [vmem:[%s456_s4] sm:$0xff] %v254_v1 }

// kernel: forward.25
= control target key start
LH: loop header
LB: loop body
LE: loop exit
PB: predicated region body
PF: predicated region fallthrough
CT: control target
= control target key end

     0   :  { %s1371_s4 = inlined_call_operand.vmem [shape: f32[128,128], index: 4, kind: input, shape index: {}]   ;;  %s1372_s6 = inlined_call_operand.vmem [shape: f32[128,128], index: 6, kind: input, shape index: {}]   ;;  %s1373_s0 = inlined_call_operand.vmem [shape: f32[32,128], index: 0, kind: input, shape index: {}]   ;;  %s1374_s1 = inlined_call_operand.vmem [shape: f32[32,128], index: 1, kind: input, shape index: {}]   ;;  %s1375_s2 = inlined_call_operand.vmem [shape: f32[32,128], index: 2, kind: input, shape index: {}]   ;;  %s1376_s3 = inlined_call_operand.vmem [shape: f32[32,128], index: 3, kind: input, shape index: {}]   ;;  %s1377_s7 = inlined_call_operand.vmem [shape: f32[128,128], index: 7, kind: input, shape index: {}]   ;;  %s1378_s8 = inlined_call_operand.vmem [shape: f32[128,128], index: 8, kind: input, shape index: {}]   ;;  %s1379_s5 = inlined_call_operand.vmem [shape: f32[1,128], index: 5, kind: input, shape index: {}]   ;;  %s1380_s10 = inlined_call_operand.vmem [shape: f32[32,128], index: 10, kind: output, shape index: {0}]   ;;  %s1381_s9 = inlined_call_operand.vmem [shape: f32[1,128], index: 9, kind: input, shape index: {}]   ;;  %s1382_s11 = inlined_call_operand.vmem [shape: f32[32,128], index: 11, kind: output, shape index: {1}]  }
   0x1   :  { %v121_v0 = vld [vmem:[%s1371_s4] sm:$0xff]  ;;  %v122_v1 = vld [vmem:[%s1371_s4 + $0x8] sm:$0xff]  ;;  %v123_v5 = vld [vmem:[%s1371_s4 + $0x10] sm:$0xff] }
   0x2   :  { %v233_v2 = vld [vmem:[%s1372_s6] sm:$0xff]  ;;  %v797_v3 = vpack.c.bf16 %v122_v1, %v121_v0  ;;  %v234_v4 = vld [vmem:[%s1372_s6 + $0x8] sm:$0xff]  ;;  %v124_v6 = vld [vmem:[%s1371_s4 + $0x18] sm:$0xff] }
   0x3   :  { %v861_v7 = vpack.c.bf16 %v234_v4, %v233_v2  ;;  %v801_v8 = vpack.c.bf16 %v124_v6, %v123_v5  ;;  %v235_v9 = vld [vmem:[%s1372_s6 + $0x10] sm:$0xff]  ;;  %v236_v10 = vld [vmem:[%s1372_s6 + $0x18] sm:$0xff]  ;;  %v125_v11 = vld [vmem:[%s1371_s4 + $0x20] sm:$0xff] }
   0x4   :  { %798 = vmatprep.subr.bf16.mxu0 %v797_v3  ;;  %v865_v12 = vpack.c.bf16 %v236_v10, %v235_v9  ;;  %v126_v13 = vld [vmem:[%s1371_s4 + $0x28] sm:$0xff]  ;;  %v237_v14 = vld [vmem:[%s1372_s6 + $0x20] sm:$0xff]  ;;  %v127_v18 = vld [vmem:[%s1371_s4 + $0x30] sm:$0xff] }
   0x5   :  { %v238_v15 = vld [vmem:[%s1372_s6 + $0x28] sm:$0xff]  ;;  %862 = vmatprep.subr.bf16.mxu1 %v861_v7  ;;  %800 = vmatpush3.bf16.msra.mxu0 %v797_v3  ;;  %v805_v16 = vpack.c.bf16 %v126_v13, %v125_v11  ;;  %v128_v19 = vld [vmem:[%s1371_s4 + $0x38] sm:$0xff]  ;;  %v239_v20 = vld [vmem:[%s1372_s6 + $0x30] sm:$0xff] }
   0x6   :  { %864 = vmatpush3.bf16.msra.mxu1 %v861_v7  ;;  %802 = vmatprep.subr.bf16.mxu0 %v801_v8  ;;  %v869_v17 = vpack.c.bf16 %v238_v15, %v237_v14  ;;  %v240_v21 = vld [vmem:[%s1372_s6 + $0x38] sm:$0xff]  ;;  %v809_v22 = vpack.c.bf16 %v128_v19, %v127_v18  ;;  %v129_v23 = vld [vmem:[%s1371_s4 + $0x40] sm:$0xff]  ;;  %v130_v24 = vld [vmem:[%s1371_s4 + $0x48] sm:$0xff] }
   0x7   :  { %866 = vmatprep.subr.bf16.mxu1 %v865_v12  ;;  %v873_v25 = vpack.c.bf16 %v240_v21, %v239_v20  ;;  %v241_v26 = vld [vmem:[%s1372_s6 + $0x40] sm:$0xff]  ;;  %v242_v27 = vld [vmem:[%s1372_s6 + $0x48] sm:$0xff]  ;;  %v813_v35 = vpack.c.bf16 %v130_v24, %v129_v23  ;;  %v131_v38 = vld [vmem:[%s1371_s4 + $0x50] sm:$0xff] }
   0x8   :  { %v37_v28 = vld [vmem:[%s1373_s0] sm:$0xff]  ;;  %v38_v36 = vld [vmem:[%s1373_s0 + $0x8] sm:$0xff]  ;;  %v877_v37 = vpack.c.bf16 %v242_v27, %v241_v26  ;;  %v132_v39 = vld [vmem:[%s1371_s4 + $0x58] sm:$0xff] }
   0x9   :  { %804 = vmatpush3.bf16.msra.mxu0 %v801_v8  ;;  %v1056_v29 = vmul.f32 0.5, %v37_v28  ;;  %v45_v30 = vld [vmem:[%s1374_s1] sm:$0xff]  ;;  %v243_v43 = vld [vmem:[%s1372_s6 + $0x50] sm:$0xff]  ;;  %v244_v44 = vld [vmem:[%s1372_s6 + $0x58] sm:$0xff]  ;;  %v1095_v47 = vmul.f32 0.5, %v38_v36  ;;  %v817_v49 = vpack.c.bf16 %v132_v39, %v131_v38 }
   0xa   :  { %868 = vmatpush3.bf16.msra.mxu1 %v865_v12  ;;  %806 = vmatprep.subr.bf16.mxu0 %v805_v16  ;;  %v53_v31 = vld [vmem:[%s1375_s2] sm:$0xff]  ;;  %v1067_v33 = vmul.f32 0.5, %v45_v30  ;;  %v46_v45 = vld [vmem:[%s1374_s1 + $0x8] sm:$0xff]  ;;  %v881_v50 = vpack.c.bf16 %v244_v44, %v243_v43  ;;  %v135_v62 = vld [vmem:[%s1371_s4 + $0x70] sm:$0xff] }
   0xb   :  { %870 = vmatprep.subr.bf16.mxu1 %v869_v17  ;;  %v61_v32 = vld [vmem:[%s1376_s3] sm:$0xff]  ;;  %v1069_v34 = vmul.f32 0.5, %v53_v31  ;;  %v81_v42 = vsub.f32 0.0, %v1056_v29  ;;  %v134_v52 = vld [vmem:[%s1371_s4 + $0x68] sm:$0xff]  ;;  %v1107_v54 = vmul.f32 0.5, %v46_v45  ;;  %v82_v60 = vsub.f32 0.0, %v1095_v47 }
   0xc   :  { %v1080_v40 = vmul.f32 0.5, %v61_v32  ;;  %v69_v41 = vadd.f32 %v1067_v33, %v1056_v29  ;;  %v133_v51 = vld [vmem:[%s1371_s4 + $0x60] sm:$0xff]  ;;  %v246_v57 = vld [vmem:[%s1372_s6 + $0x68] sm:$0xff]  ;;  %v136_v63 = vld [vmem:[%s1371_s4 + $0x78] sm:$0xff] }
   0xd   :  { %808 = vmatpush3.bf16.msra.mxu0 %v805_v16  ;;  %v85_v48 = vsub.f32 %v81_v42, %v1067_v33  ;;  %v245_v56 = vld [vmem:[%s1372_s6 + $0x60] sm:$0xff]  ;;  %v54_v58 = vld [vmem:[%s1375_s2 + $0x8] sm:$0xff]  ;;  %v821_v61 = vpack.c.bf16 %v134_v52, %v133_v51  ;;  %v247_v1 = vld [vmem:[%s1372_s6 + $0x70] sm:$0xff]  ;;  %v70_v4 = vadd.f32 %v1107_v54, %v1095_v47  ;;  %v825_v10 = vpack.c.bf16 %v136_v63, %v135_v62 }
   0xe   :  { %872 = vmatpush3.bf16.msra.mxu1 %v869_v17  ;;  %810 = vmatprep.subr.bf16.mxu0 %v809_v22  ;;  %v73_v46 = vadd.f32 %v69_v41, %v1069_v34  ;;  %v885_v0 = vpack.c.bf16 %v246_v57, %v245_v56  ;;  %v248_v2 = vld [vmem:[%s1372_s6 + $0x78] sm:$0xff]  ;;  %v1133_v3 = vmul.f32 0.5, %v54_v58  ;;  %v39_v5 = vld [vmem:[%s1373_s0 + $0x10] sm:$0xff]  ;;  %v62_v6 = vld [vmem:[%s1376_s3 + $0x8] sm:$0xff]  ;;  %v86_v11 = vsub.f32 %v82_v60, %v1107_v54 }
   0xf   :  { %874 = vmatprep.subr.bf16.mxu1 %v873_v25  ;;  %v89_v55 = vadd.f32 %v85_v48, %v1069_v34  ;;  %v1143_v7 = vmul.f32 0.5, %v39_v5  ;;  %v47_v8 = vld [vmem:[%s1374_s1 + $0x10] sm:$0xff]  ;;  %v40_v13 = vld [vmem:[%s1373_s0 + $0x18] sm:$0xff]  ;;  %v889_v16 = vpack.c.bf16 %v248_v2, %v247_v1  ;;  %v249_v17 = vld [vmem:[%s1377_s7] sm:$0xff]  ;;  %v1173_v21 = vmul.f32 0.5, %v62_v6 }
  0x10   :  { %v77_v53 = vadd.f32 %v73_v46, %v1080_v40  ;;  %v55_v9 = vld [vmem:[%s1375_s2 + $0x10] sm:$0xff]  ;;  %v1154_v12 = vmul.f32 0.5, %v47_v8  ;;  %v48_v14 = vld [vmem:[%s1374_s1 + $0x18] sm:$0xff]  ;;  %v1168_v18 = vmul.f32 0.5, %v40_v13  ;;  %v250_v23 = vld [vmem:[%s1377_s7 + $0x8] sm:$0xff]  ;;  %v90_v36 = vadd.f32 %v86_v11, %v1133_v3 }
  0x11   :  { %812 = vmatpush3.bf16.msra.mxu0 %v809_v22  ;;  %v93_v59 = vadd.f32 %v89_v55, %v1080_v40  ;;  %v56_v15 = vld [vmem:[%s1375_s2 + $0x18] sm:$0xff]  ;;  %v1170_v19 = vmul.f32 0.5, %v48_v14  ;;  %v83_v20 = vsub.f32 0.0, %v1143_v7  ;;  %v74_v22 = vadd.f32 %v70_v4, %v1133_v3  ;;  %v435_v24 = vld [vmem:[%s1378_s8] sm:$0xff]  ;;  %v63_v28 = vld [vmem:[%s1376_s3 + $0x10] sm:$0xff] }
  0x12   :  { %876 = vmatpush3.bf16.msra.mxu1 %v873_v25  ;;  %814 = vmatprep.subr.bf16.mxu0 %v813_v35  ;;  %v436_v25 = vld [vmem:[%s1378_s8 + $0x8] sm:$0xff]  ;;  %v1185_v26 = vmul.f32 0.5, %v55_v9  ;;  %v71_v27 = vadd.f32 %v1154_v12, %v1143_v7  ;;  %v1192_v30 = vmul.f32 0.5, %v56_v15  ;;  %v829_v38 = vpack.c.bf16 %v250_v23, %v249_v17  ;;  %v251_v43 = vld [vmem:[%s1377_s7 + $0x10] sm:$0xff]  ;;  %v252_v44 = vld [vmem:[%s1377_s7 + $0x18] sm:$0xff] }
  0x13   :  { %878 = vmatprep.subr.bf16.mxu1 %v877_v37  ;;  %677 = vmatprep.mubr.f32.mxu0 %v77_v53  ;;  %v72_v31 = vadd.f32 %v1170_v19, %v1168_v18  ;;  %v87_v32 = vsub.f32 %v83_v20, %v1154_v12  ;;  %v893_v39 = vpack.c.bf16 %v436_v25, %v435_v24  ;;  %v1213_v45 = vmul.f32 0.5, %v63_v28  ;;  %v437_v51 = vld [vmem:[%s1378_s8 + $0x10] sm:$0xff]  ;;  %v438_v52 = vld [vmem:[%s1378_s8 + $0x18] sm:$0xff]  ;;  %v253_v58 = vld [vmem:[%s1377_s7 + $0x20] sm:$0xff] }
  0x14   :  { %753 = vmatprep.mubr.f32.mxu1 %v93_v59  ;;  %v75_v46 = vadd.f32 %v71_v27, %v1185_v26  ;;  %v97_v48 = vadd.f32 %v81_v42, %v1067_v33  ;;  %v94_v42 = vadd.f32 %v90_v36, %v1173_v21  ;;  %v897_v57 = vpack.c.bf16 %v438_v52, %v437_v51  ;;  %v254_v59 = vld [vmem:[%s1377_s7 + $0x28] sm:$0xff]  ;;  %v439_v63 = vld [vmem:[%s1378_s8 + $0x20] sm:$0xff]  ;;  %v255_v9 = vld [vmem:[%s1377_s7 + $0x30] sm:$0xff] }
  0x15   :  { %816 = vmatpush3.bf16.msra.mxu0 %v813_v35  ;;  %v84_v35 = vsub.f32 0.0, %v1168_v18  ;;  %v76_v55 = vadd.f32 %v72_v31, %v1192_v30  ;;  %v91_v56 = vadd.f32 %v87_v32, %v1185_v26  ;;  %v837_v6 = vpack.c.bf16 %v254_v59, %v253_v58  ;;  %v441_v11 = vld [vmem:[%s1378_s8 + $0x30] sm:$0xff]  ;;  %v442_v13 = vld [vmem:[%s1378_s8 + $0x38] sm:$0xff]  ;;  %v257_v17 = vld [vmem:[%s1377_s7 + $0x40] sm:$0xff] }
  0x16   :  { %880 = vmatpush3.bf16.msra.mxu1 %v877_v37  ;;  %818 = vmatprep.subr.bf16.mxu0 %v817_v49  ;;  %v64_v37 = vld [vmem:[%s1376_s3 + $0x18] sm:$0xff]  ;;  %v101_v62 = vsub.f32 %v97_v48, %v1069_v34  ;;  %v444_v23 = vld [vmem:[%s1378_s8 + $0x48] sm:$0xff]  ;;  %v259_v27 = vld [vmem:[%s1377_s7 + $0x50] sm:$0xff] }
  0x17   :  { %882 = vmatprep.subr.bf16.mxu1 %v881_v50  ;;  %v88_v41 = vsub.f32 %v84_v35, %v1170_v19  ;;  %v1228_v53 = vmul.f32 0.5, %v64_v37  ;;  %v95_v2 = vadd.f32 %v91_v56, %v1213_v45  ;;  %v260_v28 = vld [vmem:[%s1377_s7 + $0x58] sm:$0xff]  ;;  %v445_v31 = vld [vmem:[%s1378_s8 + $0x50] sm:$0xff]  ;;  %v99_v56 = vadd.f32 %v83_v20, %v1154_v12 }
  0x18   :  { %v446_v32 = vld [vmem:[%s1378_s8 + $0x58] sm:$0xff]  ;;  %v849_v36 = vpack.c.bf16 %v260_v28, %v259_v27  ;;  %v263_v48 = vld [vmem:[%s1377_s7 + $0x70] sm:$0xff]  ;;  %v112_v20 = vsub.f32 %v1168_v18, %v1170_v19 }
  0x19   :  { %820 = vmatpush3.bf16.msra.mxu0 %v817_v49  ;;  %v109_v49 = vsub.f32 %v1056_v29, %v1067_v33  ;;  %v92_v29 = vadd.f32 %v88_v41, %v1192_v30  ;;  %v833_v33 = vpack.c.bf16 %v252_v44, %v251_v43  ;;  %v80_v1 = vadd.f32 %v76_v55, %v1228_v53  ;;  %v447_v41 = vld [vmem:[%s1378_s8 + $0x60] sm:$0xff]  ;;  %v448_v43 = vld [vmem:[%s1378_s8 + $0x68] sm:$0xff]  ;;  %v449_v51 = vld [vmem:[%s1378_s8 + $0x70] sm:$0xff] }
  0x1a   :  { %884 = vmatpush3.bf16.msra.mxu1 %v881_v50  ;;  %822 = vmatprep.subr.bf16.mxu0 %v821_v61  ;;  %v78_v50 = vadd.f32 %v74_v22, %v1173_v21  ;;  %v258_v22 = vld [vmem:[%s1377_s7 + $0x48] sm:$0xff]  ;;  %v913_v37 = vpack.c.bf16 %v446_v32, %v445_v31  ;;  %v450_v52 = vld [vmem:[%s1378_s8 + $0x78] sm:$0xff]  ;;  %v110_v55 = vsub.f32 %v1095_v47, %v1107_v54 }
  0x1b   :  { %886 = vmatprep.subr.bf16.mxu1 %v885_v0  ;;  %v113_v4 = vsub.f32 %v109_v49, %v1069_v34  ;;  %v96_v5 = vadd.f32 %v92_v29, %v1228_v53  ;;  %v105_v34 = vadd.f32 %v101_v62, %v1080_v40  ;;  %v845_v24 = vpack.c.bf16 %v258_v22, %v257_v17  ;;  %v264_v49 = vld [vmem:[%s1377_s7 + $0x78] sm:$0xff] }
  0x1c   :  { %v921_v29 = vpack.c.bf16 %v450_v52, %v449_v51  ;;  %v114_v47 = vsub.f32 %v110_v55, %v1133_v3 }
  0x1d   :  { %824 = vmatpush3.bf16.msra.mxu0 %v821_v61  ;;  %v79_v61 = vadd.f32 %v75_v46, %v1213_v45  ;;  %v117_v14 = vadd.f32 %v113_v4, %v1080_v40  ;;  %v443_v40 = vld [vmem:[%s1378_s8 + $0x40] sm:$0xff]  ;;  %v917_v46 = vpack.c.bf16 %v448_v43, %v447_v41 }
  0x1e   :  { %888 = vmatpush3.bf16.msra.mxu1 %v885_v0  ;;  %826 = vmatprep.subr.bf16.mxu0 %v825_v10  ;;  %v440_v0 = vld [vmem:[%s1378_s8 + $0x28] sm:$0xff]  ;;  %v909_v25 = vpack.c.bf16 %v444_v23, %v443_v40 }
  0x1f   :  { %890 = vmatprep.subr.bf16.mxu1 %v889_v16  ;;  %v901_v8 = vpack.c.bf16 %v440_v0, %v439_v63 }
  0x21   :  { %828 = vmatpush3.bf16.msra.mxu0 %v825_v10  ;;  %v256_v10 = vld [vmem:[%s1377_s7 + $0x38] sm:$0xff] }
  0x22   :  { %892 = vmatpush3.bf16.msra.mxu1 %v889_v16  ;;  %830 = vmatprep.subr.bf16.mxu0 %v829_v38  ;;  %v841_v15 = vpack.c.bf16 %v256_v10, %v255_v9  ;;  %v905_v16 = vpack.c.bf16 %v442_v13, %v441_v11 }
  0x23   :  { %894 = vmatprep.subr.bf16.mxu1 %v893_v39 }
  0x24   :  { %678 = vmatmul.mubr.f32.vlgmr.msra.gmra.mrb[0].mxu0 %v78_v50  ;;  %v98_v50 = vadd.f32 %v82_v60, %v1107_v54  ;;  %v111_v60 = vsub.f32 %v1143_v7, %v1154_v12  ;;  %v103_v54 = vsub.f32 %v99_v56, %v1185_v26 }
  0x25   :  { %832 = vmatpush3.bf16.msra.mxu0 %v829_v38  ;;  %754 = vmatmul.mubr.f32.vlgmr.msra.gmra.mrb[0].mxu1 %v94_v42  ;;  %v261_v38 = vld [vmem:[%s1377_s7 + $0x60] sm:$0xff]  ;;  %v857_v42 = vpack.c.bf16 %v264_v49, %v263_v48 }
  0x26   :  { %896 = vmatpush3.bf16.msra.mxu1 %v893_v39  ;;  %834 = vmatprep.subr.bf16.mxu0 %v833_v33  ;;  %v262_v39 = vld [vmem:[%s1377_s7 + $0x68] sm:$0xff]  ;;  %v115_v7 = vsub.f32 %v111_v60, %v1185_v26  ;;  %v107_v59 = vadd.f32 %v103_v54, %v1213_v45 }
  0x27   :  { %898 = vmatprep.subr.bf16.mxu1 %v897_v57  ;;  %680 = vmatprep.mubr.f32.mxu0 %v79_v61  ;;  %v853_v44 = vpack.c.bf16 %v262_v39, %v261_v38 }
  0x28   :  { %681 = vmatmul.mubr.f32.gmra.mrb[2].mxu0 %v80_v1  ;;  %756 = vmatprep.mubr.f32.mxu1 %v95_v2  ;;  %v119_v61 = vadd.f32 %v115_v7, %v1213_v45 }
  0x29   :  { %836 = vmatpush3.bf16.msra.mxu0 %v833_v33  ;;  %757 = vmatmul.mubr.f32.gmra.mrb[2].mxu1 %v96_v5  ;;  %v102_v33 = vsub.f32 %v98_v50, %v1133_v3  ;;  %v116_v3 = vsub.f32 %v112_v20, %v1192_v30  ;;  %v564_v5 = vld [vmem:[%s1381_s9] ss:$0 sm:$0xff] }
  0x2a   :  { %900 = vmatpush3.bf16.msra.mxu1 %v897_v57  ;;  %838 = vmatprep.subr.bf16.mxu0 %v837_v6  ;;  %v100_v57 = vadd.f32 %v84_v35, %v1170_v19  ;;  %v118_v35 = vadd.f32 %v114_v47, %v1173_v21 }
  0x2b   :  { %902 = vmatprep.subr.bf16.mxu1 %v901_v8  ;;  %715 = vmatprep.mubr.f32.mxu0 %v105_v34  ;;  %v106_v12 = vadd.f32 %v102_v33, %v1173_v21  ;;  %v120_v19 = vadd.f32 %v116_v3, %v1228_v53  ;;  %v563_v21 = vld [vmem:[%s1379_s5] ss:$0 sm:$0xff] }
  0x2c   :  { %791 = vmatprep.mubr.f32.mxu1 %v117_v14  ;;  %v104_v58 = vsub.f32 %v100_v57, %v1192_v30 }
  0x2d   :  { %840 = vmatpush3.bf16.msra.mxu0 %v837_v6 }
  0x2e   :  { %904 = vmatpush3.bf16.msra.mxu1 %v901_v8  ;;  %842 = vmatprep.subr.bf16.mxu0 %v841_v15  ;;  %v108_v18 = vadd.f32 %v104_v58, %v1228_v53 }
  0x2f   :  { %906 = vmatprep.subr.bf16.mxu1 %v905_v16 }
  0x31   :  { %844 = vmatpush3.bf16.msra.mxu0 %v841_v15 }
  0x32   :  { %908 = vmatpush3.bf16.msra.mxu1 %v905_v16  ;;  %846 = vmatprep.subr.bf16.mxu0 %v845_v24 }
  0x33   :  { %910 = vmatprep.subr.bf16.mxu1 %v909_v25 }
  0x35   :  { %848 = vmatpush3.bf16.msra.mxu0 %v845_v24 }
  0x36   :  { %912 = vmatpush3.bf16.msra.mxu1 %v909_v25  ;;  %850 = vmatprep.subr.bf16.mxu0 %v849_v36 }
  0x37   :  { %914 = vmatprep.subr.bf16.mxu1 %v913_v37 }
  0x39   :  { %852 = vmatpush3.bf16.msra.mxu0 %v849_v36 }
  0x3a   :  { %916 = vmatpush3.bf16.msra.mxu1 %v913_v37  ;;  %854 = vmatprep.subr.bf16.mxu0 %v853_v44 }
  0x3b   :  { %918 = vmatprep.subr.bf16.mxu1 %v917_v46 }
  0x3d   :  { %856 = vmatpush3.bf16.msra.mxu0 %v853_v44 }
  0x3e   :  { %920 = vmatpush3.bf16.msra.mxu1 %v917_v46  ;;  %858 = vmatprep.subr.bf16.mxu0 %v857_v42 }
  0x3f   :  { %922 = vmatprep.subr.bf16.mxu1 %v921_v29 }
  0x41   :  { %860 = vmatpush3.bf16.msra.mxu0 %v857_v42 }
  0x42   :  { %924 = vmatpush3.bf16.msra.mxu1 %v921_v29 }
  0x44   :  { %716 = vmatmul.mubr.f32.vlgmr.msra.gmra.mrb[4].mxu0 %v106_v12 }
  0x45   :  { %792 = vmatmul.mubr.f32.vlgmr.msra.gmra.mrb[0].mxu1 %v118_v35  ;;  %718 = vmatprep.mubr.f32.mxu0 %v107_v59 }
  0x46   :  { %794 = vmatprep.mubr.f32.mxu1 %v119_v61 }
  0x48   :  { %719 = vmatmul.mubr.f32.gmra.mrb[6].mxu0 %v108_v18 }
  0x49   :  { %795 = vmatmul.mubr.f32.gmra.mrb[2].mxu1 %v120_v19 }
  0xf7   :  { %v679_v26 = vpop.f32.mrb[0].mxu0 }
  0xf8   :  { %v216_v62 = vadd.f32 %v679_v26, %v563_v21  ;;  %v210_v30 = vpop.f32.mrb[1].mxu0 }
  0xf9   :  { %v211_v63 = vadd.f32 %v563_v21, %v210_v30 }
  0xfa   :  { %230 = vst [vmem:[%s1380_s10 + $0x8] sm:$0xff] %v216_v62 }
  0xfb   :  { %229 = vst [vmem:[%s1380_s10] sm:$0xff] %v211_v63  ;;  %v682_v45 = vpop.f32.mrb[2].mxu0 }
  0xfc   :  { %v226_v53 = vadd.f32 %v682_v45, %v563_v21  ;;  %v220_v0 = vpop.f32.mrb[3].mxu0 }
  0xfd   :  { %v221_v1 = vadd.f32 %v563_v21, %v220_v0 }
  0xfe   :  { %232 = vst [vmem:[%s1380_s10 + $0x18] sm:$0xff] %v226_v53 }
  0xff   :  { %231 = vst [vmem:[%s1380_s10 + $0x10] sm:$0xff] %v221_v1 }
 0x117   :  { %v717_v2 = vpop.f32.mrb[4].mxu0 }
 0x118   :  { %v793_v4 = vpop.f32.mrb[0].mxu1  ;;  %v331_v6 = vpop.f32.mrb[5].mxu0 }
 0x119   :  { %v925_v8 = vadd.f32 %v793_v4, %v717_v2  ;;  %v517_v9 = vpop.f32.mrb[1].mxu1 }
 0x11a   :  { %v926_v10 = vadd.f32 %v517_v9, %v331_v6 }
 0x11b   :  { %v548_v34 = vadd.f32 %v925_v8, %v564_v5  ;;  %v720_v11 = vpop.f32.mrb[6].mxu0 }
 0x11c   :  { %v547_v13 = vadd.f32 %v926_v10, %v564_v5  ;;  %v796_v14 = vpop.f32.mrb[2].mxu1  ;;  %v341_v15 = vpop.f32.mrb[7].mxu0 }
 0x11d   :  { %552 = vst [vmem:[%s1382_s11 + $0x8] sm:$0xff] %v548_v34  ;;  %v927_v16 = vadd.f32 %v796_v14, %v720_v11  ;;  %v527_v17 = vpop.f32.mrb[3].mxu1 }
 0x11e   :  { %551 = vst [vmem:[%s1382_s11] sm:$0xff] %v547_v13  ;;  %v928_v22 = vadd.f32 %v527_v17, %v341_v15 }
 0x11f   :  { %v550_v40 = vadd.f32 %v927_v16, %v564_v5 }
 0x120   :  { %v549_v23 = vadd.f32 %v928_v22, %v564_v5 }
 0x121   :  { %554 = vst [vmem:[%s1382_s11 + $0x18] sm:$0xff] %v550_v40 }
 0x122   :  { %553 = vst [vmem:[%s1382_s11 + $0x10] sm:$0xff] %v549_v23 }

// kernel: forward.26
= control target key start
LH: loop header
LB: loop body
LE: loop exit
PB: predicated region body
PF: predicated region fallthrough
CT: control target
= control target key end

     0   :  { %s650_s1 = inlined_call_operand.vmem [shape: bf16[512,128], index: 1, kind: input, shape index: {}]   ;;  %s651_s0 = inlined_call_operand.vmem [shape: bf16[8,512], index: 0, kind: input, shape index: {}]   ;;  %s652_s2 = inlined_call_operand.vmem [shape: f32[8,128], index: 2, kind: output, shape index: {0}]   ;;  %s653_s3 = inlined_call_operand.vmem [shape: f32[1,8,128], index: 3, kind: output, shape index: {1}]   ;;  %s654_s4 = inlined_call_operand.vmem [shape: f32[1,8,128], index: 4, kind: output, shape index: {2}]  }
   0x1   :  { %v482_v0 = vld [vmem:[%s650_s1 + $0x40] sm:$0xff]   ;;  %v486_v4 = vld [vmem:[%s650_s1 + $0x48] sm:$0xff]   ;;  %v490_v8 = vld [vmem:[%s650_s1 + $0x50] sm:$0xff]  }
   0x2   :  { %v483_v1 = vld [vmem:[%s650_s1 + $0xc0] sm:$0xff]   ;;  %438 = vmatprep.subr.bf16.mxu0 %v482_v0  ;;  %v487_v5 = vld [vmem:[%s650_s1 + $0xc8] sm:$0xff]   ;;  %v491_v9 = vld [vmem:[%s650_s1 + $0xd0] sm:$0xff]  }
   0x3   :  { %v484_v2 = vld [vmem:[%s650_s1] sm:$0xff]   ;;  %460 = vmatprep.subr.bf16.mxu1 %v483_v1  ;;  %v488_v6 = vld [vmem:[%s650_s1 + $0x8] sm:$0xff]   ;;  %v492_v10 = vld [vmem:[%s650_s1 + $0x10] sm:$0xff]  }
   0x4   :  { %v485_v3 = vld [vmem:[%s650_s1 + $0x80] sm:$0xff]   ;;  %439 = vmatpush3.bf16.msra.mxu0 %v484_v2  ;;  %v489_v7 = vld [vmem:[%s650_s1 + $0x88] sm:$0xff]   ;;  %v493_v11 = vld [vmem:[%s650_s1 + $0x90] sm:$0xff]  }
   0x5   :  { %461 = vmatpush3.bf16.msra.mxu1 %v485_v3  ;;  %440 = vmatprep.subr.bf16.mxu0 %v486_v4  ;;  %v494_v12 = vld [vmem:[%s650_s1 + $0x58] sm:$0xff]   ;;  %v498_v16 = vld [vmem:[%s650_s1 + $0x60] sm:$0xff]   ;;  %v502_v20 = vld [vmem:[%s650_s1 + $0x68] sm:$0xff]  }
   0x6   :  { %462 = vmatprep.subr.bf16.mxu1 %v487_v5  ;;  %v495_v13 = vld [vmem:[%s650_s1 + $0xd8] sm:$0xff]   ;;  %v499_v17 = vld [vmem:[%s650_s1 + $0xe0] sm:$0xff]   ;;  %v503_v21 = vld [vmem:[%s650_s1 + $0xe8] sm:$0xff]  }
   0x7   :  { %v496_v14 = vld [vmem:[%s650_s1 + $0x18] sm:$0xff]   ;;  %v500_v18 = vld [vmem:[%s650_s1 + $0x20] sm:$0xff]   ;;  %v504_v22 = vld [vmem:[%s650_s1 + $0x28] sm:$0xff]  }
   0x8   :  { %441 = vmatpush3.bf16.msra.mxu0 %v488_v6  ;;  %v497_v15 = vld [vmem:[%s650_s1 + $0x98] sm:$0xff]   ;;  %v501_v19 = vld [vmem:[%s650_s1 + $0xa0] sm:$0xff]   ;;  %v505_v23 = vld [vmem:[%s650_s1 + $0xa8] sm:$0xff]  }
   0x9   :  { %463 = vmatpush3.bf16.msra.mxu1 %v489_v7  ;;  %442 = vmatprep.subr.bf16.mxu0 %v490_v8  ;;  %v506_v24 = vld [vmem:[%s650_s1 + $0x70] sm:$0xff]   ;;  %v510_v28 = vld [vmem:[%s650_s1 + $0x78] sm:$0xff]   ;;  %v16_v32 = vld [vmem:[%s651_s0] sm:$0xff] }
   0xa   :  { %464 = vmatprep.subr.bf16.mxu1 %v491_v9  ;;  %v507_v25 = vld [vmem:[%s650_s1 + $0xf0] sm:$0xff]   ;;  %v511_v29 = vld [vmem:[%s650_s1 + $0xf8] sm:$0xff]   ;;  %v17_v33 = vld [vmem:[%s651_s0 + $0x8] sm:$0xff]  ;;  %vm18_vm0 = vcmp.ge.bf16.partialorder %v16_v32, 0  ;;  %v20_v34 = vmul.bf16 1045249613, %v16_v32 }
   0xb   :  { %v508_v26 = vld [vmem:[%s650_s1 + $0x30] sm:$0xff]   ;;  %v512_v30 = vld [vmem:[%s650_s1 + $0x38] sm:$0xff]   ;;  %vm19_vm1 = vcmp.ge.bf16.partialorder %v17_v33, 0  ;;  %v21_v35 = vmul.bf16 1045249613, %v17_v33 }
   0xc   :  { %443 = vmatpush3.bf16.msra.mxu0 %v492_v10  ;;  %v509_v27 = vld [vmem:[%s650_s1 + $0xb0] sm:$0xff]   ;;  %v513_v31 = vld [vmem:[%s650_s1 + $0xb8] sm:$0xff]   ;;  %v22_v36 = vsel %vm18_vm0, %v16_v32, %v20_v34 }
   0xd   :  { %465 = vmatpush3.bf16.msra.mxu1 %v493_v11  ;;  %444 = vmatprep.subr.bf16.mxu0 %v494_v12  ;;  %v23_v37 = vsel %vm19_vm1, %v17_v33, %v21_v35  ;;  %v402_v38 = vcombine.low %v22_v36, %v22_v36  ;;  %v403_v39 = vcombine.high %v22_v36, %v22_v36 }
   0xe   :  { %466 = vmatprep.subr.bf16.mxu1 %v495_v13  ;;  %v404_v40 = vcombine.low %v23_v37, %v23_v37  ;;  %v405_v41 = vcombine.high %v23_v37, %v23_v37 }
   0xf   :  { %326 = vmatprep.mubr.bf16.mxu0 %v403_v39 }
  0x10   :  { %445 = vmatpush3.bf16.msra.mxu0 %v496_v14  ;;  %366 = vmatprep.mubr.bf16.mxu1 %v405_v41 }
  0x11   :  { %467 = vmatpush3.bf16.msra.mxu1 %v497_v15  ;;  %446 = vmatprep.subr.bf16.mxu0 %v498_v16 }
  0x12   :  { %468 = vmatprep.subr.bf16.mxu1 %v499_v17 }
  0x14   :  { %447 = vmatpush3.bf16.msra.mxu0 %v500_v18 }
  0x15   :  { %469 = vmatpush3.bf16.msra.mxu1 %v501_v19  ;;  %448 = vmatprep.subr.bf16.mxu0 %v502_v20 }
  0x16   :  { %470 = vmatprep.subr.bf16.mxu1 %v503_v21 }
  0x18   :  { %449 = vmatpush3.bf16.msra.mxu0 %v504_v22 }
  0x19   :  { %471 = vmatpush3.bf16.msra.mxu1 %v505_v23  ;;  %450 = vmatprep.subr.bf16.mxu0 %v506_v24 }
  0x1a   :  { %472 = vmatprep.subr.bf16.mxu1 %v507_v25 }
  0x1c   :  { %451 = vmatpush3.bf16.msra.mxu0 %v508_v26 }
  0x1d   :  { %473 = vmatpush3.bf16.msra.mxu1 %v509_v27  ;;  %452 = vmatprep.subr.bf16.mxu0 %v510_v28 }
  0x1e   :  { %474 = vmatprep.subr.bf16.mxu1 %v511_v29 }
  0x20   :  { %453 = vmatpush3.bf16.msra.mxu0 %v512_v30 }
  0x21   :  { %475 = vmatpush3.bf16.msra.mxu1 %v513_v31 }
  0x23   :  { %327 = vmatmul.mubr.bf16.vlgmr.msra.gmra.mrb[0].mxu0 %v402_v38 }
  0x24   :  { %367 = vmatmul.mubr.bf16.vlgmr.msra.gmra.mrb[0].mxu1 %v404_v40 }
  0xf6   :  { %v454_v42 = vpop.f32.mrb[0].mxu0 }
  0xf7   :  { %v476_v43 = vpop.f32.mrb[0].mxu1  ;;  %v455_v44 = vpop.f32.mrb[1].mxu0 }
  0xf8   :  { %v477_v45 = vpop.f32.mrb[1].mxu1  ;;  %v456_v46 = vadd.f32 %v455_v44, %v454_v42  ;;  %v457_v48 = vpop.f32.mrb[2].mxu0 }
  0xf9   :  { %v478_v47 = vadd.f32 %v477_v45, %v476_v43  ;;  %v479_v49 = vpop.f32.mrb[2].mxu1  ;;  %v458_v50 = vpop.f32.mrb[3].mxu0 }
  0xfa   :  { %v480_v51 = vpop.f32.mrb[3].mxu1 }
  0xfb   :  { %v369_v52 = vadd.f32 %v478_v47, %v456_v46 }
  0xfd   :  { %374 = vst [vmem:[%s652_s2] sm:$0xff] %v369_v52  ;;  %v375_v53 = vrot.slane %v369_v52, 4  ;;  %v381_v54 = vmul.f32 %v369_v52, %v369_v52 }
  0xff   :  { %v376_v55 = vadd.f32 %v375_v53, %v369_v52  ;;  %v382_v56 = vrot.slane %v381_v54, 4 }
 0x101   :  { %v377_v57 = vrot.slane %v376_v55, 2  ;;  %v383_v58 = vadd.f32 %v382_v56, %v381_v54 }
 0x103   :  { %v378_v59 = vadd.f32 %v377_v57, %v376_v55  ;;  %v384_v60 = vrot.slane %v383_v58, 2 }
 0x105   :  { %v379_v61 = vrot.slane %v378_v59, 1  ;;  %v385_v62 = vadd.f32 %v384_v60, %v383_v58 }
 0x107   :  { %v380_v63 = vadd.f32 %v379_v61, %v378_v59  ;;  %v386_v0 = vrot.slane %v385_v62, 1 }
 0x109   :  { %v387_v1 = vadd.f32 %v386_v0, %v385_v62  ;;  %388 = vst [vmem:[%s653_s3] sm:$0xff] %v380_v63 }
 0x10b   :  { %389 = vst [vmem:[%s654_s4] sm:$0xff] %v387_v1 }

// kernel: forward.27
= control target key start
LH: loop header
LB: loop body
LE: loop exit
PB: predicated region body
PF: predicated region fallthrough
CT: control target
= control target key end

     0   :  { %s70_s0 = inlined_call_operand.vmem [shape: f32[8,128], index: 0, kind: input, shape index: {}]   ;;  %s71_s1 = inlined_call_operand.vmem [shape: f32[1,128], index: 1, kind: input, shape index: {}]   ;;  %s72_s2 = inlined_call_operand.vmem [shape: f32[1,128], index: 2, kind: input, shape index: {}]   ;;  %s73_s3 = inlined_call_operand.vmem [shape: f32[8,128], index: 3, kind: output, shape index: {}]  }
   0x1   :  { %v14_v0 = vld [vmem:[%s70_s0] sm:$0xff] }
   0x2   :  { %v36_v1 = vld [vmem:[%s71_s1] ss:$0 sm:$0xff] }
   0x3   :  { %v37_v2 = vld [vmem:[%s72_s2] ss:$0 sm:$0xff]  ;;  %v22_v3 = vmul.f32 %v36_v1, %v14_v0 }
   0x5   :  { %v30_v4 = vadd.f32 %v37_v2, %v22_v3 }
   0x7   :  { %31 = vst [vmem:[%s73_s3] sm:$0xff] %v30_v4 }

// kernel: forward.28
= control target key start
LH: loop header
LB: loop body
LE: loop exit
PB: predicated region body
PF: predicated region fallthrough
CT: control target
= control target key end

     0   :  { %v773_v3 = vmov 0.0|0.0   ;;  %vm774_vm0 = vmmov 0   ;;  %v775_v11 = vmov 0.0   ;;  %s1129_s0 = inlined_call_operand.vmem [shape: f32[8,128], index: 0, kind: input, shape index: {}]   ;;  %s1130_s1 = inlined_call_operand.vmem [shape: f32[8,128], index: 1, kind: input, shape index: {}]   ;;  %s1131_s2 = inlined_call_operand.vmem [shape: f32[8,128], index: 2, kind: input, shape index: {}]   ;;  %s1132_s3 = inlined_call_operand.vmem [shape: f32[8,128], index: 3, kind: input, shape index: {}]   ;;  %s1133_s4 = inlined_call_operand.vmem [shape: f32[128,128], index: 4, kind: input, shape index: {}]   ;;  %s1134_s5 = inlined_call_operand.vmem [shape: f32[1,128], index: 5, kind: input, shape index: {}]   ;;  %s1135_s6 = inlined_call_operand.vmem [shape: f32[128,128], index: 6, kind: input, shape index: {}]   ;;  %s1136_s7 = inlined_call_operand.vmem [shape: f32[128,128], index: 7, kind: input, shape index: {}]   ;;  %s1137_s8 = inlined_call_operand.vmem [shape: f32[128,128], index: 8, kind: input, shape index: {}]   ;;  %s1138_s9 = inlined_call_operand.vmem [shape: f32[1,128], index: 9, kind: input, shape index: {}]   ;;  %s1139_s10 = inlined_call_operand.vmem [shape: f32[8,128], index: 10, kind: output, shape index: {0}]   ;;  %s1140_s11 = inlined_call_operand.hbm [shape: f32[8,128], index: 11, kind: output, shape index: {1}]  }
   0x1   :  { %v59_v0 = vld [vmem:[%s1133_s4] sm:$0xff]  ;;  %v60_v1 = vld [vmem:[%s1133_s4 + $0x8] sm:$0xff]  ;;  %649 = vmatprep.subr.bf16.mxu0 %v773_v3  ;;  %673 = vmatprep.subr.bf16.mxu1 %v773_v3  ;;  %v61_v6 = vld [vmem:[%s1133_s4 + $0x10] sm:$0xff] }
   0x2   :  { %v169_v2 = vld [vmem:[%s1136_s7] sm:$0xff]  ;;  %v650_v4 = vpack.c.bf16 %v60_v1, %v59_v0  ;;  %v170_v5 = vld [vmem:[%s1136_s7 + $0x8] sm:$0xff]  ;;  %v62_v7 = vld [vmem:[%s1133_s4 + $0x18] sm:$0xff]  ;;  %541 = vmatprep.mubr.msk.f32.mxu0 %vm774_vm0, %v775_v11  ;;  %576 = vmatprep.mubr.msk.f32.mxu1 %vm774_vm0, %v775_v11 }
   0x3   :  { %v674_v8 = vpack.c.bf16 %v170_v5, %v169_v2  ;;  %v171_v9 = vld [vmem:[%s1136_s7 + $0x10] sm:$0xff]  ;;  %v172_v10 = vld [vmem:[%s1136_s7 + $0x18] sm:$0xff]  ;;  %v653_v12 = vpack.c.bf16 %v62_v7, %v61_v6  ;;  %v63_v14 = vld [vmem:[%s1133_s4 + $0x20] sm:$0xff] }
   0x4   :  { %651 = vmatpush3.bf16.msra.mxu0 %v650_v4  ;;  %v677_v13 = vpack.c.bf16 %v172_v10, %v171_v9  ;;  %v64_v15 = vld [vmem:[%s1133_s4 + $0x28] sm:$0xff]  ;;  %v173_v16 = vld [vmem:[%s1136_s7 + $0x20] sm:$0xff]  ;;  %v65_v20 = vld [vmem:[%s1133_s4 + $0x30] sm:$0xff] }
   0x5   :  { %675 = vmatpush3.bf16.msra.mxu1 %v674_v8  ;;  %652 = vmatprep.subr.bf16.mxu0 %v773_v3  ;;  %v174_v17 = vld [vmem:[%s1136_s7 + $0x28] sm:$0xff]  ;;  %v656_v18 = vpack.c.bf16 %v64_v15, %v63_v14  ;;  %v66_v21 = vld [vmem:[%s1133_s4 + $0x38] sm:$0xff]  ;;  %v175_v22 = vld [vmem:[%s1136_s7 + $0x30] sm:$0xff] }
   0x6   :  { %676 = vmatprep.subr.bf16.mxu1 %v773_v3  ;;  %v680_v19 = vpack.c.bf16 %v174_v17, %v173_v16  ;;  %v176_v23 = vld [vmem:[%s1136_s7 + $0x38] sm:$0xff]  ;;  %v659_v24 = vpack.c.bf16 %v66_v21, %v65_v20  ;;  %v67_v26 = vld [vmem:[%s1133_s4 + $0x40] sm:$0xff]  ;;  %v68_v27 = vld [vmem:[%s1133_s4 + $0x48] sm:$0xff] }
   0x7   :  { %v683_v25 = vpack.c.bf16 %v176_v23, %v175_v22  ;;  %v38_v28 = vld [vmem:[%s1129_s0] sm:$0xff]  ;;  %v178_v30 = vld [vmem:[%s1136_s7 + $0x48] sm:$0xff]  ;;  %v662_v31 = vpack.c.bf16 %v68_v27, %v67_v26  ;;  %v69_v35 = vld [vmem:[%s1133_s4 + $0x50] sm:$0xff] }
   0x8   :  { %654 = vmatpush3.bf16.msra.mxu0 %v653_v12  ;;  %v177_v29 = vld [vmem:[%s1136_s7 + $0x40] sm:$0xff]  ;;  %v912_v32 = vmul.f32 0.5, %v38_v28  ;;  %v70_v36 = vld [vmem:[%s1133_s4 + $0x58] sm:$0xff]  ;;  %v179_v37 = vld [vmem:[%s1136_s7 + $0x50] sm:$0xff] }
   0x9   :  { %678 = vmatpush3.bf16.msra.mxu1 %v677_v13  ;;  %655 = vmatprep.subr.bf16.mxu0 %v773_v3  ;;  %v40_v33 = vld [vmem:[%s1130_s1] sm:$0xff]  ;;  %v686_v34 = vpack.c.bf16 %v178_v30, %v177_v29  ;;  %v180_v38 = vld [vmem:[%s1136_s7 + $0x58] sm:$0xff]  ;;  %v665_v40 = vpack.c.bf16 %v70_v36, %v69_v35  ;;  %v72_v45 = vld [vmem:[%s1133_s4 + $0x68] sm:$0xff] }
   0xa   :  { %679 = vmatprep.subr.bf16.mxu1 %v773_v3  ;;  %v931_v39 = vmul.f32 0.5, %v40_v33  ;;  %v42_v41 = vld [vmem:[%s1131_s2] sm:$0xff]  ;;  %v49_v42 = vsub.f32 0.0, %v912_v32  ;;  %v689_v43 = vpack.c.bf16 %v180_v38, %v179_v37  ;;  %v182_v47 = vld [vmem:[%s1136_s7 + $0x68] sm:$0xff] }
   0xb   :  { %v71_v44 = vld [vmem:[%s1133_s4 + $0x60] sm:$0xff]  ;;  %v951_v48 = vmul.f32 0.5, %v42_v41 }
   0xc   :  { %657 = vmatpush3.bf16.msra.mxu0 %v656_v18  ;;  %v181_v46 = vld [vmem:[%s1136_s7 + $0x60] sm:$0xff]  ;;  %v46_v49 = vadd.f32 %v931_v39, %v912_v32  ;;  %v668_v50 = vpack.c.bf16 %v72_v45, %v71_v44  ;;  %v53_v52 = vadd.f32 %v49_v42, %v931_v39 }
   0xd   :  { %681 = vmatpush3.bf16.msra.mxu1 %v680_v19  ;;  %658 = vmatprep.subr.bf16.mxu0 %v773_v3  ;;  %v44_v51 = vld [vmem:[%s1132_s3] sm:$0xff] }
   0xe   :  { %682 = vmatprep.subr.bf16.mxu1 %v773_v3 }
  0x10   :  { %660 = vmatpush3.bf16.msra.mxu0 %v659_v24 }
  0x11   :  { %684 = vmatpush3.bf16.msra.mxu1 %v683_v25  ;;  %661 = vmatprep.subr.bf16.mxu0 %v773_v3 }
  0x12   :  { %685 = vmatprep.subr.bf16.mxu1 %v773_v3 }
  0x14   :  { %663 = vmatpush3.bf16.msra.mxu0 %v662_v31 }
  0x15   :  { %687 = vmatpush3.bf16.msra.mxu1 %v686_v34  ;;  %664 = vmatprep.subr.bf16.mxu0 %v773_v3 }
  0x16   :  { %688 = vmatprep.subr.bf16.mxu1 %v773_v3 }
  0x18   :  { %666 = vmatpush3.bf16.msra.mxu0 %v665_v40 }
  0x19   :  { %17 = vsyncpa [#allocation3], 0  ;;  %690 = vmatpush3.bf16.msra.mxu1 %v689_v43  ;;  %667 = vmatprep.subr.bf16.mxu0 %v773_v3  ;;  %v692_v53 = vpack.c.bf16 %v182_v47, %v181_v46  ;;  %v73_v54 = vld [vmem:[%s1133_s4 + $0x70] sm:$0xff]  ;;  %v74_v55 = vld [vmem:[%s1133_s4 + $0x78] sm:$0xff]  ;;  %v975_v58 = vmul.f32 0.5, %v44_v51  ;;  %v47_v59 = vadd.f32 %v46_v49, %v951_v48  ;;  %v54_v61 = vsub.f32 %v53_v52, %v951_v48  ;;  %s776_s22 = smov [#allocation2]  }
  0x1a   :  { %691 = vmatprep.subr.bf16.mxu1 %v773_v3  ;;  %v183_v56 = vld [vmem:[%s1136_s7 + $0x70] sm:$0xff]  ;;  %v184_v57 = vld [vmem:[%s1136_s7 + $0x78] sm:$0xff]  ;;  %v671_v60 = vpack.c.bf16 %v74_v55, %v73_v54  ;;  %v153_v63 = vld [vmem:[%s1135_s6] sm:$0xff]  ;;  %v50_v45 = vsub.f32 %v49_v42, %v931_v39  ;;  %v56_v47 = vsub.f32 %v912_v32, %v931_v39 }
  0x1b   :  { %v695_v62 = vpack.c.bf16 %v184_v57, %v183_v56  ;;  %v154_v0 = vld [vmem:[%s1135_s6 + $0x8] sm:$0xff]  ;;  %v325_v1 = vld [vmem:[%s1137_s8] sm:$0xff]  ;;  %v48_v4 = vadd.f32 %v47_v59, %v975_v58  ;;  %v55_v6 = vadd.f32 %v54_v61, %v975_v58  ;;  %v155_v8 = vld [vmem:[%s1135_s6 + $0x10] sm:$0xff] }
  0x1c   :  { %669 = vmatpush3.bf16.msra.mxu0 %v668_v50  ;;  %v326_v2 = vld [vmem:[%s1137_s8 + $0x8] sm:$0xff]  ;;  %v698_v5 = vpack.c.bf16 %v154_v0, %v153_v63  ;;  %v156_v9 = vld [vmem:[%s1135_s6 + $0x18] sm:$0xff]  ;;  %v327_v10 = vld [vmem:[%s1137_s8 + $0x10] sm:$0xff]  ;;  %v51_v39 = vadd.f32 %v50_v45, %v951_v48 }
  0x1d   :  { %693 = vmatpush3.bf16.msra.mxu1 %v692_v53  ;;  %670 = vmatprep.subr.bf16.mxu0 %v773_v3  ;;  %v722_v7 = vpack.c.bf16 %v326_v2, %v325_v1  ;;  %v328_v12 = vld [vmem:[%s1137_s8 + $0x18] sm:$0xff]  ;;  %v701_v13 = vpack.c.bf16 %v156_v9, %v155_v8  ;;  %v157_v15 = vld [vmem:[%s1135_s6 + $0x20] sm:$0xff]  ;;  %v158_v16 = vld [vmem:[%s1135_s6 + $0x28] sm:$0xff]  ;;  %v57_v53 = vsub.f32 %v56_v47, %v951_v48 }
  0x1e   :  { %694 = vmatprep.subr.bf16.mxu1 %v773_v3  ;;  %v725_v14 = vpack.c.bf16 %v328_v12, %v327_v10  ;;  %v329_v17 = vld [vmem:[%s1137_s8 + $0x20] sm:$0xff]  ;;  %v330_v18 = vld [vmem:[%s1137_s8 + $0x28] sm:$0xff]  ;;  %v704_v19 = vpack.c.bf16 %v158_v16, %v157_v15  ;;  %v159_v21 = vld [vmem:[%s1135_s6 + $0x30] sm:$0xff]  ;;  %v52_v55 = vadd.f32 %v51_v39, %v975_v58 }
  0x1f   :  { %v728_v20 = vpack.c.bf16 %v330_v18, %v329_v17  ;;  %v160_v22 = vld [vmem:[%s1135_s6 + $0x38] sm:$0xff]  ;;  %v161_v26 = vld [vmem:[%s1135_s6 + $0x40] sm:$0xff]  ;;  %v162_v27 = vld [vmem:[%s1135_s6 + $0x48] sm:$0xff]  ;;  %v58_v56 = vadd.f32 %v57_v53, %v975_v58 }
  0x20   :  { %672 = vmatpush3.bf16.msra.mxu0 %v671_v60  ;;  %v332_v23 = vld [vmem:[%s1137_s8 + $0x38] sm:$0xff]  ;;  %v707_v24 = vpack.c.bf16 %v160_v22, %v159_v21  ;;  %v333_v28 = vld [vmem:[%s1137_s8 + $0x40] sm:$0xff]  ;;  %v334_v29 = vld [vmem:[%s1137_s8 + $0x48] sm:$0xff]  ;;  %v710_v30 = vpack.c.bf16 %v162_v27, %v161_v26 }
  0x21   :  { %696 = vmatpush3.bf16.msra.mxu1 %v695_v62  ;;  %697 = vmatprep.subr.bf16.mxu0 %v773_v3  ;;  %v734_v31 = vpack.c.bf16 %v334_v29, %v333_v28  ;;  %v163_v33 = vld [vmem:[%s1135_s6 + $0x50] sm:$0xff]  ;;  %v164_v34 = vld [vmem:[%s1135_s6 + $0x58] sm:$0xff]  ;;  %v165_v40 = vld [vmem:[%s1135_s6 + $0x60] sm:$0xff] }
  0x22   :  { %721 = vmatprep.subr.bf16.mxu1 %v773_v3  ;;  %v335_v35 = vld [vmem:[%s1137_s8 + $0x50] sm:$0xff]  ;;  %v336_v36 = vld [vmem:[%s1137_s8 + $0x58] sm:$0xff]  ;;  %v713_v37 = vpack.c.bf16 %v164_v34, %v163_v33  ;;  %v166_v41 = vld [vmem:[%s1135_s6 + $0x68] sm:$0xff] }
  0x23   :  { %542 = vmatmul.mubr.f32.vlgmr.msra.gmra.mrb[0].mxu0 %v48_v4  ;;  %v737_v38 = vpack.c.bf16 %v336_v36, %v335_v35  ;;  %v337_v43 = vld [vmem:[%s1137_s8 + $0x60] sm:$0xff]  ;;  %v338_v44 = vld [vmem:[%s1137_s8 + $0x68] sm:$0xff]  ;;  %v716_v46 = vpack.c.bf16 %v166_v41, %v165_v40  ;;  %v167_v50 = vld [vmem:[%s1135_s6 + $0x70] sm:$0xff] }
  0x24   :  { %699 = vmatpush3.bf16.msra.mxu0 %v698_v5  ;;  %577 = vmatmul.mubr.f32.vlgmr.msra.gmra.mrb[0].mxu1 %v55_v6  ;;  %v740_v49 = vpack.c.bf16 %v338_v44, %v337_v43  ;;  %v168_v51 = vld [vmem:[%s1135_s6 + $0x78] sm:$0xff]  ;;  %v339_v42 = vld [vmem:[%s1137_s8 + $0x70] sm:$0xff]  ;;  %v439_v57 = vld [vmem:[%s1134_s5] ss:$0 sm:$0xff]  ;;  %s429_s5 = sshll.u32 %s776_s22, 4  ;;  %s430_s5 = int_to_ptr.vmem [resolvable:$true] %s429_s5 }
  0x25   :  { %723 = vmatpush3.bf16.msra.mxu1 %v722_v7  ;;  %700 = vmatprep.subr.bf16.mxu0 %v773_v3  ;;  %v340_v32 = vld [vmem:[%s1137_s8 + $0x78] sm:$0xff]  ;;  %v719_v52 = vpack.c.bf16 %v168_v51, %v167_v50  ;;  %v440_v2 = vld [vmem:[%s1138_s9] ss:$0 sm:$0xff]  ;;  %s749_s0 = scalar_lea.vmem %s430_s5, 128  ;;  %p754_p1 = scmp.lt.s32.totalorder %s430_s5, %s430_s5 }
  0x26   :  { %724 = vmatprep.subr.bf16.mxu1 %v773_v3  ;;  %611 = vmatprep.mubr.msk.f32.mxu0 %vm774_vm0, %v775_v11  ;;  %v743_v54 = vpack.c.bf16 %v340_v32, %v339_v42  ;;  %p750_p0 = scmp.ne.s32.totalorder %s430_s5, %s749_s0  ;;  %p755_p2 = scmp.lt.s32.totalorder %s749_s0, %s749_s0 }
  0x27   :  { %646 = vmatprep.mubr.msk.f32.mxu1 %vm774_vm0, %v775_v11  ;;  %v331_v11 = vld [vmem:[%s1137_s8 + $0x30] sm:$0xff] }
  0x28   :  { %702 = vmatpush3.bf16.msra.mxu0 %v701_v13  ;;  %v731_v25 = vpack.c.bf16 %v332_v23, %v331_v11  ;;  %p756_p3 = por %p755_p2, %p754_p1 }
  0x29   :  { %726 = vmatpush3.bf16.msra.mxu1 %v725_v14  ;;  %703 = vmatprep.subr.bf16.mxu0 %v773_v3 }
  0x2a   :  { %727 = vmatprep.subr.bf16.mxu1 %v773_v3  ;;  %p757_p4 = pnand %p756_p3, %p750_p0 }
  0x2c   :  { %705 = vmatpush3.bf16.msra.mxu0 %v704_v19 }
  0x2d   :  { %729 = vmatpush3.bf16.msra.mxu1 %v728_v20  ;;  %706 = vmatprep.subr.bf16.mxu0 %v773_v3 }
  0x2e   :  { %730 = vmatprep.subr.bf16.mxu1 %v773_v3 }
  0x30   :  { %708 = vmatpush3.bf16.msra.mxu0 %v707_v24 }
  0x31   :  { %732 = vmatpush3.bf16.msra.mxu1 %v731_v25  ;;  %709 = vmatprep.subr.bf16.mxu0 %v773_v3 }
  0x32   :  { %733 = vmatprep.subr.bf16.mxu1 %v773_v3 }
  0x34   :  { %711 = vmatpush3.bf16.msra.mxu0 %v710_v30 }
  0x35   :  { %735 = vmatpush3.bf16.msra.mxu1 %v734_v31  ;;  %712 = vmatprep.subr.bf16.mxu0 %v773_v3 }
  0x36   :  { %736 = vmatprep.subr.bf16.mxu1 %v773_v3 }
  0x38   :  { %714 = vmatpush3.bf16.msra.mxu0 %v713_v37 }
  0x39   :  { %738 = vmatpush3.bf16.msra.mxu1 %v737_v38  ;;  %715 = vmatprep.subr.bf16.mxu0 %v773_v3 }
  0x3a   :  { %739 = vmatprep.subr.bf16.mxu1 %v773_v3 }
  0x3c   :  { %717 = vmatpush3.bf16.msra.mxu0 %v716_v46 }
  0x3d   :  { %741 = vmatpush3.bf16.msra.mxu1 %v740_v49  ;;  %718 = vmatprep.subr.bf16.mxu0 %v773_v3 }
  0x3e   :  { %742 = vmatprep.subr.bf16.mxu1 %v773_v3 }
  0x40   :  { %720 = vmatpush3.bf16.msra.mxu0 %v719_v52 }
  0x41   :  { %744 = vmatpush3.bf16.msra.mxu1 %v743_v54 }
  0x43   :  { %612 = vmatmul.mubr.f32.vlgmr.msra.gmra.mrb[2].mxu0 %v52_v55 }
  0x44   :  { %647 = vmatmul.mubr.f32.vlgmr.msra.gmra.mrb[2].mxu1 %v58_v56 }
  0xf6   :  { %v148_v59 = vpop.f32.mrb[0].mxu0 }
  0xf7   :  { %v149_v48 = vadd.f32 %v439_v57, %v148_v59  ;;  %v543_v60 = vpop.f32.mrb[1].mxu0  ;;  %v251_v61 = vpop.f32.mrb[0].mxu1 }
  0xf8   :  { %v578_v62 = vpop.f32.mrb[1].mxu1 }
  0xf9   :  { %152 = vst [vmem:[%s1139_s10] sm:$0xff] %v149_v48 }
 0x116   :  { %v321_v3 = vpop.f32.mrb[2].mxu0 }
 0x117   :  { %v322_v63 = vadd.f32 %v321_v3, %v251_v61  ;;  %v613_v0 = vpop.f32.mrb[3].mxu0  ;;  %v407_v58 = vpop.f32.mrb[2].mxu1 }
 0x118   :  { %v648_v1 = vpop.f32.mrb[3].mxu1 }
 0x119   :  { %v411_v4 = vadd.f32 %v407_v58, %v322_v63 }
 0x11b   :  { %v419_v5 = vadd.f32 %v440_v2, %v411_v4 }
 0x11d   :  { %420 = vst [vmem:[#allocation2] sm:$0xff] %v419_v5 }
 0x11e   :  { %760 = shalt.err (!%p757_p4)
}
 0x11f   :  { %s761_s3 = scalar_lea.hbm %s1140_s11, 128 }
 0x120   :  { %p762_p5 = scmp.ne.s32.totalorder %s1140_s11, %s761_s3  ;;  %p765_p6 = scmp.lt.u32.totalorder %s761_s3, %s1140_s11 }
 0x122   :  { %p767_p7 = pnand %p765_p6, %p762_p5 }
 0x124   :  { %770 = shalt.err (!%p767_p7)
}
 0x125   :  { %432 = dma.vmem_to_hbm [thread:$0]  %s430_s5, 128, %s1140_s11, [#allocation3]  }
 0x126   :  { %771 = dma.done.wait [#allocation3], 128  }
 0x127   :  { %772 = vsyncadd [#allocation3], 4294967168 }
 0x128   :  { %438 = vsyncpa [#allocation3], 1 }

// kernel: tile.47
= control target key start
LH: loop header
LB: loop body
LE: loop exit
PB: predicated region body
PF: predicated region fallthrough
CT: control target
= control target key end

     0   :  { %s22_s0 = inlined_call_operand.vmem [shape: f32[32], index: 0, kind: input, shape index: {}]   ;;  %s23_s1 = inlined_call_operand.vmem [shape: f32[4,32], index: 1, kind: output, shape index: {}]  }
   0x1   :  { %v4_v0 = vld [vmem:[%s22_s0] ss:$0 sm:$0xff] }
   0x2   :  { %5 = vst [vmem:[%s23_s1] sm:$0xf] %v4_v0 }

// kernel: tile.52
= control target key start
LH: loop header
LB: loop body
LE: loop exit
PB: predicated region body
PF: predicated region fallthrough
CT: control target
= control target key end

     0   :  { %vm7_vm0 = vcmask 261120   ;;  %s37_s8 = smov 32   ;;  %s38_s9 = smov 64   ;;  %vm13_vm1 = vcmask 1048320   ;;  %vm19_vm2 = vcmask 785920   ;;  %vm25_vm3 = vcmask 523520   ;;  %s55_s0 = inlined_call_operand.vmem [shape: f32[4,32], index: 0, kind: input, shape index: {}]   ;;  %s56_s1 = inlined_call_operand.vmem [shape: f32[1,128], index: 1, kind: output, shape index: {}]  }
   0x1   :  { %v4_v0 = vld [vmem:[%s55_s0] sm:$0xf]  ;;  %s36_s0 = smov 96  }
   0x2   :  { %5 = vst [vmem:[#allocation1] sm:$0xf] %v4_v0 }
   0x9   :  { %v10_v1 = vld [vmem:[#allocation1 + $0x3] sm:$0x1]   ;;  %v22_v2 = vld [vmem:[#allocation1 + $0x1] sm:$0x1]   ;;  %v6_v3 = vld [vmem:[#allocation1] sm:$0x1]  }
   0xa   :  { %11 = vrot.lane.b32.xlu0 %v10_v1, %s36_s0  ;;  %23 = vrot.lane.b32.xlu1 %v22_v2, %s37_s8  ;;  %v16_v4 = vld [vmem:[#allocation1 + $0x2] sm:$0x1]   ;;  %8 = vst.msk [vmem:[#allocation0] sm:$0x1] %vm7_vm0, %v6_v3  }
   0xe   :  { %17 = vrot.lane.b32.xlu0 %v16_v4, %s38_s9 }
  0x7c   :  { %v12_v5 = vpop.permute.xlu0 %11   ;;  %v24_v6 = vpop.permute.xlu1 %23  }
  0x7d   :  { %14 = vst.msk [vmem:[#allocation0] sm:$0x1] %vm13_vm1, %v12_v5  }
  0x80   :  { %v18_v7 = vpop.permute.xlu0 %17  }
  0x81   :  { %20 = vst.msk [vmem:[#allocation0] sm:$0x1] %vm19_vm2, %v18_v7  }
  0x82   :  { %26 = vst.msk [vmem:[#allocation0] sm:$0x1] %vm25_vm3, %v24_v6  }
  0x89   :  { %v30_v8 = vld [vmem:[#allocation0] sm:$0x1] }
  0x8a   :  { %32 = vst [vmem:[%s56_s1] sm:$0x1] %v30_v8 }

// kernel: forward.29
= control target key start
LH: loop header
LB: loop body
LE: loop exit
PB: predicated region body
PF: predicated region fallthrough
CT: control target
= control target key end

     0   :  { %v673_v35 = vmov 0.0   ;;  %vm674_vm2 = vmmov 0   ;;  %s838_s1 = inlined_call_operand.vmem [shape: bf16[640,128], index: 1, kind: input, shape index: {}]   ;;  %s839_s0 = inlined_call_operand.vmem [shape: bf16[8,640], index: 0, kind: input, shape index: {}]   ;;  %s840_s2 = inlined_call_operand.vmem [shape: f32[8,128], index: 2, kind: output, shape index: {0}]   ;;  %s841_s3 = inlined_call_operand.vmem [shape: f32[1,8,128], index: 3, kind: output, shape index: {1}]   ;;  %s842_s4 = inlined_call_operand.vmem [shape: f32[1,8,128], index: 4, kind: output, shape index: {2}]  }
   0x1   :  { %v633_v0 = vld [vmem:[%s838_s1 + $0x40] sm:$0xff]   ;;  %v637_v4 = vld [vmem:[%s838_s1 + $0x48] sm:$0xff]   ;;  %v641_v8 = vld [vmem:[%s838_s1 + $0x50] sm:$0xff]  }
   0x2   :  { %v634_v1 = vld [vmem:[%s838_s1 + $0xc0] sm:$0xff]   ;;  %558 = vmatprep.subr.bf16.mxu0 %v633_v0  ;;  %v638_v5 = vld [vmem:[%s838_s1 + $0xc8] sm:$0xff]   ;;  %v642_v9 = vld [vmem:[%s838_s1 + $0xd0] sm:$0xff]  }
   0x3   :  { %v635_v2 = vld [vmem:[%s838_s1] sm:$0xff]   ;;  %580 = vmatprep.subr.bf16.mxu1 %v634_v1  ;;  %v639_v6 = vld [vmem:[%s838_s1 + $0x8] sm:$0xff]   ;;  %v643_v10 = vld [vmem:[%s838_s1 + $0x10] sm:$0xff]  }
   0x4   :  { %v636_v3 = vld [vmem:[%s838_s1 + $0x80] sm:$0xff]   ;;  %559 = vmatpush3.bf16.msra.mxu0 %v635_v2  ;;  %v640_v7 = vld [vmem:[%s838_s1 + $0x88] sm:$0xff]   ;;  %v644_v11 = vld [vmem:[%s838_s1 + $0x90] sm:$0xff]  }
   0x5   :  { %581 = vmatpush3.bf16.msra.mxu1 %v636_v3  ;;  %560 = vmatprep.subr.bf16.mxu0 %v637_v4  ;;  %v645_v12 = vld [vmem:[%s838_s1 + $0x58] sm:$0xff]   ;;  %v649_v16 = vld [vmem:[%s838_s1 + $0x60] sm:$0xff]   ;;  %v653_v20 = vld [vmem:[%s838_s1 + $0x68] sm:$0xff]  }
   0x6   :  { %582 = vmatprep.subr.bf16.mxu1 %v638_v5  ;;  %v646_v13 = vld [vmem:[%s838_s1 + $0xd8] sm:$0xff]   ;;  %v650_v17 = vld [vmem:[%s838_s1 + $0xe0] sm:$0xff]   ;;  %v654_v21 = vld [vmem:[%s838_s1 + $0xe8] sm:$0xff]  }
   0x7   :  { %v647_v14 = vld [vmem:[%s838_s1 + $0x18] sm:$0xff]   ;;  %v651_v18 = vld [vmem:[%s838_s1 + $0x20] sm:$0xff]   ;;  %v655_v22 = vld [vmem:[%s838_s1 + $0x28] sm:$0xff]  }
   0x8   :  { %561 = vmatpush3.bf16.msra.mxu0 %v639_v6  ;;  %v648_v15 = vld [vmem:[%s838_s1 + $0x98] sm:$0xff]   ;;  %v652_v19 = vld [vmem:[%s838_s1 + $0xa0] sm:$0xff]   ;;  %v656_v23 = vld [vmem:[%s838_s1 + $0xa8] sm:$0xff]  }
   0x9   :  { %583 = vmatpush3.bf16.msra.mxu1 %v640_v7  ;;  %562 = vmatprep.subr.bf16.mxu0 %v641_v8  ;;  %v657_v24 = vld [vmem:[%s838_s1 + $0x70] sm:$0xff]   ;;  %v661_v28 = vld [vmem:[%s838_s1 + $0x78] sm:$0xff]   ;;  %v15_v32 = vld [vmem:[%s839_s0] sm:$0xff] }
   0xa   :  { %584 = vmatprep.subr.bf16.mxu1 %v642_v9  ;;  %v658_v25 = vld [vmem:[%s838_s1 + $0xf0] sm:$0xff]   ;;  %v662_v29 = vld [vmem:[%s838_s1 + $0xf8] sm:$0xff]   ;;  %v16_v33 = vld [vmem:[%s839_s0 + $0x8] sm:$0xff]  ;;  %vm18_vm0 = vcmp.ge.bf16.partialorder %v15_v32, 0  ;;  %v21_v34 = vmul.bf16 0, %v15_v32 }
   0xb   :  { %v659_v26 = vld [vmem:[%s838_s1 + $0x30] sm:$0xff]   ;;  %v663_v30 = vld [vmem:[%s838_s1 + $0x38] sm:$0xff]   ;;  %vm19_vm1 = vcmp.ge.bf16.partialorder %v16_v33, 0  ;;  %v22_v36 = vmul.bf16 0, %v16_v33  ;;  %v665_v41 = vld [vmem:[%s838_s1 + $0x100] sm:$0xff]  }
   0xc   :  { %563 = vmatpush3.bf16.msra.mxu0 %v643_v10  ;;  %v660_v27 = vld [vmem:[%s838_s1 + $0xb0] sm:$0xff]   ;;  %v664_v31 = vld [vmem:[%s838_s1 + $0xb8] sm:$0xff]   ;;  %v24_v37 = vsel %vm18_vm0, %v15_v32, %v21_v34  ;;  %v666_v44 = vld [vmem:[%s838_s1 + $0x108] sm:$0xff]  }
   0xd   :  { %585 = vmatpush3.bf16.msra.mxu1 %v644_v11  ;;  %564 = vmatprep.subr.bf16.mxu0 %v645_v12  ;;  %v513_v38 = vcombine.low %v24_v37, %v24_v37  ;;  %v514_v39 = vcombine.high %v24_v37, %v24_v37  ;;  %v25_v40 = vsel %vm19_vm1, %v16_v33, %v22_v36  ;;  %v667_v45 = vld [vmem:[%s838_s1 + $0x110] sm:$0xff]   ;;  %v668_v46 = vld [vmem:[%s838_s1 + $0x118] sm:$0xff]   ;;  %v669_v47 = vld [vmem:[%s838_s1 + $0x120] sm:$0xff]  }
   0xe   :  { %586 = vmatprep.subr.bf16.mxu1 %v646_v13  ;;  %v515_v42 = vcombine.low %v25_v40, %v25_v40  ;;  %v516_v43 = vcombine.high %v25_v40, %v25_v40  ;;  %v670_v48 = vld [vmem:[%s838_s1 + $0x128] sm:$0xff]   ;;  %v17_v49 = vld [vmem:[%s839_s0 + $0x10] sm:$0xf]  ;;  %v672_v52 = vld [vmem:[%s838_s1 + $0x138] sm:$0xff]  }
   0xf   :  { %397 = vmatprep.mubr.bf16.mxu0 %v514_v39  ;;  %v23_v50 = vmul.bf16 0, %v17_v49  ;;  %v671_v51 = vld [vmem:[%s838_s1 + $0x130] sm:$0xff]   ;;  %vm20_vm3 = vcmp.ge.bf16.partialorder %v17_v49, 0 }
  0x10   :  { %565 = vmatpush3.bf16.msra.mxu0 %v647_v14  ;;  %437 = vmatprep.mubr.bf16.mxu1 %v516_v43 }
  0x11   :  { %587 = vmatpush3.bf16.msra.mxu1 %v648_v15  ;;  %566 = vmatprep.subr.bf16.mxu0 %v649_v16  ;;  %v26_v53 = vsel %vm20_vm3, %v17_v49, %v23_v50 }
  0x12   :  { %588 = vmatprep.subr.bf16.mxu1 %v650_v17  ;;  %v517_v54 = vcombine.low %v26_v53, %v26_v53 }
  0x14   :  { %567 = vmatpush3.bf16.msra.mxu0 %v651_v18 }
  0x15   :  { %589 = vmatpush3.bf16.msra.mxu1 %v652_v19  ;;  %568 = vmatprep.subr.bf16.mxu0 %v653_v20 }
  0x16   :  { %590 = vmatprep.subr.bf16.mxu1 %v654_v21 }
  0x18   :  { %569 = vmatpush3.bf16.msra.mxu0 %v655_v22 }
  0x19   :  { %591 = vmatpush3.bf16.msra.mxu1 %v656_v23  ;;  %570 = vmatprep.subr.bf16.mxu0 %v657_v24 }
  0x1a   :  { %592 = vmatprep.subr.bf16.mxu1 %v658_v25 }
  0x1c   :  { %571 = vmatpush3.bf16.msra.mxu0 %v659_v26 }
  0x1d   :  { %593 = vmatpush3.bf16.msra.mxu1 %v660_v27  ;;  %572 = vmatprep.subr.bf16.mxu0 %v661_v28 }
  0x1e   :  { %594 = vmatprep.subr.bf16.mxu1 %v662_v29 }
  0x20   :  { %573 = vmatpush3.bf16.msra.mxu0 %v663_v30 }
  0x21   :  { %595 = vmatpush3.bf16.msra.mxu1 %v664_v31  ;;  %611 = vmatprep.subr.bf16.mxu0 %v673_v35 }
  0x23   :  { %398 = vmatmul.mubr.bf16.vlgmr.msra.gmra.mrb[0].mxu0 %v513_v38 }
  0x24   :  { %438 = vmatmul.mubr.bf16.vlgmr.msra.gmra.mrb[0].mxu1 %v515_v42  ;;  %612 = vmatpush3.bf16.msra.mxu0 %v665_v41 }
  0x25   :  { %613 = vmatprep.subr.bf16.mxu0 %v673_v35  ;;  %627 = vmatprep.mubr.msk.bf16.mxu0 %vm674_vm2, %v673_v35 }
  0x28   :  { %614 = vmatpush3.bf16.msra.mxu0 %v666_v44 }
  0x29   :  { %615 = vmatprep.subr.bf16.mxu0 %v673_v35 }
  0x2c   :  { %616 = vmatpush3.bf16.msra.mxu0 %v667_v45 }
  0x2d   :  { %617 = vmatprep.subr.bf16.mxu0 %v673_v35 }
  0x30   :  { %618 = vmatpush3.bf16.msra.mxu0 %v668_v46 }
  0x31   :  { %619 = vmatprep.subr.bf16.mxu0 %v673_v35 }
  0x34   :  { %620 = vmatpush3.bf16.msra.mxu0 %v669_v47 }
  0x35   :  { %621 = vmatprep.subr.bf16.mxu0 %v673_v35 }
  0x38   :  { %622 = vmatpush3.bf16.msra.mxu0 %v670_v48 }
  0x39   :  { %623 = vmatprep.subr.bf16.mxu0 %v673_v35 }
  0x3c   :  { %624 = vmatpush3.bf16.msra.mxu0 %v671_v51 }
  0x3d   :  { %625 = vmatprep.subr.bf16.mxu0 %v673_v35 }
  0x40   :  { %626 = vmatpush3.bf16.msra.mxu0 %v672_v52 }
  0x43   :  { %628 = vmatmul.mubr.bf16.vlgmr.msra.gmra.mrb[4].mxu0 %v517_v54 }
  0xf6   :  { %v574_v55 = vpop.f32.mrb[0].mxu0 }
  0xf7   :  { %v596_v56 = vpop.f32.mrb[0].mxu1  ;;  %v575_v57 = vpop.f32.mrb[1].mxu0 }
  0xf8   :  { %v576_v58 = vadd.f32 %v575_v57, %v574_v55  ;;  %v597_v59 = vpop.f32.mrb[1].mxu1  ;;  %v577_v60 = vpop.f32.mrb[2].mxu0 }
  0xf9   :  { %v598_v61 = vadd.f32 %v597_v59, %v596_v56  ;;  %v578_v62 = vpop.f32.mrb[3].mxu0  ;;  %v599_v63 = vpop.f32.mrb[2].mxu1 }
  0xfa   :  { %v600_v0 = vpop.f32.mrb[3].mxu1 }
  0xfb   :  { %v440_v1 = vadd.f32 %v598_v61, %v576_v58 }
 0x116   :  { %v479_v2 = vpop.f32.mrb[4].mxu0 }
 0x117   :  { %v480_v3 = vadd.f32 %v479_v2, %v440_v1  ;;  %v629_v4 = vpop.f32.mrb[5].mxu0 }
 0x118   :  { %v482_v5 = vpop.f32.mrb[6].mxu0 }
 0x119   :  { %485 = vst [vmem:[%s840_s2] sm:$0xff] %v480_v3  ;;  %v486_v6 = vrot.slane %v480_v3, 4  ;;  %v492_v7 = vmul.f32 %v480_v3, %v480_v3  ;;  %v630_v8 = vpop.f32.mrb[7].mxu0 }
 0x11b   :  { %v487_v9 = vadd.f32 %v486_v6, %v480_v3  ;;  %v493_v10 = vrot.slane %v492_v7, 4 }
 0x11d   :  { %v488_v11 = vrot.slane %v487_v9, 2  ;;  %v494_v12 = vadd.f32 %v493_v10, %v492_v7 }
 0x11f   :  { %v489_v13 = vadd.f32 %v488_v11, %v487_v9  ;;  %v495_v14 = vrot.slane %v494_v12, 2 }
 0x121   :  { %v490_v15 = vrot.slane %v489_v13, 1  ;;  %v496_v16 = vadd.f32 %v495_v14, %v494_v12 }
 0x123   :  { %v491_v17 = vadd.f32 %v490_v15, %v489_v13  ;;  %v497_v18 = vrot.slane %v496_v16, 1 }
 0x125   :  { %v498_v19 = vadd.f32 %v497_v18, %v496_v16  ;;  %499 = vst [vmem:[%s841_s3] sm:$0xff] %v491_v17 }
 0x127   :  { %500 = vst [vmem:[%s842_s4] sm:$0xff] %v498_v19 }

// kernel: tile.57
= control target key start
LH: loop header
LB: loop body
LE: loop exit
PB: predicated region body
PF: predicated region fallthrough
CT: control target
= control target key end

     0   :  { %s22_s0 = inlined_call_operand.vmem [shape: f32[16], index: 0, kind: input, shape index: {}]   ;;  %s23_s1 = inlined_call_operand.vmem [shape: f32[4,16], index: 1, kind: output, shape index: {}]  }
   0x1   :  { %v4_v0 = vld [vmem:[%s22_s0] ss:$0 sm:$0xff] }
   0x2   :  { %5 = vst [vmem:[%s23_s1] sm:$0xf] %v4_v0 }

// kernel: tile.62
= control target key start
LH: loop header
LB: loop body
LE: loop exit
PB: predicated region body
PF: predicated region fallthrough
CT: control target
= control target key end

     0   :  { %vm7_vm0 = vcmask 130048   ;;  %s37_s8 = smov 16   ;;  %s38_s9 = smov 32   ;;  %vm13_vm1 = vcmask 523648   ;;  %vm19_vm2 = vcmask 392448   ;;  %vm25_vm3 = vcmask 261248   ;;  %s55_s0 = inlined_call_operand.vmem [shape: f32[4,16], index: 0, kind: input, shape index: {}]   ;;  %s56_s1 = inlined_call_operand.vmem [shape: f32[1,64], index: 1, kind: output, shape index: {}]  }
   0x1   :  { %v4_v0 = vld [vmem:[%s55_s0] sm:$0xf]  ;;  %s36_s0 = smov 48  }
   0x2   :  { %5 = vst [vmem:[#allocation1] sm:$0xf] %v4_v0 }
   0x9   :  { %v10_v1 = vld [vmem:[#allocation1 + $0x3] sm:$0x1]   ;;  %v22_v2 = vld [vmem:[#allocation1 + $0x1] sm:$0x1]   ;;  %v6_v3 = vld [vmem:[#allocation1] sm:$0x1]  }
   0xa   :  { %11 = vrot.lane.b32.xlu0 %v10_v1, %s36_s0  ;;  %23 = vrot.lane.b32.xlu1 %v22_v2, %s37_s8  ;;  %v16_v4 = vld [vmem:[#allocation1 + $0x2] sm:$0x1]   ;;  %8 = vst.msk [vmem:[#allocation0] sm:$0x1] %vm7_vm0, %v6_v3  }
   0xe   :  { %17 = vrot.lane.b32.xlu0 %v16_v4, %s38_s9 }
  0x7c   :  { %v12_v5 = vpop.permute.xlu0 %11   ;;  %v24_v6 = vpop.permute.xlu1 %23  }
  0x7d   :  { %14 = vst.msk [vmem:[#allocation0] sm:$0x1] %vm13_vm1, %v12_v5  }
  0x80   :  { %v18_v7 = vpop.permute.xlu0 %17  }
  0x81   :  { %20 = vst.msk [vmem:[#allocation0] sm:$0x1] %vm19_vm2, %v18_v7  }
  0x82   :  { %26 = vst.msk [vmem:[#allocation0] sm:$0x1] %vm25_vm3, %v24_v6  }
  0x89   :  { %v30_v8 = vld [vmem:[#allocation0] sm:$0x1] }
  0x8a   :  { %32 = vst [vmem:[%s56_s1] sm:$0x1] %v30_v8 }

// kernel: forward.31
= control target key start
LH: loop header
LB: loop body
LE: loop exit
PB: predicated region body
PF: predicated region fallthrough
CT: control target
= control target key end

     0   :  { %s997_s1 = inlined_call_operand.vmem [shape: bf16[640,128], index: 1, kind: input, shape index: {}]   ;;  %s998_s0 = inlined_call_operand.vmem [shape: bf16[32,640], index: 0, kind: input, shape index: {}]   ;;  %s999_s2 = inlined_call_operand.vmem [shape: f32[32,128], index: 2, kind: output, shape index: {0}]   ;;  %s1000_s3 = inlined_call_operand.vmem [shape: f32[1,8,128], index: 3, kind: output, shape index: {1}]   ;;  %s1001_s4 = inlined_call_operand.vmem [shape: f32[1,8,128], index: 4, kind: output, shape index: {2}]  }
   0x1   :  { %v758_v0 = vld [vmem:[%s997_s1 + $0x40] sm:$0xff]   ;;  %v762_v4 = vld [vmem:[%s997_s1 + $0x48] sm:$0xff]   ;;  %v766_v8 = vld [vmem:[%s997_s1 + $0x50] sm:$0xff]  }
   0x2   :  { %v759_v1 = vld [vmem:[%s997_s1 + $0xc0] sm:$0xff]   ;;  %672 = vmatprep.subr.bf16.mxu0 %v758_v0  ;;  %v763_v5 = vld [vmem:[%s997_s1 + $0xc8] sm:$0xff]   ;;  %v767_v9 = vld [vmem:[%s997_s1 + $0xd0] sm:$0xff]  }
   0x3   :  { %v760_v2 = vld [vmem:[%s997_s1] sm:$0xff]   ;;  %700 = vmatprep.subr.bf16.mxu1 %v759_v1  ;;  %v764_v6 = vld [vmem:[%s997_s1 + $0x8] sm:$0xff]   ;;  %v768_v10 = vld [vmem:[%s997_s1 + $0x10] sm:$0xff]  }
   0x4   :  { %v761_v3 = vld [vmem:[%s997_s1 + $0x80] sm:$0xff]   ;;  %673 = vmatpush3.bf16.msra.mxu0 %v760_v2  ;;  %v765_v7 = vld [vmem:[%s997_s1 + $0x88] sm:$0xff]   ;;  %v769_v11 = vld [vmem:[%s997_s1 + $0x90] sm:$0xff]  }
   0x5   :  { %701 = vmatpush3.bf16.msra.mxu1 %v761_v3  ;;  %674 = vmatprep.subr.bf16.mxu0 %v762_v4  ;;  %v770_v12 = vld [vmem:[%s997_s1 + $0x58] sm:$0xff]   ;;  %v774_v16 = vld [vmem:[%s997_s1 + $0x60] sm:$0xff]   ;;  %v778_v20 = vld [vmem:[%s997_s1 + $0x68] sm:$0xff]  }
   0x6   :  { %702 = vmatprep.subr.bf16.mxu1 %v763_v5  ;;  %v771_v13 = vld [vmem:[%s997_s1 + $0xd8] sm:$0xff]   ;;  %v775_v17 = vld [vmem:[%s997_s1 + $0xe0] sm:$0xff]   ;;  %v779_v21 = vld [vmem:[%s997_s1 + $0xe8] sm:$0xff]  }
   0x7   :  { %v772_v14 = vld [vmem:[%s997_s1 + $0x18] sm:$0xff]   ;;  %v776_v18 = vld [vmem:[%s997_s1 + $0x20] sm:$0xff]   ;;  %v780_v22 = vld [vmem:[%s997_s1 + $0x28] sm:$0xff]  }
   0x8   :  { %675 = vmatpush3.bf16.msra.mxu0 %v764_v6  ;;  %v773_v15 = vld [vmem:[%s997_s1 + $0x98] sm:$0xff]   ;;  %v777_v19 = vld [vmem:[%s997_s1 + $0xa0] sm:$0xff]   ;;  %v781_v23 = vld [vmem:[%s997_s1 + $0xa8] sm:$0xff]  }
   0x9   :  { %703 = vmatpush3.bf16.msra.mxu1 %v765_v7  ;;  %676 = vmatprep.subr.bf16.mxu0 %v766_v8  ;;  %v782_v24 = vld [vmem:[%s997_s1 + $0x70] sm:$0xff]   ;;  %v786_v28 = vld [vmem:[%s997_s1 + $0x78] sm:$0xff]   ;;  %v15_v32 = vld [vmem:[%s998_s0] sm:$0xff] }
   0xa   :  { %704 = vmatprep.subr.bf16.mxu1 %v767_v9  ;;  %v783_v25 = vld [vmem:[%s997_s1 + $0xf0] sm:$0xff]   ;;  %v787_v29 = vld [vmem:[%s997_s1 + $0xf8] sm:$0xff]   ;;  %v16_v34 = vld [vmem:[%s998_s0 + $0x8] sm:$0xff]  ;;  %vm27_vm0 = vcmp.ge.bf16.partialorder %v15_v32, 0  ;;  %v39_v35 = vmul.bf16 0, %v15_v32 }
   0xb   :  { %v784_v26 = vld [vmem:[%s997_s1 + $0x30] sm:$0xff]   ;;  %v788_v30 = vld [vmem:[%s997_s1 + $0x38] sm:$0xff]   ;;  %v790_v38 = vld [vmem:[%s997_s1 + $0x100] sm:$0xff]   ;;  %vm28_vm2 = vcmp.ge.bf16.partialorder %v16_v34, 0  ;;  %v40_v39 = vmul.bf16 0, %v16_v34 }
   0xc   :  { %677 = vmatpush3.bf16.msra.mxu0 %v768_v10  ;;  %v785_v27 = vld [vmem:[%s997_s1 + $0xb0] sm:$0xff]   ;;  %v789_v31 = vld [vmem:[%s997_s1 + $0xb8] sm:$0xff]   ;;  %v51_v41 = vsel %vm27_vm0, %v15_v32, %v39_v35  ;;  %v791_v49 = vld [vmem:[%s997_s1 + $0x108] sm:$0xff]  }
   0xd   :  { %705 = vmatpush3.bf16.msra.mxu1 %v769_v11  ;;  %678 = vmatprep.subr.bf16.mxu0 %v770_v12  ;;  %v18_v33 = vld [vmem:[%s998_s0 + $0x14] sm:$0xff]  ;;  %v19_v37 = vld [vmem:[%s998_s0 + $0x1c] sm:$0xff]  ;;  %v52_v45 = vsel %vm28_vm2, %v16_v34, %v40_v39  ;;  %v21_v51 = vld [vmem:[%s998_s0 + $0x28] sm:$0xff] }
   0xe   :  { %706 = vmatprep.subr.bf16.mxu1 %v771_v13  ;;  %vm30_vm1 = vcmp.ge.bf16.partialorder %v18_v33, 0  ;;  %v42_v36 = vmul.bf16 0, %v18_v33  ;;  %vm31_vm3 = vcmp.ge.bf16.partialorder %v19_v37, 0  ;;  %v43_v40 = vmul.bf16 0, %v19_v37  ;;  %v792_v50 = vld [vmem:[%s997_s1 + $0x110] sm:$0xff]   ;;  %v24_v52 = vld [vmem:[%s998_s0 + $0x3c] sm:$0xff] }
   0xf   :  { %vm33_vm4 = vcmp.ge.bf16.partialorder %v21_v51, 0  ;;  %vm36_vm5 = vcmp.ge.bf16.partialorder %v24_v52, 0  ;;  %v45_v53 = vmul.bf16 0, %v21_v51  ;;  %v48_v54 = vmul.bf16 0, %v24_v52  ;;  %v22_v55 = vld [vmem:[%s998_s0 + $0x30] sm:$0xff]  ;;  %v25_v56 = vld [vmem:[%s998_s0 + $0x44] sm:$0xff] }
  0x10   :  { %679 = vmatpush3.bf16.msra.mxu0 %v772_v14  ;;  %v54_v42 = vsel %vm30_vm1, %v18_v33, %v42_v36  ;;  %v55_v46 = vsel %vm31_vm3, %v19_v37, %v43_v40  ;;  %vm34_vm6 = vcmp.ge.bf16.partialorder %v22_v55, 0  ;;  %vm37_vm7 = vcmp.ge.bf16.partialorder %v25_v56, 0  ;;  %v17_v3 = vld [vmem:[%s998_s0 + $0x10] sm:$0xf]  ;;  %v793_v4 = vld [vmem:[%s997_s1 + $0x118] sm:$0xff]   ;;  %v794_v10 = vld [vmem:[%s997_s1 + $0x120] sm:$0xff]  }
  0x11   :  { %707 = vmatpush3.bf16.msra.mxu1 %v773_v15  ;;  %680 = vmatprep.subr.bf16.mxu0 %v774_v16  ;;  %v622_v43 = vcombine.low %v51_v41, %v54_v42  ;;  %v623_v44 = vcombine.high %v51_v41, %v54_v42  ;;  %v624_v47 = vcombine.low %v52_v45, %v55_v46  ;;  %v46_v57 = vmul.bf16 0, %v22_v55  ;;  %v20_v5 = vld [vmem:[%s998_s0 + $0x24] sm:$0xf]  ;;  %v795_v12 = vld [vmem:[%s997_s1 + $0x128] sm:$0xff]   ;;  %v796_v13 = vld [vmem:[%s997_s1 + $0x130] sm:$0xff]  }
  0x12   :  { %708 = vmatprep.subr.bf16.mxu1 %v775_v17  ;;  %v625_v48 = vcombine.high %v52_v45, %v55_v46  ;;  %v49_v58 = vmul.bf16 0, %v25_v56  ;;  %v57_v59 = vsel %vm33_vm4, %v21_v51, %v45_v53  ;;  %v60_v60 = vsel %vm36_vm5, %v24_v52, %v48_v54  ;;  %v23_v14 = vld [vmem:[%s998_s0 + $0x38] sm:$0xf]  ;;  %v26_v15 = vld [vmem:[%s998_s0 + $0x4c] sm:$0xf] }
  0x13   :  { %467 = vmatprep.mubr.bf16.mxu0 %v623_v44  ;;  %v628_v61 = vcombine.high %v57_v59, %v60_v60  ;;  %v58_v62 = vsel %vm34_vm6, %v22_v55, %v46_v57  ;;  %v627_v0 = vcombine.low %v57_v59, %v60_v60  ;;  %vm29_vm8 = vcmp.ge.bf16.partialorder %v17_v3, 0 }
  0x14   :  { %681 = vmatpush3.bf16.msra.mxu0 %v776_v18  ;;  %516 = vmatprep.mubr.bf16.mxu1 %v625_v48  ;;  %v61_v63 = vsel %vm37_vm7, %v25_v56, %v49_v58  ;;  %v41_v6 = vmul.bf16 0, %v17_v3  ;;  %vm32_vm9 = vcmp.ge.bf16.partialorder %v20_v5, 0  ;;  %v44_v7 = vmul.bf16 0, %v20_v5  ;;  %v797_v18 = vld [vmem:[%s997_s1 + $0x138] sm:$0xff]  }
  0x15   :  { %709 = vmatpush3.bf16.msra.mxu1 %v777_v19  ;;  %682 = vmatprep.subr.bf16.mxu0 %v778_v20  ;;  %v630_v1 = vcombine.high %v58_v62, %v61_v63  ;;  %v629_v2 = vcombine.low %v58_v62, %v61_v63  ;;  %v47_v16 = vmul.bf16 0, %v23_v14  ;;  %v50_v17 = vmul.bf16 0, %v26_v15 }
  0x16   :  { %710 = vmatprep.subr.bf16.mxu1 %v779_v21  ;;  %v53_v8 = vsel %vm29_vm8, %v17_v3, %v41_v6  ;;  %v56_v9 = vsel %vm32_vm9, %v20_v5, %v44_v7  ;;  %vm35_vm10 = vcmp.ge.bf16.partialorder %v23_v14, 0  ;;  %vm38_vm11 = vcmp.ge.bf16.partialorder %v26_v15, 0 }
  0x17   :  { %v626_v11 = vcombine.low %v53_v8, %v56_v9  ;;  %v59_v19 = vsel %vm35_vm10, %v23_v14, %v47_v16  ;;  %v62_v20 = vsel %vm38_vm11, %v26_v15, %v50_v17 }
  0x18   :  { %683 = vmatpush3.bf16.msra.mxu0 %v780_v22  ;;  %v631_v21 = vcombine.low %v59_v19, %v62_v20 }
  0x19   :  { %711 = vmatpush3.bf16.msra.mxu1 %v781_v23  ;;  %684 = vmatprep.subr.bf16.mxu0 %v782_v24 }
  0x1a   :  { %712 = vmatprep.subr.bf16.mxu1 %v783_v25 }
  0x1c   :  { %685 = vmatpush3.bf16.msra.mxu0 %v784_v26 }
  0x1d   :  { %713 = vmatpush3.bf16.msra.mxu1 %v785_v27  ;;  %686 = vmatprep.subr.bf16.mxu0 %v786_v28 }
  0x1e   :  { %714 = vmatprep.subr.bf16.mxu1 %v787_v29 }
  0x20   :  { %687 = vmatpush3.bf16.msra.mxu0 %v788_v30 }
  0x21   :  { %715 = vmatpush3.bf16.msra.mxu1 %v789_v31  ;;  %738 = vmatprep.subr.bf16.mxu0 %v790_v38 }
  0x23   :  { %468 = vmatmul.mubr.bf16.vlgmr.msra.gmra.mrb[0].mxu0 %v622_v43 }
  0x24   :  { %517 = vmatmul.mubr.bf16.vlgmr.msra.gmra.mrb[0].mxu1 %v624_v47  ;;  %739 = vmatpush3.bf16.msra.mxu0 %v790_v38 }
  0x25   :  { %740 = vmatprep.subr.bf16.mxu0 %v791_v49  ;;  %475 = vmatprep.mubr.bf16.mxu0 %v628_v61 }
  0x26   :  { %524 = vmatprep.mubr.bf16.mxu1 %v630_v1 }
  0x28   :  { %741 = vmatpush3.bf16.msra.mxu0 %v791_v49 }
  0x29   :  { %742 = vmatprep.subr.bf16.mxu0 %v792_v50 }
  0x2b   :  { %476 = vmatmul.mubr.bf16.gmra.mrb[4].mxu0 %v627_v0 }
  0x2c   :  { %743 = vmatpush3.bf16.msra.mxu0 %v792_v50  ;;  %525 = vmatmul.mubr.bf16.gmra.mrb[4].mxu1 %v629_v2 }
  0x2d   :  { %744 = vmatprep.subr.bf16.mxu0 %v793_v4  ;;  %754 = vmatprep.mubr.bf16.mxu0 %v626_v11 }
  0x30   :  { %745 = vmatpush3.bf16.msra.mxu0 %v793_v4 }
  0x31   :  { %746 = vmatprep.subr.bf16.mxu0 %v794_v10 }
  0x34   :  { %747 = vmatpush3.bf16.msra.mxu0 %v794_v10 }
  0x35   :  { %748 = vmatprep.subr.bf16.mxu0 %v795_v12 }
  0x38   :  { %749 = vmatpush3.bf16.msra.mxu0 %v795_v12 }
  0x39   :  { %750 = vmatprep.subr.bf16.mxu0 %v796_v13 }
  0x3c   :  { %751 = vmatpush3.bf16.msra.mxu0 %v796_v13 }
  0x3d   :  { %752 = vmatprep.subr.bf16.mxu0 %v797_v18 }
  0x40   :  { %753 = vmatpush3.bf16.msra.mxu0 %v797_v18 }
  0x43   :  { %755 = vmatmul.mubr.bf16.vlgmr.msra.gmra.mrb[8].mxu0 %v631_v21 }
  0xf6   :  { %v688_v22 = vpop.f32.mrb[0].mxu0 }
  0xf7   :  { %v716_v23 = vpop.f32.mrb[0].mxu1  ;;  %v689_v24 = vpop.f32.mrb[1].mxu0 }
  0xf8   :  { %v690_v25 = vadd.f32 %v689_v24, %v688_v22  ;;  %v717_v26 = vpop.f32.mrb[1].mxu1  ;;  %v691_v27 = vpop.f32.mrb[2].mxu0 }
  0xf9   :  { %v718_v28 = vadd.f32 %v717_v26, %v716_v23  ;;  %v719_v29 = vpop.f32.mrb[2].mxu1  ;;  %v692_v30 = vpop.f32.mrb[3].mxu0 }
  0xfa   :  { %v693_v31 = vadd.f32 %v692_v30, %v691_v27  ;;  %v720_v32 = vpop.f32.mrb[3].mxu1 }
  0xfb   :  { %v721_v33 = vadd.f32 %v720_v32, %v719_v29  ;;  %v519_v34 = vadd.f32 %v718_v28, %v690_v25 }
  0xfd   :  { %v522_v35 = vadd.f32 %v721_v33, %v693_v31 }
  0xfe   :  { %v694_v36 = vpop.f32.mrb[4].mxu0 }
  0xff   :  { %v722_v37 = vpop.f32.mrb[4].mxu1  ;;  %v695_v38 = vpop.f32.mrb[5].mxu0 }
 0x100   :  { %v696_v39 = vadd.f32 %v695_v38, %v694_v36  ;;  %v723_v40 = vpop.f32.mrb[5].mxu1  ;;  %v697_v41 = vpop.f32.mrb[6].mxu0 }
 0x101   :  { %v724_v42 = vadd.f32 %v723_v40, %v722_v37  ;;  %v725_v43 = vpop.f32.mrb[6].mxu1  ;;  %v698_v44 = vpop.f32.mrb[7].mxu0 }
 0x102   :  { %v699_v45 = vadd.f32 %v698_v44, %v697_v41  ;;  %v726_v46 = vpop.f32.mrb[7].mxu1 }
 0x103   :  { %v727_v47 = vadd.f32 %v726_v46, %v725_v43  ;;  %v527_v48 = vadd.f32 %v724_v42, %v696_v39 }
 0x105   :  { %v530_v49 = vadd.f32 %v727_v47, %v699_v45 }
 0x116   :  { %v756_v50 = vpop.f32.mrb[8].mxu0 }
 0x117   :  { %v576_v51 = vadd.f32 %v756_v50, %v527_v48  ;;  %v567_v52 = vpop.f32.mrb[9].mxu0 }
 0x118   :  { %v568_v53 = vadd.f32 %v567_v52, %v519_v34  ;;  %v757_v54 = vpop.f32.mrb[10].mxu0 }
 0x119   :  { %584 = vst [vmem:[%s999_s2 + $0x10] sm:$0xff] %v576_v51  ;;  %v579_v55 = vadd.f32 %v757_v54, %v530_v49  ;;  %v570_v56 = vpop.f32.mrb[11].mxu0  ;;  %v597_v61 = vmul.f32 %v576_v51, %v576_v51 }
 0x11a   :  { %582 = vst [vmem:[%s999_s2] sm:$0xff] %v568_v53  ;;  %v571_v57 = vadd.f32 %v570_v56, %v522_v35  ;;  %v595_v58 = vmul.f32 %v568_v53, %v568_v53 }
 0x11b   :  { %585 = vst [vmem:[%s999_s2 + $0x18] sm:$0xff] %v579_v55  ;;  %v598_v0 = vmul.f32 %v579_v55, %v579_v55 }
 0x11c   :  { %583 = vst [vmem:[%s999_s2 + $0x8] sm:$0xff] %v571_v57  ;;  %v586_v59 = vadd.f32 %v571_v57, %v568_v53  ;;  %v596_v60 = vmul.f32 %v571_v57, %v571_v57 }
 0x11e   :  { %v587_v62 = vadd.f32 %v586_v59, %v576_v51  ;;  %v599_v63 = vadd.f32 %v596_v60, %v595_v58 }
 0x120   :  { %v588_v1 = vadd.f32 %v587_v62, %v579_v55  ;;  %v600_v2 = vadd.f32 %v599_v63, %v597_v61 }
 0x122   :  { %v589_v3 = vrot.slane %v588_v1, 4  ;;  %v601_v4 = vadd.f32 %v600_v2, %v598_v0 }
 0x124   :  { %v590_v5 = vadd.f32 %v589_v3, %v588_v1  ;;  %v602_v6 = vrot.slane %v601_v4, 4 }
 0x126   :  { %v591_v7 = vrot.slane %v590_v5, 2  ;;  %v603_v8 = vadd.f32 %v602_v6, %v601_v4 }
 0x128   :  { %v592_v9 = vadd.f32 %v591_v7, %v590_v5  ;;  %v604_v10 = vrot.slane %v603_v8, 2 }
 0x12a   :  { %v593_v11 = vrot.slane %v592_v9, 1  ;;  %v605_v12 = vadd.f32 %v604_v10, %v603_v8 }
 0x12c   :  { %v594_v13 = vadd.f32 %v593_v11, %v592_v9  ;;  %v606_v14 = vrot.slane %v605_v12, 1 }
 0x12e   :  { %v607_v15 = vadd.f32 %v606_v14, %v605_v12  ;;  %608 = vst [vmem:[%s1000_s3] sm:$0xff] %v594_v13 }
 0x130   :  { %609 = vst [vmem:[%s1001_s4] sm:$0xff] %v607_v15 }

// kernel: forward.34
= control target key start
LH: loop header
LB: loop body
LE: loop exit
PB: predicated region body
PF: predicated region fallthrough
CT: control target
= control target key end

     0   :  { %s220_s0 = inlined_call_operand.vmem [shape: f32[128,128], index: 0, kind: input, shape index: {}]   ;;  %s221_s1 = inlined_call_operand.vmem [shape: f32[1,128], index: 1, kind: input, shape index: {}]   ;;  %s222_s2 = inlined_call_operand.vmem [shape: f32[1,128], index: 2, kind: input, shape index: {}]   ;;  %s223_s3 = inlined_call_operand.vmem [shape: f32[128,128], index: 3, kind: output, shape index: {}]  }
   0x1   :  { %v14_v0 = vld [vmem:[%s220_s0] sm:$0xff]  ;;  %v15_v4 = vld [vmem:[%s220_s0 + $0x8] sm:$0xff]  ;;  %v16_v5 = vld [vmem:[%s220_s0 + $0x10] sm:$0xff] }
   0x2   :  { %v96_v1 = vld [vmem:[%s221_s1] ss:$0 sm:$0xff]  ;;  %v17_v6 = vld [vmem:[%s220_s0 + $0x18] sm:$0xff]  ;;  %v19_v11 = vld [vmem:[%s220_s0 + $0x28] sm:$0xff] }
   0x3   :  { %v97_v2 = vld [vmem:[%s222_s2] ss:$0 sm:$0xff]  ;;  %v37_v3 = vmul.f32 %v96_v1, %v14_v0  ;;  %v38_v7 = vmul.f32 %v96_v1, %v15_v4  ;;  %v39_v8 = vmul.f32 %v96_v1, %v16_v5  ;;  %v40_v9 = vmul.f32 %v96_v1, %v17_v6  ;;  %v20_v12 = vld [vmem:[%s220_s0 + $0x30] sm:$0xff]  ;;  %v21_v17 = vld [vmem:[%s220_s0 + $0x38] sm:$0xff] }
   0x4   :  { %v18_v10 = vld [vmem:[%s220_s0 + $0x20] sm:$0xff]  ;;  %v42_v15 = vmul.f32 %v96_v1, %v19_v11  ;;  %v43_v16 = vmul.f32 %v96_v1, %v20_v12  ;;  %v23_v19 = vld [vmem:[%s220_s0 + $0x48] sm:$0xff]  ;;  %v44_v23 = vmul.f32 %v96_v1, %v21_v17  ;;  %v24_v24 = vld [vmem:[%s220_s0 + $0x50] sm:$0xff] }
   0x5   :  { %v60_v13 = vadd.f32 %v97_v2, %v37_v3  ;;  %v41_v14 = vmul.f32 %v96_v1, %v18_v10  ;;  %v22_v18 = vld [vmem:[%s220_s0 + $0x40] sm:$0xff]  ;;  %v61_v20 = vadd.f32 %v97_v2, %v38_v7  ;;  %v62_v21 = vadd.f32 %v97_v2, %v39_v8  ;;  %v25_v25 = vld [vmem:[%s220_s0 + $0x58] sm:$0xff]  ;;  %v27_v31 = vld [vmem:[%s220_s0 + $0x68] sm:$0xff] }
   0x6   :  { %v63_v22 = vadd.f32 %v97_v2, %v40_v9  ;;  %v26_v26 = vld [vmem:[%s220_s0 + $0x60] sm:$0xff]  ;;  %v65_v28 = vadd.f32 %v97_v2, %v42_v15  ;;  %v66_v29 = vadd.f32 %v97_v2, %v43_v16  ;;  %v45_v30 = vmul.f32 %v96_v1, %v22_v18  ;;  %v28_v32 = vld [vmem:[%s220_s0 + $0x70] sm:$0xff]  ;;  %v29_v33 = vld [vmem:[%s220_s0 + $0x78] sm:$0xff] }
   0x7   :  { %76 = vst [vmem:[%s223_s3] sm:$0xff] %v60_v13  ;;  %v64_v27 = vadd.f32 %v97_v2, %v41_v14  ;;  %77 = vst [vmem:[%s223_s3 + $0x8] sm:$0xff] %v61_v20  ;;  %v67_v34 = vadd.f32 %v97_v2, %v44_v23  ;;  %v46_v35 = vmul.f32 %v96_v1, %v23_v19 }
   0x8   :  { %78 = vst [vmem:[%s223_s3 + $0x10] sm:$0xff] %v62_v21  ;;  %79 = vst [vmem:[%s223_s3 + $0x18] sm:$0xff] %v63_v22  ;;  %v47_v36 = vmul.f32 %v96_v1, %v24_v24  ;;  %v48_v37 = vmul.f32 %v96_v1, %v25_v25  ;;  %v68_v38 = vadd.f32 %v97_v2, %v45_v30 }
   0x9   :  { %80 = vst [vmem:[%s223_s3 + $0x20] sm:$0xff] %v64_v27  ;;  %81 = vst [vmem:[%s223_s3 + $0x28] sm:$0xff] %v65_v28  ;;  %v49_v39 = vmul.f32 %v96_v1, %v26_v26  ;;  %v50_v40 = vmul.f32 %v96_v1, %v27_v31  ;;  %v51_v41 = vmul.f32 %v96_v1, %v28_v32 }
   0xa   :  { %82 = vst [vmem:[%s223_s3 + $0x30] sm:$0xff] %v66_v29  ;;  %83 = vst [vmem:[%s223_s3 + $0x38] sm:$0xff] %v67_v34  ;;  %v69_v42 = vadd.f32 %v97_v2, %v46_v35  ;;  %v70_v43 = vadd.f32 %v97_v2, %v47_v36  ;;  %v71_v44 = vadd.f32 %v97_v2, %v48_v37 }
   0xb   :  { %v52_v45 = vmul.f32 %v96_v1, %v29_v33  ;;  %84 = vst [vmem:[%s223_s3 + $0x40] sm:$0xff] %v68_v38  ;;  %v72_v46 = vadd.f32 %v97_v2, %v49_v39  ;;  %v73_v47 = vadd.f32 %v97_v2, %v50_v40  ;;  %v74_v48 = vadd.f32 %v97_v2, %v51_v41 }
   0xc   :  { %85 = vst [vmem:[%s223_s3 + $0x48] sm:$0xff] %v69_v42  ;;  %86 = vst [vmem:[%s223_s3 + $0x50] sm:$0xff] %v70_v43 }
   0xd   :  { %87 = vst [vmem:[%s223_s3 + $0x58] sm:$0xff] %v71_v44  ;;  %v75_v49 = vadd.f32 %v97_v2, %v52_v45  ;;  %88 = vst [vmem:[%s223_s3 + $0x60] sm:$0xff] %v72_v46 }
   0xe   :  { %89 = vst [vmem:[%s223_s3 + $0x68] sm:$0xff] %v73_v47  ;;  %90 = vst [vmem:[%s223_s3 + $0x70] sm:$0xff] %v74_v48 }
   0xf   :  { %91 = vst [vmem:[%s223_s3 + $0x78] sm:$0xff] %v75_v49 }

// kernel: forward.33
= control target key start
LH: loop header
LB: loop body
LE: loop exit
PB: predicated region body
PF: predicated region fallthrough
CT: control target
= control target key end

     0   :  { %s1187_s1 = inlined_call_operand.vmem [shape: bf16[384,128], index: 1, kind: input, shape index: {}]   ;;  %s1188_s0 = inlined_call_operand.vmem [shape: bf16[128,384], index: 0, kind: input, shape index: {}]   ;;  %s1189_s2 = inlined_call_operand.vmem [shape: f32[128,128], index: 2, kind: output, shape index: {0}]   ;;  %s1190_s3 = inlined_call_operand.vmem [shape: f32[1,8,128], index: 3, kind: output, shape index: {1}]   ;;  %s1191_s4 = inlined_call_operand.vmem [shape: f32[1,8,128], index: 4, kind: output, shape index: {2}]  }
   0x1   :  { %v905_v0 = vld [vmem:[%s1187_s1 + $0x40] sm:$0xff]   ;;  %v908_v3 = vld [vmem:[%s1187_s1 + $0x48] sm:$0xff]   ;;  %v911_v6 = vld [vmem:[%s1187_s1 + $0x50] sm:$0xff]  }
   0x2   :  { %v906_v1 = vld [vmem:[%s1187_s1] sm:$0xff]   ;;  %793 = vmatprep.subr.bf16.mxu0 %v905_v0  ;;  %v909_v4 = vld [vmem:[%s1187_s1 + $0x8] sm:$0xff]   ;;  %v912_v7 = vld [vmem:[%s1187_s1 + $0x10] sm:$0xff]  }
   0x3   :  { %v907_v2 = vld [vmem:[%s1187_s1 + $0x80] sm:$0xff]   ;;  %794 = vmatpush3.bf16.msra.mxu0 %v906_v1  ;;  %v910_v5 = vld [vmem:[%s1187_s1 + $0x88] sm:$0xff]   ;;  %v913_v8 = vld [vmem:[%s1187_s1 + $0x90] sm:$0xff]  }
   0x4   :  { %873 = vmatprep.subr.bf16.mxu1 %v907_v2  ;;  %795 = vmatprep.subr.bf16.mxu0 %v908_v3  ;;  %v914_v9 = vld [vmem:[%s1187_s1 + $0x58] sm:$0xff]   ;;  %v917_v12 = vld [vmem:[%s1187_s1 + $0x60] sm:$0xff]   ;;  %v920_v15 = vld [vmem:[%s1187_s1 + $0x68] sm:$0xff]  }
   0x5   :  { %874 = vmatpush3.bf16.msra.mxu1 %v907_v2  ;;  %v915_v10 = vld [vmem:[%s1187_s1 + $0x18] sm:$0xff]   ;;  %v919_v13 = vld [vmem:[%s1187_s1 + $0xa0] sm:$0xff]   ;;  %v922_v16 = vld [vmem:[%s1187_s1 + $0xa8] sm:$0xff]  }
   0x6   :  { %875 = vmatprep.subr.bf16.mxu1 %v910_v5  ;;  %v916_v11 = vld [vmem:[%s1187_s1 + $0x98] sm:$0xff]   ;;  %v918_v14 = vld [vmem:[%s1187_s1 + $0x20] sm:$0xff]   ;;  %v921_v17 = vld [vmem:[%s1187_s1 + $0x28] sm:$0xff]  }
   0x7   :  { %796 = vmatpush3.bf16.msra.mxu0 %v909_v4  ;;  %v923_v18 = vld [vmem:[%s1187_s1 + $0x70] sm:$0xff]   ;;  %v926_v21 = vld [vmem:[%s1187_s1 + $0x78] sm:$0xff]   ;;  %v15_v23 = vld [vmem:[%s1188_s0] sm:$0xff] }
   0x8   :  { %797 = vmatprep.subr.bf16.mxu0 %v911_v6  ;;  %v924_v19 = vld [vmem:[%s1187_s1 + $0x30] sm:$0xff]   ;;  %v928_v22 = vld [vmem:[%s1187_s1 + $0xb8] sm:$0xff]   ;;  %v16_v25 = vld [vmem:[%s1188_s0 + $0x8] sm:$0xf]  ;;  %vm47_vm0 = vcmp.ge.bf16.partialorder %v15_v23, 0  ;;  %v79_v27 = vmul.bf16 0, %v15_v23 }
   0x9   :  { %876 = vmatpush3.bf16.msra.mxu1 %v910_v5  ;;  %v925_v20 = vld [vmem:[%s1187_s1 + $0xb0] sm:$0xff]   ;;  %v927_v26 = vld [vmem:[%s1187_s1 + $0x38] sm:$0xff]   ;;  %vm48_vm2 = vcmp.ge.bf16.partialorder %v16_v25, 0  ;;  %v80_v30 = vmul.bf16 0, %v16_v25  ;;  %v20_v32 = vld [vmem:[%s1188_s0 + $0x20] sm:$0xf] }
   0xa   :  { %877 = vmatprep.subr.bf16.mxu1 %v913_v8  ;;  %v17_v24 = vld [vmem:[%s1188_s0 + $0xc] sm:$0xff]  ;;  %v18_v29 = vld [vmem:[%s1188_s0 + $0x14] sm:$0xf]  ;;  %v111_v33 = vsel %vm47_vm0, %v15_v23, %v79_v27  ;;  %vm52_vm4 = vcmp.ge.bf16.partialorder %v20_v32, 0  ;;  %v84_v36 = vmul.bf16 0, %v20_v32  ;;  %v19_v37 = vld [vmem:[%s1188_s0 + $0x18] sm:$0xff] }
   0xb   :  { %798 = vmatpush3.bf16.msra.mxu0 %v912_v7  ;;  %vm49_vm1 = vcmp.ge.bf16.partialorder %v17_v24, 0  ;;  %v81_v28 = vmul.bf16 0, %v17_v24  ;;  %vm50_vm3 = vcmp.ge.bf16.partialorder %v18_v29, 0  ;;  %v82_v31 = vmul.bf16 0, %v18_v29  ;;  %v22_v35 = vld [vmem:[%s1188_s0 + $0x2c] sm:$0xf] }
   0xc   :  { %799 = vmatprep.subr.bf16.mxu0 %v914_v9  ;;  %v21_v38 = vld [vmem:[%s1188_s0 + $0x24] sm:$0xff]  ;;  %v112_v41 = vsel %vm48_vm2, %v16_v25, %v80_v30  ;;  %v23_v43 = vld [vmem:[%s1188_s0 + $0x30] sm:$0xff]  ;;  %v25_v44 = vld [vmem:[%s1188_s0 + $0x3c] sm:$0xff]  ;;  %vm54_vm5 = vcmp.ge.bf16.partialorder %v22_v35, 0  ;;  %v86_v46 = vmul.bf16 0, %v22_v35  ;;  %v116_v47 = vsel %vm52_vm4, %v20_v32, %v84_v36 }
   0xd   :  { %878 = vmatpush3.bf16.msra.mxu1 %v913_v8  ;;  %v113_v34 = vsel %vm49_vm1, %v17_v24, %v81_v28  ;;  %v114_v42 = vsel %vm50_vm3, %v18_v29, %v82_v31  ;;  %vm51_vm6 = vcmp.ge.bf16.partialorder %v19_v37, 0  ;;  %vm53_vm7 = vcmp.ge.bf16.partialorder %v21_v38, 0  ;;  %v24_v50 = vld [vmem:[%s1188_s0 + $0x38] sm:$0xf]  ;;  %v26_v53 = vld [vmem:[%s1188_s0 + $0x44] sm:$0xf] }
   0xe   :  { %879 = vmatprep.subr.bf16.mxu1 %v916_v11  ;;  %v745_v39 = vcombine.low %v111_v33, %v113_v34  ;;  %v746_v40 = vcombine.high %v111_v33, %v113_v34  ;;  %v747_v45 = vcombine.low %v112_v41, %v114_v42  ;;  %v83_v48 = vmul.bf16 0, %v19_v37  ;;  %v28_v58 = vld [vmem:[%s1188_s0 + $0x50] sm:$0xf]  ;;  %v30_v59 = vld [vmem:[%s1188_s0 + $0x5c] sm:$0xf]  ;;  %v27_v6 = vld [vmem:[%s1188_s0 + $0x48] sm:$0xff] }
   0xf   :  { %800 = vmatpush3.bf16.msra.mxu0 %v915_v10  ;;  %v85_v49 = vmul.bf16 0, %v21_v38  ;;  %v118_v51 = vsel %vm54_vm5, %v22_v35, %v86_v46  ;;  %vm55_vm8 = vcmp.ge.bf16.partialorder %v23_v43, 0  ;;  %vm57_vm9 = vcmp.ge.bf16.partialorder %v25_v44, 0  ;;  %v29_v7 = vld [vmem:[%s1188_s0 + $0x54] sm:$0xff]  ;;  %v32_v8 = vld [vmem:[%s1188_s0 + $0x68] sm:$0xf] }
  0x10   :  { %801 = vmatprep.subr.bf16.mxu0 %v917_v12  ;;  %495 = vmatprep.mubr.bf16.mxu0 %v746_v40  ;;  %v87_v52 = vmul.bf16 0, %v23_v43  ;;  %v750_v54 = vcombine.low %v116_v47, %v118_v51  ;;  %v115_v55 = vsel %vm51_vm6, %v19_v37, %v83_v48  ;;  %v89_v57 = vmul.bf16 0, %v25_v44  ;;  %v34_v12 = vld [vmem:[%s1188_s0 + $0x74] sm:$0xf]  ;;  %v31_v25 = vld [vmem:[%s1188_s0 + $0x60] sm:$0xff]  ;;  %v33_v28 = vld [vmem:[%s1188_s0 + $0x6c] sm:$0xff] }
  0x11   :  { %880 = vmatpush3.bf16.msra.mxu1 %v916_v11  ;;  %889 = vmatprep.mubr.bf16.mxu1 %v747_v45  ;;  %v117_v56 = vsel %vm53_vm7, %v21_v38, %v85_v49  ;;  %vm56_vm10 = vcmp.ge.bf16.partialorder %v24_v50, 0  ;;  %vm58_vm11 = vcmp.ge.bf16.partialorder %v26_v53, 0  ;;  %v88_v61 = vmul.bf16 0, %v24_v50  ;;  %v40_v31 = vld [vmem:[%s1188_s0 + $0x98] sm:$0xf]  ;;  %v37_v51 = vld [vmem:[%s1188_s0 + $0x84] sm:$0xff] }
  0x12   :  { %881 = vmatprep.subr.bf16.mxu1 %v919_v13  ;;  %v749_v60 = vcombine.high %v115_v55, %v117_v56  ;;  %v90_v62 = vmul.bf16 0, %v26_v53  ;;  %v119_v63 = vsel %vm55_vm8, %v23_v43, %v87_v52  ;;  %v121_v0 = vsel %vm57_vm9, %v25_v44, %v89_v57  ;;  %v42_v34 = vld [vmem:[%s1188_s0 + $0xa4] sm:$0xf]  ;;  %v44_v36 = vld [vmem:[%s1188_s0 + $0xb0] sm:$0xf] }
  0x13   :  { %802 = vmatpush3.bf16.msra.mxu0 %v918_v14  ;;  %vm60_vm12 = vcmp.ge.bf16.partialorder %v28_v58, 0  ;;  %vm62_vm13 = vcmp.ge.bf16.partialorder %v30_v59, 0  ;;  %v120_v1 = vsel %vm56_vm10, %v24_v50, %v88_v61  ;;  %v92_v3 = vmul.bf16 0, %v28_v58  ;;  %v36_v14 = vld [vmem:[%s1188_s0 + $0x80] sm:$0xf]  ;;  %v35_v50 = vld [vmem:[%s1188_s0 + $0x78] sm:$0xff] }
  0x14   :  { %803 = vmatprep.subr.bf16.mxu0 %v920_v15  ;;  %v122_v2 = vsel %vm58_vm11, %v26_v53, %v90_v62  ;;  %v94_v4 = vmul.bf16 0, %v30_v59  ;;  %v748_v9 = vcombine.low %v115_v55, %v117_v56  ;;  %vm64_vm14 = vcmp.ge.bf16.partialorder %v32_v8, 0  ;;  %v46_v37 = vld [vmem:[%s1188_s0 + $0xbc] sm:$0xf]  ;;  %v39_v61 = vld [vmem:[%s1188_s0 + $0x90] sm:$0xff] }
  0x15   :  { %882 = vmatpush3.bf16.msra.mxu1 %v919_v13  ;;  %v753_v5 = vcombine.low %v120_v1, %v122_v2  ;;  %v124_v10 = vsel %vm60_vm12, %v28_v58, %v92_v3  ;;  %v752_v13 = vcombine.high %v119_v63, %v121_v0  ;;  %vm59_vm15 = vcmp.ge.bf16.partialorder %v27_v6, 0  ;;  %v41_v62 = vld [vmem:[%s1188_s0 + $0x9c] sm:$0xff] }
  0x16   :  { %883 = vmatprep.subr.bf16.mxu1 %v922_v16  ;;  %v126_v11 = vsel %vm62_vm13, %v30_v59, %v94_v4  ;;  %vm61_vm0 = vcmp.ge.bf16.partialorder %v29_v7, 0  ;;  %vm66_vm1 = vcmp.ge.bf16.partialorder %v34_v12, 0  ;;  %vm68_vm2 = vcmp.ge.bf16.partialorder %v36_v14, 0 }
  0x17   :  { %804 = vmatpush3.bf16.msra.mxu0 %v921_v17  ;;  %v756_v15 = vcombine.low %v124_v10, %v126_v11  ;;  %v93_v17 = vmul.bf16 0, %v29_v7  ;;  %v751_v32 = vcombine.low %v119_v63, %v121_v0  ;;  %vm63_vm4 = vcmp.ge.bf16.partialorder %v31_v25, 0 }
  0x18   :  { %805 = vmatprep.subr.bf16.mxu0 %v923_v18  ;;  %v38_v18 = vld [vmem:[%s1188_s0 + $0x8c] sm:$0xf]  ;;  %v95_v38 = vmul.bf16 0, %v31_v25  ;;  %vm72_vm5 = vcmp.ge.bf16.partialorder %v40_v31, 0  ;;  %vm65_vm6 = vcmp.ge.bf16.partialorder %v33_v28, 0  ;;  %vm74_vm7 = vcmp.ge.bf16.partialorder %v42_v34, 0 }
  0x19   :  { %884 = vmatpush3.bf16.msra.mxu1 %v922_v16  ;;  %v91_v16 = vmul.bf16 0, %v27_v6  ;;  %vm70_vm3 = vcmp.ge.bf16.partialorder %v38_v18, 0  ;;  %v125_v24 = vsel %vm61_vm0, %v29_v7, %v93_v17  ;;  %v102_v27 = vmul.bf16 0, %v38_v18 }
  0x1a   :  { %885 = vmatprep.subr.bf16.mxu1 %v925_v20  ;;  %v104_v41 = vmul.bf16 0, %v40_v31  ;;  %v106_v42 = vmul.bf16 0, %v42_v34  ;;  %vm76_vm8 = vcmp.ge.bf16.partialorder %v44_v36, 0  ;;  %vm78_vm9 = vcmp.ge.bf16.partialorder %v46_v37, 0 }
  0x1b   :  { %806 = vmatpush3.bf16.msra.mxu0 %v924_v19  ;;  %v96_v19 = vmul.bf16 0, %v32_v8  ;;  %v123_v23 = vsel %vm59_vm15, %v27_v6, %v91_v16  ;;  %v134_v33 = vsel %vm70_vm3, %v38_v18, %v102_v27  ;;  %v108_v45 = vmul.bf16 0, %v44_v36  ;;  %v45_v6 = vld [vmem:[%s1188_s0 + $0xb4] sm:$0xff] }
  0x1c   :  { %807 = vmatprep.subr.bf16.mxu0 %v926_v21  ;;  %v755_v35 = vcombine.high %v123_v23, %v125_v24  ;;  %v136_v43 = vsel %vm72_vm5, %v40_v31, %v104_v41  ;;  %v138_v44 = vsel %vm74_vm7, %v42_v34, %v106_v42  ;;  %v110_v46 = vmul.bf16 0, %v46_v37 }
  0x1d   :  { %886 = vmatpush3.bf16.msra.mxu1 %v925_v20  ;;  %v98_v20 = vmul.bf16 0, %v34_v12  ;;  %v128_v21 = vsel %vm64_vm14, %v32_v8, %v96_v19  ;;  %v127_v47 = vsel %vm63_vm4, %v31_v25, %v95_v38  ;;  %v765_v49 = vcombine.low %v136_v43, %v138_v44 }
  0x1e   :  { %887 = vmatprep.subr.bf16.mxu1 %v928_v22  ;;  %v140_v52 = vsel %vm76_vm8, %v44_v36, %v108_v45  ;;  %v142_v53 = vsel %vm78_vm9, %v46_v37, %v110_v46  ;;  %v99_v56 = vmul.bf16 0, %v35_v50  ;;  %v101_v57 = vmul.bf16 0, %v37_v51 }
  0x1f   :  { %808 = vmatpush3.bf16.msra.mxu0 %v927_v26  ;;  %v130_v26 = vsel %vm66_vm1, %v34_v12, %v98_v20  ;;  %v768_v58 = vcombine.low %v140_v52, %v142_v53  ;;  %vm67_vm10 = vcmp.ge.bf16.partialorder %v35_v50, 0  ;;  %vm69_vm11 = vcmp.ge.bf16.partialorder %v37_v51, 0 }
  0x20   :  { %v759_v29 = vcombine.low %v128_v21, %v130_v26  ;;  %v131_v59 = vsel %vm67_vm10, %v35_v50, %v99_v56  ;;  %v103_v1 = vmul.bf16 0, %v39_v61  ;;  %v105_v2 = vmul.bf16 0, %v41_v62 }
  0x21   :  { %888 = vmatpush3.bf16.msra.mxu1 %v928_v22  ;;  %v100_v22 = vmul.bf16 0, %v36_v14  ;;  %vm71_vm12 = vcmp.ge.bf16.partialorder %v39_v61, 0  ;;  %vm73_vm13 = vcmp.ge.bf16.partialorder %v41_v62, 0  ;;  %v109_v10 = vmul.bf16 0, %v45_v6 }
  0x22   :  { %496 = vmatmul.mubr.bf16.vlgmr.msra.gmra.mrb[0].mxu0 %v745_v39  ;;  %v97_v39 = vmul.bf16 0, %v33_v28  ;;  %v135_v3 = vsel %vm71_vm12, %v39_v61, %v103_v1  ;;  %v137_v4 = vsel %vm73_vm13, %v41_v62, %v105_v2  ;;  %vm77_vm15 = vcmp.ge.bf16.partialorder %v45_v6, 0 }
  0x23   :  { %503 = vmatprep.mubr.bf16.mxu0 %v749_v60  ;;  %v132_v30 = vsel %vm68_vm2, %v36_v14, %v100_v22  ;;  %v133_v60 = vsel %vm69_vm11, %v37_v51, %v101_v57  ;;  %v764_v8 = vcombine.high %v135_v3, %v137_v4  ;;  %v141_v12 = vsel %vm77_vm15, %v45_v6, %v109_v10 }
  0x24   :  { %890 = vmatmul.mubr.bf16.vlgmr.msra.gmra.mrb[0].mxu1 %v750_v54  ;;  %v762_v40 = vcombine.low %v132_v30, %v134_v33  ;;  %v129_v48 = vsel %vm65_vm6, %v33_v28, %v97_v39  ;;  %v754_v54 = vcombine.low %v123_v23, %v125_v24  ;;  %v761_v0 = vcombine.high %v131_v59, %v133_v60 }
  0x25   :  { %893 = vmatprep.mubr.bf16.mxu1 %v753_v5  ;;  %v758_v55 = vcombine.high %v127_v47, %v129_v48  ;;  %v757_v63 = vcombine.low %v127_v47, %v129_v48  ;;  %v43_v5 = vld [vmem:[%s1188_s0 + $0xa8] sm:$0xff]  ;;  %v760_v7 = vcombine.low %v131_v59, %v133_v60 }
  0x26   :  { %vm75_vm14 = vcmp.ge.bf16.partialorder %v43_v5, 0 }
  0x2a   :  { %504 = vmatmul.mubr.bf16.gmra.mrb[4].mxu0 %v748_v9  ;;  %v107_v9 = vmul.bf16 0, %v43_v5 }
  0x2b   :  { %511 = vmatprep.mubr.bf16.mxu0 %v752_v13  ;;  %v763_v13 = vcombine.low %v135_v3, %v137_v4 }
  0x2c   :  { %894 = vmatmul.mubr.bf16.gmra.mrb[4].mxu1 %v756_v15  ;;  %v139_v11 = vsel %vm75_vm14, %v43_v5, %v107_v9 }
  0x2d   :  { %897 = vmatprep.mubr.bf16.mxu1 %v759_v29  ;;  %v767_v14 = vcombine.high %v139_v11, %v141_v12  ;;  %v766_v15 = vcombine.low %v139_v11, %v141_v12 }
  0x32   :  { %512 = vmatmul.mubr.bf16.gmra.mrb[8].mxu0 %v751_v32 }
  0x33   :  { %519 = vmatprep.mubr.bf16.mxu0 %v755_v35 }
  0x34   :  { %898 = vmatmul.mubr.bf16.gmra.mrb[8].mxu1 %v762_v40 }
  0x35   :  { %901 = vmatprep.mubr.bf16.mxu1 %v765_v49 }
  0x3a   :  { %520 = vmatmul.mubr.bf16.gmra.mrb[12].mxu0 %v754_v54 }
  0x3b   :  { %527 = vmatprep.mubr.bf16.mxu0 %v758_v55 }
  0x3c   :  { %902 = vmatmul.mubr.bf16.gmra.mrb[12].mxu1 %v768_v58 }
  0x42   :  { %528 = vmatmul.mubr.bf16.gmra.mrb[16].mxu0 %v757_v63 }
  0x43   :  { %535 = vmatprep.mubr.bf16.mxu0 %v761_v0 }
  0x4a   :  { %536 = vmatmul.mubr.bf16.gmra.mrb[20].mxu0 %v760_v7 }
  0x4b   :  { %543 = vmatprep.mubr.bf16.mxu0 %v764_v8 }
  0x52   :  { %544 = vmatmul.mubr.bf16.gmra.mrb[24].mxu0 %v763_v13 }
  0x53   :  { %551 = vmatprep.mubr.bf16.mxu0 %v767_v14 }
  0x5a   :  { %552 = vmatmul.mubr.bf16.gmra.mrb[28].mxu0 %v766_v15 }
  0xf5   :  { %v809_v16 = vpop.f32.mrb[0].mxu0 }
  0xf6   :  { %v810_v17 = vpop.f32.mrb[1].mxu0 }
  0xf7   :  { %v811_v18 = vadd.f32 %v810_v17, %v809_v16  ;;  %v812_v19 = vpop.f32.mrb[2].mxu0  ;;  %v891_v20 = vpop.f32.mrb[0].mxu1 }
  0xf8   :  { %v813_v21 = vpop.f32.mrb[3].mxu0  ;;  %v594_v22 = vpop.f32.mrb[1].mxu1 }
  0xf9   :  { %v814_v23 = vadd.f32 %v813_v21, %v812_v19  ;;  %v595_v24 = vadd.f32 %v811_v18, %v594_v22  ;;  %v892_v25 = vpop.f32.mrb[2].mxu1 }
  0xfa   :  { %v597_v26 = vpop.f32.mrb[3].mxu1 }
  0xfb   :  { %657 = vst [vmem:[%s1189_s2] sm:$0xff] %v595_v24  ;;  %v598_v27 = vadd.f32 %v814_v23, %v597_v26  ;;  %v694_v28 = vmul.f32 %v595_v24, %v595_v24 }
  0xfd   :  { %658 = vst [vmem:[%s1189_s2 + $0x8] sm:$0xff] %v598_v27  ;;  %v673_v29 = vadd.f32 %v598_v27, %v595_v24  ;;  %v695_v30 = vmul.f32 %v598_v27, %v598_v27  ;;  %v815_v31 = vpop.f32.mrb[4].mxu0 }
  0xfe   :  { %v816_v32 = vpop.f32.mrb[5].mxu0 }
  0xff   :  { %v710_v33 = vadd.f32 %v695_v30, %v694_v28  ;;  %v817_v34 = vadd.f32 %v816_v32, %v815_v31  ;;  %v818_v35 = vpop.f32.mrb[6].mxu0  ;;  %v895_v36 = vpop.f32.mrb[4].mxu1 }
 0x100   :  { %v819_v37 = vpop.f32.mrb[7].mxu0  ;;  %v610_v38 = vpop.f32.mrb[5].mxu1 }
 0x101   :  { %v603_v39 = vadd.f32 %v891_v20, %v817_v34  ;;  %v820_v40 = vadd.f32 %v819_v37, %v818_v35  ;;  %v896_v41 = vpop.f32.mrb[6].mxu1 }
 0x102   :  { %v613_v42 = vpop.f32.mrb[7].mxu1 }
 0x103   :  { %659 = vst [vmem:[%s1189_s2 + $0x10] sm:$0xff] %v603_v39  ;;  %v674_v43 = vadd.f32 %v673_v29, %v603_v39  ;;  %v696_v44 = vmul.f32 %v603_v39, %v603_v39  ;;  %v606_v45 = vadd.f32 %v892_v25, %v820_v40 }
 0x105   :  { %v711_v46 = vadd.f32 %v710_v33, %v696_v44  ;;  %660 = vst [vmem:[%s1189_s2 + $0x18] sm:$0xff] %v606_v45  ;;  %v697_v47 = vmul.f32 %v606_v45, %v606_v45  ;;  %v821_v48 = vpop.f32.mrb[8].mxu0  ;;  %v675_v49 = vadd.f32 %v674_v43, %v606_v45 }
 0x106   :  { %v822_v50 = vpop.f32.mrb[9].mxu0 }
 0x107   :  { %v823_v51 = vadd.f32 %v822_v50, %v821_v48  ;;  %v824_v52 = vpop.f32.mrb[10].mxu0  ;;  %v712_v53 = vadd.f32 %v711_v46, %v697_v47  ;;  %v899_v54 = vpop.f32.mrb[8].mxu1 }
 0x108   :  { %v825_v55 = vpop.f32.mrb[11].mxu0  ;;  %v626_v56 = vpop.f32.mrb[9].mxu1 }
 0x109   :  { %v826_v57 = vadd.f32 %v825_v55, %v824_v52  ;;  %v611_v58 = vadd.f32 %v823_v51, %v610_v38  ;;  %v900_v59 = vpop.f32.mrb[10].mxu1 }
 0x10a   :  { %v629_v60 = vpop.f32.mrb[11].mxu1 }
 0x10b   :  { %661 = vst [vmem:[%s1189_s2 + $0x20] sm:$0xff] %v611_v58  ;;  %v676_v61 = vadd.f32 %v675_v49, %v611_v58  ;;  %v698_v62 = vmul.f32 %v611_v58, %v611_v58  ;;  %v614_v63 = vadd.f32 %v826_v57, %v613_v42 }
 0x10d   :  { %v713_v0 = vadd.f32 %v712_v53, %v698_v62  ;;  %662 = vst [vmem:[%s1189_s2 + $0x28] sm:$0xff] %v614_v63  ;;  %v677_v1 = vadd.f32 %v676_v61, %v614_v63  ;;  %v699_v2 = vmul.f32 %v614_v63, %v614_v63  ;;  %v827_v3 = vpop.f32.mrb[12].mxu0 }
 0x10e   :  { %v828_v4 = vpop.f32.mrb[13].mxu0 }
 0x10f   :  { %v714_v5 = vadd.f32 %v713_v0, %v699_v2  ;;  %v829_v6 = vadd.f32 %v828_v4, %v827_v3  ;;  %v830_v7 = vpop.f32.mrb[14].mxu0  ;;  %v1145_v8 = vpop.f32.mrb[12].mxu1 }
 0x110   :  { %v831_v9 = vpop.f32.mrb[15].mxu0  ;;  %v642_v10 = vpop.f32.mrb[13].mxu1 }
 0x111   :  { %v619_v11 = vadd.f32 %v895_v36, %v829_v6  ;;  %v832_v12 = vadd.f32 %v831_v9, %v830_v7  ;;  %v1147_v13 = vpop.f32.mrb[14].mxu1 }
 0x112   :  { %v645_v14 = vpop.f32.mrb[15].mxu1 }
 0x113   :  { %663 = vst [vmem:[%s1189_s2 + $0x30] sm:$0xff] %v619_v11  ;;  %v678_v15 = vadd.f32 %v677_v1, %v619_v11  ;;  %v700_v16 = vmul.f32 %v619_v11, %v619_v11  ;;  %v622_v17 = vadd.f32 %v896_v41, %v832_v12 }
 0x115   :  { %v715_v18 = vadd.f32 %v714_v5, %v700_v16  ;;  %664 = vst [vmem:[%s1189_s2 + $0x38] sm:$0xff] %v622_v17  ;;  %v701_v19 = vmul.f32 %v622_v17, %v622_v17  ;;  %v833_v20 = vpop.f32.mrb[16].mxu0  ;;  %v679_v21 = vadd.f32 %v678_v15, %v622_v17 }
 0x116   :  { %v834_v22 = vpop.f32.mrb[17].mxu0 }
 0x117   :  { %v835_v23 = vadd.f32 %v834_v22, %v833_v20  ;;  %v836_v24 = vpop.f32.mrb[18].mxu0  ;;  %v716_v25 = vadd.f32 %v715_v18, %v701_v19 }
 0x118   :  { %v837_v26 = vpop.f32.mrb[19].mxu0 }
 0x119   :  { %v838_v27 = vadd.f32 %v837_v26, %v836_v24  ;;  %v627_v28 = vadd.f32 %v835_v23, %v626_v56 }
 0x11b   :  { %665 = vst [vmem:[%s1189_s2 + $0x40] sm:$0xff] %v627_v28  ;;  %v680_v29 = vadd.f32 %v679_v21, %v627_v28  ;;  %v702_v30 = vmul.f32 %v627_v28, %v627_v28  ;;  %v630_v31 = vadd.f32 %v838_v27, %v629_v60 }
 0x11d   :  { %v717_v32 = vadd.f32 %v716_v25, %v702_v30  ;;  %666 = vst [vmem:[%s1189_s2 + $0x48] sm:$0xff] %v630_v31  ;;  %v681_v33 = vadd.f32 %v680_v29, %v630_v31  ;;  %v703_v34 = vmul.f32 %v630_v31, %v630_v31  ;;  %v839_v35 = vpop.f32.mrb[20].mxu0 }
 0x11e   :  { %v840_v36 = vpop.f32.mrb[21].mxu0 }
 0x11f   :  { %v718_v37 = vadd.f32 %v717_v32, %v703_v34  ;;  %v841_v38 = vadd.f32 %v840_v36, %v839_v35  ;;  %v842_v39 = vpop.f32.mrb[22].mxu0 }
 0x120   :  { %v843_v40 = vpop.f32.mrb[23].mxu0 }
 0x121   :  { %v635_v41 = vadd.f32 %v899_v54, %v841_v38  ;;  %v844_v42 = vadd.f32 %v843_v40, %v842_v39 }
 0x123   :  { %667 = vst [vmem:[%s1189_s2 + $0x50] sm:$0xff] %v635_v41  ;;  %v682_v43 = vadd.f32 %v681_v33, %v635_v41  ;;  %v704_v44 = vmul.f32 %v635_v41, %v635_v41  ;;  %v638_v45 = vadd.f32 %v900_v59, %v844_v42 }
 0x125   :  { %v719_v46 = vadd.f32 %v718_v37, %v704_v44  ;;  %668 = vst [vmem:[%s1189_s2 + $0x58] sm:$0xff] %v638_v45  ;;  %v705_v47 = vmul.f32 %v638_v45, %v638_v45  ;;  %v845_v48 = vpop.f32.mrb[24].mxu0  ;;  %v683_v49 = vadd.f32 %v682_v43, %v638_v45 }
 0x126   :  { %v846_v50 = vpop.f32.mrb[25].mxu0 }
 0x127   :  { %v847_v51 = vadd.f32 %v846_v50, %v845_v48  ;;  %v848_v52 = vpop.f32.mrb[26].mxu0  ;;  %v720_v53 = vadd.f32 %v719_v46, %v705_v47 }
 0x128   :  { %v849_v54 = vpop.f32.mrb[27].mxu0 }
 0x129   :  { %v850_v55 = vadd.f32 %v849_v54, %v848_v52  ;;  %v643_v56 = vadd.f32 %v847_v51, %v642_v10 }
 0x12b   :  { %669 = vst [vmem:[%s1189_s2 + $0x60] sm:$0xff] %v643_v56  ;;  %v684_v57 = vadd.f32 %v683_v49, %v643_v56  ;;  %v706_v58 = vmul.f32 %v643_v56, %v643_v56  ;;  %v646_v59 = vadd.f32 %v850_v55, %v645_v14 }
 0x12d   :  { %v721_v60 = vadd.f32 %v720_v53, %v706_v58  ;;  %670 = vst [vmem:[%s1189_s2 + $0x68] sm:$0xff] %v646_v59  ;;  %v685_v61 = vadd.f32 %v684_v57, %v646_v59  ;;  %v707_v62 = vmul.f32 %v646_v59, %v646_v59  ;;  %v851_v63 = vpop.f32.mrb[28].mxu0 }
 0x12e   :  { %v852_v0 = vpop.f32.mrb[29].mxu0 }
 0x12f   :  { %v722_v1 = vadd.f32 %v721_v60, %v707_v62  ;;  %v853_v2 = vadd.f32 %v852_v0, %v851_v63  ;;  %v854_v3 = vpop.f32.mrb[30].mxu0 }
 0x130   :  { %v855_v4 = vpop.f32.mrb[31].mxu0 }
 0x131   :  { %v651_v5 = vadd.f32 %v1145_v8, %v853_v2  ;;  %v856_v6 = vadd.f32 %v855_v4, %v854_v3 }
 0x133   :  { %671 = vst [vmem:[%s1189_s2 + $0x70] sm:$0xff] %v651_v5  ;;  %v686_v7 = vadd.f32 %v685_v61, %v651_v5  ;;  %v708_v9 = vmul.f32 %v651_v5, %v651_v5  ;;  %v654_v10 = vadd.f32 %v1147_v13, %v856_v6 }
 0x135   :  { %v723_v11 = vadd.f32 %v722_v1, %v708_v9  ;;  %672 = vst [vmem:[%s1189_s2 + $0x78] sm:$0xff] %v654_v10  ;;  %v687_v12 = vadd.f32 %v686_v7, %v654_v10  ;;  %v709_v14 = vmul.f32 %v654_v10, %v654_v10 }
 0x137   :  { %v688_v15 = vrot.slane %v687_v12, 4  ;;  %v724_v16 = vadd.f32 %v723_v11, %v709_v14 }
 0x139   :  { %v689_v17 = vadd.f32 %v688_v15, %v687_v12  ;;  %v725_v8 = vrot.slane %v724_v16, 4 }
 0x13b   :  { %v690_v18 = vrot.slane %v689_v17, 2  ;;  %v726_v19 = vadd.f32 %v725_v8, %v724_v16 }
 0x13d   :  { %v691_v20 = vadd.f32 %v690_v18, %v689_v17  ;;  %v727_v21 = vrot.slane %v726_v19, 2 }
 0x13f   :  { %v692_v22 = vrot.slane %v691_v20, 1  ;;  %v728_v23 = vadd.f32 %v727_v21, %v726_v19 }
 0x141   :  { %v693_v24 = vadd.f32 %v692_v22, %v691_v20  ;;  %v729_v25 = vrot.slane %v728_v23, 1 }
 0x143   :  { %v730_v13 = vadd.f32 %v729_v25, %v728_v23  ;;  %731 = vst [vmem:[%s1190_s3] sm:$0xff] %v693_v24 }
 0x145   :  { %732 = vst [vmem:[%s1191_s4] sm:$0xff] %v730_v13 }

// kernel: forward.35
= control target key start
LH: loop header
LB: loop body
LE: loop exit
PB: predicated region body
PF: predicated region fallthrough
CT: control target
= control target key end

     0   :  { %v2346_v0 = vmov 0   ;;  %s3082_s1 = inlined_call_operand.vmem [shape: bf16[512,128], index: 1, kind: input, shape index: {}]   ;;  %s3083_s0 = inlined_call_operand.vmem [shape: bf16[512,512], index: 0, kind: input, shape index: {}]   ;;  %s3084_s2 = inlined_call_operand.vmem [shape: f32[512,128], index: 2, kind: output, shape index: {0}]   ;;  %s3085_s3 = inlined_call_operand.vmem [shape: f32[1,8,128], index: 3, kind: output, shape index: {1}]   ;;  %s3086_s4 = inlined_call_operand.vmem [shape: f32[1,8,128], index: 4, kind: output, shape index: {2}]  }
   0x1   :  { %1039 = vmatprep.subr.bf16.mxu1 %v2346_v0  ;;  %1328 = vmatprep.subr.bf16.mxu0 %v2346_v0  ;;  %v2122_v1 = vld [vmem:[%s3082_s1] sm:$0xff]   ;;  %v2124_v3 = vld [vmem:[%s3082_s1 + $0x8] sm:$0xff]   ;;  %v2126_v5 = vld [vmem:[%s3082_s1 + $0x10] sm:$0xff]  }
   0x2   :  { %v2123_v2 = vld [vmem:[%s3082_s1 + $0x80] sm:$0xff]   ;;  %1040 = vmatpush1.bf16.msra.mxu1 %v2122_v1  ;;  %v2125_v4 = vld [vmem:[%s3082_s1 + $0x88] sm:$0xff]   ;;  %v2127_v6 = vld [vmem:[%s3082_s1 + $0x90] sm:$0xff]  }
   0x3   :  { %1329 = vmatpush1.bf16.msra.mxu0 %v2123_v2  ;;  %1041 = vmatprep.subr.bf16.mxu1 %v2346_v0  ;;  %v2128_v7 = vld [vmem:[%s3082_s1 + $0x18] sm:$0xff]   ;;  %v2130_v9 = vld [vmem:[%s3082_s1 + $0x20] sm:$0xff]   ;;  %v2132_v11 = vld [vmem:[%s3082_s1 + $0x28] sm:$0xff]  }
   0x4   :  { %1330 = vmatprep.subr.bf16.mxu0 %v2346_v0  ;;  %v2129_v8 = vld [vmem:[%s3082_s1 + $0x98] sm:$0xff]   ;;  %v2131_v10 = vld [vmem:[%s3082_s1 + $0xa0] sm:$0xff]   ;;  %v2133_v12 = vld [vmem:[%s3082_s1 + $0xa8] sm:$0xff]  }
   0x5   :  { %v2134_v13 = vld [vmem:[%s3082_s1 + $0x30] sm:$0xff]   ;;  %v2136_v15 = vld [vmem:[%s3082_s1 + $0x38] sm:$0xff]   ;;  %v2138_v17 = vld [vmem:[%s3082_s1 + $0x40] sm:$0xff]  }
   0x6   :  { %1042 = vmatpush1.bf16.msra.mxu1 %v2124_v3  ;;  %v2135_v14 = vld [vmem:[%s3082_s1 + $0xb0] sm:$0xff]   ;;  %v2137_v16 = vld [vmem:[%s3082_s1 + $0xb8] sm:$0xff]   ;;  %v2139_v18 = vld [vmem:[%s3082_s1 + $0xc0] sm:$0xff]  }
   0x7   :  { %1331 = vmatpush1.bf16.msra.mxu0 %v2125_v4  ;;  %1043 = vmatprep.subr.bf16.mxu1 %v2346_v0  ;;  %v2156_v19 = vld [vmem:[%s3083_s0 + $0x4] ss:$16 sps:$4 sm:$0xff]   ;;  %v2140_v20 = vld [vmem:[%s3082_s1 + $0x48] sm:$0xff]   ;;  %v2144_v25 = vld [vmem:[%s3082_s1 + $0x58] sm:$0xff]  }
   0x8   :  { %1332 = vmatprep.subr.bf16.mxu0 %v2346_v0  ;;  %v2159_v21 = vld [vmem:[%s3083_s0 + $0xc] ss:$16 sps:$4 sm:$0xff]   ;;  %1071 = vmatprep.mubr.bf16.mxu1 %v2156_v19  ;;  %v2142_v23 = vld [vmem:[%s3082_s1 + $0x50] sm:$0xff]   ;;  %v2146_v27 = vld [vmem:[%s3082_s1 + $0x60] sm:$0xff]  }
   0x9   :  { %v2141_v22 = vld [vmem:[%s3082_s1 + $0xc8] sm:$0xff]   ;;  %1360 = vmatprep.mubr.bf16.mxu0 %v2159_v21  ;;  %v2143_v24 = vld [vmem:[%s3082_s1 + $0xd0] sm:$0xff]   ;;  %v2145_v26 = vld [vmem:[%s3082_s1 + $0xd8] sm:$0xff]  }
   0xa   :  { %1044 = vmatpush1.bf16.msra.mxu1 %v2126_v5  ;;  %v2147_v28 = vld [vmem:[%s3082_s1 + $0xe0] sm:$0xff]   ;;  %v2148_v29 = vld [vmem:[%s3082_s1 + $0x68] sm:$0xff]   ;;  %v2150_v31 = vld [vmem:[%s3082_s1 + $0x70] sm:$0xff]  }
   0xb   :  { %1333 = vmatpush1.bf16.msra.mxu0 %v2127_v6  ;;  %1045 = vmatprep.subr.bf16.mxu1 %v2346_v0  ;;  %v2149_v30 = vld [vmem:[%s3082_s1 + $0xe8] sm:$0xff]   ;;  %v2151_v32 = vld [vmem:[%s3082_s1 + $0xf0] sm:$0xff]   ;;  %v2152_v33 = vld [vmem:[%s3082_s1 + $0x78] sm:$0xff]  }
   0xc   :  { %1334 = vmatprep.subr.bf16.mxu0 %v2346_v0  ;;  %v2153_v34 = vld [vmem:[%s3082_s1 + $0xf8] sm:$0xff]   ;;  %v2154_v35 = vld [vmem:[%s3083_s0] ss:$16 sps:$4 sm:$0xff]   ;;  %v2160_v37 = vld [vmem:[%s3083_s0 + $0x24] ss:$16 sps:$4 sm:$0xff]  }
   0xd   :  { %v2157_v36 = vld [vmem:[%s3083_s0 + $0x8] ss:$16 sps:$4 sm:$0xff]   ;;  %v2162_v38 = vld [vmem:[%s3083_s0 + $0x2c] ss:$16 sps:$4 sm:$0xff]   ;;  %v2164_v39 = vld [vmem:[%s3083_s0 + $0x20] ss:$16 sps:$4 sm:$0xff]  }
   0xe   :  { %1046 = vmatpush1.bf16.msra.mxu1 %v2128_v7  ;;  %v2165_v40 = vld [vmem:[%s3083_s0 + $0x28] ss:$16 sps:$4 sm:$0xff]   ;;  %v2166_v41 = vld [vmem:[%s3083_s0 + $0x44] ss:$16 sps:$4 sm:$0xff]   ;;  %v2168_v42 = vld [vmem:[%s3083_s0 + $0x4c] ss:$16 sps:$4 sm:$0xff]  }
   0xf   :  { %1335 = vmatpush1.bf16.msra.mxu0 %v2129_v8  ;;  %1047 = vmatprep.subr.bf16.mxu1 %v2346_v0  ;;  %v2170_v43 = vld [vmem:[%s3083_s0 + $0x40] ss:$16 sps:$4 sm:$0xff]   ;;  %v2171_v44 = vld [vmem:[%s3083_s0 + $0x48] ss:$16 sps:$4 sm:$0xff]   ;;  %v2172_v45 = vld [vmem:[%s3083_s0 + $0x64] ss:$16 sps:$4 sm:$0xff]  }
  0x10   :  { %1336 = vmatprep.subr.bf16.mxu0 %v2346_v0  ;;  %v2174_v46 = vld [vmem:[%s3083_s0 + $0x6c] ss:$16 sps:$4 sm:$0xff]   ;;  %v2176_v47 = vld [vmem:[%s3083_s0 + $0x60] ss:$16 sps:$4 sm:$0xff]   ;;  %v2177_v48 = vld [vmem:[%s3083_s0 + $0x68] ss:$16 sps:$4 sm:$0xff]  }
  0x11   :  { %v2178_v49 = vld [vmem:[%s3083_s0 + $0x84] ss:$16 sps:$4 sm:$0xff]   ;;  %v2180_v50 = vld [vmem:[%s3083_s0 + $0x8c] ss:$16 sps:$4 sm:$0xff]   ;;  %v2182_v51 = vld [vmem:[%s3083_s0 + $0x80] ss:$16 sps:$4 sm:$0xff]  }
  0x12   :  { %1048 = vmatpush1.bf16.msra.mxu1 %v2130_v9  ;;  %v2183_v52 = vld [vmem:[%s3083_s0 + $0x88] ss:$16 sps:$4 sm:$0xff]   ;;  %v2184_v53 = vld [vmem:[%s3083_s0 + $0xa4] ss:$16 sps:$4 sm:$0xff]   ;;  %v2186_v54 = vld [vmem:[%s3083_s0 + $0xac] ss:$16 sps:$4 sm:$0xff]  }
  0x13   :  { %1337 = vmatpush1.bf16.msra.mxu0 %v2131_v10  ;;  %1049 = vmatprep.subr.bf16.mxu1 %v2346_v0  ;;  %v2188_v55 = vld [vmem:[%s3083_s0 + $0xa0] ss:$16 sps:$4 sm:$0xff]   ;;  %v2189_v56 = vld [vmem:[%s3083_s0 + $0xa8] ss:$16 sps:$4 sm:$0xff]   ;;  %v2190_v57 = vld [vmem:[%s3083_s0 + $0xc4] ss:$16 sps:$4 sm:$0xff]  }
  0x14   :  { %1338 = vmatprep.subr.bf16.mxu0 %v2346_v0  ;;  %v2192_v58 = vld [vmem:[%s3083_s0 + $0xcc] ss:$16 sps:$4 sm:$0xff]   ;;  %v2194_v59 = vld [vmem:[%s3083_s0 + $0xc0] ss:$16 sps:$4 sm:$0xff]   ;;  %v2195_v60 = vld [vmem:[%s3083_s0 + $0xc8] ss:$16 sps:$4 sm:$0xff]  }
  0x15   :  { %v2196_v61 = vld [vmem:[%s3083_s0 + $0xe4] ss:$16 sps:$4 sm:$0xff]   ;;  %v2198_v62 = vld [vmem:[%s3083_s0 + $0xec] ss:$16 sps:$4 sm:$0xff]   ;;  %v2200_v63 = vld [vmem:[%s3083_s0 + $0xe0] ss:$16 sps:$4 sm:$0xff]  }
  0x16   :  { %1050 = vmatpush1.bf16.msra.mxu1 %v2132_v11  ;;  %v2202_v1 = vld [vmem:[%s3083_s0 + $0x104] ss:$16 sps:$4 sm:$0xff]   ;;  %v2204_v2 = vld [vmem:[%s3083_s0 + $0x10c] ss:$16 sps:$4 sm:$0xff]   ;;  %v2206_v3 = vld [vmem:[%s3083_s0 + $0x100] ss:$16 sps:$4 sm:$0xff]  }
  0x17   :  { %1339 = vmatpush1.bf16.msra.mxu0 %v2133_v12  ;;  %1051 = vmatprep.subr.bf16.mxu1 %v2346_v0  ;;  %v2207_v4 = vld [vmem:[%s3083_s0 + $0x108] ss:$16 sps:$4 sm:$0xff]   ;;  %v2208_v5 = vld [vmem:[%s3083_s0 + $0x124] ss:$16 sps:$4 sm:$0xff]   ;;  %v2210_v6 = vld [vmem:[%s3083_s0 + $0x12c] ss:$16 sps:$4 sm:$0xff]  }
  0x18   :  { %1340 = vmatprep.subr.bf16.mxu0 %v2346_v0  ;;  %v2212_v7 = vld [vmem:[%s3083_s0 + $0x120] ss:$16 sps:$4 sm:$0xff]   ;;  %v2213_v8 = vld [vmem:[%s3083_s0 + $0x128] ss:$16 sps:$4 sm:$0xff]   ;;  %v2214_v9 = vld [vmem:[%s3083_s0 + $0x144] ss:$16 sps:$4 sm:$0xff]  }
  0x19   :  { %v2216_v10 = vld [vmem:[%s3083_s0 + $0x14c] ss:$16 sps:$4 sm:$0xff]   ;;  %v2218_v11 = vld [vmem:[%s3083_s0 + $0x140] ss:$16 sps:$4 sm:$0xff]   ;;  %v2219_v12 = vld [vmem:[%s3083_s0 + $0x148] ss:$16 sps:$4 sm:$0xff]  }
  0x1a   :  { %1052 = vmatpush1.bf16.msra.mxu1 %v2134_v13  ;;  %v2220_v13 = vld [vmem:[%s3083_s0 + $0x164] ss:$16 sps:$4 sm:$0xff]   ;;  %v2230_v19 = vld [vmem:[%s3083_s0 + $0x180] ss:$16 sps:$4 sm:$0xff]  }
  0x1b   :  { %1341 = vmatpush1.bf16.msra.mxu0 %v2135_v14  ;;  %1053 = vmatprep.subr.bf16.mxu1 %v2346_v0  ;;  %v2222_v14 = vld [vmem:[%s3083_s0 + $0x16c] ss:$16 sps:$4 sm:$0xff]   ;;  %v2232_v21 = vld [vmem:[%s3083_s0 + $0x1a4] ss:$16 sps:$4 sm:$0xff]  }
  0x1c   :  { %1342 = vmatprep.subr.bf16.mxu0 %v2346_v0 }
  0x1e   :  { %1054 = vmatpush1.bf16.msra.mxu1 %v2136_v15  ;;  %v2224_v15 = vld [vmem:[%s3083_s0 + $0x160] ss:$16 sps:$4 sm:$0xff]  }
  0x1f   :  { %1343 = vmatpush1.bf16.msra.mxu0 %v2137_v16  ;;  %1055 = vmatprep.subr.bf16.mxu1 %v2346_v0  ;;  %v2225_v16 = vld [vmem:[%s3083_s0 + $0x168] ss:$16 sps:$4 sm:$0xff]  }
  0x20   :  { %1344 = vmatprep.subr.bf16.mxu0 %v2346_v0 }
  0x22   :  { %1056 = vmatpush1.bf16.msra.mxu1 %v2138_v17  ;;  %v2226_v17 = vld [vmem:[%s3083_s0 + $0x184] ss:$16 sps:$4 sm:$0xff]  }
  0x23   :  { %1345 = vmatpush1.bf16.msra.mxu0 %v2139_v18  ;;  %1057 = vmatprep.subr.bf16.mxu1 %v2346_v0  ;;  %v2228_v18 = vld [vmem:[%s3083_s0 + $0x18c] ss:$16 sps:$4 sm:$0xff]  }
  0x24   :  { %1346 = vmatprep.subr.bf16.mxu0 %v2346_v0 }
  0x26   :  { %1058 = vmatpush1.bf16.msra.mxu1 %v2140_v20  ;;  %v2231_v20 = vld [vmem:[%s3083_s0 + $0x188] ss:$16 sps:$4 sm:$0xff]  }
  0x27   :  { %1347 = vmatpush1.bf16.msra.mxu0 %v2141_v22  ;;  %1059 = vmatprep.subr.bf16.mxu1 %v2346_v0  ;;  %v2234_v22 = vld [vmem:[%s3083_s0 + $0x1ac] ss:$16 sps:$4 sm:$0xff]  }
  0x28   :  { %1348 = vmatprep.subr.bf16.mxu0 %v2346_v0 }
  0x2a   :  { %1060 = vmatpush1.bf16.msra.mxu1 %v2142_v23  ;;  %v2236_v23 = vld [vmem:[%s3083_s0 + $0x1a0] ss:$16 sps:$4 sm:$0xff]  }
  0x2b   :  { %1349 = vmatpush1.bf16.msra.mxu0 %v2143_v24  ;;  %1061 = vmatprep.subr.bf16.mxu1 %v2346_v0  ;;  %v2237_v24 = vld [vmem:[%s3083_s0 + $0x1a8] ss:$16 sps:$4 sm:$0xff]  }
  0x2c   :  { %1350 = vmatprep.subr.bf16.mxu0 %v2346_v0 }
  0x2e   :  { %1062 = vmatpush1.bf16.msra.mxu1 %v2144_v25  ;;  %v2238_v25 = vld [vmem:[%s3083_s0 + $0x1c4] ss:$16 sps:$4 sm:$0xff]  }
  0x2f   :  { %1351 = vmatpush1.bf16.msra.mxu0 %v2145_v26  ;;  %1063 = vmatprep.subr.bf16.mxu1 %v2346_v0  ;;  %v2240_v26 = vld [vmem:[%s3083_s0 + $0x1cc] ss:$16 sps:$4 sm:$0xff]  }
  0x30   :  { %1352 = vmatprep.subr.bf16.mxu0 %v2346_v0 }
  0x32   :  { %1064 = vmatpush1.bf16.msra.mxu1 %v2146_v27  ;;  %v2242_v27 = vld [vmem:[%s3083_s0 + $0x1c0] ss:$16 sps:$4 sm:$0xff]  }
  0x33   :  { %1353 = vmatpush1.bf16.msra.mxu0 %v2147_v28  ;;  %1065 = vmatprep.subr.bf16.mxu1 %v2346_v0  ;;  %v2243_v28 = vld [vmem:[%s3083_s0 + $0x1c8] ss:$16 sps:$4 sm:$0xff]  }
  0x34   :  { %1354 = vmatprep.subr.bf16.mxu0 %v2346_v0 }
  0x36   :  { %1066 = vmatpush1.bf16.msra.mxu1 %v2148_v29  ;;  %v2244_v29 = vld [vmem:[%s3083_s0 + $0x1e4] ss:$16 sps:$4 sm:$0xff]  }
  0x37   :  { %1355 = vmatpush1.bf16.msra.mxu0 %v2149_v30  ;;  %1067 = vmatprep.subr.bf16.mxu1 %v2346_v0  ;;  %v2246_v30 = vld [vmem:[%s3083_s0 + $0x1ec] ss:$16 sps:$4 sm:$0xff]  }
  0x38   :  { %1356 = vmatprep.subr.bf16.mxu0 %v2346_v0 }
  0x3a   :  { %1068 = vmatpush1.bf16.msra.mxu1 %v2150_v31  ;;  %v2248_v31 = vld [vmem:[%s3083_s0 + $0x1e0] ss:$16 sps:$4 sm:$0xff]  }
  0x3b   :  { %1357 = vmatpush1.bf16.msra.mxu0 %v2151_v32  ;;  %1069 = vmatprep.subr.bf16.mxu1 %v2346_v0  ;;  %v2249_v32 = vld [vmem:[%s3083_s0 + $0x1e8] ss:$16 sps:$4 sm:$0xff]  }
  0x3c   :  { %1358 = vmatprep.subr.bf16.mxu0 %v2346_v0  ;;  %v2201_v0 = vld [vmem:[%s3083_s0 + $0xe8] ss:$16 sps:$4 sm:$0xff]  }
  0x3e   :  { %1070 = vmatpush1.bf16.msra.mxu1 %v2152_v33  ;;  %v2250_v33 = vld [vmem:[%s3083_s0 + $0x204] ss:$16 sps:$4 sm:$0xff]  }
  0x3f   :  { %1359 = vmatpush1.bf16.msra.mxu0 %v2153_v34  ;;  %v2252_v34 = vld [vmem:[%s3083_s0 + $0x20c] ss:$16 sps:$4 sm:$0xff]  }
  0x41   :  { %1072 = vmatmul.mubr.bf16.vlgmr.msra.gmra.mrb[0].mxu1 %v2154_v35  ;;  %v2254_v35 = vld [vmem:[%s3083_s0 + $0x200] ss:$16 sps:$4 sm:$0xff]  }
  0x42   :  { %1361 = vmatmul.mubr.bf16.vlgmr.msra.gmra.mrb[0].mxu0 %v2157_v36  ;;  %1079 = vmatprep.mubr.bf16.mxu1 %v2160_v37  ;;  %v2255_v36 = vld [vmem:[%s3083_s0 + $0x208] ss:$16 sps:$4 sm:$0xff]   ;;  %v2256_v37 = vld [vmem:[%s3083_s0 + $0x224] ss:$16 sps:$4 sm:$0xff]  }
  0x43   :  { %1368 = vmatprep.mubr.bf16.mxu0 %v2162_v38  ;;  %v2258_v38 = vld [vmem:[%s3083_s0 + $0x22c] ss:$16 sps:$4 sm:$0xff]  }
  0x49   :  { %1080 = vmatmul.mubr.bf16.gmra.mrb[4].mxu1 %v2164_v39  ;;  %v2260_v39 = vld [vmem:[%s3083_s0 + $0x220] ss:$16 sps:$4 sm:$0xff]  }
  0x4a   :  { %1369 = vmatmul.mubr.bf16.gmra.mrb[4].mxu0 %v2165_v40  ;;  %1087 = vmatprep.mubr.bf16.mxu1 %v2166_v41  ;;  %v2261_v40 = vld [vmem:[%s3083_s0 + $0x228] ss:$16 sps:$4 sm:$0xff]   ;;  %v2262_v41 = vld [vmem:[%s3083_s0 + $0x244] ss:$16 sps:$4 sm:$0xff]  }
  0x4b   :  { %1376 = vmatprep.mubr.bf16.mxu0 %v2168_v42  ;;  %v2264_v42 = vld [vmem:[%s3083_s0 + $0x24c] ss:$16 sps:$4 sm:$0xff]  }
  0x51   :  { %1088 = vmatmul.mubr.bf16.gmra.mrb[8].mxu1 %v2170_v43  ;;  %v2266_v43 = vld [vmem:[%s3083_s0 + $0x240] ss:$16 sps:$4 sm:$0xff]  }
  0x52   :  { %1377 = vmatmul.mubr.bf16.gmra.mrb[8].mxu0 %v2171_v44  ;;  %1095 = vmatprep.mubr.bf16.mxu1 %v2172_v45  ;;  %v2267_v44 = vld [vmem:[%s3083_s0 + $0x248] ss:$16 sps:$4 sm:$0xff]   ;;  %v2268_v45 = vld [vmem:[%s3083_s0 + $0x264] ss:$16 sps:$4 sm:$0xff]  }
  0x53   :  { %1384 = vmatprep.mubr.bf16.mxu0 %v2174_v46  ;;  %v2270_v46 = vld [vmem:[%s3083_s0 + $0x26c] ss:$16 sps:$4 sm:$0xff]  }
  0x59   :  { %1096 = vmatmul.mubr.bf16.gmra.mrb[12].mxu1 %v2176_v47  ;;  %v2272_v47 = vld [vmem:[%s3083_s0 + $0x260] ss:$16 sps:$4 sm:$0xff]  }
  0x5a   :  { %1385 = vmatmul.mubr.bf16.gmra.mrb[12].mxu0 %v2177_v48  ;;  %1103 = vmatprep.mubr.bf16.mxu1 %v2178_v49  ;;  %v2273_v48 = vld [vmem:[%s3083_s0 + $0x268] ss:$16 sps:$4 sm:$0xff]   ;;  %v2274_v49 = vld [vmem:[%s3083_s0 + $0x284] ss:$16 sps:$4 sm:$0xff]  }
  0x5b   :  { %1392 = vmatprep.mubr.bf16.mxu0 %v2180_v50  ;;  %v2276_v50 = vld [vmem:[%s3083_s0 + $0x28c] ss:$16 sps:$4 sm:$0xff]  }
  0x61   :  { %1104 = vmatmul.mubr.bf16.gmra.mrb[16].mxu1 %v2182_v51  ;;  %v2278_v51 = vld [vmem:[%s3083_s0 + $0x280] ss:$16 sps:$4 sm:$0xff]  }
  0x62   :  { %1393 = vmatmul.mubr.bf16.gmra.mrb[16].mxu0 %v2183_v52  ;;  %1111 = vmatprep.mubr.bf16.mxu1 %v2184_v53  ;;  %v2279_v52 = vld [vmem:[%s3083_s0 + $0x288] ss:$16 sps:$4 sm:$0xff]   ;;  %v2280_v53 = vld [vmem:[%s3083_s0 + $0x2a4] ss:$16 sps:$4 sm:$0xff]  }
  0x63   :  { %1400 = vmatprep.mubr.bf16.mxu0 %v2186_v54  ;;  %v2282_v54 = vld [vmem:[%s3083_s0 + $0x2ac] ss:$16 sps:$4 sm:$0xff]  }
  0x69   :  { %1112 = vmatmul.mubr.bf16.gmra.mrb[20].mxu1 %v2188_v55  ;;  %v2284_v55 = vld [vmem:[%s3083_s0 + $0x2a0] ss:$16 sps:$4 sm:$0xff]  }
  0x6a   :  { %1401 = vmatmul.mubr.bf16.gmra.mrb[20].mxu0 %v2189_v56  ;;  %1119 = vmatprep.mubr.bf16.mxu1 %v2190_v57  ;;  %v2285_v56 = vld [vmem:[%s3083_s0 + $0x2a8] ss:$16 sps:$4 sm:$0xff]   ;;  %v2286_v57 = vld [vmem:[%s3083_s0 + $0x2c4] ss:$16 sps:$4 sm:$0xff]  }
  0x6b   :  { %1408 = vmatprep.mubr.bf16.mxu0 %v2192_v58  ;;  %v2288_v58 = vld [vmem:[%s3083_s0 + $0x2cc] ss:$16 sps:$4 sm:$0xff]  }
  0x71   :  { %1120 = vmatmul.mubr.bf16.gmra.mrb[24].mxu1 %v2194_v59  ;;  %v2290_v59 = vld [vmem:[%s3083_s0 + $0x2c0] ss:$16 sps:$4 sm:$0xff]  }
  0x72   :  { %1409 = vmatmul.mubr.bf16.gmra.mrb[24].mxu0 %v2195_v60  ;;  %1127 = vmatprep.mubr.bf16.mxu1 %v2196_v61  ;;  %v2291_v60 = vld [vmem:[%s3083_s0 + $0x2c8] ss:$16 sps:$4 sm:$0xff]   ;;  %v2292_v61 = vld [vmem:[%s3083_s0 + $0x2e4] ss:$16 sps:$4 sm:$0xff]  }
  0x73   :  { %1416 = vmatprep.mubr.bf16.mxu0 %v2198_v62  ;;  %v2294_v62 = vld [vmem:[%s3083_s0 + $0x2ec] ss:$16 sps:$4 sm:$0xff]  }
  0x79   :  { %1128 = vmatmul.mubr.bf16.gmra.mrb[28].mxu1 %v2200_v63  ;;  %v2296_v63 = vld [vmem:[%s3083_s0 + $0x2e0] ss:$16 sps:$4 sm:$0xff]  }
  0x7a   :  { %1417 = vmatmul.mubr.bf16.gmra.mrb[28].mxu0 %v2201_v0  ;;  %1135 = vmatprep.mubr.bf16.mxu1 %v2202_v1  ;;  %v2297_v0 = vld [vmem:[%s3083_s0 + $0x2e8] ss:$16 sps:$4 sm:$0xff]   ;;  %v2298_v1 = vld [vmem:[%s3083_s0 + $0x304] ss:$16 sps:$4 sm:$0xff]  }
  0x7b   :  { %1424 = vmatprep.mubr.bf16.mxu0 %v2204_v2  ;;  %v2300_v2 = vld [vmem:[%s3083_s0 + $0x30c] ss:$16 sps:$4 sm:$0xff]  }
  0x81   :  { %1136 = vmatmul.mubr.bf16.gmra.mrb[32].mxu1 %v2206_v3  ;;  %v2302_v3 = vld [vmem:[%s3083_s0 + $0x300] ss:$16 sps:$4 sm:$0xff]  }
  0x82   :  { %1425 = vmatmul.mubr.bf16.gmra.mrb[32].mxu0 %v2207_v4  ;;  %1143 = vmatprep.mubr.bf16.mxu1 %v2208_v5  ;;  %v2303_v4 = vld [vmem:[%s3083_s0 + $0x308] ss:$16 sps:$4 sm:$0xff]   ;;  %v2304_v5 = vld [vmem:[%s3083_s0 + $0x324] ss:$16 sps:$4 sm:$0xff]  }
  0x83   :  { %1432 = vmatprep.mubr.bf16.mxu0 %v2210_v6  ;;  %v2306_v6 = vld [vmem:[%s3083_s0 + $0x32c] ss:$16 sps:$4 sm:$0xff]  }
  0x89   :  { %1144 = vmatmul.mubr.bf16.gmra.mrb[36].mxu1 %v2212_v7  ;;  %v2308_v7 = vld [vmem:[%s3083_s0 + $0x320] ss:$16 sps:$4 sm:$0xff]  }
  0x8a   :  { %1433 = vmatmul.mubr.bf16.gmra.mrb[36].mxu0 %v2213_v8  ;;  %1151 = vmatprep.mubr.bf16.mxu1 %v2214_v9  ;;  %v2309_v8 = vld [vmem:[%s3083_s0 + $0x328] ss:$16 sps:$4 sm:$0xff]   ;;  %v2310_v9 = vld [vmem:[%s3083_s0 + $0x344] ss:$16 sps:$4 sm:$0xff]  }
  0x8b   :  { %1440 = vmatprep.mubr.bf16.mxu0 %v2216_v10  ;;  %v2312_v10 = vld [vmem:[%s3083_s0 + $0x34c] ss:$16 sps:$4 sm:$0xff]  }
  0x91   :  { %1152 = vmatmul.mubr.bf16.gmra.mrb[40].mxu1 %v2218_v11  ;;  %v2314_v11 = vld [vmem:[%s3083_s0 + $0x340] ss:$16 sps:$4 sm:$0xff]  }
  0x92   :  { %1441 = vmatmul.mubr.bf16.gmra.mrb[40].mxu0 %v2219_v12  ;;  %1159 = vmatprep.mubr.bf16.mxu1 %v2220_v13  ;;  %v2315_v12 = vld [vmem:[%s3083_s0 + $0x348] ss:$16 sps:$4 sm:$0xff]   ;;  %v2316_v13 = vld [vmem:[%s3083_s0 + $0x364] ss:$16 sps:$4 sm:$0xff]  }
  0x93   :  { %1448 = vmatprep.mubr.bf16.mxu0 %v2222_v14  ;;  %v2318_v14 = vld [vmem:[%s3083_s0 + $0x36c] ss:$16 sps:$4 sm:$0xff]  }
  0x99   :  { %1160 = vmatmul.mubr.bf16.gmra.mrb[44].mxu1 %v2224_v15 }
  0x9a   :  { %1449 = vmatmul.mubr.bf16.gmra.mrb[44].mxu0 %v2225_v16  ;;  %1167 = vmatprep.mubr.bf16.mxu1 %v2226_v17 }
  0x9b   :  { %1456 = vmatprep.mubr.bf16.mxu0 %v2228_v18  ;;  %v2320_v18 = vld [vmem:[%s3083_s0 + $0x360] ss:$16 sps:$4 sm:$0xff]  }
  0xa1   :  { %1168 = vmatmul.mubr.bf16.gmra.mrb[48].mxu1 %v2230_v19 }
  0xa2   :  { %1457 = vmatmul.mubr.bf16.gmra.mrb[48].mxu0 %v2231_v20  ;;  %1175 = vmatprep.mubr.bf16.mxu1 %v2232_v21 }
  0xa3   :  { %1464 = vmatprep.mubr.bf16.mxu0 %v2234_v22  ;;  %v2321_v22 = vld [vmem:[%s3083_s0 + $0x368] ss:$16 sps:$4 sm:$0xff]  }
  0xa9   :  { %1176 = vmatmul.mubr.bf16.gmra.mrb[52].mxu1 %v2236_v23  ;;  %v2322_v23 = vld [vmem:[%s3083_s0 + $0x384] ss:$16 sps:$4 sm:$0xff]  }
  0xaa   :  { %1465 = vmatmul.mubr.bf16.gmra.mrb[52].mxu0 %v2237_v24  ;;  %1183 = vmatprep.mubr.bf16.mxu1 %v2238_v25 }
  0xab   :  { %1472 = vmatprep.mubr.bf16.mxu0 %v2240_v26  ;;  %v2324_v26 = vld [vmem:[%s3083_s0 + $0x38c] ss:$16 sps:$4 sm:$0xff]  }
  0xb1   :  { %1184 = vmatmul.mubr.bf16.gmra.mrb[56].mxu1 %v2242_v27 }
  0xb2   :  { %1473 = vmatmul.mubr.bf16.gmra.mrb[56].mxu0 %v2243_v28  ;;  %1191 = vmatprep.mubr.bf16.mxu1 %v2244_v29 }
  0xb3   :  { %1480 = vmatprep.mubr.bf16.mxu0 %v2246_v30 }
  0xb9   :  { %1192 = vmatmul.mubr.bf16.gmra.mrb[60].mxu1 %v2248_v31 }
  0xba   :  { %1481 = vmatmul.mubr.bf16.gmra.mrb[60].mxu0 %v2249_v32  ;;  %1199 = vmatprep.mubr.bf16.mxu1 %v2250_v33 }
  0xbb   :  { %1488 = vmatprep.mubr.bf16.mxu0 %v2252_v34 }
  0xc1   :  { %1200 = vmatmul.mubr.bf16.gmra.mrb[64].mxu1 %v2254_v35 }
  0xc2   :  { %1489 = vmatmul.mubr.bf16.gmra.mrb[64].mxu0 %v2255_v36  ;;  %1207 = vmatprep.mubr.bf16.mxu1 %v2256_v37  ;;  %v2326_v36 = vld [vmem:[%s3083_s0 + $0x380] ss:$16 sps:$4 sm:$0xff]  }
  0xc3   :  { %1496 = vmatprep.mubr.bf16.mxu0 %v2258_v38 }
  0xc9   :  { %1208 = vmatmul.mubr.bf16.gmra.mrb[68].mxu1 %v2260_v39 }
  0xca   :  { %1497 = vmatmul.mubr.bf16.gmra.mrb[68].mxu0 %v2261_v40  ;;  %1215 = vmatprep.mubr.bf16.mxu1 %v2262_v41  ;;  %v2327_v40 = vld [vmem:[%s3083_s0 + $0x388] ss:$16 sps:$4 sm:$0xff]   ;;  %v2328_v41 = vld [vmem:[%s3083_s0 + $0x3a4] ss:$16 sps:$4 sm:$0xff]  }
  0xcb   :  { %1504 = vmatprep.mubr.bf16.mxu0 %v2264_v42 }
  0xd1   :  { %1216 = vmatmul.mubr.bf16.gmra.mrb[72].mxu1 %v2266_v43 }
  0xd2   :  { %1505 = vmatmul.mubr.bf16.gmra.mrb[72].mxu0 %v2267_v44  ;;  %1223 = vmatprep.mubr.bf16.mxu1 %v2268_v45  ;;  %v2330_v44 = vld [vmem:[%s3083_s0 + $0x3ac] ss:$16 sps:$4 sm:$0xff]  }
  0xd3   :  { %1512 = vmatprep.mubr.bf16.mxu0 %v2270_v46 }
  0xd9   :  { %1224 = vmatmul.mubr.bf16.gmra.mrb[76].mxu1 %v2272_v47 }
  0xda   :  { %1513 = vmatmul.mubr.bf16.gmra.mrb[76].mxu0 %v2273_v48  ;;  %1231 = vmatprep.mubr.bf16.mxu1 %v2274_v49 }
  0xdb   :  { %1520 = vmatprep.mubr.bf16.mxu0 %v2276_v50 }
  0xe1   :  { %1232 = vmatmul.mubr.bf16.gmra.mrb[80].mxu1 %v2278_v51 }
  0xe2   :  { %1521 = vmatmul.mubr.bf16.gmra.mrb[80].mxu0 %v2279_v52  ;;  %1239 = vmatprep.mubr.bf16.mxu1 %v2280_v53 }
  0xe3   :  { %1528 = vmatprep.mubr.bf16.mxu0 %v2282_v54 }
  0xe9   :  { %1240 = vmatmul.mubr.bf16.gmra.mrb[84].mxu1 %v2284_v55 }
  0xea   :  { %1529 = vmatmul.mubr.bf16.gmra.mrb[84].mxu0 %v2285_v56  ;;  %1247 = vmatprep.mubr.bf16.mxu1 %v2286_v57  ;;  %v2332_v56 = vld [vmem:[%s3083_s0 + $0x3a0] ss:$16 sps:$4 sm:$0xff]  }
  0xeb   :  { %1536 = vmatprep.mubr.bf16.mxu0 %v2288_v58 }
  0xf1   :  { %1248 = vmatmul.mubr.bf16.gmra.mrb[88].mxu1 %v2290_v59 }
  0xf2   :  { %1537 = vmatmul.mubr.bf16.gmra.mrb[88].mxu0 %v2291_v60  ;;  %1255 = vmatprep.mubr.bf16.mxu1 %v2292_v61  ;;  %v2333_v60 = vld [vmem:[%s3083_s0 + $0x3a8] ss:$16 sps:$4 sm:$0xff]   ;;  %v2334_v61 = vld [vmem:[%s3083_s0 + $0x3c4] ss:$16 sps:$4 sm:$0xff]  }
  0xf3   :  { %1544 = vmatprep.mubr.bf16.mxu0 %v2294_v62 }
  0xf9   :  { %1256 = vmatmul.mubr.bf16.gmra.mrb[92].mxu1 %v2296_v63 }
  0xfa   :  { %1545 = vmatmul.mubr.bf16.gmra.mrb[92].mxu0 %v2297_v0  ;;  %1263 = vmatprep.mubr.bf16.mxu1 %v2298_v1  ;;  %v2336_v0 = vld [vmem:[%s3083_s0 + $0x3cc] ss:$16 sps:$4 sm:$0xff]  }
  0xfb   :  { %1552 = vmatprep.mubr.bf16.mxu0 %v2300_v2 }
 0x101   :  { %1264 = vmatmul.mubr.bf16.gmra.mrb[96].mxu1 %v2302_v3 }
 0x102   :  { %1553 = vmatmul.mubr.bf16.gmra.mrb[96].mxu0 %v2303_v4  ;;  %1271 = vmatprep.mubr.bf16.mxu1 %v2304_v5 }
 0x103   :  { %1560 = vmatprep.mubr.bf16.mxu0 %v2306_v6 }
 0x109   :  { %1272 = vmatmul.mubr.bf16.gmra.mrb[100].mxu1 %v2308_v7 }
 0x10a   :  { %1561 = vmatmul.mubr.bf16.gmra.mrb[100].mxu0 %v2309_v8  ;;  %1279 = vmatprep.mubr.bf16.mxu1 %v2310_v9 }
 0x10b   :  { %1568 = vmatprep.mubr.bf16.mxu0 %v2312_v10 }
 0x111   :  { %1280 = vmatmul.mubr.bf16.gmra.mrb[104].mxu1 %v2314_v11 }
 0x112   :  { %1569 = vmatmul.mubr.bf16.gmra.mrb[104].mxu0 %v2315_v12  ;;  %1287 = vmatprep.mubr.bf16.mxu1 %v2316_v13  ;;  %v2338_v12 = vld [vmem:[%s3083_s0 + $0x3c0] ss:$16 sps:$4 sm:$0xff]  }
 0x113   :  { %1576 = vmatprep.mubr.bf16.mxu0 %v2318_v14 }
 0x114   :  { %v1073_v15 = vpop.f32.mrb[0].mxu1 }
 0x115   :  { %v1362_v16 = vpop.f32.mrb[0].mxu0  ;;  %v1075_v17 = vpop.f32.mrb[1].mxu1 }
 0x116   :  { %v1363_v19 = vadd.f32 %v1362_v16, %v1073_v15  ;;  %v1364_v20 = vpop.f32.mrb[1].mxu0  ;;  %v1076_v21 = vpop.f32.mrb[2].mxu1  ;;  %v2339_v16 = vld [vmem:[%s3083_s0 + $0x3c8] ss:$16 sps:$4 sm:$0xff]   ;;  %v2340_v17 = vld [vmem:[%s3083_s0 + $0x3e4] ss:$16 sps:$4 sm:$0xff]  }
 0x117   :  { %v1365_v24 = vpop.f32.mrb[2].mxu0  ;;  %v1078_v25 = vpop.f32.mrb[3].mxu1  ;;  %v2342_v20 = vld [vmem:[%s3083_s0 + $0x3ec] ss:$16 sps:$4 sm:$0xff]  }
 0x118   :  { %1617 = vst [vmem:[%s3084_s2] sm:$0xff] %v1363_v19  ;;  %v1366_v27 = vadd.f32 %v1365_v24, %v1076_v21  ;;  %v1367_v28 = vpop.f32.mrb[3].mxu0  ;;  %v1750_v29 = vmul.f32 %v1363_v19, %v1363_v19 }
 0x119   :  { %1288 = vmatmul.mubr.bf16.gmra.mrb[108].mxu1 %v2320_v18 }
 0x11a   :  { %1618 = vst [vmem:[%s3084_s2 + $0x8] sm:$0xff] %v1366_v27  ;;  %v1681_v30 = vadd.f32 %v1366_v27, %v1363_v19  ;;  %v1751_v31 = vmul.f32 %v1366_v27, %v1366_v27  ;;  %1577 = vmatmul.mubr.bf16.gmra.mrb[108].mxu0 %v2321_v22  ;;  %1295 = vmatprep.mubr.bf16.mxu1 %v2322_v23 }
 0x11b   :  { %1584 = vmatprep.mubr.bf16.mxu0 %v2324_v26 }
 0x11c   :  { %v1814_v32 = vadd.f32 %v1751_v31, %v1750_v29  ;;  %v1081_v33 = vpop.f32.mrb[4].mxu1 }
 0x11d   :  { %v1370_v34 = vpop.f32.mrb[4].mxu0  ;;  %v1083_v35 = vpop.f32.mrb[5].mxu1 }
 0x11e   :  { %v1371_v37 = vadd.f32 %v1370_v34, %v1081_v33  ;;  %v1372_v38 = vpop.f32.mrb[5].mxu0  ;;  %v1084_v39 = vpop.f32.mrb[6].mxu1 }
 0x11f   :  { %v1373_v42 = vpop.f32.mrb[6].mxu0  ;;  %v1086_v43 = vpop.f32.mrb[7].mxu1 }
 0x120   :  { %1619 = vst [vmem:[%s3084_s2 + $0x10] sm:$0xff] %v1371_v37  ;;  %v1682_v45 = vadd.f32 %v1681_v30, %v1371_v37  ;;  %v1752_v46 = vmul.f32 %v1371_v37, %v1371_v37  ;;  %v1374_v47 = vadd.f32 %v1373_v42, %v1084_v39  ;;  %v1375_v48 = vpop.f32.mrb[7].mxu0 }
 0x121   :  { %1296 = vmatmul.mubr.bf16.gmra.mrb[112].mxu1 %v2326_v36  ;;  %v2345_v36 = vld [vmem:[%s3083_s0 + $0x3e8] ss:$16 sps:$4 sm:$0xff]  }
 0x122   :  { %v1815_v49 = vadd.f32 %v1814_v32, %v1752_v46  ;;  %1620 = vst [vmem:[%s3084_s2 + $0x18] sm:$0xff] %v1374_v47  ;;  %v1683_v50 = vadd.f32 %v1682_v45, %v1374_v47  ;;  %v1753_v51 = vmul.f32 %v1374_v47, %v1374_v47  ;;  %1585 = vmatmul.mubr.bf16.gmra.mrb[112].mxu0 %v2327_v40  ;;  %v2344_v32 = vld [vmem:[%s3083_s0 + $0x3e0] ss:$16 sps:$4 sm:$0xff]  }
 0x123   :  { %1303 = vmatprep.mubr.bf16.mxu1 %v2328_v41  ;;  %1592 = vmatprep.mubr.bf16.mxu0 %v2330_v44 }
 0x124   :  { %v1816_v52 = vadd.f32 %v1815_v49, %v1753_v51  ;;  %v1089_v53 = vpop.f32.mrb[8].mxu1 }
 0x125   :  { %v1378_v54 = vpop.f32.mrb[8].mxu0  ;;  %v1091_v55 = vpop.f32.mrb[9].mxu1 }
 0x126   :  { %v1379_v57 = vadd.f32 %v1378_v54, %v1089_v53  ;;  %v1380_v58 = vpop.f32.mrb[9].mxu0  ;;  %v1092_v59 = vpop.f32.mrb[10].mxu1 }
 0x127   :  { %v1381_v62 = vpop.f32.mrb[10].mxu0  ;;  %v1094_v63 = vpop.f32.mrb[11].mxu1 }
 0x128   :  { %1621 = vst [vmem:[%s3084_s2 + $0x20] sm:$0xff] %v1379_v57  ;;  %v1684_v1 = vadd.f32 %v1683_v50, %v1379_v57  ;;  %v1754_v2 = vmul.f32 %v1379_v57, %v1379_v57  ;;  %v1382_v3 = vadd.f32 %v1381_v62, %v1092_v59  ;;  %v1383_v4 = vpop.f32.mrb[11].mxu0 }
 0x129   :  { %1304 = vmatmul.mubr.bf16.gmra.mrb[116].mxu1 %v2332_v56 }
 0x12a   :  { %v1817_v5 = vadd.f32 %v1816_v52, %v1754_v2  ;;  %1622 = vst [vmem:[%s3084_s2 + $0x28] sm:$0xff] %v1382_v3  ;;  %v1685_v6 = vadd.f32 %v1684_v1, %v1382_v3  ;;  %v1755_v7 = vmul.f32 %v1382_v3, %v1382_v3  ;;  %1593 = vmatmul.mubr.bf16.gmra.mrb[116].mxu0 %v2333_v60 }
 0x12b   :  { %1311 = vmatprep.mubr.bf16.mxu1 %v2334_v61  ;;  %1600 = vmatprep.mubr.bf16.mxu0 %v2336_v0 }
 0x12c   :  { %v1818_v8 = vadd.f32 %v1817_v5, %v1755_v7  ;;  %v1097_v9 = vpop.f32.mrb[12].mxu1 }
 0x12d   :  { %v1386_v10 = vpop.f32.mrb[12].mxu0  ;;  %v1099_v11 = vpop.f32.mrb[13].mxu1 }
 0x12e   :  { %v1387_v13 = vadd.f32 %v1386_v10, %v1097_v9  ;;  %v1388_v14 = vpop.f32.mrb[13].mxu0  ;;  %v1100_v15 = vpop.f32.mrb[14].mxu1 }
 0x12f   :  { %v1389_v18 = vpop.f32.mrb[14].mxu0  ;;  %v1102_v19 = vpop.f32.mrb[15].mxu1 }
 0x130   :  { %1623 = vst [vmem:[%s3084_s2 + $0x30] sm:$0xff] %v1387_v13  ;;  %v1686_v21 = vadd.f32 %v1685_v6, %v1387_v13  ;;  %v1756_v22 = vmul.f32 %v1387_v13, %v1387_v13  ;;  %v1390_v23 = vadd.f32 %v1389_v18, %v1100_v15  ;;  %v1391_v24 = vpop.f32.mrb[15].mxu0 }
 0x131   :  { %1312 = vmatmul.mubr.bf16.gmra.mrb[120].mxu1 %v2338_v12 }
 0x132   :  { %v1819_v25 = vadd.f32 %v1818_v8, %v1756_v22  ;;  %1624 = vst [vmem:[%s3084_s2 + $0x38] sm:$0xff] %v1390_v23  ;;  %v1687_v26 = vadd.f32 %v1686_v21, %v1390_v23  ;;  %v1757_v27 = vmul.f32 %v1390_v23, %v1390_v23  ;;  %1601 = vmatmul.mubr.bf16.gmra.mrb[120].mxu0 %v2339_v16 }
 0x133   :  { %1319 = vmatprep.mubr.bf16.mxu1 %v2340_v17  ;;  %1608 = vmatprep.mubr.bf16.mxu0 %v2342_v20 }
 0x134   :  { %v1820_v28 = vadd.f32 %v1819_v25, %v1757_v27  ;;  %v1105_v29 = vpop.f32.mrb[16].mxu1 }
 0x135   :  { %v1394_v30 = vpop.f32.mrb[16].mxu0  ;;  %v1107_v31 = vpop.f32.mrb[17].mxu1 }
 0x136   :  { %v1395_v33 = vadd.f32 %v1394_v30, %v1105_v29  ;;  %v1396_v34 = vpop.f32.mrb[17].mxu0  ;;  %v1108_v35 = vpop.f32.mrb[18].mxu1 }
 0x137   :  { %v1397_v37 = vpop.f32.mrb[18].mxu0  ;;  %v1110_v38 = vpop.f32.mrb[19].mxu1 }
 0x138   :  { %1625 = vst [vmem:[%s3084_s2 + $0x40] sm:$0xff] %v1395_v33  ;;  %v1688_v39 = vadd.f32 %v1687_v26, %v1395_v33  ;;  %v1758_v40 = vmul.f32 %v1395_v33, %v1395_v33  ;;  %v1398_v41 = vadd.f32 %v1397_v37, %v1108_v35  ;;  %v1399_v42 = vpop.f32.mrb[19].mxu0 }
 0x139   :  { %1320 = vmatmul.mubr.bf16.gmra.mrb[124].mxu1 %v2344_v32 }
 0x13a   :  { %v1821_v43 = vadd.f32 %v1820_v28, %v1758_v40  ;;  %1626 = vst [vmem:[%s3084_s2 + $0x48] sm:$0xff] %v1398_v41  ;;  %v1689_v44 = vadd.f32 %v1688_v39, %v1398_v41  ;;  %v1759_v45 = vmul.f32 %v1398_v41, %v1398_v41  ;;  %1609 = vmatmul.mubr.bf16.gmra.mrb[124].mxu0 %v2345_v36 }
 0x13c   :  { %v1822_v46 = vadd.f32 %v1821_v43, %v1759_v45  ;;  %v1113_v47 = vpop.f32.mrb[20].mxu1 }
 0x13d   :  { %v1402_v48 = vpop.f32.mrb[20].mxu0  ;;  %v1115_v49 = vpop.f32.mrb[21].mxu1 }
 0x13e   :  { %v1403_v50 = vadd.f32 %v1402_v48, %v1113_v47  ;;  %v1404_v51 = vpop.f32.mrb[21].mxu0  ;;  %v1116_v52 = vpop.f32.mrb[22].mxu1 }
 0x13f   :  { %v1405_v53 = vpop.f32.mrb[22].mxu0  ;;  %v1118_v54 = vpop.f32.mrb[23].mxu1 }
 0x140   :  { %1627 = vst [vmem:[%s3084_s2 + $0x50] sm:$0xff] %v1403_v50  ;;  %v1690_v55 = vadd.f32 %v1689_v44, %v1403_v50  ;;  %v1760_v56 = vmul.f32 %v1403_v50, %v1403_v50  ;;  %v1406_v57 = vadd.f32 %v1405_v53, %v1116_v52  ;;  %v1407_v58 = vpop.f32.mrb[23].mxu0 }
 0x142   :  { %v1823_v59 = vadd.f32 %v1822_v46, %v1760_v56  ;;  %1628 = vst [vmem:[%s3084_s2 + $0x58] sm:$0xff] %v1406_v57  ;;  %v1691_v60 = vadd.f32 %v1690_v55, %v1406_v57  ;;  %v1761_v61 = vmul.f32 %v1406_v57, %v1406_v57 }
 0x144   :  { %v1824_v62 = vadd.f32 %v1823_v59, %v1761_v61  ;;  %v1121_v63 = vpop.f32.mrb[24].mxu1 }
 0x145   :  { %v1410_v0 = vpop.f32.mrb[24].mxu0  ;;  %v1123_v1 = vpop.f32.mrb[25].mxu1 }
 0x146   :  { %v1411_v2 = vadd.f32 %v1410_v0, %v1121_v63  ;;  %v1412_v3 = vpop.f32.mrb[25].mxu0  ;;  %v1124_v4 = vpop.f32.mrb[26].mxu1 }
 0x147   :  { %v1413_v5 = vpop.f32.mrb[26].mxu0  ;;  %v1126_v6 = vpop.f32.mrb[27].mxu1 }
 0x148   :  { %1629 = vst [vmem:[%s3084_s2 + $0x60] sm:$0xff] %v1411_v2  ;;  %v1692_v7 = vadd.f32 %v1691_v60, %v1411_v2  ;;  %v1762_v8 = vmul.f32 %v1411_v2, %v1411_v2  ;;  %v1414_v9 = vadd.f32 %v1413_v5, %v1124_v4  ;;  %v1415_v10 = vpop.f32.mrb[27].mxu0 }
 0x14a   :  { %v1825_v11 = vadd.f32 %v1824_v62, %v1762_v8  ;;  %1630 = vst [vmem:[%s3084_s2 + $0x68] sm:$0xff] %v1414_v9  ;;  %v1693_v12 = vadd.f32 %v1692_v7, %v1414_v9  ;;  %v1763_v13 = vmul.f32 %v1414_v9, %v1414_v9 }
 0x14c   :  { %v1826_v14 = vadd.f32 %v1825_v11, %v1763_v13  ;;  %v1129_v15 = vpop.f32.mrb[28].mxu1 }
 0x14d   :  { %v1418_v16 = vpop.f32.mrb[28].mxu0  ;;  %v1131_v17 = vpop.f32.mrb[29].mxu1 }
 0x14e   :  { %v1419_v18 = vadd.f32 %v1418_v16, %v1129_v15  ;;  %v1420_v19 = vpop.f32.mrb[29].mxu0  ;;  %v1132_v20 = vpop.f32.mrb[30].mxu1 }
 0x14f   :  { %v1421_v21 = vpop.f32.mrb[30].mxu0  ;;  %v1134_v22 = vpop.f32.mrb[31].mxu1 }
 0x150   :  { %1631 = vst [vmem:[%s3084_s2 + $0x70] sm:$0xff] %v1419_v18  ;;  %v1694_v23 = vadd.f32 %v1693_v12, %v1419_v18  ;;  %v1764_v24 = vmul.f32 %v1419_v18, %v1419_v18  ;;  %v1422_v25 = vadd.f32 %v1421_v21, %v1132_v20  ;;  %v1423_v26 = vpop.f32.mrb[31].mxu0 }
 0x152   :  { %v1827_v27 = vadd.f32 %v1826_v14, %v1764_v24  ;;  %1632 = vst [vmem:[%s3084_s2 + $0x78] sm:$0xff] %v1422_v25  ;;  %v1695_v28 = vadd.f32 %v1694_v23, %v1422_v25  ;;  %v1765_v29 = vmul.f32 %v1422_v25, %v1422_v25 }
 0x154   :  { %v1828_v30 = vadd.f32 %v1827_v27, %v1765_v29  ;;  %v1137_v31 = vpop.f32.mrb[32].mxu1 }
 0x155   :  { %v1426_v32 = vpop.f32.mrb[32].mxu0  ;;  %v1139_v33 = vpop.f32.mrb[33].mxu1 }
 0x156   :  { %v1427_v34 = vadd.f32 %v1426_v32, %v1137_v31  ;;  %v1428_v35 = vpop.f32.mrb[33].mxu0  ;;  %v1140_v36 = vpop.f32.mrb[34].mxu1 }
 0x157   :  { %v1429_v37 = vpop.f32.mrb[34].mxu0  ;;  %v1142_v38 = vpop.f32.mrb[35].mxu1 }
 0x158   :  { %1633 = vst [vmem:[%s3084_s2 + $0x80] sm:$0xff] %v1427_v34  ;;  %v1696_v39 = vadd.f32 %v1695_v28, %v1427_v34  ;;  %v1766_v40 = vmul.f32 %v1427_v34, %v1427_v34  ;;  %v1430_v41 = vadd.f32 %v1429_v37, %v1140_v36  ;;  %v1431_v42 = vpop.f32.mrb[35].mxu0 }
 0x15a   :  { %v1829_v43 = vadd.f32 %v1828_v30, %v1766_v40  ;;  %1634 = vst [vmem:[%s3084_s2 + $0x88] sm:$0xff] %v1430_v41  ;;  %v1697_v44 = vadd.f32 %v1696_v39, %v1430_v41  ;;  %v1767_v45 = vmul.f32 %v1430_v41, %v1430_v41 }
 0x15c   :  { %v1830_v46 = vadd.f32 %v1829_v43, %v1767_v45  ;;  %v1145_v47 = vpop.f32.mrb[36].mxu1 }
 0x15d   :  { %v1434_v48 = vpop.f32.mrb[36].mxu0  ;;  %v1147_v49 = vpop.f32.mrb[37].mxu1 }
 0x15e   :  { %v1435_v50 = vadd.f32 %v1434_v48, %v1145_v47  ;;  %v1436_v51 = vpop.f32.mrb[37].mxu0  ;;  %v1148_v52 = vpop.f32.mrb[38].mxu1 }
 0x15f   :  { %v1437_v53 = vpop.f32.mrb[38].mxu0  ;;  %v1150_v54 = vpop.f32.mrb[39].mxu1 }
 0x160   :  { %1635 = vst [vmem:[%s3084_s2 + $0x90] sm:$0xff] %v1435_v50  ;;  %v1698_v55 = vadd.f32 %v1697_v44, %v1435_v50  ;;  %v1768_v56 = vmul.f32 %v1435_v50, %v1435_v50  ;;  %v1438_v57 = vadd.f32 %v1437_v53, %v1148_v52  ;;  %v1439_v58 = vpop.f32.mrb[39].mxu0 }
 0x162   :  { %v1831_v59 = vadd.f32 %v1830_v46, %v1768_v56  ;;  %1636 = vst [vmem:[%s3084_s2 + $0x98] sm:$0xff] %v1438_v57  ;;  %v1699_v60 = vadd.f32 %v1698_v55, %v1438_v57  ;;  %v1769_v61 = vmul.f32 %v1438_v57, %v1438_v57 }
 0x164   :  { %v1832_v62 = vadd.f32 %v1831_v59, %v1769_v61  ;;  %v1153_v63 = vpop.f32.mrb[40].mxu1 }
 0x165   :  { %v1442_v0 = vpop.f32.mrb[40].mxu0  ;;  %v1155_v1 = vpop.f32.mrb[41].mxu1 }
 0x166   :  { %v1443_v2 = vadd.f32 %v1442_v0, %v1153_v63  ;;  %v1444_v3 = vpop.f32.mrb[41].mxu0  ;;  %v1156_v4 = vpop.f32.mrb[42].mxu1 }
 0x167   :  { %v1445_v5 = vpop.f32.mrb[42].mxu0  ;;  %v1158_v6 = vpop.f32.mrb[43].mxu1 }
 0x168   :  { %1637 = vst [vmem:[%s3084_s2 + $0xa0] sm:$0xff] %v1443_v2  ;;  %v1700_v7 = vadd.f32 %v1699_v60, %v1443_v2  ;;  %v1770_v8 = vmul.f32 %v1443_v2, %v1443_v2  ;;  %v1446_v9 = vadd.f32 %v1445_v5, %v1156_v4  ;;  %v1447_v10 = vpop.f32.mrb[43].mxu0 }
 0x16a   :  { %v1833_v11 = vadd.f32 %v1832_v62, %v1770_v8  ;;  %1638 = vst [vmem:[%s3084_s2 + $0xa8] sm:$0xff] %v1446_v9  ;;  %v1701_v12 = vadd.f32 %v1700_v7, %v1446_v9  ;;  %v1771_v13 = vmul.f32 %v1446_v9, %v1446_v9 }
 0x16c   :  { %v1834_v14 = vadd.f32 %v1833_v11, %v1771_v13  ;;  %v1161_v15 = vpop.f32.mrb[44].mxu1 }
 0x16d   :  { %v1450_v16 = vpop.f32.mrb[44].mxu0  ;;  %v1163_v17 = vpop.f32.mrb[45].mxu1 }
 0x16e   :  { %v1451_v18 = vadd.f32 %v1450_v16, %v1161_v15  ;;  %v1452_v19 = vpop.f32.mrb[45].mxu0  ;;  %v1164_v20 = vpop.f32.mrb[46].mxu1 }
 0x16f   :  { %v1453_v21 = vpop.f32.mrb[46].mxu0  ;;  %v1166_v22 = vpop.f32.mrb[47].mxu1 }
 0x170   :  { %1639 = vst [vmem:[%s3084_s2 + $0xb0] sm:$0xff] %v1451_v18  ;;  %v1702_v23 = vadd.f32 %v1701_v12, %v1451_v18  ;;  %v1772_v24 = vmul.f32 %v1451_v18, %v1451_v18  ;;  %v1454_v25 = vadd.f32 %v1453_v21, %v1164_v20  ;;  %v1455_v26 = vpop.f32.mrb[47].mxu0 }
 0x172   :  { %v1835_v27 = vadd.f32 %v1834_v14, %v1772_v24  ;;  %1640 = vst [vmem:[%s3084_s2 + $0xb8] sm:$0xff] %v1454_v25  ;;  %v1703_v28 = vadd.f32 %v1702_v23, %v1454_v25  ;;  %v1773_v29 = vmul.f32 %v1454_v25, %v1454_v25 }
 0x174   :  { %v1836_v30 = vadd.f32 %v1835_v27, %v1773_v29  ;;  %v1169_v31 = vpop.f32.mrb[48].mxu1 }
 0x175   :  { %v1458_v32 = vpop.f32.mrb[48].mxu0  ;;  %v1171_v33 = vpop.f32.mrb[49].mxu1 }
 0x176   :  { %v1459_v34 = vadd.f32 %v1458_v32, %v1169_v31  ;;  %v1460_v35 = vpop.f32.mrb[49].mxu0  ;;  %v1172_v36 = vpop.f32.mrb[50].mxu1 }
 0x177   :  { %v1461_v37 = vpop.f32.mrb[50].mxu0  ;;  %v1174_v38 = vpop.f32.mrb[51].mxu1 }
 0x178   :  { %1641 = vst [vmem:[%s3084_s2 + $0xc0] sm:$0xff] %v1459_v34  ;;  %v1704_v39 = vadd.f32 %v1703_v28, %v1459_v34  ;;  %v1774_v40 = vmul.f32 %v1459_v34, %v1459_v34  ;;  %v1462_v41 = vadd.f32 %v1461_v37, %v1172_v36  ;;  %v1463_v42 = vpop.f32.mrb[51].mxu0 }
 0x17a   :  { %v1837_v43 = vadd.f32 %v1836_v30, %v1774_v40  ;;  %1642 = vst [vmem:[%s3084_s2 + $0xc8] sm:$0xff] %v1462_v41  ;;  %v1705_v44 = vadd.f32 %v1704_v39, %v1462_v41  ;;  %v1775_v45 = vmul.f32 %v1462_v41, %v1462_v41 }
 0x17c   :  { %v1838_v46 = vadd.f32 %v1837_v43, %v1775_v45  ;;  %v1177_v47 = vpop.f32.mrb[52].mxu1 }
 0x17d   :  { %v1466_v48 = vpop.f32.mrb[52].mxu0  ;;  %v1179_v49 = vpop.f32.mrb[53].mxu1 }
 0x17e   :  { %v1467_v50 = vadd.f32 %v1466_v48, %v1177_v47  ;;  %v1468_v51 = vpop.f32.mrb[53].mxu0  ;;  %v1180_v52 = vpop.f32.mrb[54].mxu1 }
 0x17f   :  { %v1469_v53 = vpop.f32.mrb[54].mxu0  ;;  %v1182_v54 = vpop.f32.mrb[55].mxu1 }
 0x180   :  { %1643 = vst [vmem:[%s3084_s2 + $0xd0] sm:$0xff] %v1467_v50  ;;  %v1706_v55 = vadd.f32 %v1705_v44, %v1467_v50  ;;  %v1776_v56 = vmul.f32 %v1467_v50, %v1467_v50  ;;  %v1470_v57 = vadd.f32 %v1469_v53, %v1180_v52  ;;  %v1471_v58 = vpop.f32.mrb[55].mxu0 }
 0x182   :  { %v1839_v59 = vadd.f32 %v1838_v46, %v1776_v56  ;;  %1644 = vst [vmem:[%s3084_s2 + $0xd8] sm:$0xff] %v1470_v57  ;;  %v1707_v60 = vadd.f32 %v1706_v55, %v1470_v57  ;;  %v1777_v61 = vmul.f32 %v1470_v57, %v1470_v57 }
 0x184   :  { %v1840_v62 = vadd.f32 %v1839_v59, %v1777_v61  ;;  %v1185_v63 = vpop.f32.mrb[56].mxu1 }
 0x185   :  { %v1474_v0 = vpop.f32.mrb[56].mxu0  ;;  %v1187_v1 = vpop.f32.mrb[57].mxu1 }
 0x186   :  { %v1475_v2 = vadd.f32 %v1474_v0, %v1185_v63  ;;  %v1476_v3 = vpop.f32.mrb[57].mxu0  ;;  %v1188_v4 = vpop.f32.mrb[58].mxu1 }
 0x187   :  { %v1477_v5 = vpop.f32.mrb[58].mxu0  ;;  %v1190_v6 = vpop.f32.mrb[59].mxu1 }
 0x188   :  { %1645 = vst [vmem:[%s3084_s2 + $0xe0] sm:$0xff] %v1475_v2  ;;  %v1708_v7 = vadd.f32 %v1707_v60, %v1475_v2  ;;  %v1778_v8 = vmul.f32 %v1475_v2, %v1475_v2  ;;  %v1478_v9 = vadd.f32 %v1477_v5, %v1188_v4  ;;  %v1479_v10 = vpop.f32.mrb[59].mxu0 }
 0x18a   :  { %v1841_v11 = vadd.f32 %v1840_v62, %v1778_v8  ;;  %1646 = vst [vmem:[%s3084_s2 + $0xe8] sm:$0xff] %v1478_v9  ;;  %v1709_v12 = vadd.f32 %v1708_v7, %v1478_v9  ;;  %v1779_v13 = vmul.f32 %v1478_v9, %v1478_v9 }
 0x18c   :  { %v1842_v14 = vadd.f32 %v1841_v11, %v1779_v13  ;;  %v1193_v15 = vpop.f32.mrb[60].mxu1 }
 0x18d   :  { %v1482_v16 = vpop.f32.mrb[60].mxu0  ;;  %v1195_v17 = vpop.f32.mrb[61].mxu1 }
 0x18e   :  { %v1483_v18 = vadd.f32 %v1482_v16, %v1193_v15  ;;  %v1484_v19 = vpop.f32.mrb[61].mxu0  ;;  %v1196_v20 = vpop.f32.mrb[62].mxu1 }
 0x18f   :  { %v1485_v21 = vpop.f32.mrb[62].mxu0  ;;  %v1198_v22 = vpop.f32.mrb[63].mxu1 }
 0x190   :  { %1647 = vst [vmem:[%s3084_s2 + $0xf0] sm:$0xff] %v1483_v18  ;;  %v1710_v23 = vadd.f32 %v1709_v12, %v1483_v18  ;;  %v1780_v24 = vmul.f32 %v1483_v18, %v1483_v18  ;;  %v1486_v25 = vadd.f32 %v1485_v21, %v1196_v20  ;;  %v1487_v26 = vpop.f32.mrb[63].mxu0 }
 0x192   :  { %v1843_v27 = vadd.f32 %v1842_v14, %v1780_v24  ;;  %1648 = vst [vmem:[%s3084_s2 + $0xf8] sm:$0xff] %v1486_v25  ;;  %v1711_v28 = vadd.f32 %v1710_v23, %v1486_v25  ;;  %v1781_v29 = vmul.f32 %v1486_v25, %v1486_v25 }
 0x194   :  { %v1844_v30 = vadd.f32 %v1843_v27, %v1781_v29  ;;  %v1201_v31 = vpop.f32.mrb[64].mxu1 }
 0x195   :  { %v1490_v32 = vpop.f32.mrb[64].mxu0  ;;  %v1203_v33 = vpop.f32.mrb[65].mxu1 }
 0x196   :  { %v1491_v34 = vadd.f32 %v1490_v32, %v1201_v31  ;;  %v1492_v35 = vpop.f32.mrb[65].mxu0  ;;  %v1204_v36 = vpop.f32.mrb[66].mxu1 }
 0x197   :  { %v1493_v37 = vpop.f32.mrb[66].mxu0  ;;  %v1206_v38 = vpop.f32.mrb[67].mxu1 }
 0x198   :  { %1649 = vst [vmem:[%s3084_s2 + $0x100] sm:$0xff] %v1491_v34  ;;  %v1712_v39 = vadd.f32 %v1711_v28, %v1491_v34  ;;  %v1782_v40 = vmul.f32 %v1491_v34, %v1491_v34  ;;  %v1494_v41 = vadd.f32 %v1493_v37, %v1204_v36  ;;  %v1495_v42 = vpop.f32.mrb[67].mxu0 }
 0x19a   :  { %v1845_v43 = vadd.f32 %v1844_v30, %v1782_v40  ;;  %1650 = vst [vmem:[%s3084_s2 + $0x108] sm:$0xff] %v1494_v41  ;;  %v1713_v44 = vadd.f32 %v1712_v39, %v1494_v41  ;;  %v1783_v45 = vmul.f32 %v1494_v41, %v1494_v41 }
 0x19c   :  { %v1846_v46 = vadd.f32 %v1845_v43, %v1783_v45  ;;  %v1209_v47 = vpop.f32.mrb[68].mxu1 }
 0x19d   :  { %v1498_v48 = vpop.f32.mrb[68].mxu0  ;;  %v1211_v49 = vpop.f32.mrb[69].mxu1 }
 0x19e   :  { %v1499_v50 = vadd.f32 %v1498_v48, %v1209_v47  ;;  %v1500_v51 = vpop.f32.mrb[69].mxu0  ;;  %v1212_v52 = vpop.f32.mrb[70].mxu1 }
 0x19f   :  { %v1501_v53 = vpop.f32.mrb[70].mxu0  ;;  %v1214_v54 = vpop.f32.mrb[71].mxu1 }
 0x1a0   :  { %1651 = vst [vmem:[%s3084_s2 + $0x110] sm:$0xff] %v1499_v50  ;;  %v1714_v55 = vadd.f32 %v1713_v44, %v1499_v50  ;;  %v1784_v56 = vmul.f32 %v1499_v50, %v1499_v50  ;;  %v1502_v57 = vadd.f32 %v1501_v53, %v1212_v52  ;;  %v1503_v58 = vpop.f32.mrb[71].mxu0 }
 0x1a2   :  { %v1847_v59 = vadd.f32 %v1846_v46, %v1784_v56  ;;  %1652 = vst [vmem:[%s3084_s2 + $0x118] sm:$0xff] %v1502_v57  ;;  %v1715_v60 = vadd.f32 %v1714_v55, %v1502_v57  ;;  %v1785_v61 = vmul.f32 %v1502_v57, %v1502_v57 }
 0x1a4   :  { %v1848_v62 = vadd.f32 %v1847_v59, %v1785_v61  ;;  %v1217_v63 = vpop.f32.mrb[72].mxu1 }
 0x1a5   :  { %v1506_v0 = vpop.f32.mrb[72].mxu0  ;;  %v1219_v1 = vpop.f32.mrb[73].mxu1 }
 0x1a6   :  { %v1507_v2 = vadd.f32 %v1506_v0, %v1217_v63  ;;  %v1508_v3 = vpop.f32.mrb[73].mxu0  ;;  %v1220_v4 = vpop.f32.mrb[74].mxu1 }
 0x1a7   :  { %v1509_v5 = vpop.f32.mrb[74].mxu0  ;;  %v1222_v6 = vpop.f32.mrb[75].mxu1 }
 0x1a8   :  { %1653 = vst [vmem:[%s3084_s2 + $0x120] sm:$0xff] %v1507_v2  ;;  %v1716_v7 = vadd.f32 %v1715_v60, %v1507_v2  ;;  %v1786_v8 = vmul.f32 %v1507_v2, %v1507_v2  ;;  %v1510_v9 = vadd.f32 %v1509_v5, %v1220_v4  ;;  %v1511_v10 = vpop.f32.mrb[75].mxu0 }
 0x1aa   :  { %v1849_v11 = vadd.f32 %v1848_v62, %v1786_v8  ;;  %1654 = vst [vmem:[%s3084_s2 + $0x128] sm:$0xff] %v1510_v9  ;;  %v1717_v12 = vadd.f32 %v1716_v7, %v1510_v9  ;;  %v1787_v13 = vmul.f32 %v1510_v9, %v1510_v9 }
 0x1ac   :  { %v1850_v14 = vadd.f32 %v1849_v11, %v1787_v13  ;;  %v1225_v15 = vpop.f32.mrb[76].mxu1 }
 0x1ad   :  { %v1514_v16 = vpop.f32.mrb[76].mxu0  ;;  %v1227_v17 = vpop.f32.mrb[77].mxu1 }
 0x1ae   :  { %v1515_v18 = vadd.f32 %v1514_v16, %v1225_v15  ;;  %v1516_v19 = vpop.f32.mrb[77].mxu0  ;;  %v1228_v20 = vpop.f32.mrb[78].mxu1 }
 0x1af   :  { %v1517_v21 = vpop.f32.mrb[78].mxu0  ;;  %v1230_v22 = vpop.f32.mrb[79].mxu1 }
 0x1b0   :  { %1655 = vst [vmem:[%s3084_s2 + $0x130] sm:$0xff] %v1515_v18  ;;  %v1718_v23 = vadd.f32 %v1717_v12, %v1515_v18  ;;  %v1788_v24 = vmul.f32 %v1515_v18, %v1515_v18  ;;  %v1518_v25 = vadd.f32 %v1517_v21, %v1228_v20  ;;  %v1519_v26 = vpop.f32.mrb[79].mxu0 }
 0x1b2   :  { %v1851_v27 = vadd.f32 %v1850_v14, %v1788_v24  ;;  %1656 = vst [vmem:[%s3084_s2 + $0x138] sm:$0xff] %v1518_v25  ;;  %v1719_v28 = vadd.f32 %v1718_v23, %v1518_v25  ;;  %v1789_v29 = vmul.f32 %v1518_v25, %v1518_v25 }
 0x1b4   :  { %v1852_v30 = vadd.f32 %v1851_v27, %v1789_v29  ;;  %v1233_v31 = vpop.f32.mrb[80].mxu1 }
 0x1b5   :  { %v1522_v32 = vpop.f32.mrb[80].mxu0  ;;  %v1235_v33 = vpop.f32.mrb[81].mxu1 }
 0x1b6   :  { %v1523_v34 = vadd.f32 %v1522_v32, %v1233_v31  ;;  %v1524_v35 = vpop.f32.mrb[81].mxu0  ;;  %v1236_v36 = vpop.f32.mrb[82].mxu1 }
 0x1b7   :  { %v1525_v37 = vpop.f32.mrb[82].mxu0  ;;  %v1238_v38 = vpop.f32.mrb[83].mxu1 }
 0x1b8   :  { %1657 = vst [vmem:[%s3084_s2 + $0x140] sm:$0xff] %v1523_v34  ;;  %v1720_v39 = vadd.f32 %v1719_v28, %v1523_v34  ;;  %v1790_v40 = vmul.f32 %v1523_v34, %v1523_v34  ;;  %v1526_v41 = vadd.f32 %v1525_v37, %v1236_v36  ;;  %v1527_v42 = vpop.f32.mrb[83].mxu0 }
 0x1ba   :  { %v1853_v43 = vadd.f32 %v1852_v30, %v1790_v40  ;;  %1658 = vst [vmem:[%s3084_s2 + $0x148] sm:$0xff] %v1526_v41  ;;  %v1721_v44 = vadd.f32 %v1720_v39, %v1526_v41  ;;  %v1791_v45 = vmul.f32 %v1526_v41, %v1526_v41 }
 0x1bc   :  { %v1854_v46 = vadd.f32 %v1853_v43, %v1791_v45  ;;  %v1241_v47 = vpop.f32.mrb[84].mxu1 }
 0x1bd   :  { %v1530_v48 = vpop.f32.mrb[84].mxu0  ;;  %v1243_v49 = vpop.f32.mrb[85].mxu1 }
 0x1be   :  { %v1531_v50 = vadd.f32 %v1530_v48, %v1241_v47  ;;  %v1532_v51 = vpop.f32.mrb[85].mxu0  ;;  %v1244_v52 = vpop.f32.mrb[86].mxu1 }
 0x1bf   :  { %v1533_v53 = vpop.f32.mrb[86].mxu0  ;;  %v1246_v54 = vpop.f32.mrb[87].mxu1 }
 0x1c0   :  { %1659 = vst [vmem:[%s3084_s2 + $0x150] sm:$0xff] %v1531_v50  ;;  %v1722_v55 = vadd.f32 %v1721_v44, %v1531_v50  ;;  %v1792_v56 = vmul.f32 %v1531_v50, %v1531_v50  ;;  %v1534_v57 = vadd.f32 %v1533_v53, %v1244_v52  ;;  %v1535_v58 = vpop.f32.mrb[87].mxu0 }
 0x1c2   :  { %v1855_v59 = vadd.f32 %v1854_v46, %v1792_v56  ;;  %1660 = vst [vmem:[%s3084_s2 + $0x158] sm:$0xff] %v1534_v57  ;;  %v1723_v60 = vadd.f32 %v1722_v55, %v1534_v57  ;;  %v1793_v61 = vmul.f32 %v1534_v57, %v1534_v57 }
 0x1c4   :  { %v1856_v62 = vadd.f32 %v1855_v59, %v1793_v61  ;;  %v1249_v63 = vpop.f32.mrb[88].mxu1 }
 0x1c5   :  { %v1538_v0 = vpop.f32.mrb[88].mxu0  ;;  %v1251_v1 = vpop.f32.mrb[89].mxu1 }
 0x1c6   :  { %v1539_v2 = vadd.f32 %v1538_v0, %v1249_v63  ;;  %v1540_v3 = vpop.f32.mrb[89].mxu0  ;;  %v1252_v4 = vpop.f32.mrb[90].mxu1 }
 0x1c7   :  { %v1541_v5 = vpop.f32.mrb[90].mxu0  ;;  %v1254_v6 = vpop.f32.mrb[91].mxu1 }
 0x1c8   :  { %1661 = vst [vmem:[%s3084_s2 + $0x160] sm:$0xff] %v1539_v2  ;;  %v1724_v7 = vadd.f32 %v1723_v60, %v1539_v2  ;;  %v1794_v8 = vmul.f32 %v1539_v2, %v1539_v2  ;;  %v1542_v9 = vadd.f32 %v1541_v5, %v1252_v4  ;;  %v1543_v10 = vpop.f32.mrb[91].mxu0 }
 0x1ca   :  { %v1857_v11 = vadd.f32 %v1856_v62, %v1794_v8  ;;  %1662 = vst [vmem:[%s3084_s2 + $0x168] sm:$0xff] %v1542_v9  ;;  %v1725_v12 = vadd.f32 %v1724_v7, %v1542_v9  ;;  %v1795_v13 = vmul.f32 %v1542_v9, %v1542_v9 }
 0x1cc   :  { %v1858_v14 = vadd.f32 %v1857_v11, %v1795_v13  ;;  %v1257_v15 = vpop.f32.mrb[92].mxu1 }
 0x1cd   :  { %v1546_v16 = vpop.f32.mrb[92].mxu0  ;;  %v1259_v17 = vpop.f32.mrb[93].mxu1 }
 0x1ce   :  { %v1547_v18 = vadd.f32 %v1546_v16, %v1257_v15  ;;  %v1548_v19 = vpop.f32.mrb[93].mxu0  ;;  %v1260_v20 = vpop.f32.mrb[94].mxu1 }
 0x1cf   :  { %v1549_v21 = vpop.f32.mrb[94].mxu0  ;;  %v1262_v22 = vpop.f32.mrb[95].mxu1 }
 0x1d0   :  { %1663 = vst [vmem:[%s3084_s2 + $0x170] sm:$0xff] %v1547_v18  ;;  %v1726_v23 = vadd.f32 %v1725_v12, %v1547_v18  ;;  %v1796_v24 = vmul.f32 %v1547_v18, %v1547_v18  ;;  %v1550_v25 = vadd.f32 %v1549_v21, %v1260_v20  ;;  %v1551_v26 = vpop.f32.mrb[95].mxu0 }
 0x1d2   :  { %v1859_v27 = vadd.f32 %v1858_v14, %v1796_v24  ;;  %1664 = vst [vmem:[%s3084_s2 + $0x178] sm:$0xff] %v1550_v25  ;;  %v1727_v28 = vadd.f32 %v1726_v23, %v1550_v25  ;;  %v1797_v29 = vmul.f32 %v1550_v25, %v1550_v25 }
 0x1d4   :  { %v1860_v30 = vadd.f32 %v1859_v27, %v1797_v29  ;;  %v1265_v31 = vpop.f32.mrb[96].mxu1 }
 0x1d5   :  { %v1554_v32 = vpop.f32.mrb[96].mxu0  ;;  %v1267_v33 = vpop.f32.mrb[97].mxu1 }
 0x1d6   :  { %v1555_v34 = vadd.f32 %v1554_v32, %v1265_v31  ;;  %v1556_v35 = vpop.f32.mrb[97].mxu0  ;;  %v1268_v36 = vpop.f32.mrb[98].mxu1 }
 0x1d7   :  { %v1557_v37 = vpop.f32.mrb[98].mxu0  ;;  %v1270_v38 = vpop.f32.mrb[99].mxu1 }
 0x1d8   :  { %1665 = vst [vmem:[%s3084_s2 + $0x180] sm:$0xff] %v1555_v34  ;;  %v1728_v39 = vadd.f32 %v1727_v28, %v1555_v34  ;;  %v1798_v40 = vmul.f32 %v1555_v34, %v1555_v34  ;;  %v1558_v41 = vadd.f32 %v1557_v37, %v1268_v36  ;;  %v1559_v42 = vpop.f32.mrb[99].mxu0 }
 0x1da   :  { %v1861_v43 = vadd.f32 %v1860_v30, %v1798_v40  ;;  %1666 = vst [vmem:[%s3084_s2 + $0x188] sm:$0xff] %v1558_v41  ;;  %v1729_v44 = vadd.f32 %v1728_v39, %v1558_v41  ;;  %v1799_v45 = vmul.f32 %v1558_v41, %v1558_v41 }
 0x1dc   :  { %v1862_v46 = vadd.f32 %v1861_v43, %v1799_v45  ;;  %v1273_v47 = vpop.f32.mrb[100].mxu1 }
 0x1dd   :  { %v1562_v48 = vpop.f32.mrb[100].mxu0  ;;  %v1275_v49 = vpop.f32.mrb[101].mxu1 }
 0x1de   :  { %v1563_v50 = vadd.f32 %v1562_v48, %v1273_v47  ;;  %v1564_v51 = vpop.f32.mrb[101].mxu0  ;;  %v1276_v52 = vpop.f32.mrb[102].mxu1 }
 0x1df   :  { %v1565_v53 = vpop.f32.mrb[102].mxu0  ;;  %v1278_v54 = vpop.f32.mrb[103].mxu1 }
 0x1e0   :  { %1667 = vst [vmem:[%s3084_s2 + $0x190] sm:$0xff] %v1563_v50  ;;  %v1730_v55 = vadd.f32 %v1729_v44, %v1563_v50  ;;  %v1800_v56 = vmul.f32 %v1563_v50, %v1563_v50  ;;  %v1566_v57 = vadd.f32 %v1565_v53, %v1276_v52  ;;  %v1567_v58 = vpop.f32.mrb[103].mxu0 }
 0x1e2   :  { %v1863_v59 = vadd.f32 %v1862_v46, %v1800_v56  ;;  %1668 = vst [vmem:[%s3084_s2 + $0x198] sm:$0xff] %v1566_v57  ;;  %v1731_v60 = vadd.f32 %v1730_v55, %v1566_v57  ;;  %v1801_v61 = vmul.f32 %v1566_v57, %v1566_v57 }
 0x1e4   :  { %v1864_v62 = vadd.f32 %v1863_v59, %v1801_v61  ;;  %v1281_v63 = vpop.f32.mrb[104].mxu1 }
 0x1e5   :  { %v1570_v0 = vpop.f32.mrb[104].mxu0  ;;  %v1283_v1 = vpop.f32.mrb[105].mxu1 }
 0x1e6   :  { %v1571_v2 = vadd.f32 %v1570_v0, %v1281_v63  ;;  %v1572_v3 = vpop.f32.mrb[105].mxu0  ;;  %v1284_v4 = vpop.f32.mrb[106].mxu1 }
 0x1e7   :  { %v1573_v5 = vpop.f32.mrb[106].mxu0  ;;  %v1286_v6 = vpop.f32.mrb[107].mxu1 }
 0x1e8   :  { %1669 = vst [vmem:[%s3084_s2 + $0x1a0] sm:$0xff] %v1571_v2  ;;  %v1732_v7 = vadd.f32 %v1731_v60, %v1571_v2  ;;  %v1802_v8 = vmul.f32 %v1571_v2, %v1571_v2  ;;  %v1574_v9 = vadd.f32 %v1573_v5, %v1284_v4  ;;  %v1575_v10 = vpop.f32.mrb[107].mxu0 }
 0x1ea   :  { %v1865_v11 = vadd.f32 %v1864_v62, %v1802_v8  ;;  %1670 = vst [vmem:[%s3084_s2 + $0x1a8] sm:$0xff] %v1574_v9  ;;  %v1733_v12 = vadd.f32 %v1732_v7, %v1574_v9  ;;  %v1803_v13 = vmul.f32 %v1574_v9, %v1574_v9 }
 0x1ec   :  { %v1866_v14 = vadd.f32 %v1865_v11, %v1803_v13  ;;  %v1289_v15 = vpop.f32.mrb[108].mxu1 }
 0x1ed   :  { %v1578_v16 = vpop.f32.mrb[108].mxu0  ;;  %v1291_v17 = vpop.f32.mrb[109].mxu1 }
 0x1ee   :  { %v1579_v18 = vadd.f32 %v1578_v16, %v1289_v15  ;;  %v1580_v19 = vpop.f32.mrb[109].mxu0  ;;  %v1292_v20 = vpop.f32.mrb[110].mxu1 }
 0x1ef   :  { %v1581_v21 = vpop.f32.mrb[110].mxu0  ;;  %v1294_v22 = vpop.f32.mrb[111].mxu1 }
 0x1f0   :  { %1671 = vst [vmem:[%s3084_s2 + $0x1b0] sm:$0xff] %v1579_v18  ;;  %v1734_v23 = vadd.f32 %v1733_v12, %v1579_v18  ;;  %v1804_v24 = vmul.f32 %v1579_v18, %v1579_v18  ;;  %v1582_v25 = vadd.f32 %v1581_v21, %v1292_v20  ;;  %v1583_v26 = vpop.f32.mrb[111].mxu0 }
 0x1f2   :  { %v1867_v27 = vadd.f32 %v1866_v14, %v1804_v24  ;;  %1672 = vst [vmem:[%s3084_s2 + $0x1b8] sm:$0xff] %v1582_v25  ;;  %v1735_v28 = vadd.f32 %v1734_v23, %v1582_v25  ;;  %v1805_v29 = vmul.f32 %v1582_v25, %v1582_v25 }
 0x1f4   :  { %v1868_v30 = vadd.f32 %v1867_v27, %v1805_v29  ;;  %v1297_v31 = vpop.f32.mrb[112].mxu1 }
 0x1f5   :  { %v1586_v32 = vpop.f32.mrb[112].mxu0  ;;  %v1299_v33 = vpop.f32.mrb[113].mxu1 }
 0x1f6   :  { %v1587_v34 = vadd.f32 %v1586_v32, %v1297_v31  ;;  %v1588_v35 = vpop.f32.mrb[113].mxu0  ;;  %v1300_v36 = vpop.f32.mrb[114].mxu1 }
 0x1f7   :  { %v1589_v37 = vpop.f32.mrb[114].mxu0  ;;  %v1302_v38 = vpop.f32.mrb[115].mxu1 }
 0x1f8   :  { %1673 = vst [vmem:[%s3084_s2 + $0x1c0] sm:$0xff] %v1587_v34  ;;  %v1736_v39 = vadd.f32 %v1735_v28, %v1587_v34  ;;  %v1806_v40 = vmul.f32 %v1587_v34, %v1587_v34  ;;  %v1590_v41 = vadd.f32 %v1589_v37, %v1300_v36  ;;  %v1591_v42 = vpop.f32.mrb[115].mxu0 }
 0x1fa   :  { %v1869_v43 = vadd.f32 %v1868_v30, %v1806_v40  ;;  %1674 = vst [vmem:[%s3084_s2 + $0x1c8] sm:$0xff] %v1590_v41  ;;  %v1737_v44 = vadd.f32 %v1736_v39, %v1590_v41  ;;  %v1807_v45 = vmul.f32 %v1590_v41, %v1590_v41 }
 0x1fc   :  { %v1870_v46 = vadd.f32 %v1869_v43, %v1807_v45  ;;  %v1305_v47 = vpop.f32.mrb[116].mxu1 }
 0x1fd   :  { %v1594_v48 = vpop.f32.mrb[116].mxu0  ;;  %v1307_v49 = vpop.f32.mrb[117].mxu1 }
 0x1fe   :  { %v1595_v50 = vadd.f32 %v1594_v48, %v1305_v47  ;;  %v1596_v51 = vpop.f32.mrb[117].mxu0  ;;  %v1308_v52 = vpop.f32.mrb[118].mxu1 }
 0x1ff   :  { %v1597_v53 = vpop.f32.mrb[118].mxu0  ;;  %v1310_v54 = vpop.f32.mrb[119].mxu1 }
 0x200   :  { %1675 = vst [vmem:[%s3084_s2 + $0x1d0] sm:$0xff] %v1595_v50  ;;  %v1738_v55 = vadd.f32 %v1737_v44, %v1595_v50  ;;  %v1808_v56 = vmul.f32 %v1595_v50, %v1595_v50  ;;  %v1598_v57 = vadd.f32 %v1597_v53, %v1308_v52  ;;  %v1599_v58 = vpop.f32.mrb[119].mxu0 }
 0x202   :  { %v1871_v59 = vadd.f32 %v1870_v46, %v1808_v56  ;;  %1676 = vst [vmem:[%s3084_s2 + $0x1d8] sm:$0xff] %v1598_v57  ;;  %v1739_v60 = vadd.f32 %v1738_v55, %v1598_v57  ;;  %v1809_v61 = vmul.f32 %v1598_v57, %v1598_v57 }
 0x204   :  { %v1872_v62 = vadd.f32 %v1871_v59, %v1809_v61  ;;  %v1313_v63 = vpop.f32.mrb[120].mxu1 }
 0x205   :  { %v1602_v0 = vpop.f32.mrb[120].mxu0  ;;  %v1315_v1 = vpop.f32.mrb[121].mxu1 }
 0x206   :  { %v1603_v2 = vadd.f32 %v1602_v0, %v1313_v63  ;;  %v1604_v3 = vpop.f32.mrb[121].mxu0  ;;  %v1316_v4 = vpop.f32.mrb[122].mxu1 }
 0x207   :  { %v1605_v5 = vpop.f32.mrb[122].mxu0  ;;  %v1318_v6 = vpop.f32.mrb[123].mxu1 }
 0x208   :  { %1677 = vst [vmem:[%s3084_s2 + $0x1e0] sm:$0xff] %v1603_v2  ;;  %v1740_v7 = vadd.f32 %v1739_v60, %v1603_v2  ;;  %v1810_v8 = vmul.f32 %v1603_v2, %v1603_v2  ;;  %v1606_v9 = vadd.f32 %v1605_v5, %v1316_v4  ;;  %v1607_v10 = vpop.f32.mrb[123].mxu0 }
 0x20a   :  { %v1873_v11 = vadd.f32 %v1872_v62, %v1810_v8  ;;  %1678 = vst [vmem:[%s3084_s2 + $0x1e8] sm:$0xff] %v1606_v9  ;;  %v1741_v12 = vadd.f32 %v1740_v7, %v1606_v9  ;;  %v1811_v13 = vmul.f32 %v1606_v9, %v1606_v9 }
 0x20c   :  { %v1874_v14 = vadd.f32 %v1873_v11, %v1811_v13  ;;  %v1321_v15 = vpop.f32.mrb[124].mxu1 }
 0x20d   :  { %v1610_v16 = vpop.f32.mrb[124].mxu0  ;;  %v1323_v17 = vpop.f32.mrb[125].mxu1 }
 0x20e   :  { %v1611_v18 = vadd.f32 %v1610_v16, %v1321_v15  ;;  %v1612_v19 = vpop.f32.mrb[125].mxu0  ;;  %v1324_v20 = vpop.f32.mrb[126].mxu1 }
 0x20f   :  { %v1613_v21 = vpop.f32.mrb[126].mxu0  ;;  %v1326_v22 = vpop.f32.mrb[127].mxu1 }
 0x210   :  { %1679 = vst [vmem:[%s3084_s2 + $0x1f0] sm:$0xff] %v1611_v18  ;;  %v1742_v23 = vadd.f32 %v1741_v12, %v1611_v18  ;;  %v1812_v24 = vmul.f32 %v1611_v18, %v1611_v18  ;;  %v1614_v25 = vadd.f32 %v1613_v21, %v1324_v20  ;;  %v1615_v26 = vpop.f32.mrb[127].mxu0 }
 0x212   :  { %v1875_v27 = vadd.f32 %v1874_v14, %v1812_v24  ;;  %1680 = vst [vmem:[%s3084_s2 + $0x1f8] sm:$0xff] %v1614_v25  ;;  %v1743_v28 = vadd.f32 %v1742_v23, %v1614_v25  ;;  %v1813_v29 = vmul.f32 %v1614_v25, %v1614_v25 }
 0x214   :  { %v1744_v30 = vrot.slane %v1743_v28, 4  ;;  %v1876_v31 = vadd.f32 %v1875_v27, %v1813_v29 }
 0x216   :  { %v1745_v32 = vadd.f32 %v1744_v30, %v1743_v28  ;;  %v1877_v33 = vrot.slane %v1876_v31, 4 }
 0x218   :  { %v1746_v34 = vrot.slane %v1745_v32, 2  ;;  %v1878_v35 = vadd.f32 %v1877_v33, %v1876_v31 }
 0x21a   :  { %v1747_v36 = vadd.f32 %v1746_v34, %v1745_v32  ;;  %v1879_v37 = vrot.slane %v1878_v35, 2 }
 0x21c   :  { %v1748_v38 = vrot.slane %v1747_v36, 1  ;;  %v1880_v39 = vadd.f32 %v1879_v37, %v1878_v35 }
 0x21e   :  { %v1749_v40 = vadd.f32 %v1748_v38, %v1747_v36  ;;  %v1881_v41 = vrot.slane %v1880_v39, 1 }
 0x220   :  { %v1882_v42 = vadd.f32 %v1881_v41, %v1880_v39  ;;  %1883 = vst [vmem:[%s3085_s3] sm:$0xff] %v1749_v40 }
 0x222   :  { %1884 = vst [vmem:[%s3086_s4] sm:$0xff] %v1882_v42 }

// kernel: forward.37
= control target key start
LH: loop header
LB: loop body
LE: loop exit
PB: predicated region body
PF: predicated region fallthrough
CT: control target
= control target key end

     0   :  { %v1926_v0 = vmov 0   ;;  %s2714_s1 = inlined_call_operand.vmem [shape: bf16[384,128], index: 1, kind: input, shape index: {}]   ;;  %s2715_s0 = inlined_call_operand.vmem [shape: bf16[512,384], index: 0, kind: input, shape index: {}]   ;;  %s2716_s2 = inlined_call_operand.vmem [shape: f32[1,128], index: 2, kind: input, shape index: {}]   ;;  %s2717_s3 = inlined_call_operand.vmem [shape: f32[512,128], index: 3, kind: output, shape index: {}]  }
   0x1   :  { %854 = vmatprep.subr.bf16.mxu0 %v1926_v0  ;;  %1741 = vmatprep.subr.bf16.mxu1 %v1926_v0  ;;  %v1774_v1 = vld [vmem:[%s2714_s1] sm:$0xff]   ;;  %v1775_v2 = vld [vmem:[%s2714_s1 + $0x8] sm:$0xff]   ;;  %v1776_v3 = vld [vmem:[%s2714_s1 + $0x10] sm:$0xff]  }
   0x2   :  { %855 = vmatpush1.bf16.msra.mxu0 %v1774_v1  ;;  %1757 = vmatpush1.bf16.msra.mxu1 %v1774_v1  ;;  %v1777_v4 = vld [vmem:[%s2714_s1 + $0x18] sm:$0xff]   ;;  %v1778_v5 = vld [vmem:[%s2714_s1 + $0x20] sm:$0xff]   ;;  %v1779_v7 = vld [vmem:[%s2714_s1 + $0x28] sm:$0xff]  }
   0x3   :  { %856 = vmatprep.subr.bf16.mxu0 %v1926_v0  ;;  %1742 = vmatprep.subr.bf16.mxu1 %v1926_v0  ;;  %v1792_v6 = vld [vmem:[%s2715_s0 + $0x4] ss:$12 sps:$4 sm:$0xff]   ;;  %v1781_v10 = vld [vmem:[%s2714_s1 + $0x38] sm:$0xff]   ;;  %v1783_v12 = vld [vmem:[%s2714_s1 + $0x48] sm:$0xff]  }
   0x4   :  { %v1795_v8 = vld [vmem:[%s2715_s0 + $0x244] ss:$12 sps:$4 sm:$0xff]   ;;  %886 = vmatprep.mubr.bf16.mxu0 %v1792_v6  ;;  %v1785_v14 = vld [vmem:[%s2714_s1 + $0x58] sm:$0xff]   ;;  %v1787_v16 = vld [vmem:[%s2714_s1 + $0x68] sm:$0xff]  }
   0x5   :  { %1078 = vmatprep.mubr.bf16.mxu1 %v1795_v8  ;;  %v1780_v9 = vld [vmem:[%s2714_s1 + $0x30] sm:$0xff]   ;;  %v1782_v11 = vld [vmem:[%s2714_s1 + $0x40] sm:$0xff]   ;;  %v1789_v18 = vld [vmem:[%s2714_s1 + $0x78] sm:$0xff]  }
   0x6   :  { %857 = vmatpush1.bf16.msra.mxu0 %v1775_v2  ;;  %1758 = vmatpush1.bf16.msra.mxu1 %v1775_v2  ;;  %v1784_v13 = vld [vmem:[%s2714_s1 + $0x50] sm:$0xff]   ;;  %v1786_v15 = vld [vmem:[%s2714_s1 + $0x60] sm:$0xff]   ;;  %v1797_v22 = vld [vmem:[%s2715_s0 + $0x1c] ss:$12 sps:$4 sm:$0xff]  }
   0x7   :  { %858 = vmatprep.subr.bf16.mxu0 %v1926_v0  ;;  %1743 = vmatprep.subr.bf16.mxu1 %v1926_v0  ;;  %v1788_v17 = vld [vmem:[%s2714_s1 + $0x70] sm:$0xff]   ;;  %v1796_v19 = vld [vmem:[%s2714_s1 + $0x80] sm:$0xff]   ;;  %v1799_v23 = vld [vmem:[%s2715_s0 + $0x25c] ss:$12 sps:$4 sm:$0xff]  }
   0x8   :  { %v1790_v20 = vld [vmem:[%s2715_s0] ss:$12 sps:$4 sm:$0xff]   ;;  %v1810_v25 = vld [vmem:[%s2714_s1 + $0x90] sm:$0xff]   ;;  %v1801_v26 = vld [vmem:[%s2715_s0 + $0x18] ss:$12 sps:$4 sm:$0xff]  }
   0x9   :  { %v1793_v21 = vld [vmem:[%s2715_s0 + $0x240] ss:$12 sps:$4 sm:$0xff]   ;;  %v1802_v27 = vld [vmem:[%s2715_s0 + $0x258] ss:$12 sps:$4 sm:$0xff]   ;;  %v1808_v31 = vld [vmem:[%s2715_s0 + $0x30] ss:$12 sps:$4 sm:$0xff]  }
   0xa   :  { %859 = vmatpush1.bf16.msra.mxu0 %v1776_v3  ;;  %1759 = vmatpush1.bf16.msra.mxu1 %v1776_v3  ;;  %v1803_v24 = vld [vmem:[%s2714_s1 + $0x88] sm:$0xff]   ;;  %v1804_v28 = vld [vmem:[%s2715_s0 + $0x34] ss:$12 sps:$4 sm:$0xff]   ;;  %v1817_v30 = vld [vmem:[%s2714_s1 + $0x98] sm:$0xff]  }
   0xb   :  { %860 = vmatprep.subr.bf16.mxu0 %v1926_v0  ;;  %1744 = vmatprep.subr.bf16.mxu1 %v1926_v0  ;;  %v1806_v29 = vld [vmem:[%s2715_s0 + $0x274] ss:$12 sps:$4 sm:$0xff]   ;;  %v1809_v33 = vld [vmem:[%s2715_s0 + $0x270] ss:$12 sps:$4 sm:$0xff]   ;;  %v1811_v34 = vld [vmem:[%s2715_s0 + $0x4c] ss:$12 sps:$4 sm:$0xff]  }
   0xc   :  { %v1824_v32 = vld [vmem:[%s2714_s1 + $0xa0] sm:$0xff]   ;;  %v1813_v35 = vld [vmem:[%s2715_s0 + $0x28c] ss:$12 sps:$4 sm:$0xff]   ;;  %v1815_v37 = vld [vmem:[%s2715_s0 + $0x48] ss:$12 sps:$4 sm:$0xff]  }
   0xd   :  { %v1831_v36 = vld [vmem:[%s2714_s1 + $0xa8] sm:$0xff]   ;;  %v1818_v39 = vld [vmem:[%s2715_s0 + $0x64] ss:$12 sps:$4 sm:$0xff]   ;;  %v1845_v42 = vld [vmem:[%s2714_s1 + $0xb8] sm:$0xff]  }
   0xe   :  { %861 = vmatpush1.bf16.msra.mxu0 %v1777_v4  ;;  %1760 = vmatpush1.bf16.msra.mxu1 %v1777_v4  ;;  %v1816_v38 = vld [vmem:[%s2715_s0 + $0x288] ss:$12 sps:$4 sm:$0xff]   ;;  %v1820_v40 = vld [vmem:[%s2715_s0 + $0x2a4] ss:$12 sps:$4 sm:$0xff]   ;;  %v1822_v43 = vld [vmem:[%s2715_s0 + $0x60] ss:$12 sps:$4 sm:$0xff]  }
   0xf   :  { %862 = vmatprep.subr.bf16.mxu0 %v1926_v0  ;;  %1745 = vmatprep.subr.bf16.mxu1 %v1926_v0  ;;  %v1838_v41 = vld [vmem:[%s2714_s1 + $0xb0] sm:$0xff]   ;;  %v1823_v44 = vld [vmem:[%s2715_s0 + $0x2a0] ss:$12 sps:$4 sm:$0xff]   ;;  %v1825_v45 = vld [vmem:[%s2715_s0 + $0x7c] ss:$12 sps:$4 sm:$0xff]  }
  0x10   :  { %v1827_v46 = vld [vmem:[%s2715_s0 + $0x2bc] ss:$12 sps:$4 sm:$0xff]   ;;  %v1829_v47 = vld [vmem:[%s2715_s0 + $0x78] ss:$12 sps:$4 sm:$0xff]   ;;  %v1832_v49 = vld [vmem:[%s2715_s0 + $0x94] ss:$12 sps:$4 sm:$0xff]  }
  0x11   :  { %v1830_v48 = vld [vmem:[%s2715_s0 + $0x2b8] ss:$12 sps:$4 sm:$0xff]   ;;  %v1834_v50 = vld [vmem:[%s2715_s0 + $0x2d4] ss:$12 sps:$4 sm:$0xff]   ;;  %v1836_v51 = vld [vmem:[%s2715_s0 + $0x90] ss:$12 sps:$4 sm:$0xff]  }
  0x12   :  { %863 = vmatpush1.bf16.msra.mxu0 %v1778_v5  ;;  %1761 = vmatpush1.bf16.msra.mxu1 %v1778_v5  ;;  %v1837_v52 = vld [vmem:[%s2715_s0 + $0x2d0] ss:$12 sps:$4 sm:$0xff]   ;;  %v1839_v53 = vld [vmem:[%s2715_s0 + $0xac] ss:$12 sps:$4 sm:$0xff]   ;;  %v1843_v55 = vld [vmem:[%s2715_s0 + $0xa8] ss:$12 sps:$4 sm:$0xff]  }
  0x13   :  { %864 = vmatprep.subr.bf16.mxu0 %v1926_v0  ;;  %1746 = vmatprep.subr.bf16.mxu1 %v1926_v0  ;;  %v1841_v54 = vld [vmem:[%s2715_s0 + $0x2ec] ss:$12 sps:$4 sm:$0xff]   ;;  %v1844_v56 = vld [vmem:[%s2715_s0 + $0x2e8] ss:$12 sps:$4 sm:$0xff]   ;;  %v1846_v57 = vld [vmem:[%s2715_s0 + $0xc4] ss:$12 sps:$4 sm:$0xff]  }
  0x14   :  { %v1848_v58 = vld [vmem:[%s2715_s0 + $0x8] ss:$12 sps:$4 sm:$0xff]   ;;  %v1849_v59 = vld [vmem:[%s2715_s0 + $0xc0] ss:$12 sps:$4 sm:$0xff]   ;;  %v1853_v62 = vld [vmem:[%s2715_s0 + $0x38] ss:$12 sps:$4 sm:$0xff]  }
  0x15   :  { %v1850_v60 = vld [vmem:[%s2715_s0 + $0x20] ss:$12 sps:$4 sm:$0xff]   ;;  %v1851_v61 = vld [vmem:[%s2715_s0 + $0xdc] ss:$12 sps:$4 sm:$0xff]   ;;  %v1854_v63 = vld [vmem:[%s2715_s0 + $0xd8] ss:$12 sps:$4 sm:$0xff]  }
  0x16   :  { %865 = vmatpush1.bf16.msra.mxu0 %v1779_v7  ;;  %1762 = vmatpush1.bf16.msra.mxu1 %v1779_v7  ;;  %v1856_v1 = vld [vmem:[%s2715_s0 + $0xf4] ss:$12 sps:$4 sm:$0xff]   ;;  %v1859_v3 = vld [vmem:[%s2715_s0 + $0xf0] ss:$12 sps:$4 sm:$0xff]   ;;  %v1861_v5 = vld [vmem:[%s2715_s0 + $0x10c] ss:$12 sps:$4 sm:$0xff]  }
  0x17   :  { %866 = vmatprep.subr.bf16.mxu0 %v1926_v0  ;;  %1747 = vmatprep.subr.bf16.mxu1 %v1926_v0  ;;  %v1858_v2 = vld [vmem:[%s2715_s0 + $0x68] ss:$12 sps:$4 sm:$0xff]   ;;  %v1860_v4 = vld [vmem:[%s2715_s0 + $0x80] ss:$12 sps:$4 sm:$0xff]   ;;  %v1863_v6 = vld [vmem:[%s2715_s0 + $0x98] ss:$12 sps:$4 sm:$0xff]  }
  0x18   :  { %v1864_v7 = vld [vmem:[%s2715_s0 + $0x108] ss:$12 sps:$4 sm:$0xff]   ;;  %v1865_v8 = vld [vmem:[%s2715_s0 + $0xb0] ss:$12 sps:$4 sm:$0xff]  }
  0x1a   :  { %867 = vmatpush1.bf16.msra.mxu0 %v1780_v9  ;;  %1763 = vmatpush1.bf16.msra.mxu1 %v1780_v9  ;;  %v1866_v9 = vld [vmem:[%s2715_s0 + $0x124] ss:$12 sps:$4 sm:$0xff]  }
  0x1b   :  { %868 = vmatprep.subr.bf16.mxu0 %v1926_v0  ;;  %1748 = vmatprep.subr.bf16.mxu1 %v1926_v0 }
  0x1e   :  { %869 = vmatpush1.bf16.msra.mxu0 %v1781_v10  ;;  %1764 = vmatpush1.bf16.msra.mxu1 %v1781_v10  ;;  %v1868_v10 = vld [vmem:[%s2715_s0 + $0xc8] ss:$12 sps:$4 sm:$0xff]  }
  0x1f   :  { %870 = vmatprep.subr.bf16.mxu0 %v1926_v0  ;;  %1749 = vmatprep.subr.bf16.mxu1 %v1926_v0 }
  0x22   :  { %871 = vmatpush1.bf16.msra.mxu0 %v1782_v11  ;;  %1765 = vmatpush1.bf16.msra.mxu1 %v1782_v11  ;;  %v1869_v11 = vld [vmem:[%s2715_s0 + $0x120] ss:$12 sps:$4 sm:$0xff]  }
  0x23   :  { %872 = vmatprep.subr.bf16.mxu0 %v1926_v0  ;;  %1750 = vmatprep.subr.bf16.mxu1 %v1926_v0 }
  0x26   :  { %873 = vmatpush1.bf16.msra.mxu0 %v1783_v12  ;;  %1766 = vmatpush1.bf16.msra.mxu1 %v1783_v12  ;;  %v1870_v12 = vld [vmem:[%s2715_s0 + $0xe0] ss:$12 sps:$4 sm:$0xff]  }
  0x27   :  { %874 = vmatprep.subr.bf16.mxu0 %v1926_v0  ;;  %1751 = vmatprep.subr.bf16.mxu1 %v1926_v0 }
  0x2a   :  { %875 = vmatpush1.bf16.msra.mxu0 %v1784_v13  ;;  %1767 = vmatpush1.bf16.msra.mxu1 %v1784_v13  ;;  %v1871_v13 = vld [vmem:[%s2715_s0 + $0x13c] ss:$12 sps:$4 sm:$0xff]  }
  0x2b   :  { %876 = vmatprep.subr.bf16.mxu0 %v1926_v0  ;;  %1752 = vmatprep.subr.bf16.mxu1 %v1926_v0 }
  0x2e   :  { %877 = vmatpush1.bf16.msra.mxu0 %v1785_v14  ;;  %1768 = vmatpush1.bf16.msra.mxu1 %v1785_v14  ;;  %v1873_v14 = vld [vmem:[%s2715_s0 + $0xf8] ss:$12 sps:$4 sm:$0xff]  }
  0x2f   :  { %878 = vmatprep.subr.bf16.mxu0 %v1926_v0  ;;  %1753 = vmatprep.subr.bf16.mxu1 %v1926_v0 }
  0x32   :  { %879 = vmatpush1.bf16.msra.mxu0 %v1786_v15  ;;  %1769 = vmatpush1.bf16.msra.mxu1 %v1786_v15  ;;  %v1874_v15 = vld [vmem:[%s2715_s0 + $0x138] ss:$12 sps:$4 sm:$0xff]  }
  0x33   :  { %880 = vmatprep.subr.bf16.mxu0 %v1926_v0  ;;  %1754 = vmatprep.subr.bf16.mxu1 %v1926_v0 }
  0x36   :  { %881 = vmatpush1.bf16.msra.mxu0 %v1787_v16  ;;  %1770 = vmatpush1.bf16.msra.mxu1 %v1787_v16  ;;  %v1875_v16 = vld [vmem:[%s2715_s0 + $0x110] ss:$12 sps:$4 sm:$0xff]  }
  0x37   :  { %882 = vmatprep.subr.bf16.mxu0 %v1926_v0  ;;  %1755 = vmatprep.subr.bf16.mxu1 %v1926_v0 }
  0x3a   :  { %883 = vmatpush1.bf16.msra.mxu0 %v1788_v17  ;;  %1771 = vmatpush1.bf16.msra.mxu1 %v1788_v17  ;;  %v1876_v17 = vld [vmem:[%s2715_s0 + $0x154] ss:$12 sps:$4 sm:$0xff]  }
  0x3b   :  { %884 = vmatprep.subr.bf16.mxu0 %v1926_v0  ;;  %1756 = vmatprep.subr.bf16.mxu1 %v1926_v0  ;;  %v1855_v0 = vld [vmem:[%s2715_s0 + $0x50] ss:$12 sps:$4 sm:$0xff]  }
  0x3e   :  { %885 = vmatpush1.bf16.msra.mxu0 %v1789_v18  ;;  %1772 = vmatpush1.bf16.msra.mxu1 %v1789_v18  ;;  %v1878_v18 = vld [vmem:[%s2715_s0 + $0x128] ss:$12 sps:$4 sm:$0xff]  }
  0x3f   :  { %1661 = vmatprep.subr.bf16.mxu1 %v1796_v19 }
  0x41   :  { %887 = vmatmul.mubr.bf16.vlgmr.msra.gmra.mrb[0].mxu0 %v1790_v20  ;;  %1079 = vmatmul.mubr.bf16.vlgmr.msra.gmra.mrb[0].mxu1 %v1793_v21  ;;  %v1880_v20 = vld [vmem:[%s2715_s0 + $0x140] ss:$12 sps:$4 sm:$0xff]  }
  0x42   :  { %1662 = vmatpush3.bf16.msra.mxu1 %v1796_v19  ;;  %894 = vmatprep.mubr.bf16.mxu0 %v1797_v22  ;;  %v1879_v19 = vld [vmem:[%s2715_s0 + $0x150] ss:$12 sps:$4 sm:$0xff]   ;;  %v1881_v21 = vld [vmem:[%s2715_s0 + $0x16c] ss:$12 sps:$4 sm:$0xff]  }
  0x43   :  { %1086 = vmatprep.mubr.bf16.mxu1 %v1799_v23  ;;  %1663 = vmatprep.subr.bf16.mxu1 %v1803_v24  ;;  %v1883_v22 = vld [vmem:[%s2715_s0 + $0x158] ss:$12 sps:$4 sm:$0xff]   ;;  %v1884_v23 = vld [vmem:[%s2715_s0 + $0x168] ss:$12 sps:$4 sm:$0xff]  }
  0x46   :  { %1664 = vmatpush3.bf16.msra.mxu1 %v1803_v24  ;;  %v1885_v24 = vld [vmem:[%s2715_s0 + $0x170] ss:$12 sps:$4 sm:$0xff]  }
  0x47   :  { %1665 = vmatprep.subr.bf16.mxu1 %v1810_v25 }
  0x49   :  { %895 = vmatmul.mubr.bf16.gmra.mrb[4].mxu0 %v1801_v26  ;;  %1087 = vmatmul.mubr.bf16.gmra.mrb[4].mxu1 %v1802_v27  ;;  %v1888_v26 = vld [vmem:[%s2715_s0 + $0x188] ss:$12 sps:$4 sm:$0xff]   ;;  %v1889_v27 = vld [vmem:[%s2715_s0 + $0x180] ss:$12 sps:$4 sm:$0xff]  }
  0x4a   :  { %902 = vmatprep.mubr.bf16.mxu0 %v1804_v28  ;;  %1094 = vmatprep.mubr.bf16.mxu1 %v1806_v29  ;;  %v1890_v28 = vld [vmem:[%s2715_s0 + $0x1a0] ss:$12 sps:$4 sm:$0xff]   ;;  %v1891_v29 = vld [vmem:[%s2715_s0 + $0x19c] ss:$12 sps:$4 sm:$0xff]  }
  0x4b   :  { %1666 = vmatpush3.bf16.msra.mxu1 %v1810_v25  ;;  %v1886_v25 = vld [vmem:[%s2715_s0 + $0x184] ss:$12 sps:$4 sm:$0xff]  }
  0x4c   :  { %1667 = vmatprep.subr.bf16.mxu1 %v1817_v30 }
  0x4f   :  { %1668 = vmatpush3.bf16.msra.mxu1 %v1817_v30  ;;  %v1893_v30 = vld [vmem:[%s2715_s0 + $0x1b8] ss:$12 sps:$4 sm:$0xff]  }
  0x50   :  { %1669 = vmatprep.subr.bf16.mxu1 %v1824_v32 }
  0x51   :  { %903 = vmatmul.mubr.bf16.gmra.mrb[8].mxu0 %v1808_v31  ;;  %1095 = vmatmul.mubr.bf16.gmra.mrb[8].mxu1 %v1809_v33  ;;  %v1894_v31 = vld [vmem:[%s2715_s0 + $0x198] ss:$12 sps:$4 sm:$0xff]   ;;  %v1896_v33 = vld [vmem:[%s2715_s0 + $0x1b4] ss:$12 sps:$4 sm:$0xff]  }
  0x52   :  { %910 = vmatprep.mubr.bf16.mxu0 %v1811_v34  ;;  %1102 = vmatprep.mubr.bf16.mxu1 %v1813_v35  ;;  %v1898_v34 = vld [vmem:[%s2715_s0 + $0x1e8] ss:$12 sps:$4 sm:$0xff]   ;;  %v1899_v35 = vld [vmem:[%s2715_s0 + $0x1b0] ss:$12 sps:$4 sm:$0xff]  }
  0x53   :  { %1670 = vmatpush3.bf16.msra.mxu1 %v1824_v32  ;;  %v1895_v32 = vld [vmem:[%s2715_s0 + $0x1d0] ss:$12 sps:$4 sm:$0xff]  }
  0x54   :  { %1671 = vmatprep.subr.bf16.mxu1 %v1831_v36 }
  0x57   :  { %1672 = vmatpush3.bf16.msra.mxu1 %v1831_v36  ;;  %v1900_v36 = vld [vmem:[%s2715_s0 + $0x200] ss:$12 sps:$4 sm:$0xff]  }
  0x58   :  { %1673 = vmatprep.subr.bf16.mxu1 %v1838_v41 }
  0x59   :  { %911 = vmatmul.mubr.bf16.gmra.mrb[12].mxu0 %v1815_v37  ;;  %1103 = vmatmul.mubr.bf16.gmra.mrb[12].mxu1 %v1816_v38  ;;  %v1901_v37 = vld [vmem:[%s2715_s0 + $0x1cc] ss:$12 sps:$4 sm:$0xff]  }
  0x5a   :  { %918 = vmatprep.mubr.bf16.mxu0 %v1818_v39  ;;  %1110 = vmatprep.mubr.bf16.mxu1 %v1820_v40  ;;  %v1903_v38 = vld [vmem:[%s2715_s0 + $0x218] ss:$12 sps:$4 sm:$0xff]   ;;  %v1904_v39 = vld [vmem:[%s2715_s0 + $0x1c8] ss:$12 sps:$4 sm:$0xff]   ;;  %v1905_v40 = vld [vmem:[%s2715_s0 + $0x230] ss:$12 sps:$4 sm:$0xff]  }
  0x5b   :  { %1674 = vmatpush3.bf16.msra.mxu1 %v1838_v41  ;;  %v1906_v41 = vld [vmem:[%s2715_s0 + $0x1e4] ss:$12 sps:$4 sm:$0xff]  }
  0x5c   :  { %1675 = vmatprep.subr.bf16.mxu1 %v1845_v42 }
  0x5f   :  { %1676 = vmatpush3.bf16.msra.mxu1 %v1845_v42  ;;  %v1908_v42 = vld [vmem:[%s2715_s0 + $0x248] ss:$12 sps:$4 sm:$0xff]  }
  0x61   :  { %919 = vmatmul.mubr.bf16.gmra.mrb[16].mxu0 %v1822_v43  ;;  %1111 = vmatmul.mubr.bf16.gmra.mrb[16].mxu1 %v1823_v44  ;;  %v1909_v43 = vld [vmem:[%s2715_s0 + $0x1e0] ss:$12 sps:$4 sm:$0xff]  }
  0x62   :  { %926 = vmatprep.mubr.bf16.mxu0 %v1825_v45  ;;  %1118 = vmatprep.mubr.bf16.mxu1 %v1827_v46  ;;  %v1910_v44 = vld [vmem:[%s2715_s0 + $0x260] ss:$12 sps:$4 sm:$0xff]   ;;  %v1911_v45 = vld [vmem:[%s2715_s0 + $0x1fc] ss:$12 sps:$4 sm:$0xff]   ;;  %v1913_v46 = vld [vmem:[%s2715_s0 + $0x278] ss:$12 sps:$4 sm:$0xff]  }
  0x69   :  { %927 = vmatmul.mubr.bf16.gmra.mrb[20].mxu0 %v1829_v47  ;;  %1119 = vmatmul.mubr.bf16.gmra.mrb[20].mxu1 %v1830_v48  ;;  %v1914_v47 = vld [vmem:[%s2715_s0 + $0x1f8] ss:$12 sps:$4 sm:$0xff]   ;;  %v1915_v48 = vld [vmem:[%s2715_s0 + $0x290] ss:$12 sps:$4 sm:$0xff]  }
  0x6a   :  { %934 = vmatprep.mubr.bf16.mxu0 %v1832_v49  ;;  %1126 = vmatprep.mubr.bf16.mxu1 %v1834_v50  ;;  %v1916_v49 = vld [vmem:[%s2715_s0 + $0x214] ss:$12 sps:$4 sm:$0xff]  }
  0x6b   :  { %v1918_v50 = vld [vmem:[%s2715_s0 + $0x2a8] ss:$12 sps:$4 sm:$0xff]  }
  0x71   :  { %935 = vmatmul.mubr.bf16.gmra.mrb[24].mxu0 %v1836_v51  ;;  %1127 = vmatmul.mubr.bf16.gmra.mrb[24].mxu1 %v1837_v52  ;;  %v1919_v51 = vld [vmem:[%s2715_s0 + $0x210] ss:$12 sps:$4 sm:$0xff]   ;;  %v1920_v52 = vld [vmem:[%s2715_s0 + $0x2c0] ss:$12 sps:$4 sm:$0xff]  }
  0x72   :  { %942 = vmatprep.mubr.bf16.mxu0 %v1839_v53  ;;  %1134 = vmatprep.mubr.bf16.mxu1 %v1841_v54  ;;  %v1921_v53 = vld [vmem:[%s2715_s0 + $0x22c] ss:$12 sps:$4 sm:$0xff]  }
  0x73   :  { %v1923_v54 = vld [vmem:[%s2715_s0 + $0x2d8] ss:$12 sps:$4 sm:$0xff]  }
  0x79   :  { %943 = vmatmul.mubr.bf16.gmra.mrb[28].mxu0 %v1843_v55  ;;  %1135 = vmatmul.mubr.bf16.gmra.mrb[28].mxu1 %v1844_v56  ;;  %v1924_v55 = vld [vmem:[%s2715_s0 + $0x228] ss:$12 sps:$4 sm:$0xff]   ;;  %v1925_v56 = vld [vmem:[%s2715_s0 + $0x2f0] ss:$12 sps:$4 sm:$0xff]  }
  0x7a   :  { %950 = vmatprep.mubr.bf16.mxu0 %v1846_v57  ;;  %1677 = vmatprep.mubr.bf16.mxu1 %v1848_v58 }
  0x81   :  { %951 = vmatmul.mubr.bf16.gmra.mrb[32].mxu0 %v1849_v59  ;;  %1678 = vmatmul.mubr.bf16.vlgmr.msra.gmra.mrb[32].mxu1 %v1850_v60 }
  0x82   :  { %958 = vmatprep.mubr.bf16.mxu0 %v1851_v61  ;;  %1681 = vmatprep.mubr.bf16.mxu1 %v1853_v62 }
  0x89   :  { %959 = vmatmul.mubr.bf16.gmra.mrb[36].mxu0 %v1854_v63  ;;  %1682 = vmatmul.mubr.bf16.gmra.mrb[36].mxu1 %v1855_v0 }
  0x8a   :  { %966 = vmatprep.mubr.bf16.mxu0 %v1856_v1  ;;  %1685 = vmatprep.mubr.bf16.mxu1 %v1858_v2 }
  0x91   :  { %967 = vmatmul.mubr.bf16.gmra.mrb[40].mxu0 %v1859_v3  ;;  %1686 = vmatmul.mubr.bf16.gmra.mrb[40].mxu1 %v1860_v4 }
  0x92   :  { %974 = vmatprep.mubr.bf16.mxu0 %v1861_v5  ;;  %1689 = vmatprep.mubr.bf16.mxu1 %v1863_v6 }
  0x99   :  { %975 = vmatmul.mubr.bf16.gmra.mrb[44].mxu0 %v1864_v7  ;;  %1690 = vmatmul.mubr.bf16.gmra.mrb[44].mxu1 %v1865_v8 }
  0x9a   :  { %982 = vmatprep.mubr.bf16.mxu0 %v1866_v9  ;;  %1693 = vmatprep.mubr.bf16.mxu1 %v1868_v10 }
  0xa1   :  { %983 = vmatmul.mubr.bf16.gmra.mrb[48].mxu0 %v1869_v11  ;;  %1694 = vmatmul.mubr.bf16.gmra.mrb[48].mxu1 %v1870_v12 }
  0xa2   :  { %990 = vmatprep.mubr.bf16.mxu0 %v1871_v13  ;;  %1697 = vmatprep.mubr.bf16.mxu1 %v1873_v14 }
  0xa9   :  { %991 = vmatmul.mubr.bf16.gmra.mrb[52].mxu0 %v1874_v15  ;;  %1698 = vmatmul.mubr.bf16.gmra.mrb[52].mxu1 %v1875_v16 }
  0xaa   :  { %998 = vmatprep.mubr.bf16.mxu0 %v1876_v17  ;;  %1701 = vmatprep.mubr.bf16.mxu1 %v1878_v18 }
  0xb1   :  { %999 = vmatmul.mubr.bf16.gmra.mrb[56].mxu0 %v1879_v19  ;;  %1702 = vmatmul.mubr.bf16.gmra.mrb[56].mxu1 %v1880_v20 }
  0xb2   :  { %1006 = vmatprep.mubr.bf16.mxu0 %v1881_v21  ;;  %1705 = vmatprep.mubr.bf16.mxu1 %v1883_v22 }
  0xb9   :  { %1007 = vmatmul.mubr.bf16.gmra.mrb[60].mxu0 %v1884_v23  ;;  %1706 = vmatmul.mubr.bf16.gmra.mrb[60].mxu1 %v1885_v24 }
  0xba   :  { %1014 = vmatprep.mubr.bf16.mxu0 %v1886_v25  ;;  %1709 = vmatprep.mubr.bf16.mxu1 %v1888_v26 }
  0xc1   :  { %1015 = vmatmul.mubr.bf16.gmra.mrb[64].mxu0 %v1889_v27  ;;  %1710 = vmatmul.mubr.bf16.gmra.mrb[64].mxu1 %v1890_v28 }
  0xc2   :  { %1022 = vmatprep.mubr.bf16.mxu0 %v1891_v29  ;;  %1713 = vmatprep.mubr.bf16.mxu1 %v1893_v30 }
  0xc9   :  { %1023 = vmatmul.mubr.bf16.gmra.mrb[68].mxu0 %v1894_v31  ;;  %1714 = vmatmul.mubr.bf16.gmra.mrb[68].mxu1 %v1895_v32 }
  0xca   :  { %1030 = vmatprep.mubr.bf16.mxu0 %v1896_v33  ;;  %1717 = vmatprep.mubr.bf16.mxu1 %v1898_v34 }
  0xd1   :  { %1031 = vmatmul.mubr.bf16.gmra.mrb[72].mxu0 %v1899_v35  ;;  %1718 = vmatmul.mubr.bf16.gmra.mrb[72].mxu1 %v1900_v36 }
  0xd2   :  { %1038 = vmatprep.mubr.bf16.mxu0 %v1901_v37  ;;  %1721 = vmatprep.mubr.bf16.mxu1 %v1903_v38 }
  0xd9   :  { %1039 = vmatmul.mubr.bf16.gmra.mrb[76].mxu0 %v1904_v39  ;;  %1722 = vmatmul.mubr.bf16.gmra.mrb[76].mxu1 %v1905_v40 }
  0xda   :  { %1046 = vmatprep.mubr.bf16.mxu0 %v1906_v41  ;;  %1725 = vmatprep.mubr.bf16.mxu1 %v1908_v42 }
  0xe1   :  { %1047 = vmatmul.mubr.bf16.gmra.mrb[80].mxu0 %v1909_v43  ;;  %1726 = vmatmul.mubr.bf16.gmra.mrb[80].mxu1 %v1910_v44 }
  0xe2   :  { %1054 = vmatprep.mubr.bf16.mxu0 %v1911_v45  ;;  %1729 = vmatprep.mubr.bf16.mxu1 %v1913_v46 }
  0xe9   :  { %1055 = vmatmul.mubr.bf16.gmra.mrb[84].mxu0 %v1914_v47  ;;  %1730 = vmatmul.mubr.bf16.gmra.mrb[84].mxu1 %v1915_v48 }
  0xea   :  { %1062 = vmatprep.mubr.bf16.mxu0 %v1916_v49  ;;  %1733 = vmatprep.mubr.bf16.mxu1 %v1918_v50 }
  0xf1   :  { %1063 = vmatmul.mubr.bf16.gmra.mrb[88].mxu0 %v1919_v51  ;;  %1734 = vmatmul.mubr.bf16.gmra.mrb[88].mxu1 %v1920_v52 }
  0xf2   :  { %1070 = vmatprep.mubr.bf16.mxu0 %v1921_v53  ;;  %1737 = vmatprep.mubr.bf16.mxu1 %v1923_v54 }
  0xf9   :  { %1071 = vmatmul.mubr.bf16.gmra.mrb[92].mxu0 %v1924_v55  ;;  %1738 = vmatmul.mubr.bf16.gmra.mrb[92].mxu1 %v1925_v56 }
 0x114   :  { %v2339_v57 = vpop.f32.mrb[0].mxu0  ;;  %v2341_v58 = vpop.f32.mrb[0].mxu1 }
 0x115   :  { %v890_v59 = vpop.f32.mrb[1].mxu0  ;;  %v1082_v60 = vpop.f32.mrb[1].mxu1 }
 0x116   :  { %v2343_v61 = vpop.f32.mrb[2].mxu0  ;;  %v2345_v62 = vpop.f32.mrb[2].mxu1  ;;  %v2402_v59 = vld [vmem:[%s2716_s2] ss:$0 sm:$0xff] }
 0x117   :  { %v893_v63 = vpop.f32.mrb[3].mxu0  ;;  %v1085_v0 = vpop.f32.mrb[3].mxu1 }
 0x118   :  { %v889_v63 = vadd.f32 %v2402_v59, %v2339_v57 }
 0x11c   :  { %v896_v1 = vpop.f32.mrb[4].mxu0  ;;  %v2347_v2 = vpop.f32.mrb[4].mxu1 }
 0x11d   :  { %v898_v3 = vpop.f32.mrb[5].mxu0  ;;  %v1090_v4 = vpop.f32.mrb[5].mxu1  ;;  %v897_v60 = vadd.f32 %v2402_v59, %v896_v1 }
 0x11e   :  { %v899_v5 = vpop.f32.mrb[6].mxu0  ;;  %v2349_v6 = vpop.f32.mrb[6].mxu1 }
 0x11f   :  { %v901_v7 = vpop.f32.mrb[7].mxu0  ;;  %v1093_v8 = vpop.f32.mrb[7].mxu1  ;;  %v900_v4 = vadd.f32 %v2402_v59, %v899_v5 }
 0x124   :  { %v2351_v9 = vpop.f32.mrb[8].mxu0  ;;  %v2353_v10 = vpop.f32.mrb[8].mxu1 }
 0x125   :  { %v906_v11 = vpop.f32.mrb[9].mxu0  ;;  %v1098_v12 = vpop.f32.mrb[9].mxu1 }
 0x126   :  { %v2355_v13 = vpop.f32.mrb[10].mxu0  ;;  %v2357_v14 = vpop.f32.mrb[10].mxu1  ;;  %v892_v12 = vadd.f32 %v2402_v59, %v2343_v61 }
 0x127   :  { %v909_v15 = vpop.f32.mrb[11].mxu0  ;;  %v1101_v16 = vpop.f32.mrb[11].mxu1 }
 0x12c   :  { %v2359_v17 = vpop.f32.mrb[12].mxu0  ;;  %v2361_v18 = vpop.f32.mrb[12].mxu1 }
 0x12d   :  { %v914_v19 = vpop.f32.mrb[13].mxu0  ;;  %v1106_v20 = vpop.f32.mrb[13].mxu1  ;;  %v913_v61 = vadd.f32 %v2402_v59, %v2359_v17 }
 0x12e   :  { %v2363_v21 = vpop.f32.mrb[14].mxu0  ;;  %v2365_v22 = vpop.f32.mrb[14].mxu1 }
 0x12f   :  { %v917_v23 = vpop.f32.mrb[15].mxu0  ;;  %v1109_v24 = vpop.f32.mrb[15].mxu1 }
 0x130   :  { %v905_v23 = vadd.f32 %v2402_v59, %v2351_v9 }
 0x134   :  { %v2367_v25 = vpop.f32.mrb[16].mxu0  ;;  %v2369_v26 = vpop.f32.mrb[16].mxu1 }
 0x135   :  { %v922_v27 = vpop.f32.mrb[17].mxu0  ;;  %v1114_v28 = vpop.f32.mrb[17].mxu1 }
 0x136   :  { %v2371_v29 = vpop.f32.mrb[18].mxu0  ;;  %v2373_v30 = vpop.f32.mrb[18].mxu1  ;;  %v916_v28 = vadd.f32 %v2402_v59, %v2363_v21 }
 0x137   :  { %v925_v31 = vpop.f32.mrb[19].mxu0  ;;  %v1117_v32 = vpop.f32.mrb[19].mxu1 }
 0x13c   :  { %v2375_v33 = vpop.f32.mrb[20].mxu0  ;;  %v2377_v34 = vpop.f32.mrb[20].mxu1 }
 0x13d   :  { %v930_v35 = vpop.f32.mrb[21].mxu0  ;;  %v1122_v36 = vpop.f32.mrb[21].mxu1 }
 0x13e   :  { %v2379_v37 = vpop.f32.mrb[22].mxu0  ;;  %v2381_v38 = vpop.f32.mrb[22].mxu1  ;;  %v908_v36 = vadd.f32 %v2402_v59, %v2355_v13  ;;  %v929_v13 = vadd.f32 %v2402_v59, %v2375_v33 }
 0x13f   :  { %v933_v39 = vpop.f32.mrb[23].mxu0  ;;  %v1125_v40 = vpop.f32.mrb[23].mxu1 }
 0x144   :  { %v2383_v41 = vpop.f32.mrb[24].mxu0  ;;  %v2385_v42 = vpop.f32.mrb[24].mxu1 }
 0x145   :  { %v938_v43 = vpop.f32.mrb[25].mxu0  ;;  %v1130_v44 = vpop.f32.mrb[25].mxu1 }
 0x146   :  { %v2387_v45 = vpop.f32.mrb[26].mxu0  ;;  %v2389_v46 = vpop.f32.mrb[26].mxu1 }
 0x147   :  { %v941_v47 = vpop.f32.mrb[27].mxu0  ;;  %v1133_v48 = vpop.f32.mrb[27].mxu1 }
 0x148   :  { %v921_v47 = vadd.f32 %v2402_v59, %v2367_v25 }
 0x14c   :  { %v2391_v49 = vpop.f32.mrb[28].mxu0  ;;  %v2393_v50 = vpop.f32.mrb[28].mxu1 }
 0x14d   :  { %v946_v51 = vpop.f32.mrb[29].mxu0  ;;  %v1138_v52 = vpop.f32.mrb[29].mxu1 }
 0x14e   :  { %v2395_v53 = vpop.f32.mrb[30].mxu0  ;;  %v2397_v54 = vpop.f32.mrb[30].mxu1  ;;  %v932_v52 = vadd.f32 %v2402_v59, %v2379_v37 }
 0x14f   :  { %v949_v55 = vpop.f32.mrb[31].mxu0  ;;  %v1141_v56 = vpop.f32.mrb[31].mxu1 }
 0x154   :  { %v2407_v0 = vpop.f32.mrb[32].mxu0  ;;  %v1679_v3 = vpop.f32.mrb[32].mxu1 }
 0x155   :  { %v1186_v7 = vadd.f32 %v1679_v3, %v897_v60  ;;  %v954_v8 = vpop.f32.mrb[33].mxu0  ;;  %v1177_v11 = vpop.f32.mrb[33].mxu1 }
 0x156   :  { %v1178_v15 = vadd.f32 %v1177_v11, %v889_v63  ;;  %v2412_v16 = vpop.f32.mrb[34].mxu0  ;;  %v1680_v19 = vpop.f32.mrb[34].mxu1  ;;  %v924_v63 = vadd.f32 %v2402_v59, %v2371_v29  ;;  %v945_v29 = vadd.f32 %v2402_v59, %v2391_v49  ;;  %v937_v11 = vadd.f32 %v2402_v59, %v2383_v41 }
 0x157   :  { %1434 = vst [vmem:[%s2717_s3 + $0x10] sm:$0xff] %v1186_v7  ;;  %v1189_v57 = vadd.f32 %v1680_v19, %v900_v4  ;;  %v957_v1 = vpop.f32.mrb[35].mxu0  ;;  %v1180_v20 = vpop.f32.mrb[35].mxu1  ;;  %v948_v19 = vadd.f32 %v2402_v59, %v2395_v53 }
 0x158   :  { %1432 = vst [vmem:[%s2717_s3] sm:$0xff] %v1178_v15  ;;  %v1181_v5 = vadd.f32 %v1180_v20, %v892_v12 }
 0x159   :  { %1435 = vst [vmem:[%s2717_s3 + $0x18] sm:$0xff] %v1189_v57 }
 0x15a   :  { %1433 = vst [vmem:[%s2717_s3 + $0x8] sm:$0xff] %v1181_v5  ;;  %v940_v5 = vadd.f32 %v2402_v59, %v2387_v45 }
 0x15c   :  { %v960_v24 = vpop.f32.mrb[36].mxu0  ;;  %v1683_v27 = vpop.f32.mrb[36].mxu1 }
 0x15d   :  { %v1202_v31 = vadd.f32 %v1683_v27, %v913_v61  ;;  %v962_v32 = vpop.f32.mrb[37].mxu0  ;;  %v1193_v35 = vpop.f32.mrb[37].mxu1  ;;  %v961_v45 = vadd.f32 %v2402_v59, %v960_v24 }
 0x15e   :  { %v1194_v39 = vadd.f32 %v1193_v35, %v905_v23  ;;  %v963_v40 = vpop.f32.mrb[38].mxu0  ;;  %v1684_v43 = vpop.f32.mrb[38].mxu1 }
 0x15f   :  { %1438 = vst [vmem:[%s2717_s3 + $0x30] sm:$0xff] %v1202_v31  ;;  %v1205_v17 = vadd.f32 %v1684_v43, %v916_v28  ;;  %v965_v9 = vpop.f32.mrb[39].mxu0  ;;  %v1196_v44 = vpop.f32.mrb[39].mxu1  ;;  %v953_v31 = vadd.f32 %v2402_v59, %v2407_v0 }
 0x160   :  { %1436 = vst [vmem:[%s2717_s3 + $0x20] sm:$0xff] %v1194_v39  ;;  %v1197_v21 = vadd.f32 %v1196_v44, %v908_v36  ;;  %v964_v36 = vadd.f32 %v2402_v59, %v963_v40  ;;  %v956_v9 = vadd.f32 %v2402_v59, %v2412_v16 }
 0x161   :  { %1439 = vst [vmem:[%s2717_s3 + $0x38] sm:$0xff] %v1205_v17 }
 0x162   :  { %1437 = vst [vmem:[%s2717_s3 + $0x28] sm:$0xff] %v1197_v21 }
 0x164   :  { %v968_v48 = vpop.f32.mrb[40].mxu0  ;;  %v1687_v51 = vpop.f32.mrb[40].mxu1 }
 0x165   :  { %v1218_v55 = vadd.f32 %v1687_v51, %v929_v13  ;;  %v970_v56 = vpop.f32.mrb[41].mxu0  ;;  %v1209_v60 = vpop.f32.mrb[41].mxu1  ;;  %v969_v51 = vadd.f32 %v2402_v59, %v968_v48 }
 0x166   :  { %v1210_v3 = vadd.f32 %v1209_v60, %v921_v47  ;;  %v971_v4 = vpop.f32.mrb[42].mxu0  ;;  %v1688_v7 = vpop.f32.mrb[42].mxu1 }
 0x167   :  { %1442 = vst [vmem:[%s2717_s3 + $0x50] sm:$0xff] %v1218_v55  ;;  %v1221_v33 = vadd.f32 %v1688_v7, %v932_v52  ;;  %v973_v25 = vpop.f32.mrb[43].mxu0  ;;  %v1212_v8 = vpop.f32.mrb[43].mxu1  ;;  %v972_v7 = vadd.f32 %v2402_v59, %v971_v4 }
 0x168   :  { %1440 = vst [vmem:[%s2717_s3 + $0x40] sm:$0xff] %v1210_v3  ;;  %v1213_v37 = vadd.f32 %v1212_v8, %v924_v63 }
 0x169   :  { %1443 = vst [vmem:[%s2717_s3 + $0x58] sm:$0xff] %v1221_v33 }
 0x16a   :  { %1441 = vst [vmem:[%s2717_s3 + $0x48] sm:$0xff] %v1213_v37 }
 0x16c   :  { %v976_v12 = vpop.f32.mrb[44].mxu0  ;;  %v1691_v15 = vpop.f32.mrb[44].mxu1 }
 0x16d   :  { %v1234_v57 = vadd.f32 %v1691_v15, %v945_v29  ;;  %v978_v1 = vpop.f32.mrb[45].mxu0  ;;  %v1225_v20 = vpop.f32.mrb[45].mxu1  ;;  %v977_v16 = vadd.f32 %v2402_v59, %v976_v12 }
 0x16e   :  { %v1226_v61 = vadd.f32 %v1225_v20, %v937_v11  ;;  %v979_v23 = vpop.f32.mrb[46].mxu0  ;;  %v1692_v27 = vpop.f32.mrb[46].mxu1 }
 0x16f   :  { %1446 = vst [vmem:[%s2717_s3 + $0x70] sm:$0xff] %v1234_v57  ;;  %v1237_v49 = vadd.f32 %v1692_v27, %v948_v19  ;;  %v981_v41 = vpop.f32.mrb[47].mxu0  ;;  %v1228_v28 = vpop.f32.mrb[47].mxu1  ;;  %v980_v56 = vadd.f32 %v2402_v59, %v979_v23 }
 0x170   :  { %1444 = vst [vmem:[%s2717_s3 + $0x60] sm:$0xff] %v1226_v61  ;;  %v1229_v53 = vadd.f32 %v1228_v28, %v940_v5 }
 0x171   :  { %1447 = vst [vmem:[%s2717_s3 + $0x78] sm:$0xff] %v1237_v49 }
 0x172   :  { %1445 = vst [vmem:[%s2717_s3 + $0x68] sm:$0xff] %v1229_v53 }
 0x174   :  { %v984_v32 = vpop.f32.mrb[48].mxu0  ;;  %v1695_v35 = vpop.f32.mrb[48].mxu1 }
 0x175   :  { %v1250_v39 = vadd.f32 %v1695_v35, %v961_v45  ;;  %v986_v43 = vpop.f32.mrb[49].mxu0  ;;  %v1241_v17 = vpop.f32.mrb[49].mxu1  ;;  %v985_v12 = vadd.f32 %v2402_v59, %v984_v32 }
 0x176   :  { %v1242_v44 = vadd.f32 %v1241_v17, %v953_v31  ;;  %v987_v21 = vpop.f32.mrb[50].mxu0  ;;  %v1696_v13 = vpop.f32.mrb[50].mxu1 }
 0x177   :  { %1450 = vst [vmem:[%s2717_s3 + $0x90] sm:$0xff] %v1250_v39  ;;  %v1253_v24 = vadd.f32 %v1696_v13, %v964_v36  ;;  %v989_v47 = vpop.f32.mrb[51].mxu0  ;;  %v1244_v0 = vpop.f32.mrb[51].mxu1  ;;  %v988_v61 = vadd.f32 %v2402_v59, %v987_v21 }
 0x178   :  { %1448 = vst [vmem:[%s2717_s3 + $0x80] sm:$0xff] %v1242_v44  ;;  %v1245_v40 = vadd.f32 %v1244_v0, %v956_v9 }
 0x179   :  { %1451 = vst [vmem:[%s2717_s3 + $0x98] sm:$0xff] %v1253_v24 }
 0x17a   :  { %1449 = vst [vmem:[%s2717_s3 + $0x88] sm:$0xff] %v1245_v40 }
 0x17c   :  { %v992_v52 = vpop.f32.mrb[52].mxu0  ;;  %v1699_v55 = vpop.f32.mrb[52].mxu1 }
 0x17d   :  { %v1266_v60 = vadd.f32 %v1699_v55, %v977_v16  ;;  %v994_v63 = vpop.f32.mrb[53].mxu0  ;;  %v1257_v3 = vpop.f32.mrb[53].mxu1  ;;  %v993_v4 = vadd.f32 %v2402_v59, %v992_v52 }
 0x17e   :  { %v1258_v33 = vadd.f32 %v1257_v3, %v969_v51  ;;  %v995_v25 = vpop.f32.mrb[54].mxu0  ;;  %v1700_v8 = vpop.f32.mrb[54].mxu1 }
 0x17f   :  { %1454 = vst [vmem:[%s2717_s3 + $0xb0] sm:$0xff] %v1266_v60  ;;  %v1269_v37 = vadd.f32 %v1700_v8, %v980_v56  ;;  %v997_v29 = vpop.f32.mrb[55].mxu0  ;;  %v1260_v11 = vpop.f32.mrb[55].mxu1  ;;  %v996_v57 = vadd.f32 %v2402_v59, %v995_v25 }
 0x180   :  { %1452 = vst [vmem:[%s2717_s3 + $0xa0] sm:$0xff] %v1258_v33  ;;  %v1261_v48 = vadd.f32 %v1260_v11, %v972_v7 }
 0x181   :  { %1455 = vst [vmem:[%s2717_s3 + $0xb8] sm:$0xff] %v1269_v37 }
 0x182   :  { %1453 = vst [vmem:[%s2717_s3 + $0xa8] sm:$0xff] %v1261_v48 }
 0x184   :  { %v1000_v15 = vpop.f32.mrb[56].mxu0  ;;  %v1703_v19 = vpop.f32.mrb[56].mxu1 }
 0x185   :  { %v1282_v1 = vadd.f32 %v1703_v19, %v993_v4  ;;  %v1002_v20 = vpop.f32.mrb[57].mxu0  ;;  %v1273_v5 = vpop.f32.mrb[57].mxu1  ;;  %v1001_v31 = vadd.f32 %v2402_v59, %v1000_v15 }
 0x186   :  { %v1274_v23 = vadd.f32 %v1273_v5, %v985_v12  ;;  %v1003_v27 = vpop.f32.mrb[58].mxu0  ;;  %v1704_v49 = vpop.f32.mrb[58].mxu1 }
 0x187   :  { %1458 = vst [vmem:[%s2717_s3 + $0xd0] sm:$0xff] %v1282_v1  ;;  %v1285_v41 = vadd.f32 %v1704_v49, %v996_v57  ;;  %v1005_v28 = vpop.f32.mrb[59].mxu0  ;;  %v1276_v53 = vpop.f32.mrb[59].mxu1  ;;  %v1004_v17 = vadd.f32 %v2402_v59, %v1003_v27 }
 0x188   :  { %1456 = vst [vmem:[%s2717_s3 + $0xc0] sm:$0xff] %v1274_v23  ;;  %v1277_v45 = vadd.f32 %v1276_v53, %v988_v61 }
 0x189   :  { %1459 = vst [vmem:[%s2717_s3 + $0xd8] sm:$0xff] %v1285_v41 }
 0x18a   :  { %1457 = vst [vmem:[%s2717_s3 + $0xc8] sm:$0xff] %v1277_v45 }
 0x18c   :  { %v1008_v32 = vpop.f32.mrb[60].mxu0  ;;  %v1707_v35 = vpop.f32.mrb[60].mxu1 }
 0x18d   :  { %v1009_v36 = vadd.f32 %v2402_v59, %v1008_v32  ;;  %v1010_v39 = vpop.f32.mrb[61].mxu0  ;;  %v1289_v43 = vpop.f32.mrb[61].mxu1 }
 0x18e   :  { %v1290_v9 = vadd.f32 %v1289_v43, %v1001_v31  ;;  %v1011_v44 = vpop.f32.mrb[62].mxu0  ;;  %v1708_v21 = vpop.f32.mrb[62].mxu1 }
 0x18f   :  { %v1298_v13 = vadd.f32 %v1707_v35, %v1009_v36  ;;  %v1012_v24 = vadd.f32 %v2402_v59, %v1011_v44  ;;  %v1013_v47 = vpop.f32.mrb[63].mxu0  ;;  %v1292_v0 = vpop.f32.mrb[63].mxu1 }
 0x190   :  { %1460 = vst [vmem:[%s2717_s3 + $0xe0] sm:$0xff] %v1290_v9  ;;  %v1293_v40 = vadd.f32 %v1292_v0, %v1004_v17 }
 0x191   :  { %1462 = vst [vmem:[%s2717_s3 + $0xf0] sm:$0xff] %v1298_v13  ;;  %v1301_v16 = vadd.f32 %v1708_v21, %v1012_v24 }
 0x192   :  { %1461 = vst [vmem:[%s2717_s3 + $0xe8] sm:$0xff] %v1293_v40 }
 0x193   :  { %1463 = vst [vmem:[%s2717_s3 + $0xf8] sm:$0xff] %v1301_v16 }
 0x194   :  { %v1016_v51 = vpop.f32.mrb[64].mxu0  ;;  %v1711_v52 = vpop.f32.mrb[64].mxu1 }
 0x195   :  { %v1017_v55 = vadd.f32 %v2402_v59, %v1016_v51  ;;  %v1018_v56 = vpop.f32.mrb[65].mxu0  ;;  %v1305_v60 = vpop.f32.mrb[65].mxu1 }
 0x196   :  { %v1019_v63 = vpop.f32.mrb[66].mxu0  ;;  %v1712_v3 = vpop.f32.mrb[66].mxu1 }
 0x197   :  { %v1306_v7 = vadd.f32 %v1305_v60, %v1017_v55  ;;  %v1020_v33 = vadd.f32 %v2402_v59, %v1019_v63  ;;  %v1021_v25 = vpop.f32.mrb[67].mxu0  ;;  %v1308_v8 = vpop.f32.mrb[67].mxu1  ;;  %v1081_v55 = vadd.f32 %v2402_v59, %v2341_v58  ;;  %v1092_v63 = vadd.f32 %v2402_v59, %v2349_v6 }
 0x199   :  { %1464 = vst [vmem:[%s2717_s3 + $0x100] sm:$0xff] %v1306_v7  ;;  %v1309_v37 = vadd.f32 %v1308_v8, %v1020_v33 }
 0x19b   :  { %1465 = vst [vmem:[%s2717_s3 + $0x108] sm:$0xff] %v1309_v37 }
 0x19c   :  { %v1024_v29 = vpop.f32.mrb[68].mxu0  ;;  %v1715_v11 = vpop.f32.mrb[68].mxu1 }
 0x19d   :  { %v1025_v48 = vadd.f32 %v2402_v59, %v1024_v29  ;;  %v1026_v4 = vpop.f32.mrb[69].mxu0  ;;  %v1321_v12 = vpop.f32.mrb[69].mxu1 }
 0x19e   :  { %v1027_v15 = vpop.f32.mrb[70].mxu0  ;;  %v1716_v19 = vpop.f32.mrb[70].mxu1 }
 0x19f   :  { %v1314_v57 = vadd.f32 %v1711_v52, %v1025_v48  ;;  %v1028_v1 = vadd.f32 %v2402_v59, %v1027_v15  ;;  %v1029_v20 = vpop.f32.mrb[71].mxu0  ;;  %v1324_v5 = vpop.f32.mrb[71].mxu1  ;;  %v1089_v52 = vadd.f32 %v2402_v59, %v2347_v2  ;;  %v1084_v2 = vadd.f32 %v2402_v59, %v2345_v62 }
 0x1a0   :  { %v1105_v15 = vadd.f32 %v2402_v59, %v2361_v18  ;;  %v1108_v20 = vadd.f32 %v2402_v59, %v2365_v22  ;;  %v1100_v18 = vadd.f32 %v2402_v59, %v2357_v14 }
 0x1a1   :  { %1466 = vst [vmem:[%s2717_s3 + $0x110] sm:$0xff] %v1314_v57  ;;  %v1317_v61 = vadd.f32 %v1712_v3, %v1028_v1 }
 0x1a3   :  { %1467 = vst [vmem:[%s2717_s3 + $0x118] sm:$0xff] %v1317_v61 }
 0x1a4   :  { %v1032_v23 = vpop.f32.mrb[72].mxu0  ;;  %v2568_v27 = vpop.f32.mrb[72].mxu1 }
 0x1a5   :  { %v1033_v49 = vadd.f32 %v2402_v59, %v1032_v23  ;;  %v1034_v41 = vpop.f32.mrb[73].mxu0  ;;  %v1337_v28 = vpop.f32.mrb[73].mxu1 }
 0x1a6   :  { %v1035_v53 = vpop.f32.mrb[74].mxu0  ;;  %v2571_v45 = vpop.f32.mrb[74].mxu1 }
 0x1a7   :  { %v1322_v31 = vadd.f32 %v1321_v12, %v1033_v49  ;;  %v1036_v32 = vadd.f32 %v2402_v59, %v1035_v53  ;;  %v1037_v35 = vpop.f32.mrb[75].mxu0  ;;  %v1340_v36 = vpop.f32.mrb[75].mxu1 }
 0x1a9   :  { %1468 = vst [vmem:[%s2717_s3 + $0x120] sm:$0xff] %v1322_v31  ;;  %v1325_v39 = vadd.f32 %v1324_v5, %v1036_v32 }
 0x1ab   :  { %1469 = vst [vmem:[%s2717_s3 + $0x128] sm:$0xff] %v1325_v39  ;;  %v1113_v39 = vadd.f32 %v2402_v59, %v2369_v26 }
 0x1ac   :  { %v1040_v43 = vpop.f32.mrb[76].mxu0  ;;  %v2580_v17 = vpop.f32.mrb[76].mxu1 }
 0x1ad   :  { %v1041_v9 = vadd.f32 %v2402_v59, %v1040_v43  ;;  %v1042_v44 = vpop.f32.mrb[77].mxu0  ;;  %v2583_v21 = vpop.f32.mrb[77].mxu1 }
 0x1ae   :  { %v1043_v13 = vpop.f32.mrb[78].mxu0  ;;  %v2585_v24 = vpop.f32.mrb[78].mxu1 }
 0x1af   :  { %v1330_v47 = vadd.f32 %v1715_v11, %v1041_v9  ;;  %v1044_v0 = vadd.f32 %v2402_v59, %v1043_v13  ;;  %v1045_v40 = vpop.f32.mrb[79].mxu0  ;;  %v2588_v16 = vpop.f32.mrb[79].mxu1  ;;  %v1124_v9 = vadd.f32 %v2402_v59, %v2381_v38 }
 0x1b1   :  { %1470 = vst [vmem:[%s2717_s3 + $0x130] sm:$0xff] %v1330_v47  ;;  %v1333_v51 = vadd.f32 %v1716_v19, %v1044_v0  ;;  %v1097_v19 = vadd.f32 %v2402_v59, %v2353_v10 }
 0x1b3   :  { %1471 = vst [vmem:[%s2717_s3 + $0x138] sm:$0xff] %v1333_v51 }
 0x1b4   :  { %v1048_v56 = vpop.f32.mrb[80].mxu0  ;;  %v1727_v60 = vpop.f32.mrb[80].mxu1 }
 0x1b5   :  { %v1049_v3 = vadd.f32 %v2402_v59, %v1048_v56  ;;  %v1378_v7 = vadd.f32 %v1727_v60, %v1089_v52  ;;  %v1050_v33 = vpop.f32.mrb[81].mxu0  ;;  %v1369_v25 = vpop.f32.mrb[81].mxu1 }
 0x1b6   :  { %v1370_v8 = vadd.f32 %v1369_v25, %v1081_v55  ;;  %v1051_v37 = vpop.f32.mrb[82].mxu0  ;;  %v1728_v29 = vpop.f32.mrb[82].mxu1  ;;  %v1140_v33 = vadd.f32 %v2402_v59, %v2397_v54 }
 0x1b7   :  { %v1338_v11 = vadd.f32 %v1337_v28, %v1049_v3  ;;  %1482 = vst [vmem:[%s2717_s3 + $0x190] sm:$0xff] %v1378_v7  ;;  %v1052_v58 = vadd.f32 %v2402_v59, %v1051_v37  ;;  %v1381_v48 = vadd.f32 %v1728_v29, %v1092_v63  ;;  %v1053_v6 = vpop.f32.mrb[83].mxu0  ;;  %v1372_v4 = vpop.f32.mrb[83].mxu1  ;;  %v1129_v3 = vadd.f32 %v2402_v59, %v2385_v42 }
 0x1b8   :  { %1480 = vst [vmem:[%s2717_s3 + $0x180] sm:$0xff] %v1370_v8  ;;  %v1373_v12 = vadd.f32 %v1372_v4, %v1084_v2 }
 0x1b9   :  { %1472 = vst [vmem:[%s2717_s3 + $0x140] sm:$0xff] %v1338_v11  ;;  %v1341_v62 = vadd.f32 %v1340_v36, %v1052_v58  ;;  %1483 = vst [vmem:[%s2717_s3 + $0x198] sm:$0xff] %v1381_v48 }
 0x1ba   :  { %1481 = vst [vmem:[%s2717_s3 + $0x188] sm:$0xff] %v1373_v12 }
 0x1bb   :  { %1473 = vst [vmem:[%s2717_s3 + $0x148] sm:$0xff] %v1341_v62 }
 0x1bc   :  { %v1056_v57 = vpop.f32.mrb[84].mxu0  ;;  %v1731_v1 = vpop.f32.mrb[84].mxu1 }
 0x1bd   :  { %v1057_v5 = vadd.f32 %v2402_v59, %v1056_v57  ;;  %v1394_v61 = vadd.f32 %v1731_v1, %v1105_v15  ;;  %v1058_v23 = vpop.f32.mrb[85].mxu0  ;;  %v1385_v49 = vpop.f32.mrb[85].mxu1 }
 0x1be   :  { %v1386_v41 = vadd.f32 %v1385_v49, %v1097_v19  ;;  %v1059_v28 = vpop.f32.mrb[86].mxu0  ;;  %v1732_v53 = vpop.f32.mrb[86].mxu1 }
 0x1bf   :  { %v1346_v31 = vadd.f32 %v2568_v27, %v1057_v5  ;;  %1486 = vst [vmem:[%s2717_s3 + $0x1b0] sm:$0xff] %v1394_v61  ;;  %v1060_v10 = vadd.f32 %v2402_v59, %v1059_v28  ;;  %v1397_v22 = vadd.f32 %v1732_v53, %v1108_v20  ;;  %v1061_v32 = vpop.f32.mrb[87].mxu0  ;;  %v1388_v35 = vpop.f32.mrb[87].mxu1  ;;  %v1121_v27 = vadd.f32 %v2402_v59, %v2377_v34 }
 0x1c0   :  { %1484 = vst [vmem:[%s2717_s3 + $0x1a0] sm:$0xff] %v1386_v41  ;;  %v1389_v36 = vadd.f32 %v1388_v35, %v1100_v18  ;;  %v1116_v34 = vadd.f32 %v2402_v59, %v2373_v30 }
 0x1c1   :  { %1474 = vst [vmem:[%s2717_s3 + $0x150] sm:$0xff] %v1346_v31  ;;  %v1349_v14 = vadd.f32 %v2571_v45, %v1060_v10  ;;  %1487 = vst [vmem:[%s2717_s3 + $0x1b8] sm:$0xff] %v1397_v22 }
 0x1c2   :  { %1485 = vst [vmem:[%s2717_s3 + $0x1a8] sm:$0xff] %v1389_v36 }
 0x1c3   :  { %1475 = vst [vmem:[%s2717_s3 + $0x158] sm:$0xff] %v1349_v14 }
 0x1c4   :  { %v1064_v43 = vpop.f32.mrb[88].mxu0  ;;  %v1735_v45 = vpop.f32.mrb[88].mxu1 }
 0x1c5   :  { %v1065_v44 = vadd.f32 %v2402_v59, %v1064_v43  ;;  %v1410_v13 = vadd.f32 %v1735_v45, %v1121_v27  ;;  %v1066_v47 = vpop.f32.mrb[89].mxu0  ;;  %v1401_v0 = vpop.f32.mrb[89].mxu1 }
 0x1c6   :  { %v1402_v40 = vadd.f32 %v1401_v0, %v1113_v39  ;;  %v1067_v51 = vpop.f32.mrb[90].mxu0  ;;  %v1736_v52 = vpop.f32.mrb[90].mxu1 }
 0x1c7   :  { %v1354_v55 = vadd.f32 %v2583_v21, %v1065_v44  ;;  %1490 = vst [vmem:[%s2717_s3 + $0x1d0] sm:$0xff] %v1410_v13  ;;  %v1068_v26 = vadd.f32 %v2402_v59, %v1067_v51  ;;  %v1413_v38 = vadd.f32 %v1736_v52, %v1124_v9  ;;  %v1069_v56 = vpop.f32.mrb[91].mxu0  ;;  %v1404_v60 = vpop.f32.mrb[91].mxu1  ;;  %v1137_v21 = vadd.f32 %v2402_v59, %v2393_v50 }
 0x1c8   :  { %1488 = vst [vmem:[%s2717_s3 + $0x1c0] sm:$0xff] %v1402_v40  ;;  %v1405_v63 = vadd.f32 %v1404_v60, %v1116_v34  ;;  %v1132_v50 = vadd.f32 %v2402_v59, %v2389_v46 }
 0x1c9   :  { %1476 = vst [vmem:[%s2717_s3 + $0x160] sm:$0xff] %v1354_v55  ;;  %v1357_v30 = vadd.f32 %v2588_v16, %v1068_v26  ;;  %1491 = vst [vmem:[%s2717_s3 + $0x1d8] sm:$0xff] %v1413_v38 }
 0x1ca   :  { %1489 = vst [vmem:[%s2717_s3 + $0x1c8] sm:$0xff] %v1405_v63 }
 0x1cb   :  { %1477 = vst [vmem:[%s2717_s3 + $0x168] sm:$0xff] %v1357_v30 }
 0x1cc   :  { %v1072_v7 = vpop.f32.mrb[92].mxu0  ;;  %v1739_v16 = vpop.f32.mrb[92].mxu1 }
 0x1cd   :  { %v1073_v25 = vadd.f32 %v2402_v59, %v1072_v7  ;;  %v1426_v2 = vadd.f32 %v1739_v16, %v1137_v21  ;;  %v1074_v8 = vpop.f32.mrb[93].mxu0  ;;  %v1417_v37 = vpop.f32.mrb[93].mxu1 }
 0x1ce   :  { %v1418_v29 = vadd.f32 %v1417_v37, %v1129_v3  ;;  %v1075_v11 = vpop.f32.mrb[94].mxu0  ;;  %v1740_v58 = vpop.f32.mrb[94].mxu1 }
 0x1cf   :  { %v1362_v48 = vadd.f32 %v2580_v17, %v1073_v25  ;;  %1494 = vst [vmem:[%s2717_s3 + $0x1f0] sm:$0xff] %v1426_v2  ;;  %v1076_v42 = vadd.f32 %v2402_v59, %v1075_v11  ;;  %v1429_v54 = vadd.f32 %v1740_v58, %v1140_v33  ;;  %v1077_v6 = vpop.f32.mrb[95].mxu0  ;;  %v1420_v4 = vpop.f32.mrb[95].mxu1 }
 0x1d0   :  { %1492 = vst [vmem:[%s2717_s3 + $0x1e0] sm:$0xff] %v1418_v29  ;;  %v1421_v12 = vadd.f32 %v1420_v4, %v1132_v50 }
 0x1d1   :  { %1478 = vst [vmem:[%s2717_s3 + $0x170] sm:$0xff] %v1362_v48  ;;  %v1365_v46 = vadd.f32 %v2585_v24, %v1076_v42  ;;  %1495 = vst [vmem:[%s2717_s3 + $0x1f8] sm:$0xff] %v1429_v54 }
 0x1d2   :  { %1493 = vst [vmem:[%s2717_s3 + $0x1e8] sm:$0xff] %v1421_v12 }
 0x1d3   :  { %1479 = vst [vmem:[%s2717_s3 + $0x178] sm:$0xff] %v1365_v46 }

</bundles_post_ra>
